<compile_context>
chip_gen: v7x
topology: tpu7x:2x2x1
jax: 0.10.0
libtpu: 0.0.40
codegen_flags: <defaults>
</compile_context>

<pallas_src>
import functools
import math

import jax
import jax.numpy as jnp
from jax.experimental import pallas as pl
from jax.experimental.pallas import tpu as pltpu

BN_EPS = 1e-5
GN_EPS = 1e-5
BN_SCALE = 1.0 / math.sqrt(1.0 + BN_EPS)   # eval BN with default stats / affine
KS = 3          # kernel_size
SHARE = 8       # share_planes
RADIX = 2


def _row_tile(n, cap=256):
    # Largest row tile <= cap that divides n (multiple of 8): gives >=2 grid steps so
    # the Pallas pipeline overlaps DMA with compute and v7x's 2 TCs both get work,
    # while staying far under every generation's VMEM budget.
    if n <= cap:
        return n
    t = cap - (cap % 8)
    while t >= 8:
        if n % t == 0:
            return t
        t -= 8
    return n


# ----------------------------- Pallas kernels -----------------------------

def _merged_x_kernel(x_ref, wc1_ref, wkc_ref, x1_ref, kc_ref, *, nb, nbc):
    # All branch-independent matmuls on x: the 4 conv1x1(+BN) branches and the
    # key_embed(+BN+ReLU) of "center-only" branches (dilation >= H,W).  x is read
    # from HBM once instead of 4-6 times.
    x = x_ref[...]                                        # (tn, C) bf16
    for j in range(nb):
        y = jnp.dot(x, wc1_ref[j], preferred_element_type=jnp.float32)
        x1_ref[j] = y.astype(jnp.bfloat16)
    for j in range(nbc):
        y = jnp.dot(x, wkc_ref[j], preferred_element_type=jnp.float32)
        kc_ref[j] = jnp.maximum(y, 0.0)


def _merged_x_kernel_nocenter(x_ref, wc1_ref, x1_ref, *, nb):
    x = x_ref[...]
    for j in range(nb):
        y = jnp.dot(x, wc1_ref[j], preferred_element_type=jnp.float32)
        x1_ref[j] = y.astype(jnp.bfloat16)


def merged_x_matmuls(x_flat, wc1, wkc):
    n, c = x_flat.shape
    nb = wc1.shape[0]
    tn = _row_tile(n)
    grid = (n // tn,)
    params = pltpu.CompilerParams(dimension_semantics=("parallel",))
    if wkc is None:
        x1 = pl.pallas_call(
            functools.partial(_merged_x_kernel_nocenter, nb=nb),
            out_shape=jax.ShapeDtypeStruct((nb, n, c), jnp.bfloat16),
            grid_spec=pltpu.PrefetchScalarGridSpec(
                num_scalar_prefetch=0, grid=grid,
                in_specs=[pl.BlockSpec((tn, c), lambda i: (i, 0)),
                          pl.BlockSpec((nb, c, c), lambda i: (0, 0, 0))],
                out_specs=pl.BlockSpec((nb, tn, c), lambda i: (0, i, 0))),
            compiler_params=params,
        )(x_flat, wc1)
        return x1, None
    nbc = wkc.shape[0]
    x1, kc = pl.pallas_call(
        functools.partial(_merged_x_kernel, nb=nb, nbc=nbc),
        out_shape=(jax.ShapeDtypeStruct((nb, n, c), jnp.bfloat16),
                   jax.ShapeDtypeStruct((nbc, n, c), jnp.float32)),
        grid_spec=pltpu.PrefetchScalarGridSpec(
            num_scalar_prefetch=0, grid=grid,
            in_specs=[pl.BlockSpec((tn, c), lambda i: (i, 0)),
                      pl.BlockSpec((nb, c, c), lambda i: (0, 0, 0)),
                      pl.BlockSpec((nbc, c, c), lambda i: (0, 0, 0))],
            out_specs=[pl.BlockSpec((nb, tn, c), lambda i: (0, i, 0)),
                       pl.BlockSpec((nbc, tn, c), lambda i: (0, i, 0))]),
        compiler_params=params,
    )(x_flat, wc1, wkc)
    return x1, kc


def _key_embed_kernel(xs_ref, wk_ref, o_ref):
    # Grouped dilated 3x3 conv + BN + ReLU as a 9-tap accumulating matmul.
    # xs block: (9, tn, C) bf16 taps; wk block: (9, C, C) bf16 (block-diag dense,
    # BN folded).  TODO(synk): for C >> 64 run 4 grouped K=C/4 matmuls instead of
    # the 75%-zero dense weight.
    acc = jnp.dot(xs_ref[0], wk_ref[0], preferred_element_type=jnp.float32)
    for t in range(1, KS * KS):
        acc = acc + jnp.dot(xs_ref[t], wk_ref[t], preferred_element_type=jnp.float32)
    o_ref[0] = jnp.maximum(acc, 0.0)


def key_embed_taps(xs_flat, wk_flat):
    # xs_flat: (nbf*9, N, C) bf16, wk_flat: (nbf*9, C, C) bf16 -> (nbf, N, C) f32
    nbf = wk_flat.shape[0] // (KS * KS)
    n, c = xs_flat.shape[1], xs_flat.shape[2]
    tn = _row_tile(n)
    return pl.pallas_call(
        _key_embed_kernel,
        out_shape=jax.ShapeDtypeStruct((nbf, n, c), jnp.float32),
        grid_spec=pltpu.PrefetchScalarGridSpec(
            num_scalar_prefetch=0, grid=(nbf, n // tn),
            in_specs=[pl.BlockSpec((KS * KS, tn, c), lambda j, i: (j, i, 0)),
                      pl.BlockSpec((KS * KS, c, c), lambda j, i: (j, 0, 0))],
            out_specs=pl.BlockSpec((1, tn, c), lambda j, i: (j, i, 0))),
        compiler_params=pltpu.CompilerParams(
            dimension_semantics=("parallel", "parallel")),
    )(xs_flat, wk_flat)


def _cot_tail_kernel(x_ref, k_ref, w1x_ref, w1k_ref, w2_ref, b2_ref, p_ref,
                     xs_ref, sel_ref, wse1_ref, bse1_ref, w20_ref, b20_ref,
                     w21_ref, b21_ref, o_ref, *, inv_hw):
    # Fused per-(branch, batch) tail of a CotLayer:
    #   embed (split-weight, qk never materialized) -> GroupNorm -> folded BN ->
    #   local_conv (per-pixel dynamic 3x3) -> swish -> SE -> radix softmax -> combine.
    xb = x_ref[0]                                          # (hw, C) bf16
    k = k_ref[0]                                           # (hw, C) f32
    kb = k.astype(jnp.bfloat16)

    # embed: 1x1(2C->C/2)+BN+ReLU then 1x1(C/2->9C/8)+bias
    e1 = jnp.dot(xb, w1x_ref[0], preferred_element_type=jnp.float32)
    e1 = e1 + jnp.dot(kb, w1k_ref[0], preferred_element_type=jnp.float32)
    e1 = jnp.maximum(e1, 0.0)
    wdyn = jnp.dot(e1.astype(jnp.bfloat16), w2_ref[0],
                   preferred_element_type=jnp.float32) + b2_ref[0]     # (hw, 9C/8)

    # GroupNorm over (taps-in-group, H, W); lane order is tap-major so group == lane%8.
    # p_ref is the (9C/8, 9C/8) same-group projection scaled by 1/(hw*9).
    mean_ch = jnp.sum(jnp.dot(wdyn, p_ref[...], preferred_element_type=jnp.float32),
                      axis=0, keepdims=True)
    wctr = wdyn - mean_ch
    var_ch = jnp.sum(jnp.dot(wctr * wctr, p_ref[...],
                             preferred_element_type=jnp.float32),
                     axis=0, keepdims=True)
    wn = wctr * jax.lax.rsqrt(var_ch + GN_EPS) * BN_SCALE   # self.bn scale folded in

    # local_conv: out[:, c] = sum_t x_tap[t][:, c] * wn[:, t*8 + c%8]
    # (sel[t] is a 0/1 selection matrix -> the 8->C lane replication is one MXU dot)
    acc = xs_ref[0].astype(jnp.float32) * jnp.dot(
        wn, sel_ref[0], preferred_element_type=jnp.float32)
    for t in range(1, KS * KS):
        wt = jnp.dot(wn, sel_ref[t], preferred_element_type=jnp.float32)
        acc = acc + xs_ref[t].astype(jnp.float32) * wt
    xl = acc * jax.nn.sigmoid(acc)                          # swish

    # radix-2 split attention (SE head on gap = mean_hw(xl + k))
    gap = jnp.sum(xl + k, axis=0, keepdims=True) * inv_hw   # (1, C)
    s1 = jnp.dot(gap, wse1_ref[0], preferred_element_type=jnp.float32) + bse1_ref[0]
    s1 = jnp.maximum(s1, 0.0)
    l0 = jnp.dot(s1, w20_ref[0], preferred_element_type=jnp.float32) + b20_ref[0]
    l1 = jnp.dot(s1, w21_ref[0], preferred_element_type=jnp.float32) + b21_ref[0]
    m = jnp.maximum(l0, l1)
    a0 = jnp.exp(l0 - m)
    a1 = jnp.exp(l1 - m)
    inv = pl.reciprocal(a0 + a1, approx=True)               # divide on the EUP slot
    o_ref[0] = (xl * (a0 * inv) + k * (a1 * inv)).astype(jnp.bfloat16)


def cot_tail(x3, k4, xs1, sel, gn_proj, w1x, w1k, we2, be2,
             wse1, bse1, w20, b20, w21, b21):
    # x3: (B, hw, C) bf16; k4/out: (nb*B, hw, C); xs1: (nb*B*9, hw, C) bf16.
    # TODO(synk): at much larger H*W the per-block hw rows need splitting vs VMEM.
    b, hw, c = x3.shape
    nb = wse1.shape[0]
    mid = w1x.shape[2]
    e2 = we2.shape[2]
    attn = wse1.shape[2]
    return pl.pallas_call(
        functools.partial(_cot_tail_kernel, inv_hw=1.0 / hw),
        out_shape=jax.ShapeDtypeStruct((nb * b, hw, c), jnp.bfloat16),
        grid_spec=pltpu.PrefetchScalarGridSpec(
            num_scalar_prefetch=0, grid=(nb, b),
            in_specs=[
                pl.BlockSpec((1, hw, c), lambda j, i: (i, 0, 0)),
                pl.BlockSpec((1, hw, c), lambda j, i: (j * b + i, 0, 0)),
                pl.BlockSpec((1, c, mid), lambda j, i: (j, 0, 0)),
                pl.BlockSpec((1, c, mid), lambda j, i: (j, 0, 0)),
                pl.BlockSpec((1, mid, e2), lambda j, i: (j, 0, 0)),
                pl.BlockSpec((1, 1, e2), lambda j, i: (j, 0, 0)),
                pl.BlockSpec((e2, e2), lambda j, i: (0, 0)),
                pl.BlockSpec((KS * KS, hw, c), lambda j, i: (j * b + i, 0, 0)),
                pl.BlockSpec((KS * KS, e2, c), lambda j, i: (0, 0, 0)),
                pl.BlockSpec((1, c, attn), lambda j, i: (j, 0, 0)),
                pl.BlockSpec((1, 1, attn), lambda j, i: (j, 0, 0)),
                pl.BlockSpec((1, attn, c), lambda j, i: (j, 0, 0)),
                pl.BlockSpec((1, 1, c), lambda j, i: (j, 0, 0)),
                pl.BlockSpec((1, attn, c), lambda j, i: (j, 0, 0)),
                pl.BlockSpec((1, 1, c), lambda j, i: (j, 0, 0)),
            ],
            out_specs=pl.BlockSpec((1, hw, c), lambda j, i: (j * b + i, 0, 0))),
        compiler_params=pltpu.CompilerParams(
            dimension_semantics=("parallel", "parallel")),
    )(x3, k4, w1x, w1k, we2, be2, gn_proj, xs1, sel,
      wse1, bse1, w20, b20, w21, b21)


def _fuse_kernel(x_ref, w_ref, o_ref, *, nb):
    # Final 1x1 fuse conv (256->64) + BN + ReLU as a split-weight matmul: the four
    # branch outputs are never concatenated in HBM.
    acc = jnp.dot(x_ref[0], w_ref[0], preferred_element_type=jnp.float32)
    for j in range(1, nb):
        acc = acc + jnp.dot(x_ref[j], w_ref[j], preferred_element_type=jnp.float32)
    o_ref[...] = jnp.maximum(acc, 0.0)


def fuse_conv(bo, w_fuse):
    nb, n, c = bo.shape
    cout = w_fuse.shape[2]
    tn = _row_tile(n)
    return pl.pallas_call(
        functools.partial(_fuse_kernel, nb=nb),
        out_shape=jax.ShapeDtypeStruct((n, cout), jnp.float32),
        grid_spec=pltpu.PrefetchScalarGridSpec(
            num_scalar_prefetch=0, grid=(n // tn,),
            in_specs=[pl.BlockSpec((nb, tn, c), lambda i: (0, i, 0)),
                      pl.BlockSpec((nb, c, cout), lambda i: (0, 0, 0))],
            out_specs=pl.BlockSpec((tn, cout), lambda i: (i, 0))),
        compiler_params=pltpu.CompilerParams(dimension_semantics=("parallel",)),
    )(bo, w_fuse)


# ----------------------------- JAX glue -----------------------------------

def branch_partition(dilations, h, w):
    # Branches with dilation >= H and >= W: every non-center 3x3 tap reads only zero
    # padding, so key_embed degenerates to a grouped 1x1 conv (static-shape gate).
    full = [i for i, d in enumerate(dilations) if not (d >= h and d >= w)]
    center = [i for i, d in enumerate(dilations) if d >= h and d >= w]
    return full, center


def conv3x3_taps(x_nhwc, d):
    # Zero-padded taps of a 3x3 conv with padding == dilation (same spatial size).
    b, h, w, c = x_nhwc.shape
    xp = jnp.pad(x_nhwc, ((0, 0), (d, d), (d, d), (0, 0)))
    taps = [xp[:, kh * d:kh * d + h, kw * d:kw * d + w, :]
            for kh in range(KS) for kw in range(KS)]
    return jnp.stack(taps, axis=0)                 # (9, B, H, W, C)


def grouped_weight_to_dense(wk, groups):
    # wk: (Cout, Cin//groups, 3, 3) torch layout -> per-tap dense (9, Cin, Cout)
    # block-diagonal matrices (acceptable zero-waste at C=64).
    cout, cin_g, kh, kw = wk.shape
    cin = cin_g * groups
    cout_g = cout // groups
    dense = jnp.zeros((kh * kw, cin, cout), jnp.float32)
    for g in range(groups):
        blk = wk[g * cout_g:(g + 1) * cout_g]      # (co_g, ci_g, 3, 3)
        blk = blk.reshape(cout_g, cin_g, kh * kw)
        blk = jnp.transpose(blk, (2, 1, 0))        # (k, ci, co)
        dense = dense.at[:, g * cin_g:(g + 1) * cin_g,
                         g * cout_g:(g + 1) * cout_g].set(blk)
    return dense


def init_cot_params(key, dim):
    attn_chs = max(dim * RADIX // 4, 32)
    keys = jax.random.split(key, 8)

    def kaiming(k, shape, fan_in):
        return jax.random.normal(k, shape, jnp.float32) * math.sqrt(2.0 / fan_in)

    emb2_out = KS * KS * dim // SHARE
    return {
        "wk": kaiming(keys[0], (dim, dim // 4, KS, KS), (dim // 4) * KS * KS),
        "we1": kaiming(keys[1], (2 * dim, dim // 2), 2 * dim),
        "we2": kaiming(keys[2], (dim // 2, emb2_out), dim // 2),
        "be2": jax.random.normal(keys[3], (emb2_out,), jnp.float32) * 0.01,
        "wc1": kaiming(keys[4], (dim, dim), dim),
        "wse1": kaiming(keys[5], (dim, attn_chs), dim),
        "bse1": jax.random.normal(keys[6], (attn_chs,), jnp.float32) * 0.01,
        "wse2": kaiming(keys[7], (attn_chs, RADIX * dim), attn_chs),
        "bse2": jnp.zeros((RADIX * dim,), jnp.float32),
    }


def prepare_acsp_params(raw_branches, wconv1, dilations, h, w):
    # Host-side prep: fold eval-BN scales into weights, permute the embed-2 output
    # channels to tap-major lane order (so GroupNorm groups are lane % 8 and the
    # local-conv weight gather is a contiguous selection), stack per-branch weights
    # in [full..., center...] order, cast MXU operands to bf16.
    dim = raw_branches[0]["wc1"].shape[0]
    g = dim // SHARE
    e2 = KS * KS * dim // SHARE
    full, center = branch_partition(dilations, h, w)
    order = full + center
    bnf = jnp.float32(BN_SCALE)

    # torch embed-2 channel o = wc*9 + tap  ->  lane ch' = tap*8 + wc
    perm = jnp.asarray([(ch % g) * (KS * KS) + (ch // g) for ch in range(e2)],
                       jnp.int32)

    def per_branch(p):
        wk9 = grouped_weight_to_dense(p["wk"], groups=4) * bnf        # (9, C, C)
        we1 = p["we1"] * bnf
        we2p = jnp.take(p["we2"], perm, axis=1)
        be2p = jnp.take(p["be2"], perm, axis=0)
        return dict(
            wk9=wk9.astype(jnp.bfloat16),
            wkc=wk9[(KS * KS) // 2].astype(jnp.bfloat16),             # center tap
            w1x=we1[:dim].astype(jnp.bfloat16),
            w1k=we1[dim:].astype(jnp.bfloat16),
            we2=we2p.astype(jnp.bfloat16),
            be2=be2p.reshape(1, e2).astype(jnp.float32),
            wc1=(p["wc1"] * bnf).astype(jnp.bfloat16),
            wse1=(p["wse1"] * bnf).astype(jnp.float32),
            bse1=(p["bse1"] * bnf).reshape(1, -1).astype(jnp.float32),
            # SE output channel ch -> (c, r) = (ch // radix, ch % radix)
            wse2_r0=p["wse2"][:, 0::2].astype(jnp.float32),
            bse2_r0=p["bse2"][0::2].reshape(1, dim).astype(jnp.float32),
            wse2_r1=p["wse2"][:, 1::2].astype(jnp.float32),
            bse2_r1=p["bse2"][1::2].reshape(1, dim).astype(jnp.float32),
        )

    pb = [per_branch(raw_branches[i]) for i in order]

    def stack(key_name):
        return jnp.stack([q[key_name] for q in pb], axis=0)

    prep = dict(
        wc1=stack("wc1"),
        w1x=stack("w1x"), w1k=stack("w1k"), we2=stack("we2"), be2=stack("be2"),
        wse1=stack("wse1"), bse1=stack("bse1"),
        wse2_r0=stack("wse2_r0"), bse2_r0=stack("bse2_r0"),
        wse2_r1=stack("wse2_r1"), bse2_r1=stack("bse2_r1"),
    )
    if full:
        prep["wk_full"] = jnp.stack(
            [pb[j]["wk9"] for j in range(len(full))], axis=0
        ).reshape(len(full) * KS * KS, dim, dim)
    if center:
        prep["wk_center"] = jnp.stack(
            [pb[len(full) + j]["wkc"] for j in range(len(center))], axis=0)

    # GroupNorm same-group projection: P[c, c'] = 1/(hw*9) if c%8 == c'%8 else 0
    ids = jnp.arange(e2)
    same = (ids[:, None] % g) == (ids[None, :] % g)
    prep["gn_proj"] = same.astype(jnp.float32) / float(h * w * KS * KS)

    # local_conv selection: sel[t, ch, c] = 1 iff ch == t*8 + c%8
    ch_ids = jnp.arange(e2)[:, None]
    c_ids = jnp.arange(dim)[None, :]
    prep["sel"] = jnp.stack(
        [(ch_ids == (t * g + c_ids % g)).astype(jnp.float32) for t in range(KS * KS)],
        axis=0)                                                        # (9, 72, 64)

    # Final 1x1 fuse conv + eval BN, rows reordered to the branch stacking order.
    prep["wfuse"] = jnp.stack(
        [wconv1[i * dim:(i + 1) * dim] * bnf for i in order], axis=0
    ).astype(jnp.bfloat16)
    return prep


def acsp_forward(x_nchw, prep, *, dilations):
    b, c, h, w = x_nchw.shape
    hw = h * w
    n = b * hw
    nb = len(dilations)
    full, center = branch_partition(dilations, h, w)

    x_nhwc = jnp.transpose(x_nchw, (0, 2, 3, 1)).astype(jnp.bfloat16)
    x_flat = x_nhwc.reshape(n, c)

    # 1) merged x-side matmuls: 4x conv1x1(+BN) and center-only key_embeds(+BN+ReLU)
    x1_all, k_center = merged_x_matmuls(x_flat, prep["wc1"], prep.get("wk_center"))

    # 2) key_embed (grouped dilated 3x3 + BN + ReLU) for branches needing all 9 taps
    k_parts = []
    if full:
        xs_full = jnp.stack(
            [conv3x3_taps(x_nhwc, dilations[i]).reshape(KS * KS, n, c) for i in full],
            axis=0).reshape(len(full) * KS * KS, n, c)
        k_parts.append(key_embed_taps(xs_full, prep["wk_full"]))
    if center:
        k_parts.append(k_center)
    k_all = k_parts[0] if len(k_parts) == 1 else jnp.concatenate(k_parts, axis=0)
    k4 = k_all.reshape(nb * b, hw, c)                                  # f32

    # 3x3 taps (dilation 1) of the conv1x1 outputs, for the dynamic local conv
    xp = jnp.pad(x1_all.reshape(nb, b, h, w, c),
                 ((0, 0), (0, 0), (1, 1), (1, 1), (0, 0)))
    taps1 = [xp[:, :, kh:kh + h, kw:kw + w, :]
             for kh in range(KS) for kw in range(KS)]
    xs1 = jnp.stack(taps1, axis=2).reshape(nb * b * KS * KS, hw, c)    # bf16

    # 3) fused per-(branch, batch) tail: embed + GN + local_conv + swish + SE + combine
    x3 = x_flat.reshape(b, hw, c)
    bo = cot_tail(x3, k4, xs1, prep["sel"], prep["gn_proj"],
                  prep["w1x"], prep["w1k"], prep["we2"], prep["be2"],
                  prep["wse1"], prep["bse1"],
                  prep["wse2_r0"], prep["bse2_r0"],
                  prep["wse2_r1"], prep["bse2_r1"])                    # (nb*B, hw, C)

    # 4) fuse 1x1 conv + BN + ReLU (Dropout = identity in eval mode)
    out = fuse_conv(bo.reshape(nb, n, c), prep["wfuse"])               # (N, 64) f32
    return jnp.transpose(out.reshape(b, h, w, -1), (0, 3, 1, 2))       # back to NCHW


# ----------------------------- driver --------------------------------------

if __name__ == "__main__":
    key = jax.random.PRNGKey(0)
    kx, kp = jax.random.split(key)
    inplanes = 64                 # ACSP.conv1 expects 4*inplanes == 256 channels
    B, H, W = 2, 16, 16
    dilations = (1, 12, 24, 36)   # output_stride = 8
    x = jax.random.normal(kx, (B, inplanes, H, W), jnp.float32)

    pkeys = jax.random.split(kp, 5)
    raw = [init_cot_params(pkeys[i], inplanes) for i in range(4)]
    wconv1 = (jax.random.normal(pkeys[4], (4 * inplanes, 64), jnp.float32)
              * math.sqrt(2.0 / (4 * inplanes)))
    prep = prepare_acsp_params(raw, wconv1, dilations, H, W)

    fwd = jax.jit(functools.partial(acsp_forward, dilations=dilations))
    out = fwd(x, prep)
    jax.block_until_ready(out)
    assert out.shape == (B, 64, H, W) and out.dtype == jnp.float32
    print("KERNEL_OK")
</pallas_src>

<mosaic_0001>
module attributes {stable_mosaic.version = 11 : i64} {
  func.func @_key_embed_kernel(%arg0: i32, %arg1: i32, %arg2: memref<9x256x64xbf16, #tpu.memory_space<vmem>>, %arg3: memref<9x64x64xbf16, #tpu.memory_space<vmem>>, %arg4: memref<1x256x64xf32, #tpu.memory_space<vmem>>) attributes {dimension_semantics = [#tpu.dimension_semantics<parallel>, #tpu.dimension_semantics<parallel>], iteration_bounds = array<i64: 2, 2>, scalar_prefetch = 0 : i64, scratch_operands = 0 : i64, tpu.core_type = #tpu.core_type<tc>, window_params = [{transform_indices = @transform_0, window_bounds = array<i64: 9, 256, 64>}, {transform_indices = @transform_1, window_bounds = array<i64: 9, 64, 64>}, {transform_indices = @transform_2, window_bounds = array<i64: 1, 256, 64>}]} {
    %c0 = arith.constant 0 : index
    %c0_0 = arith.constant 0 : index
    %c0_1 = arith.constant 0 : index
    %0 = vector.load %arg2[%c0, %c0_0, %c0_1] : memref<9x256x64xbf16, #tpu.memory_space<vmem>>, vector<1x256x64xbf16>
    %1 = vector.shape_cast %0 : vector<1x256x64xbf16> to vector<256x64xbf16>
    %c0_2 = arith.constant 0 : index
    %c0_3 = arith.constant 0 : index
    %c0_4 = arith.constant 0 : index
    %2 = vector.load %arg3[%c0_2, %c0_3, %c0_4] : memref<9x64x64xbf16, #tpu.memory_space<vmem>>, vector<1x64x64xbf16>
    %3 = vector.shape_cast %2 : vector<1x64x64xbf16> to vector<64x64xbf16>
    %cst = arith.constant dense<0.000000e+00> : vector<256x64xf32>
    %4 = tpu.matmul %1, %3, %cst {dimension_numbers = #tpu.dot_dimension_numbers<[1], [0], [0], [1], [0, 0, 1, 1], [], []>} : vector<256x64xbf16>, vector<64x64xbf16>, vector<256x64xf32> -> vector<256x64xf32>
    %c1 = arith.constant 1 : index
    %c0_5 = arith.constant 0 : index
    %c0_6 = arith.constant 0 : index
    %5 = vector.load %arg2[%c1, %c0_5, %c0_6] : memref<9x256x64xbf16, #tpu.memory_space<vmem>>, vector<1x256x64xbf16>
    %6 = vector.shape_cast %5 : vector<1x256x64xbf16> to vector<256x64xbf16>
    %c1_7 = arith.constant 1 : index
    %c0_8 = arith.constant 0 : index
    %c0_9 = arith.constant 0 : index
    %7 = vector.load %arg3[%c1_7, %c0_8, %c0_9] : memref<9x64x64xbf16, #tpu.memory_space<vmem>>, vector<1x64x64xbf16>
    %8 = vector.shape_cast %7 : vector<1x64x64xbf16> to vector<64x64xbf16>
    %cst_10 = arith.constant dense<0.000000e+00> : vector<256x64xf32>
    %9 = tpu.matmul %6, %8, %cst_10 {dimension_numbers = #tpu.dot_dimension_numbers<[1], [0], [0], [1], [0, 0, 1, 1], [], []>} : vector<256x64xbf16>, vector<64x64xbf16>, vector<256x64xf32> -> vector<256x64xf32>
    %10 = arith.addf %4, %9 : vector<256x64xf32>
    %c2 = arith.constant 2 : index
    %c0_11 = arith.constant 0 : index
    %c0_12 = arith.constant 0 : index
    %11 = vector.load %arg2[%c2, %c0_11, %c0_12] : memref<9x256x64xbf16, #tpu.memory_space<vmem>>, vector<1x256x64xbf16>
    %12 = vector.shape_cast %11 : vector<1x256x64xbf16> to vector<256x64xbf16>
    %c2_13 = arith.constant 2 : index
    %c0_14 = arith.constant 0 : index
    %c0_15 = arith.constant 0 : index
    %13 = vector.load %arg3[%c2_13, %c0_14, %c0_15] : memref<9x64x64xbf16, #tpu.memory_space<vmem>>, vector<1x64x64xbf16>
    %14 = vector.shape_cast %13 : vector<1x64x64xbf16> to vector<64x64xbf16>
    %cst_16 = arith.constant dense<0.000000e+00> : vector<256x64xf32>
    %15 = tpu.matmul %12, %14, %cst_16 {dimension_numbers = #tpu.dot_dimension_numbers<[1], [0], [0], [1], [0, 0, 1, 1], [], []>} : vector<256x64xbf16>, vector<64x64xbf16>, vector<256x64xf32> -> vector<256x64xf32>
    %16 = arith.addf %10, %15 : vector<256x64xf32>
    %c3 = arith.constant 3 : index
    %c0_17 = arith.constant 0 : index
    %c0_18 = arith.constant 0 : index
    %17 = vector.load %arg2[%c3, %c0_17, %c0_18] : memref<9x256x64xbf16, #tpu.memory_space<vmem>>, vector<1x256x64xbf16>
    %18 = vector.shape_cast %17 : vector<1x256x64xbf16> to vector<256x64xbf16>
    %c3_19 = arith.constant 3 : index
    %c0_20 = arith.constant 0 : index
    %c0_21 = arith.constant 0 : index
    %19 = vector.load %arg3[%c3_19, %c0_20, %c0_21] : memref<9x64x64xbf16, #tpu.memory_space<vmem>>, vector<1x64x64xbf16>
    %20 = vector.shape_cast %19 : vector<1x64x64xbf16> to vector<64x64xbf16>
    %cst_22 = arith.constant dense<0.000000e+00> : vector<256x64xf32>
    %21 = tpu.matmul %18, %20, %cst_22 {dimension_numbers = #tpu.dot_dimension_numbers<[1], [0], [0], [1], [0, 0, 1, 1], [], []>} : vector<256x64xbf16>, vector<64x64xbf16>, vector<256x64xf32> -> vector<256x64xf32>
    %22 = arith.addf %16, %21 : vector<256x64xf32>
    %c4 = arith.constant 4 : index
    %c0_23 = arith.constant 0 : index
    %c0_24 = arith.constant 0 : index
    %23 = vector.load %arg2[%c4, %c0_23, %c0_24] : memref<9x256x64xbf16, #tpu.memory_space<vmem>>, vector<1x256x64xbf16>
    %24 = vector.shape_cast %23 : vector<1x256x64xbf16> to vector<256x64xbf16>
    %c4_25 = arith.constant 4 : index
    %c0_26 = arith.constant 0 : index
    %c0_27 = arith.constant 0 : index
    %25 = vector.load %arg3[%c4_25, %c0_26, %c0_27] : memref<9x64x64xbf16, #tpu.memory_space<vmem>>, vector<1x64x64xbf16>
    %26 = vector.shape_cast %25 : vector<1x64x64xbf16> to vector<64x64xbf16>
    %cst_28 = arith.constant dense<0.000000e+00> : vector<256x64xf32>
    %27 = tpu.matmul %24, %26, %cst_28 {dimension_numbers = #tpu.dot_dimension_numbers<[1], [0], [0], [1], [0, 0, 1, 1], [], []>} : vector<256x64xbf16>, vector<64x64xbf16>, vector<256x64xf32> -> vector<256x64xf32>
    %28 = arith.addf %22, %27 : vector<256x64xf32>
    %c5 = arith.constant 5 : index
    %c0_29 = arith.constant 0 : index
    %c0_30 = arith.constant 0 : index
    %29 = vector.load %arg2[%c5, %c0_29, %c0_30] : memref<9x256x64xbf16, #tpu.memory_space<vmem>>, vector<1x256x64xbf16>
    %30 = vector.shape_cast %29 : vector<1x256x64xbf16> to vector<256x64xbf16>
    %c5_31 = arith.constant 5 : index
    %c0_32 = arith.constant 0 : index
    %c0_33 = arith.constant 0 : index
    %31 = vector.load %arg3[%c5_31, %c0_32, %c0_33] : memref<9x64x64xbf16, #tpu.memory_space<vmem>>, vector<1x64x64xbf16>
    %32 = vector.shape_cast %31 : vector<1x64x64xbf16> to vector<64x64xbf16>
    %cst_34 = arith.constant dense<0.000000e+00> : vector<256x64xf32>
    %33 = tpu.matmul %30, %32, %cst_34 {dimension_numbers = #tpu.dot_dimension_numbers<[1], [0], [0], [1], [0, 0, 1, 1], [], []>} : vector<256x64xbf16>, vector<64x64xbf16>, vector<256x64xf32> -> vector<256x64xf32>
    %34 = arith.addf %28, %33 : vector<256x64xf32>
    %c6 = arith.constant 6 : index
    %c0_35 = arith.constant 0 : index
    %c0_36 = arith.constant 0 : index
    %35 = vector.load %arg2[%c6, %c0_35, %c0_36] : memref<9x256x64xbf16, #tpu.memory_space<vmem>>, vector<1x256x64xbf16>
    %36 = vector.shape_cast %35 : vector<1x256x64xbf16> to vector<256x64xbf16>
    %c6_37 = arith.constant 6 : index
    %c0_38 = arith.constant 0 : index
    %c0_39 = arith.constant 0 : index
    %37 = vector.load %arg3[%c6_37, %c0_38, %c0_39] : memref<9x64x64xbf16, #tpu.memory_space<vmem>>, vector<1x64x64xbf16>
    %38 = vector.shape_cast %37 : vector<1x64x64xbf16> to vector<64x64xbf16>
    %cst_40 = arith.constant dense<0.000000e+00> : vector<256x64xf32>
    %39 = tpu.matmul %36, %38, %cst_40 {dimension_numbers = #tpu.dot_dimension_numbers<[1], [0], [0], [1], [0, 0, 1, 1], [], []>} : vector<256x64xbf16>, vector<64x64xbf16>, vector<256x64xf32> -> vector<256x64xf32>
    %40 = arith.addf %34, %39 : vector<256x64xf32>
    %c7 = arith.constant 7 : index
    %c0_41 = arith.constant 0 : index
    %c0_42 = arith.constant 0 : index
    %41 = vector.load %arg2[%c7, %c0_41, %c0_42] : memref<9x256x64xbf16, #tpu.memory_space<vmem>>, vector<1x256x64xbf16>
    %42 = vector.shape_cast %41 : vector<1x256x64xbf16> to vector<256x64xbf16>
    %c7_43 = arith.constant 7 : index
    %c0_44 = arith.constant 0 : index
    %c0_45 = arith.constant 0 : index
    %43 = vector.load %arg3[%c7_43, %c0_44, %c0_45] : memref<9x64x64xbf16, #tpu.memory_space<vmem>>, vector<1x64x64xbf16>
    %44 = vector.shape_cast %43 : vector<1x64x64xbf16> to vector<64x64xbf16>
    %cst_46 = arith.constant dense<0.000000e+00> : vector<256x64xf32>
    %45 = tpu.matmul %42, %44, %cst_46 {dimension_numbers = #tpu.dot_dimension_numbers<[1], [0], [0], [1], [0, 0, 1, 1], [], []>} : vector<256x64xbf16>, vector<64x64xbf16>, vector<256x64xf32> -> vector<256x64xf32>
    %46 = arith.addf %40, %45 : vector<256x64xf32>
    %c8 = arith.constant 8 : index
    %c0_47 = arith.constant 0 : index
    %c0_48 = arith.constant 0 : index
    %47 = vector.load %arg2[%c8, %c0_47, %c0_48] : memref<9x256x64xbf16, #tpu.memory_space<vmem>>, vector<1x256x64xbf16>
    %48 = vector.shape_cast %47 : vector<1x256x64xbf16> to vector<256x64xbf16>
    %c8_49 = arith.constant 8 : index
    %c0_50 = arith.constant 0 : index
    %c0_51 = arith.constant 0 : index
    %49 = vector.load %arg3[%c8_49, %c0_50, %c0_51] : memref<9x64x64xbf16, #tpu.memory_space<vmem>>, vector<1x64x64xbf16>
    %50 = vector.shape_cast %49 : vector<1x64x64xbf16> to vector<64x64xbf16>
    %cst_52 = arith.constant dense<0.000000e+00> : vector<256x64xf32>
    %51 = tpu.matmul %48, %50, %cst_52 {dimension_numbers = #tpu.dot_dimension_numbers<[1], [0], [0], [1], [0, 0, 1, 1], [], []>} : vector<256x64xbf16>, vector<64x64xbf16>, vector<256x64xf32> -> vector<256x64xf32>
    %52 = arith.addf %46, %51 : vector<256x64xf32>
    %cst_53 = arith.constant 0.000000e+00 : f32
    %53 = vector.broadcast %cst_53 : f32 to vector<256x64xf32>
    %54 = arith.maximumf %52, %53 : vector<256x64xf32>
    %c0_54 = arith.constant 0 : index
    %c0_55 = arith.constant 0 : index
    %c0_56 = arith.constant 0 : index
    %55 = vector.load %arg4[%c0_54, %c0_55, %c0_56] : memref<1x256x64xf32, #tpu.memory_space<vmem>>, vector<1x256x64xf32>
    %56 = vector.shape_cast %55 : vector<1x256x64xf32> to vector<256x64xf32>
    %57 = vector.shape_cast %54 : vector<256x64xf32> to vector<1x256x64xf32>
    tpu.vector_store %arg4[%c0_54, %c0_55, %c0_56], %57 {strides = array<i32>} : memref<1x256x64xf32, #tpu.memory_space<vmem>>, vector<1x256x64xf32>,
    return
  }
  func.func @transform_0(%arg0: i32, %arg1: i32) -> (i32, i32, i32) {
    %c0_i32 = arith.constant 0 : i32
    %c0_i32_0 = arith.constant 0 : i32
    return %arg0, %arg1, %c0_i32 : i32, i32, i32
  }
  func.func @transform_1(%arg0: i32, %arg1: i32) -> (i32, i32, i32) {
    %c0_i32 = arith.constant 0 : i32
    %c0_i32_0 = arith.constant 0 : i32
    %c0_i32_1 = arith.constant 0 : i32
    return %arg0, %c0_i32, %c0_i32_0 : i32, i32, i32
  }
  func.func @transform_2(%arg0: i32, %arg1: i32) -> (i32, i32, i32) {
    %c0_i32 = arith.constant 0 : i32
    %c0_i32_0 = arith.constant 0 : i32
    return %arg0, %arg1, %c0_i32 : i32, i32, i32
  }
}

module attributes {stable_mosaic.version = 11 : i64} {
  func.func @_merged_x_kernel(%arg0: i32, %arg1: memref<256x64xbf16, #tpu.memory_space<vmem>>, %arg2: memref<4x64x64xbf16, #tpu.memory_space<vmem>>, %arg3: memref<2x64x64xbf16, #tpu.memory_space<vmem>>, %arg4: memref<4x256x64xbf16, #tpu.memory_space<vmem>>, %arg5: memref<2x256x64xf32, #tpu.memory_space<vmem>>) attributes {dimension_semantics = [#tpu.dimension_semantics<parallel>], iteration_bounds = array<i64: 2>, scalar_prefetch = 0 : i64, scratch_operands = 0 : i64, tpu.core_type = #tpu.core_type<tc>, window_params = [{transform_indices = @transform_0, window_bounds = array<i64: 256, 64>}, {pipeline_mode = #tpu.pipeline_mode<synchronous>, transform_indices = @transform_1, window_bounds = array<i64: 4, 64, 64>}, {pipeline_mode = #tpu.pipeline_mode<synchronous>, transform_indices = @transform_2, window_bounds = array<i64: 2, 64, 64>}, {transform_indices = @transform_3, window_bounds = array<i64: 4, 256, 64>}, {transform_indices = @transform_4, window_bounds = array<i64: 2, 256, 64>}]} {
    %c0 = arith.constant 0 : index
    %c0_0 = arith.constant 0 : index
    %0 = vector.load %arg1[%c0, %c0_0] : memref<256x64xbf16, #tpu.memory_space<vmem>>, vector<256x64xbf16>
    %c0_1 = arith.constant 0 : index
    %c0_2 = arith.constant 0 : index
    %c0_3 = arith.constant 0 : index
    %1 = vector.load %arg2[%c0_1, %c0_2, %c0_3] : memref<4x64x64xbf16, #tpu.memory_space<vmem>>, vector<1x64x64xbf16>
    %2 = vector.shape_cast %1 : vector<1x64x64xbf16> to vector<64x64xbf16>
    %cst = arith.constant dense<0.000000e+00> : vector<256x64xf32>
    %3 = tpu.matmul %0, %2, %cst {dimension_numbers = #tpu.dot_dimension_numbers<[1], [0], [0], [1], [0, 0, 1, 1], [], []>} : vector<256x64xbf16>, vector<64x64xbf16>, vector<256x64xf32> -> vector<256x64xf32>
    %4 = arith.truncf %3 : vector<256x64xf32> to vector<256x64xbf16>
    %c0_4 = arith.constant 0 : index
    %c0_5 = arith.constant 0 : index
    %c0_6 = arith.constant 0 : index
    %5 = vector.load %arg4[%c0_4, %c0_5, %c0_6] : memref<4x256x64xbf16, #tpu.memory_space<vmem>>, vector<1x256x64xbf16>
    %6 = vector.shape_cast %5 : vector<1x256x64xbf16> to vector<256x64xbf16>
    %7 = vector.shape_cast %4 : vector<256x64xbf16> to vector<1x256x64xbf16>
    tpu.vector_store %arg4[%c0_4, %c0_5, %c0_6], %7 {strides = array<i32>} : memref<4x256x64xbf16, #tpu.memory_space<vmem>>, vector<1x256x64xbf16>,
    %c1 = arith.constant 1 : index
    %c0_7 = arith.constant 0 : index
    %c0_8 = arith.constant 0 : index
    %8 = vector.load %arg2[%c1, %c0_7, %c0_8] : memref<4x64x64xbf16, #tpu.memory_space<vmem>>, vector<1x64x64xbf16>
    %9 = vector.shape_cast %8 : vector<1x64x64xbf16> to vector<64x64xbf16>
    %cst_9 = arith.constant dense<0.000000e+00> : vector<256x64xf32>
    %10 = tpu.matmul %0, %9, %cst_9 {dimension_numbers = #tpu.dot_dimension_numbers<[1], [0], [0], [1], [0, 0, 1, 1], [], []>} : vector<256x64xbf16>, vector<64x64xbf16>, vector<256x64xf32> -> vector<256x64xf32>
    %11 = arith.truncf %10 : vector<256x64xf32> to vector<256x64xbf16>
    %c1_10 = arith.constant 1 : index
    %c0_11 = arith.constant 0 : index
    %c0_12 = arith.constant 0 : index
    %12 = vector.load %arg4[%c1_10, %c0_11, %c0_12] : memref<4x256x64xbf16, #tpu.memory_space<vmem>>, vector<1x256x64xbf16>
    %13 = vector.shape_cast %12 : vector<1x256x64xbf16> to vector<256x64xbf16>
    %14 = vector.shape_cast %11 : vector<256x64xbf16> to vector<1x256x64xbf16>
    tpu.vector_store %arg4[%c1_10, %c0_11, %c0_12], %14 {strides = array<i32>} : memref<4x256x64xbf16, #tpu.memory_space<vmem>>, vector<1x256x64xbf16>,
    %c2 = arith.constant 2 : index
    %c0_13 = arith.constant 0 : index
    %c0_14 = arith.constant 0 : index
    %15 = vector.load %arg2[%c2, %c0_13, %c0_14] : memref<4x64x64xbf16, #tpu.memory_space<vmem>>, vector<1x64x64xbf16>
    %16 = vector.shape_cast %15 : vector<1x64x64xbf16> to vector<64x64xbf16>
    %cst_15 = arith.constant dense<0.000000e+00> : vector<256x64xf32>
    %17 = tpu.matmul %0, %16, %cst_15 {dimension_numbers = #tpu.dot_dimension_numbers<[1], [0], [0], [1], [0, 0, 1, 1], [], []>} : vector<256x64xbf16>, vector<64x64xbf16>, vector<256x64xf32> -> vector<256x64xf32>
    %18 = arith.truncf %17 : vector<256x64xf32> to vector<256x64xbf16>
    %c2_16 = arith.constant 2 : index
    %c0_17 = arith.constant 0 : index
    %c0_18 = arith.constant 0 : index
    %19 = vector.load %arg4[%c2_16, %c0_17, %c0_18] : memref<4x256x64xbf16, #tpu.memory_space<vmem>>, vector<1x256x64xbf16>
    %20 = vector.shape_cast %19 : vector<1x256x64xbf16> to vector<256x64xbf16>
    %21 = vector.shape_cast %18 : vector<256x64xbf16> to vector<1x256x64xbf16>
    tpu.vector_store %arg4[%c2_16, %c0_17, %c0_18], %21 {strides = array<i32>} : memref<4x256x64xbf16, #tpu.memory_space<vmem>>, vector<1x256x64xbf16>,
    %c3 = arith.constant 3 : index
    %c0_19 = arith.constant 0 : index
    %c0_20 = arith.constant 0 : index
    %22 = vector.load %arg2[%c3, %c0_19, %c0_20] : memref<4x64x64xbf16, #tpu.memory_space<vmem>>, vector<1x64x64xbf16>
    %23 = vector.shape_cast %22 : vector<1x64x64xbf16> to vector<64x64xbf16>
    %cst_21 = arith.constant dense<0.000000e+00> : vector<256x64xf32>
    %24 = tpu.matmul %0, %23, %cst_21 {dimension_numbers = #tpu.dot_dimension_numbers<[1], [0], [0], [1], [0, 0, 1, 1], [], []>} : vector<256x64xbf16>, vector<64x64xbf16>, vector<256x64xf32> -> vector<256x64xf32>
    %25 = arith.truncf %24 : vector<256x64xf32> to vector<256x64xbf16>
    %c3_22 = arith.constant 3 : index
    %c0_23 = arith.constant 0 : index
    %c0_24 = arith.constant 0 : index
    %26 = vector.load %arg4[%c3_22, %c0_23, %c0_24] : memref<4x256x64xbf16, #tpu.memory_space<vmem>>, vector<1x256x64xbf16>
    %27 = vector.shape_cast %26 : vector<1x256x64xbf16> to vector<256x64xbf16>
    %28 = vector.shape_cast %25 : vector<256x64xbf16> to vector<1x256x64xbf16>
    tpu.vector_store %arg4[%c3_22, %c0_23, %c0_24], %28 {strides = array<i32>} : memref<4x256x64xbf16, #tpu.memory_space<vmem>>, vector<1x256x64xbf16>,
    %c0_25 = arith.constant 0 : index
    %c0_26 = arith.constant 0 : index
    %c0_27 = arith.constant 0 : index
    %29 = vector.load %arg3[%c0_25, %c0_26, %c0_27] : memref<2x64x64xbf16, #tpu.memory_space<vmem>>, vector<1x64x64xbf16>
    %30 = vector.shape_cast %29 : vector<1x64x64xbf16> to vector<64x64xbf16>
    %cst_28 = arith.constant dense<0.000000e+00> : vector<256x64xf32>
    %31 = tpu.matmul %0, %30, %cst_28 {dimension_numbers = #tpu.dot_dimension_numbers<[1], [0], [0], [1], [0, 0, 1, 1], [], []>} : vector<256x64xbf16>, vector<64x64xbf16>, vector<256x64xf32> -> vector<256x64xf32>
    %cst_29 = arith.constant 0.000000e+00 : f32
    %32 = vector.broadcast %cst_29 : f32 to vector<256x64xf32>
    %33 = arith.maximumf %31, %32 : vector<256x64xf32>
    %c0_30 = arith.constant 0 : index
    %c0_31 = arith.constant 0 : index
    %c0_32 = arith.constant 0 : index
    %34 = vector.load %arg5[%c0_30, %c0_31, %c0_32] : memref<2x256x64xf32, #tpu.memory_space<vmem>>, vector<1x256x64xf32>
    %35 = vector.shape_cast %34 : vector<1x256x64xf32> to vector<256x64xf32>
    %36 = vector.shape_cast %33 : vector<256x64xf32> to vector<1x256x64xf32>
    tpu.vector_store %arg5[%c0_30, %c0_31, %c0_32], %36 {strides = array<i32>} : memref<2x256x64xf32, #tpu.memory_space<vmem>>, vector<1x256x64xf32>,
    %c1_33 = arith.constant 1 : index
    %c0_34 = arith.constant 0 : index
    %c0_35 = arith.constant 0 : index
    %37 = vector.load %arg3[%c1_33, %c0_34, %c0_35] : memref<2x64x64xbf16, #tpu.memory_space<vmem>>, vector<1x64x64xbf16>
    %38 = vector.shape_cast %37 : vector<1x64x64xbf16> to vector<64x64xbf16>
    %cst_36 = arith.constant dense<0.000000e+00> : vector<256x64xf32>
    %39 = tpu.matmul %0, %38, %cst_36 {dimension_numbers = #tpu.dot_dimension_numbers<[1], [0], [0], [1], [0, 0, 1, 1], [], []>} : vector<256x64xbf16>, vector<64x64xbf16>, vector<256x64xf32> -> vector<256x64xf32>
    %cst_37 = arith.constant 0.000000e+00 : f32
    %40 = vector.broadcast %cst_37 : f32 to vector<256x64xf32>
    %41 = arith.maximumf %39, %40 : vector<256x64xf32>
    %c1_38 = arith.constant 1 : index
    %c0_39 = arith.constant 0 : index
    %c0_40 = arith.constant 0 : index
    %42 = vector.load %arg5[%c1_38, %c0_39, %c0_40] : memref<2x256x64xf32, #tpu.memory_space<vmem>>, vector<1x256x64xf32>
    %43 = vector.shape_cast %42 : vector<1x256x64xf32> to vector<256x64xf32>
    %44 = vector.shape_cast %41 : vector<256x64xf32> to vector<1x256x64xf32>
    tpu.vector_store %arg5[%c1_38, %c0_39, %c0_40], %44 {strides = array<i32>} : memref<2x256x64xf32, #tpu.memory_space<vmem>>, vector<1x256x64xf32>,
    return
  }
  func.func @transform_0(%arg0: i32) -> (i32, i32) {
    %c0_i32 = arith.constant 0 : i32
    %c0_i32_0 = arith.constant 0 : i32
    return %arg0, %c0_i32 : i32, i32
  }
  func.func @transform_1(%arg0: i32) -> (i32, i32, i32) {
    %c0_i32 = arith.constant 0 : i32
    %c0_i32_0 = arith.constant 0 : i32
    %c0_i32_1 = arith.constant 0 : i32
    %c0_i32_2 = arith.constant 0 : i32
    return %c0_i32, %c0_i32_0, %c0_i32_1 : i32, i32, i32
  }
  func.func @transform_2(%arg0: i32) -> (i32, i32, i32) {
    %c0_i32 = arith.constant 0 : i32
    %c0_i32_0 = arith.constant 0 : i32
    %c0_i32_1 = arith.constant 0 : i32
    %c0_i32_2 = arith.constant 0 : i32
    return %c0_i32, %c0_i32_0, %c0_i32_1 : i32, i32, i32
  }
  func.func @transform_3(%arg0: i32) -> (i32, i32, i32) {
    %c0_i32 = arith.constant 0 : i32
    %c0_i32_0 = arith.constant 0 : i32
    %c0_i32_1 = arith.constant 0 : i32
    return %c0_i32, %arg0, %c0_i32_0 : i32, i32, i32
  }
  func.func @transform_4(%arg0: i32) -> (i32, i32, i32) {
    %c0_i32 = arith.constant 0 : i32
    %c0_i32_0 = arith.constant 0 : i32
    %c0_i32_1 = arith.constant 0 : i32
    return %c0_i32, %arg0, %c0_i32_0 : i32, i32, i32
  }
}

module attributes {stable_mosaic.version = 11 : i64} {
  func.func @_fuse_kernel(%arg0: i32, %arg1: memref<4x256x64xbf16, #tpu.memory_space<vmem>>, %arg2: memref<4x64x64xbf16, #tpu.memory_space<vmem>>, %arg3: memref<256x64xf32, #tpu.memory_space<vmem>>) attributes {dimension_semantics = [#tpu.dimension_semantics<parallel>], iteration_bounds = array<i64: 2>, scalar_prefetch = 0 : i64, scratch_operands = 0 : i64, tpu.core_type = #tpu.core_type<tc>, window_params = [{transform_indices = @transform_0, window_bounds = array<i64: 4, 256, 64>}, {pipeline_mode = #tpu.pipeline_mode<synchronous>, transform_indices = @transform_1, window_bounds = array<i64: 4, 64, 64>}, {transform_indices = @transform_2, window_bounds = array<i64: 256, 64>}]} {
    %c0 = arith.constant 0 : index
    %c0_0 = arith.constant 0 : index
    %c0_1 = arith.constant 0 : index
    %0 = vector.load %arg1[%c0, %c0_0, %c0_1] : memref<4x256x64xbf16, #tpu.memory_space<vmem>>, vector<1x256x64xbf16>
    %1 = vector.shape_cast %0 : vector<1x256x64xbf16> to vector<256x64xbf16>
    %c0_2 = arith.constant 0 : index
    %c0_3 = arith.constant 0 : index
    %c0_4 = arith.constant 0 : index
    %2 = vector.load %arg2[%c0_2, %c0_3, %c0_4] : memref<4x64x64xbf16, #tpu.memory_space<vmem>>, vector<1x64x64xbf16>
    %3 = vector.shape_cast %2 : vector<1x64x64xbf16> to vector<64x64xbf16>
    %cst = arith.constant dense<0.000000e+00> : vector<256x64xf32>
    %4 = tpu.matmul %1, %3, %cst {dimension_numbers = #tpu.dot_dimension_numbers<[1], [0], [0], [1], [0, 0, 1, 1], [], []>} : vector<256x64xbf16>, vector<64x64xbf16>, vector<256x64xf32> -> vector<256x64xf32>
    %c1 = arith.constant 1 : index
    %c0_5 = arith.constant 0 : index
    %c0_6 = arith.constant 0 : index
    %5 = vector.load %arg1[%c1, %c0_5, %c0_6] : memref<4x256x64xbf16, #tpu.memory_space<vmem>>, vector<1x256x64xbf16>
    %6 = vector.shape_cast %5 : vector<1x256x64xbf16> to vector<256x64xbf16>
    %c1_7 = arith.constant 1 : index
    %c0_8 = arith.constant 0 : index
    %c0_9 = arith.constant 0 : index
    %7 = vector.load %arg2[%c1_7, %c0_8, %c0_9] : memref<4x64x64xbf16, #tpu.memory_space<vmem>>, vector<1x64x64xbf16>
    %8 = vector.shape_cast %7 : vector<1x64x64xbf16> to vector<64x64xbf16>
    %cst_10 = arith.constant dense<0.000000e+00> : vector<256x64xf32>
    %9 = tpu.matmul %6, %8, %cst_10 {dimension_numbers = #tpu.dot_dimension_numbers<[1], [0], [0], [1], [0, 0, 1, 1], [], []>} : vector<256x64xbf16>, vector<64x64xbf16>, vector<256x64xf32> -> vector<256x64xf32>
    %10 = arith.addf %4, %9 : vector<256x64xf32>
    %c2 = arith.constant 2 : index
    %c0_11 = arith.constant 0 : index
    %c0_12 = arith.constant 0 : index
    %11 = vector.load %arg1[%c2, %c0_11, %c0_12] : memref<4x256x64xbf16, #tpu.memory_space<vmem>>, vector<1x256x64xbf16>
    %12 = vector.shape_cast %11 : vector<1x256x64xbf16> to vector<256x64xbf16>
    %c2_13 = arith.constant 2 : index
    %c0_14 = arith.constant 0 : index
    %c0_15 = arith.constant 0 : index
    %13 = vector.load %arg2[%c2_13, %c0_14, %c0_15] : memref<4x64x64xbf16, #tpu.memory_space<vmem>>, vector<1x64x64xbf16>
    %14 = vector.shape_cast %13 : vector<1x64x64xbf16> to vector<64x64xbf16>
    %cst_16 = arith.constant dense<0.000000e+00> : vector<256x64xf32>
    %15 = tpu.matmul %12, %14, %cst_16 {dimension_numbers = #tpu.dot_dimension_numbers<[1], [0], [0], [1], [0, 0, 1, 1], [], []>} : vector<256x64xbf16>, vector<64x64xbf16>, vector<256x64xf32> -> vector<256x64xf32>
    %16 = arith.addf %10, %15 : vector<256x64xf32>
    %c3 = arith.constant 3 : index
    %c0_17 = arith.constant 0 : index
    %c0_18 = arith.constant 0 : index
    %17 = vector.load %arg1[%c3, %c0_17, %c0_18] : memref<4x256x64xbf16, #tpu.memory_space<vmem>>, vector<1x256x64xbf16>
    %18 = vector.shape_cast %17 : vector<1x256x64xbf16> to vector<256x64xbf16>
    %c3_19 = arith.constant 3 : index
    %c0_20 = arith.constant 0 : index
    %c0_21 = arith.constant 0 : index
    %19 = vector.load %arg2[%c3_19, %c0_20, %c0_21] : memref<4x64x64xbf16, #tpu.memory_space<vmem>>, vector<1x64x64xbf16>
    %20 = vector.shape_cast %19 : vector<1x64x64xbf16> to vector<64x64xbf16>
    %cst_22 = arith.constant dense<0.000000e+00> : vector<256x64xf32>
    %21 = tpu.matmul %18, %20, %cst_22 {dimension_numbers = #tpu.dot_dimension_numbers<[1], [0], [0], [1], [0, 0, 1, 1], [], []>} : vector<256x64xbf16>, vector<64x64xbf16>, vector<256x64xf32> -> vector<256x64xf32>
    %22 = arith.addf %16, %21 : vector<256x64xf32>
    %cst_23 = arith.constant 0.000000e+00 : f32
    %23 = vector.broadcast %cst_23 : f32 to vector<256x64xf32>
    %24 = arith.maximumf %22, %23 : vector<256x64xf32>
    %c0_24 = arith.constant 0 : index
    %c0_25 = arith.constant 0 : index
    %25 = vector.load %arg3[%c0_24, %c0_25] : memref<256x64xf32, #tpu.memory_space<vmem>>, vector<256x64xf32>
    tpu.vector_store %arg3[%c0_24, %c0_25], %24 {strides = array<i32>} : memref<256x64xf32, #tpu.memory_space<vmem>>, vector<256x64xf32>,
    return
  }
  func.func @transform_0(%arg0: i32) -> (i32, i32, i32) {
    %c0_i32 = arith.constant 0 : i32
    %c0_i32_0 = arith.constant 0 : i32
    %c0_i32_1 = arith.constant 0 : i32
    return %c0_i32, %arg0, %c0_i32_0 : i32, i32, i32
  }
  func.func @transform_1(%arg0: i32) -> (i32, i32, i32) {
    %c0_i32 = arith.constant 0 : i32
    %c0_i32_0 = arith.constant 0 : i32
    %c0_i32_1 = arith.constant 0 : i32
    %c0_i32_2 = arith.constant 0 : i32
    return %c0_i32, %c0_i32_0, %c0_i32_1 : i32, i32, i32
  }
  func.func @transform_2(%arg0: i32) -> (i32, i32) {
    %c0_i32 = arith.constant 0 : i32
    %c0_i32_0 = arith.constant 0 : i32
    return %arg0, %c0_i32 : i32, i32
  }
}

module attributes {stable_mosaic.version = 11 : i64} {
  func.func @_cot_tail_kernel(%arg0: i32, %arg1: i32, %arg2: memref<1x256x64xbf16, #tpu.memory_space<vmem>>, %arg3: memref<1x256x64xf32, #tpu.memory_space<vmem>>, %arg4: memref<1x64x32xbf16, #tpu.memory_space<vmem>>, %arg5: memref<1x64x32xbf16, #tpu.memory_space<vmem>>, %arg6: memref<1x32x72xbf16, #tpu.memory_space<vmem>>, %arg7: memref<1x1x72xf32, #tpu.memory_space<vmem>>, %arg8: memref<72x72xf32, #tpu.memory_space<vmem>>, %arg9: memref<9x256x64xbf16, #tpu.memory_space<vmem>>, %arg10: memref<9x72x64xf32, #tpu.memory_space<vmem>>, %arg11: memref<1x64x32xf32, #tpu.memory_space<vmem>>, %arg12: memref<1x1x32xf32, #tpu.memory_space<vmem>>, %arg13: memref<1x32x64xf32, #tpu.memory_space<vmem>>, %arg14: memref<1x1x64xf32, #tpu.memory_space<vmem>>, %arg15: memref<1x32x64xf32, #tpu.memory_space<vmem>>, %arg16: memref<1x1x64xf32, #tpu.memory_space<vmem>>, %arg17: memref<1x256x64xbf16, #tpu.memory_space<vmem>>) attributes {dimension_semantics = [#tpu.dimension_semantics<parallel>, #tpu.dimension_semantics<parallel>], iteration_bounds = array<i64: 4, 2>, scalar_prefetch = 0 : i64, scratch_operands = 0 : i64, tpu.core_type = #tpu.core_type<tc>, window_params = [{transform_indices = @transform_0, window_bounds = array<i64: 1, 256, 64>}, {transform_indices = @transform_1, window_bounds = array<i64: 1, 256, 64>}, {transform_indices = @transform_2, window_bounds = array<i64: 1, 64, 32>}, {transform_indices = @transform_3, window_bounds = array<i64: 1, 64, 32>}, {transform_indices = @transform_4, window_bounds = array<i64: 1, 32, 72>}, {transform_indices = @transform_5, window_bounds = array<i64: 1, 1, 72>}, {pipeline_mode = #tpu.pipeline_mode<synchronous>, transform_indices = @transform_6, window_bounds = array<i64: 72, 72>}, {transform_indices = @transform_7, window_bounds = array<i64: 9, 256, 64>}, {pipeline_mode = #tpu.pipeline_mode<synchronous>, transform_indices = @transform_8, window_bounds = array<i64: 9, 72, 64>}, {transform_indices = @transform_9, window_bounds = array<i64: 1, 64, 32>}, {transform_indices = @transform_10, window_bounds = array<i64: 1, 1, 32>}, {transform_indices = @transform_11, window_bounds = array<i64: 1, 32, 64>}, {transform_indices = @transform_12, window_bounds = array<i64: 1, 1, 64>}, {transform_indices = @transform_13, window_bounds = array<i64: 1, 32, 64>}, {transform_indices = @transform_14, window_bounds = array<i64: 1, 1, 64>}, {transform_indices = @transform_15, window_bounds = array<i64: 1, 256, 64>}]} {
    %c0 = arith.constant 0 : index
    %c0_0 = arith.constant 0 : index
    %c0_1 = arith.constant 0 : index
    %0 = vector.load %arg2[%c0, %c0_0, %c0_1] : memref<1x256x64xbf16, #tpu.memory_space<vmem>>, vector<1x256x64xbf16>
    %1 = vector.shape_cast %0 : vector<1x256x64xbf16> to vector<256x64xbf16>
    %c0_2 = arith.constant 0 : index
    %c0_3 = arith.constant 0 : index
    %c0_4 = arith.constant 0 : index
    %2 = vector.load %arg3[%c0_2, %c0_3, %c0_4] : memref<1x256x64xf32, #tpu.memory_space<vmem>>, vector<1x256x64xf32>
    %3 = vector.shape_cast %2 : vector<1x256x64xf32> to vector<256x64xf32>
    %4 = arith.truncf %3 : vector<256x64xf32> to vector<256x64xbf16>
    %c0_5 = arith.constant 0 : index
    %c0_6 = arith.constant 0 : index
    %c0_7 = arith.constant 0 : index
    %5 = vector.load %arg4[%c0_5, %c0_6, %c0_7] : memref<1x64x32xbf16, #tpu.memory_space<vmem>>, vector<1x64x32xbf16>
    %6 = vector.shape_cast %5 : vector<1x64x32xbf16> to vector<64x32xbf16>
    %cst = arith.constant dense<0.000000e+00> : vector<256x32xf32>
    %7 = tpu.matmul %1, %6, %cst {dimension_numbers = #tpu.dot_dimension_numbers<[1], [0], [0], [1], [0, 0, 1, 1], [], []>} : vector<256x64xbf16>, vector<64x32xbf16>, vector<256x32xf32> -> vector<256x32xf32>
    %c0_8 = arith.constant 0 : index
    %c0_9 = arith.constant 0 : index
    %c0_10 = arith.constant 0 : index
    %8 = vector.load %arg5[%c0_8, %c0_9, %c0_10] : memref<1x64x32xbf16, #tpu.memory_space<vmem>>, vector<1x64x32xbf16>
    %9 = vector.shape_cast %8 : vector<1x64x32xbf16> to vector<64x32xbf16>
    %cst_11 = arith.constant dense<0.000000e+00> : vector<256x32xf32>
    %10 = tpu.matmul %4, %9, %cst_11 {dimension_numbers = #tpu.dot_dimension_numbers<[1], [0], [0], [1], [0, 0, 1, 1], [], []>} : vector<256x64xbf16>, vector<64x32xbf16>, vector<256x32xf32> -> vector<256x32xf32>
    %11 = arith.addf %7, %10 : vector<256x32xf32>
    %cst_12 = arith.constant 0.000000e+00 : f32
    %12 = vector.broadcast %cst_12 : f32 to vector<256x32xf32>
    %13 = arith.maximumf %11, %12 : vector<256x32xf32>
    %14 = arith.truncf %13 : vector<256x32xf32> to vector<256x32xbf16>
    %c0_13 = arith.constant 0 : index
    %c0_14 = arith.constant 0 : index
    %c0_15 = arith.constant 0 : index
    %15 = vector.load %arg6[%c0_13, %c0_14, %c0_15] : memref<1x32x72xbf16, #tpu.memory_space<vmem>>, vector<1x32x72xbf16>
    %16 = vector.shape_cast %15 : vector<1x32x72xbf16> to vector<32x72xbf16>
    %cst_16 = arith.constant dense<0.000000e+00> : vector<256x72xf32>
    %17 = tpu.matmul %14, %16, %cst_16 {dimension_numbers = #tpu.dot_dimension_numbers<[1], [0], [0], [1], [0, 0, 1, 1], [], []>} : vector<256x32xbf16>, vector<32x72xbf16>, vector<256x72xf32> -> vector<256x72xf32>
    %c0_17 = arith.constant 0 : index
    %c0_18 = arith.constant 0 : index
    %c0_19 = arith.constant 0 : index
    %18 = vector.load %arg7[%c0_17, %c0_18, %c0_19] : memref<1x1x72xf32, #tpu.memory_space<vmem>>, vector<1x1x72xf32>
    %19 = vector.shape_cast %18 : vector<1x1x72xf32> to vector<1x72xf32>
    %20 = vector.broadcast %19 : vector<1x72xf32> to vector<256x72xf32>
    %21 = arith.addf %17, %20 : vector<256x72xf32>
    %c0_20 = arith.constant 0 : index
    %c0_21 = arith.constant 0 : index
    %22 = vector.load %arg8[%c0_20, %c0_21] : memref<72x72xf32, #tpu.memory_space<vmem>>, vector<72x72xf32>
    %cst_22 = arith.constant dense<0.000000e+00> : vector<256x72xf32>
    %23 = tpu.matmul %21, %22, %cst_22 {dimension_numbers = #tpu.dot_dimension_numbers<[1], [0], [0], [1], [0, 0, 1, 1], [], []>} : vector<256x72xf32>, vector<72x72xf32>, vector<256x72xf32> -> vector<256x72xf32>
    %cst_23 = arith.constant dense<0.000000e+00> : vector<72xf32>
    %24 = vector.multi_reduction <add>, %23, %cst_23 [0] : vector<256x72xf32> to vector<72xf32>
    %25 = vector.shape_cast %24 : vector<72xf32> to vector<1x72xf32>
    %26 = vector.broadcast %25 : vector<1x72xf32> to vector<256x72xf32>
    %27 = arith.subf %21, %26 : vector<256x72xf32>
    %28 = arith.mulf %27, %27 : vector<256x72xf32>
    %c0_24 = arith.constant 0 : index
    %c0_25 = arith.constant 0 : index
    %29 = vector.load %arg8[%c0_24, %c0_25] : memref<72x72xf32, #tpu.memory_space<vmem>>, vector<72x72xf32>
    %cst_26 = arith.constant dense<0.000000e+00> : vector<256x72xf32>
    %30 = tpu.matmul %28, %29, %cst_26 {dimension_numbers = #tpu.dot_dimension_numbers<[1], [0], [0], [1], [0, 0, 1, 1], [], []>} : vector<256x72xf32>, vector<72x72xf32>, vector<256x72xf32> -> vector<256x72xf32>
    %cst_27 = arith.constant dense<0.000000e+00> : vector<72xf32>
    %31 = vector.multi_reduction <add>, %30, %cst_27 [0] : vector<256x72xf32> to vector<72xf32>
    %32 = vector.shape_cast %31 : vector<72xf32> to vector<1x72xf32>
    %cst_28 = arith.constant 9.99999974E-6 : f32
    %33 = vector.broadcast %cst_28 : f32 to vector<1x72xf32>
    %34 = arith.addf %32, %33 : vector<1x72xf32>
    %35 = math.rsqrt %34 : vector<1x72xf32>
    %36 = vector.broadcast %35 : vector<1x72xf32> to vector<256x72xf32>
    %37 = arith.mulf %27, %36 : vector<256x72xf32>
    %cst_29 = arith.constant 0.999994993 : f32
    %38 = vector.broadcast %cst_29 : f32 to vector<256x72xf32>
    %39 = arith.mulf %37, %38 : vector<256x72xf32>
    %c0_30 = arith.constant 0 : index
    %c0_31 = arith.constant 0 : index
    %c0_32 = arith.constant 0 : index
    %40 = vector.load %arg9[%c0_30, %c0_31, %c0_32] : memref<9x256x64xbf16, #tpu.memory_space<vmem>>, vector<1x256x64xbf16>
    %41 = vector.shape_cast %40 : vector<1x256x64xbf16> to vector<256x64xbf16>
    %42 = arith.extf %41 : vector<256x64xbf16> to vector<256x64xf32>
    %c0_33 = arith.constant 0 : index
    %c0_34 = arith.constant 0 : index
    %c0_35 = arith.constant 0 : index
    %43 = vector.load %arg10[%c0_33, %c0_34, %c0_35] : memref<9x72x64xf32, #tpu.memory_space<vmem>>, vector<1x72x64xf32>
    %44 = vector.shape_cast %43 : vector<1x72x64xf32> to vector<72x64xf32>
    %cst_36 = arith.constant dense<0.000000e+00> : vector<256x64xf32>
    %45 = tpu.matmul %39, %44, %cst_36 {dimension_numbers = #tpu.dot_dimension_numbers<[1], [0], [0], [1], [0, 0, 1, 1], [], []>} : vector<256x72xf32>, vector<72x64xf32>, vector<256x64xf32> -> vector<256x64xf32>
    %46 = arith.mulf %42, %45 : vector<256x64xf32>
    %c1 = arith.constant 1 : index
    %c0_37 = arith.constant 0 : index
    %c0_38 = arith.constant 0 : index
    %47 = vector.load %arg10[%c1, %c0_37, %c0_38] : memref<9x72x64xf32, #tpu.memory_space<vmem>>, vector<1x72x64xf32>
    %48 = vector.shape_cast %47 : vector<1x72x64xf32> to vector<72x64xf32>
    %cst_39 = arith.constant dense<0.000000e+00> : vector<256x64xf32>
    %49 = tpu.matmul %39, %48, %cst_39 {dimension_numbers = #tpu.dot_dimension_numbers<[1], [0], [0], [1], [0, 0, 1, 1], [], []>} : vector<256x72xf32>, vector<72x64xf32>, vector<256x64xf32> -> vector<256x64xf32>
    %c1_40 = arith.constant 1 : index
    %c0_41 = arith.constant 0 : index
    %c0_42 = arith.constant 0 : index
    %50 = vector.load %arg9[%c1_40, %c0_41, %c0_42] : memref<9x256x64xbf16, #tpu.memory_space<vmem>>, vector<1x256x64xbf16>
    %51 = vector.shape_cast %50 : vector<1x256x64xbf16> to vector<256x64xbf16>
    %52 = arith.extf %51 : vector<256x64xbf16> to vector<256x64xf32>
    %53 = arith.mulf %52, %49 : vector<256x64xf32>
    %54 = arith.addf %46, %53 : vector<256x64xf32>
    %c2 = arith.constant 2 : index
    %c0_43 = arith.constant 0 : index
    %c0_44 = arith.constant 0 : index
    %55 = vector.load %arg10[%c2, %c0_43, %c0_44] : memref<9x72x64xf32, #tpu.memory_space<vmem>>, vector<1x72x64xf32>
    %56 = vector.shape_cast %55 : vector<1x72x64xf32> to vector<72x64xf32>
    %cst_45 = arith.constant dense<0.000000e+00> : vector<256x64xf32>
    %57 = tpu.matmul %39, %56, %cst_45 {dimension_numbers = #tpu.dot_dimension_numbers<[1], [0], [0], [1], [0, 0, 1, 1], [], []>} : vector<256x72xf32>, vector<72x64xf32>, vector<256x64xf32> -> vector<256x64xf32>
    %c2_46 = arith.constant 2 : index
    %c0_47 = arith.constant 0 : index
    %c0_48 = arith.constant 0 : index
    %58 = vector.load %arg9[%c2_46, %c0_47, %c0_48] : memref<9x256x64xbf16, #tpu.memory_space<vmem>>, vector<1x256x64xbf16>
    %59 = vector.shape_cast %58 : vector<1x256x64xbf16> to vector<256x64xbf16>
    %60 = arith.extf %59 : vector<256x64xbf16> to vector<256x64xf32>
    %61 = arith.mulf %60, %57 : vector<256x64xf32>
    %62 = arith.addf %54, %61 : vector<256x64xf32>
    %c3 = arith.constant 3 : index
    %c0_49 = arith.constant 0 : index
    %c0_50 = arith.constant 0 : index
    %63 = vector.load %arg10[%c3, %c0_49, %c0_50] : memref<9x72x64xf32, #tpu.memory_space<vmem>>, vector<1x72x64xf32>
    %64 = vector.shape_cast %63 : vector<1x72x64xf32> to vector<72x64xf32>
    %cst_51 = arith.constant dense<0.000000e+00> : vector<256x64xf32>
    %65 = tpu.matmul %39, %64, %cst_51 {dimension_numbers = #tpu.dot_dimension_numbers<[1], [0], [0], [1], [0, 0, 1, 1], [], []>} : vector<256x72xf32>, vector<72x64xf32>, vector<256x64xf32> -> vector<256x64xf32>
    %c3_52 = arith.constant 3 : index
    %c0_53 = arith.constant 0 : index
    %c0_54 = arith.constant 0 : index
    %66 = vector.load %arg9[%c3_52, %c0_53, %c0_54] : memref<9x256x64xbf16, #tpu.memory_space<vmem>>, vector<1x256x64xbf16>
    %67 = vector.shape_cast %66 : vector<1x256x64xbf16> to vector<256x64xbf16>
    %68 = arith.extf %67 : vector<256x64xbf16> to vector<256x64xf32>
    %69 = arith.mulf %68, %65 : vector<256x64xf32>
    %70 = arith.addf %62, %69 : vector<256x64xf32>
    %c4 = arith.constant 4 : index
    %c0_55 = arith.constant 0 : index
    %c0_56 = arith.constant 0 : index
    %71 = vector.load %arg10[%c4, %c0_55, %c0_56] : memref<9x72x64xf32, #tpu.memory_space<vmem>>, vector<1x72x64xf32>
    %72 = vector.shape_cast %71 : vector<1x72x64xf32> to vector<72x64xf32>
    %cst_57 = arith.constant dense<0.000000e+00> : vector<256x64xf32>
    %73 = tpu.matmul %39, %72, %cst_57 {dimension_numbers = #tpu.dot_dimension_numbers<[1], [0], [0], [1], [0, 0, 1, 1], [], []>} : vector<256x72xf32>, vector<72x64xf32>, vector<256x64xf32> -> vector<256x64xf32>
    %c4_58 = arith.constant 4 : index
    %c0_59 = arith.constant 0 : index
    %c0_60 = arith.constant 0 : index
    %74 = vector.load %arg9[%c4_58, %c0_59, %c0_60] : memref<9x256x64xbf16, #tpu.memory_space<vmem>>, vector<1x256x64xbf16>
    %75 = vector.shape_cast %74 : vector<1x256x64xbf16> to vector<256x64xbf16>
    %76 = arith.extf %75 : vector<256x64xbf16> to vector<256x64xf32>
    %77 = arith.mulf %76, %73 : vector<256x64xf32>
    %78 = arith.addf %70, %77 : vector<256x64xf32>
    %c5 = arith.constant 5 : index
    %c0_61 = arith.constant 0 : index
    %c0_62 = arith.constant 0 : index
    %79 = vector.load %arg10[%c5, %c0_61, %c0_62] : memref<9x72x64xf32, #tpu.memory_space<vmem>>, vector<1x72x64xf32>
    %80 = vector.shape_cast %79 : vector<1x72x64xf32> to vector<72x64xf32>
    %cst_63 = arith.constant dense<0.000000e+00> : vector<256x64xf32>
    %81 = tpu.matmul %39, %80, %cst_63 {dimension_numbers = #tpu.dot_dimension_numbers<[1], [0], [0], [1], [0, 0, 1, 1], [], []>} : vector<256x72xf32>, vector<72x64xf32>, vector<256x64xf32> -> vector<256x64xf32>
    %c5_64 = arith.constant 5 : index
    %c0_65 = arith.constant 0 : index
    %c0_66 = arith.constant 0 : index
    %82 = vector.load %arg9[%c5_64, %c0_65, %c0_66] : memref<9x256x64xbf16, #tpu.memory_space<vmem>>, vector<1x256x64xbf16>
    %83 = vector.shape_cast %82 : vector<1x256x64xbf16> to vector<256x64xbf16>
    %84 = arith.extf %83 : vector<256x64xbf16> to vector<256x64xf32>
    %85 = arith.mulf %84, %81 : vector<256x64xf32>
    %86 = arith.addf %78, %85 : vector<256x64xf32>
    %c6 = arith.constant 6 : index
    %c0_67 = arith.constant 0 : index
    %c0_68 = arith.constant 0 : index
    %87 = vector.load %arg10[%c6, %c0_67, %c0_68] : memref<9x72x64xf32, #tpu.memory_space<vmem>>, vector<1x72x64xf32>
    %88 = vector.shape_cast %87 : vector<1x72x64xf32> to vector<72x64xf32>
    %cst_69 = arith.constant dense<0.000000e+00> : vector<256x64xf32>
    %89 = tpu.matmul %39, %88, %cst_69 {dimension_numbers = #tpu.dot_dimension_numbers<[1], [0], [0], [1], [0, 0, 1, 1], [], []>} : vector<256x72xf32>, vector<72x64xf32>, vector<256x64xf32> -> vector<256x64xf32>
    %c6_70 = arith.constant 6 : index
    %c0_71 = arith.constant 0 : index
    %c0_72 = arith.constant 0 : index
    %90 = vector.load %arg9[%c6_70, %c0_71, %c0_72] : memref<9x256x64xbf16, #tpu.memory_space<vmem>>, vector<1x256x64xbf16>
    %91 = vector.shape_cast %90 : vector<1x256x64xbf16> to vector<256x64xbf16>
    %92 = arith.extf %91 : vector<256x64xbf16> to vector<256x64xf32>
    %93 = arith.mulf %92, %89 : vector<256x64xf32>
    %94 = arith.addf %86, %93 : vector<256x64xf32>
    %c7 = arith.constant 7 : index
    %c0_73 = arith.constant 0 : index
    %c0_74 = arith.constant 0 : index
    %95 = vector.load %arg10[%c7, %c0_73, %c0_74] : memref<9x72x64xf32, #tpu.memory_space<vmem>>, vector<1x72x64xf32>
    %96 = vector.shape_cast %95 : vector<1x72x64xf32> to vector<72x64xf32>
    %cst_75 = arith.constant dense<0.000000e+00> : vector<256x64xf32>
    %97 = tpu.matmul %39, %96, %cst_75 {dimension_numbers = #tpu.dot_dimension_numbers<[1], [0], [0], [1], [0, 0, 1, 1], [], []>} : vector<256x72xf32>, vector<72x64xf32>, vector<256x64xf32> -> vector<256x64xf32>
    %c7_76 = arith.constant 7 : index
    %c0_77 = arith.constant 0 : index
    %c0_78 = arith.constant 0 : index
    %98 = vector.load %arg9[%c7_76, %c0_77, %c0_78] : memref<9x256x64xbf16, #tpu.memory_space<vmem>>, vector<1x256x64xbf16>
    %99 = vector.shape_cast %98 : vector<1x256x64xbf16> to vector<256x64xbf16>
    %100 = arith.extf %99 : vector<256x64xbf16> to vector<256x64xf32>
    %101 = arith.mulf %100, %97 : vector<256x64xf32>
    %102 = arith.addf %94, %101 : vector<256x64xf32>
    %c8 = arith.constant 8 : index
    %c0_79 = arith.constant 0 : index
    %c0_80 = arith.constant 0 : index
    %103 = vector.load %arg10[%c8, %c0_79, %c0_80] : memref<9x72x64xf32, #tpu.memory_space<vmem>>, vector<1x72x64xf32>
    %104 = vector.shape_cast %103 : vector<1x72x64xf32> to vector<72x64xf32>
    %cst_81 = arith.constant dense<0.000000e+00> : vector<256x64xf32>
    %105 = tpu.matmul %39, %104, %cst_81 {dimension_numbers = #tpu.dot_dimension_numbers<[1], [0], [0], [1], [0, 0, 1, 1], [], []>} : vector<256x72xf32>, vector<72x64xf32>, vector<256x64xf32> -> vector<256x64xf32>
    %c8_82 = arith.constant 8 : index
    %c0_83 = arith.constant 0 : index
    %c0_84 = arith.constant 0 : index
    %106 = vector.load %arg9[%c8_82, %c0_83, %c0_84] : memref<9x256x64xbf16, #tpu.memory_space<vmem>>, vector<1x256x64xbf16>
    %107 = vector.shape_cast %106 : vector<1x256x64xbf16> to vector<256x64xbf16>
    %108 = arith.extf %107 : vector<256x64xbf16> to vector<256x64xf32>
    %109 = arith.mulf %108, %105 : vector<256x64xf32>
    %110 = arith.addf %102, %109 : vector<256x64xf32>
    %111 = arith.negf %110 : vector<256x64xf32>
    %112 = math.exp %111 : vector<256x64xf32>
    %cst_85 = arith.constant 1.000000e+00 : f32
    %113 = vector.broadcast %cst_85 : f32 to vector<256x64xf32>
    %114 = arith.addf %113, %112 : vector<256x64xf32>
    %115 = arith.divf %113, %114 : vector<256x64xf32>
    %116 = arith.mulf %110, %115 : vector<256x64xf32>
    %117 = arith.addf %116, %3 : vector<256x64xf32>
    %cst_86 = arith.constant dense<0.000000e+00> : vector<64xf32>
    %118 = vector.multi_reduction <add>, %117, %cst_86 [0] : vector<256x64xf32> to vector<64xf32>
    %119 = vector.shape_cast %118 : vector<64xf32> to vector<1x64xf32>
    %cst_87 = arith.constant 3.906250e-03 : f32
    %120 = vector.broadcast %cst_87 : f32 to vector<1x64xf32>
    %121 = arith.mulf %119, %120 : vector<1x64xf32>
    %c0_88 = arith.constant 0 : index
    %c0_89 = arith.constant 0 : index
    %c0_90 = arith.constant 0 : index
    %122 = vector.load %arg11[%c0_88, %c0_89, %c0_90] : memref<1x64x32xf32, #tpu.memory_space<vmem>>, vector<1x64x32xf32>
    %123 = vector.shape_cast %122 : vector<1x64x32xf32> to vector<64x32xf32>
    %cst_91 = arith.constant dense<0.000000e+00> : vector<1x32xf32>
    %124 = tpu.matmul %121, %123, %cst_91 {dimension_numbers = #tpu.dot_dimension_numbers<[1], [0], [0], [1], [0, 0, 1, 1], [], []>} : vector<1x64xf32>, vector<64x32xf32>, vector<1x32xf32> -> vector<1x32xf32>
    %c0_92 = arith.constant 0 : index
    %c0_93 = arith.constant 0 : index
    %c0_94 = arith.constant 0 : index
    %125 = vector.load %arg12[%c0_92, %c0_93, %c0_94] : memref<1x1x32xf32, #tpu.memory_space<vmem>>, vector<1x1x32xf32>
    %126 = vector.shape_cast %125 : vector<1x1x32xf32> to vector<1x32xf32>
    %127 = arith.addf %124, %126 : vector<1x32xf32>
    %cst_95 = arith.constant 0.000000e+00 : f32
    %128 = vector.broadcast %cst_95 : f32 to vector<1x32xf32>
    %129 = arith.maximumf %127, %128 : vector<1x32xf32>
    %c0_96 = arith.constant 0 : index
    %c0_97 = arith.constant 0 : index
    %c0_98 = arith.constant 0 : index
    %130 = vector.load %arg13[%c0_96, %c0_97, %c0_98] : memref<1x32x64xf32, #tpu.memory_space<vmem>>, vector<1x32x64xf32>
    %131 = vector.shape_cast %130 : vector<1x32x64xf32> to vector<32x64xf32>
    %cst_99 = arith.constant dense<0.000000e+00> : vector<1x64xf32>
    %132 = tpu.matmul %129, %131, %cst_99 {dimension_numbers = #tpu.dot_dimension_numbers<[1], [0], [0], [1], [0, 0, 1, 1], [], []>} : vector<1x32xf32>, vector<32x64xf32>, vector<1x64xf32> -> vector<1x64xf32>
    %c0_100 = arith.constant 0 : index
    %c0_101 = arith.constant 0 : index
    %c0_102 = arith.constant 0 : index
    %133 = vector.load %arg14[%c0_100, %c0_101, %c0_102] : memref<1x1x64xf32, #tpu.memory_space<vmem>>, vector<1x1x64xf32>
    %134 = vector.shape_cast %133 : vector<1x1x64xf32> to vector<1x64xf32>
    %135 = arith.addf %132, %134 : vector<1x64xf32>
    %c0_103 = arith.constant 0 : index
    %c0_104 = arith.constant 0 : index
    %c0_105 = arith.constant 0 : index
    %136 = vector.load %arg15[%c0_103, %c0_104, %c0_105] : memref<1x32x64xf32, #tpu.memory_space<vmem>>, vector<1x32x64xf32>
    %137 = vector.shape_cast %136 : vector<1x32x64xf32> to vector<32x64xf32>
    %cst_106 = arith.constant dense<0.000000e+00> : vector<1x64xf32>
    %138 = tpu.matmul %129, %137, %cst_106 {dimension_numbers = #tpu.dot_dimension_numbers<[1], [0], [0], [1], [0, 0, 1, 1], [], []>} : vector<1x32xf32>, vector<32x64xf32>, vector<1x64xf32> -> vector<1x64xf32>
    %c0_107 = arith.constant 0 : index
    %c0_108 = arith.constant 0 : index
    %c0_109 = arith.constant 0 : index
    %139 = vector.load %arg16[%c0_107, %c0_108, %c0_109] : memref<1x1x64xf32, #tpu.memory_space<vmem>>, vector<1x1x64xf32>
    %140 = vector.shape_cast %139 : vector<1x1x64xf32> to vector<1x64xf32>
    %141 = arith.addf %138, %140 : vector<1x64xf32>
    %142 = arith.maximumf %135, %141 : vector<1x64xf32>
    %143 = arith.subf %135, %142 : vector<1x64xf32>
    %144 = math.exp %143 : vector<1x64xf32>
    %145 = arith.subf %141, %142 : vector<1x64xf32>
    %146 = math.exp %145 : vector<1x64xf32>
    %147 = arith.addf %144, %146 : vector<1x64xf32>
    %148 = tpu.reciprocal %147 {approx = true} : vector<1x64xf32> -> vector<1x64xf32>
    %149 = arith.mulf %144, %148 : vector<1x64xf32>
    %150 = vector.broadcast %149 : vector<1x64xf32> to vector<256x64xf32>
    %151 = arith.mulf %116, %150 : vector<256x64xf32>
    %152 = arith.mulf %146, %148 : vector<1x64xf32>
    %153 = vector.broadcast %152 : vector<1x64xf32> to vector<256x64xf32>
    %154 = arith.mulf %3, %153 : vector<256x64xf32>
    %155 = arith.addf %151, %154 : vector<256x64xf32>
    %156 = arith.truncf %155 : vector<256x64xf32> to vector<256x64xbf16>
    %c0_110 = arith.constant 0 : index
    %c0_111 = arith.constant 0 : index
    %c0_112 = arith.constant 0 : index
    %157 = vector.load %arg17[%c0_110, %c0_111, %c0_112] : memref<1x256x64xbf16, #tpu.memory_space<vmem>>, vector<1x256x64xbf16>
    %158 = vector.shape_cast %157 : vector<1x256x64xbf16> to vector<256x64xbf16>
    %159 = vector.shape_cast %156 : vector<256x64xbf16> to vector<1x256x64xbf16>
    tpu.vector_store %arg17[%c0_110, %c0_111, %c0_112], %159 {strides = array<i32>} : memref<1x256x64xbf16, #tpu.memory_space<vmem>>, vector<1x256x64xbf16>,
    return
  }
  func.func @transform_0(%arg0: i32, %arg1: i32) -> (i32, i32, i32) {
    %c0_i32 = arith.constant 0 : i32
    %c0_i32_0 = arith.constant 0 : i32
    %c0_i32_1 = arith.constant 0 : i32
    return %arg1, %c0_i32, %c0_i32_0 : i32, i32, i32
  }
  func.func @transform_1(%arg0: i32, %arg1: i32) -> (i32, i32, i32) {
    %c2_i32 = arith.constant 2 : i32
    %0 = arith.muli %arg0, %c2_i32 : i32
    %1 = arith.addi %0, %arg1 : i32
    %c0_i32 = arith.constant 0 : i32
    %c0_i32_0 = arith.constant 0 : i32
    %c0_i32_1 = arith.constant 0 : i32
    return %1, %c0_i32, %c0_i32_0 : i32, i32, i32
  }
  func.func @transform_2(%arg0: i32, %arg1: i32) -> (i32, i32, i32) {
    %c0_i32 = arith.constant 0 : i32
    %c0_i32_0 = arith.constant 0 : i32
    %c0_i32_1 = arith.constant 0 : i32
    return %arg0, %c0_i32, %c0_i32_0 : i32, i32, i32
  }
  func.func @transform_3(%arg0: i32, %arg1: i32) -> (i32, i32, i32) {
    %c0_i32 = arith.constant 0 : i32
    %c0_i32_0 = arith.constant 0 : i32
    %c0_i32_1 = arith.constant 0 : i32
    return %arg0, %c0_i32, %c0_i32_0 : i32, i32, i32
  }
  func.func @transform_4(%arg0: i32, %arg1: i32) -> (i32, i32, i32) {
    %c0_i32 = arith.constant 0 : i32
    %c0_i32_0 = arith.constant 0 : i32
    %c0_i32_1 = arith.constant 0 : i32
    return %arg0, %c0_i32, %c0_i32_0 : i32, i32, i32
  }
  func.func @transform_5(%arg0: i32, %arg1: i32) -> (i32, i32, i32) {
    %c0_i32 = arith.constant 0 : i32
    %c0_i32_0 = arith.constant 0 : i32
    %c0_i32_1 = arith.constant 0 : i32
    return %arg0, %c0_i32, %c0_i32_0 : i32, i32, i32
  }
  func.func @transform_6(%arg0: i32, %arg1: i32) -> (i32, i32) {
    %c0_i32 = arith.constant 0 : i32
    %c0_i32_0 = arith.constant 0 : i32
    %c0_i32_1 = arith.constant 0 : i32
    return %c0_i32, %c0_i32_0 : i32, i32
  }
  func.func @transform_7(%arg0: i32, %arg1: i32) -> (i32, i32, i32) {
    %c2_i32 = arith.constant 2 : i32
    %0 = arith.muli %arg0, %c2_i32 : i32
    %1 = arith.addi %0, %arg1 : i32
    %c0_i32 = arith.constant 0 : i32
    %c0_i32_0 = arith.constant 0 : i32
    %c0_i32_1 = arith.constant 0 : i32
    return %1, %c0_i32, %c0_i32_0 : i32, i32, i32
  }
  func.func @transform_8(%arg0: i32, %arg1: i32) -> (i32, i32, i32) {
    %c0_i32 = arith.constant 0 : i32
    %c0_i32_0 = arith.constant 0 : i32
    %c0_i32_1 = arith.constant 0 : i32
    %c0_i32_2 = arith.constant 0 : i32
    return %c0_i32, %c0_i32_0, %c0_i32_1 : i32, i32, i32
  }
  func.func @transform_9(%arg0: i32, %arg1: i32) -> (i32, i32, i32) {
    %c0_i32 = arith.constant 0 : i32
    %c0_i32_0 = arith.constant 0 : i32
    %c0_i32_1 = arith.constant 0 : i32
    return %arg0, %c0_i32, %c0_i32_0 : i32, i32, i32
  }
  func.func @transform_10(%arg0: i32, %arg1: i32) -> (i32, i32, i32) {
    %c0_i32 = arith.constant 0 : i32
    %c0_i32_0 = arith.constant 0 : i32
    %c0_i32_1 = arith.constant 0 : i32
    return %arg0, %c0_i32, %c0_i32_0 : i32, i32, i32
  }
  func.func @transform_11(%arg0: i32, %arg1: i32) -> (i32, i32, i32) {
    %c0_i32 = arith.constant 0 : i32
    %c0_i32_0 = arith.constant 0 : i32
    %c0_i32_1 = arith.constant 0 : i32
    return %arg0, %c0_i32, %c0_i32_0 : i32, i32, i32
  }
  func.func @transform_12(%arg0: i32, %arg1: i32) -> (i32, i32, i32) {
    %c0_i32 = arith.constant 0 : i32
    %c0_i32_0 = arith.constant 0 : i32
    %c0_i32_1 = arith.constant 0 : i32
    return %arg0, %c0_i32, %c0_i32_0 : i32, i32, i32
  }
  func.func @transform_13(%arg0: i32, %arg1: i32) -> (i32, i32, i32) {
    %c0_i32 = arith.constant 0 : i32
    %c0_i32_0 = arith.constant 0 : i32
    %c0_i32_1 = arith.constant 0 : i32
    return %arg0, %c0_i32, %c0_i32_0 : i32, i32, i32
  }
  func.func @transform_14(%arg0: i32, %arg1: i32) -> (i32, i32, i32) {
    %c0_i32 = arith.constant 0 : i32
    %c0_i32_0 = arith.constant 0 : i32
    %c0_i32_1 = arith.constant 0 : i32
    return %arg0, %c0_i32, %c0_i32_0 : i32, i32, i32
  }
  func.func @transform_15(%arg0: i32, %arg1: i32) -> (i32, i32, i32) {
    %c2_i32 = arith.constant 2 : i32
    %0 = arith.muli %arg0, %c2_i32 : i32
    %1 = arith.addi %0, %arg1 : i32
    %c0_i32 = arith.constant 0 : i32
    %c0_i32_0 = arith.constant 0 : i32
    %c0_i32_1 = arith.constant 0 : i32
    return %1, %c0_i32, %c0_i32_0 : i32, i32, i32
  }
}

</mosaic_0001>

<bundles_post_ra>
// kernel: acsp_forward.4
= control target key start
LH: loop header
LB: loop body
LE: loop exit
PB: predicated region body
PF: predicated region fallthrough
CT: control target
= control target key end

     0   :  { %s4273_s15 = smov 0   ;;  %s4275_s16 = smov 0   ;;  %s5295_s0 = inlined_call_operand.vmem [shape: bf16[512,64], index: 0, kind: input, shape index: {}]   ;;  %s5296_s1 = inlined_call_operand.vmem [shape: bf16[4,64,64], index: 1, kind: input, shape index: {}]   ;;  %s5297_s2 = inlined_call_operand.vmem [shape: bf16[2,64,64], index: 2, kind: input, shape index: {}]   ;;  %s5298_s3 = inlined_call_operand.vmem [shape: bf16[4,512,64], index: 3, kind: output, shape index: {0}]   ;;  %s5299_s4 = inlined_call_operand.vmem [shape: f32[2,512,64], index: 4, kind: output, shape index: {1}]  }
   0x1   :  { %s4277_s17 = smov 0  }
   0x2 LB: > { %s4286_s18 = sadd.s32 4294967295, %s4246_s17   ;;  %s4288_s19 = sadd.s32 1, %s4246_s17   ;;  %s4246_s17 = sphi %s4277_s17, %s5303_s17   ;;  %s4242_s16 = sphi %s4275_s16, %s5302_s16   ;;  %s4238_s15 = sphi %s4273_s15, %s5301_s15  }
   0x3   : > { %s87_s20 = ssub.s32 %s4246_s17, %s4288_s19  ;;  %s90_s21 = sadd.s32 1, %s4242_s16 }
   0x4   : > { %p88_p0 = scmp.eq.s32.totalorder %s87_s20, 0  ;;  %p100_p1 = scmp.ne.s32.totalorder %s4242_s16, %s4238_s15 }
   0x5   : > { %p101_p2 = scmp.eq.s32.totalorder %s4286_s18, 1  ;;  %p3233_p3 = scmp.ge.s32.totalorder %s4246_s17, 1 }
   0x6   : > { %s4296_s22 = scalar_select %p88_p0, %s4242_s16, %s90_s21  }
   0x7   : > { %p4298_p4 = por %p101_p2, %p100_p1  ;;  %p166_p5 = scmp.lt.s32.totalorder %s4246_s17, 3 }
   0x9   : > { %p167_p6 = pnand %p3233_p3, %p166_p5 }
   0xa   : > { %v4184_v0 = vld [vmem:[%s5296_s1] sm:$0xff] (!%p167_p6)   ;;  %s3236_s26 = sshll.u32 (!%p167_p6), %s4286_s18, 5  ;;  %v4186_v2 = vld [vmem:[%s5296_s1 + $0x8] sm:$0xff] (!%p167_p6)   ;;  %v4188_v4 = vld [vmem:[%s5296_s1 + $0x10] sm:$0xff] (!%p167_p6)   ;;  %vm348_vm0 = vcmask (!%p167_p6), 523264   ;;  %vm686_vm1 = vcmask (!%p167_p6), 519168  }
   0xb   : > { %170 = sbr.rel (%p167_p6) target bundleno = 483 (0x1e3), region = 32  ;;  %v4185_v1 = vld [vmem:[%s5296_s1 + $0x20] sm:$0xff] (!%p167_p6)   ;;  %p196_p7 = scmp.lt.s32.totalorder (!%p167_p6), %s3236_s26, 63  ;;  %3920 = vmatprep.subr.bf16.mxu0 (!%p167_p6), %v4184_v0  ;;  %v4187_v3 = vld [vmem:[%s5296_s1 + $0x28] sm:$0xff] (!%p167_p6)   ;;  %v4189_v5 = vld [vmem:[%s5296_s1 + $0x30] sm:$0xff] (!%p167_p6)  }
   0xc   : > { %3960 = vmatprep.subr.bf16.mxu1 (!%p167_p6), %v4185_v1  ;;  %3921 = vmatpush3.bf16.msra.mxu0 (!%p167_p6), %v4184_v0  ;;  %v4190_v6 = vld [vmem:[%s5296_s1 + $0x18] sm:$0xff] (!%p167_p6)   ;;  %v4194_v9 = vld [vmem:[%s5296_s1 + $0x40] sm:$0xff] (!%p167_p6)   ;;  %v4200_v13 = vld [vmem:[%s5296_s1 + $0x48] sm:$0xff] (!%p167_p6)  }
   0xd   : > { %3961 = vmatpush3.bf16.msra.mxu1 (!%p167_p6), %v4185_v1  ;;  %3922 = vmatprep.subr.bf16.mxu0 (!%p167_p6), %v4186_v2  ;;  %v4191_v8 = vld [vmem:[%s5296_s1 + $0x38] sm:$0xff] (!%p167_p6)   ;;  %v4195_v10 = vld [vmem:[%s5296_s1 + $0x60] sm:$0xff] (!%p167_p6)   ;;  %v4201_v14 = vld [vmem:[%s5296_s1 + $0x68] sm:$0xff] (!%p167_p6)  }
   0xe   : > { %3962 = vmatprep.subr.bf16.mxu1 (!%p167_p6), %v4187_v3  ;;  %v4206_v17 = vld [vmem:[%s5296_s1 + $0x50] sm:$0xff] (!%p167_p6)   ;;  %v4212_v19 = vld [vmem:[%s5296_s1 + $0x58] sm:$0xff] (!%p167_p6)   ;;  %v4216_v23 = vld [vmem:[%s5297_s2] sm:$0xff] (!%p167_p6)  }
   0xf   : > { %v4207_v18 = vld [vmem:[%s5296_s1 + $0x70] sm:$0xff] (!%p167_p6)   ;;  %v4213_v20 = vld [vmem:[%s5296_s1 + $0x78] sm:$0xff] (!%p167_p6)   ;;  %v4217_v24 = vld [vmem:[%s5297_s2 + $0x20] sm:$0xff] (!%p167_p6)  }
  0x10   : > { %3923 = vmatpush3.bf16.msra.mxu0 (!%p167_p6), %v4186_v2  ;;  %v4218_v34 = vld [vmem:[%s5297_s2 + $0x8] sm:$0xff] (!%p167_p6)   ;;  %v4220_v36 = vld [vmem:[%s5297_s2 + $0x10] sm:$0xff] (!%p167_p6)   ;;  %v4222_v38 = vld [vmem:[%s5297_s2 + $0x18] sm:$0xff] (!%p167_p6)  }
  0x11   : > { %3963 = vmatpush3.bf16.msra.mxu1 (!%p167_p6), %v4187_v3  ;;  %3924 = vmatprep.subr.bf16.mxu0 (!%p167_p6), %v4188_v4  ;;  %v4219_v35 = vld [vmem:[%s5297_s2 + $0x28] sm:$0xff] (!%p167_p6)   ;;  %v4221_v37 = vld [vmem:[%s5297_s2 + $0x30] sm:$0xff] (!%p167_p6)   ;;  %v4223_v39 = vld [vmem:[%s5297_s2 + $0x38] sm:$0xff] (!%p167_p6)  }
  0x12   : > { %s5305_s26 = smov (!%p196_p7, %s3236_s26), 63  ;;  %3964 = vmatprep.subr.bf16.mxu1 %v4189_v5  ;;  %s3798_s17 = sshll.u32 (%p4298_p4), %s4286_s18, 7 }
  0x13   : > { %s3237_s11 = sshll.u32 %s5305_s26, 2  ;;  %s5022_s24 = scalar_lea.vmem (%p4298_p4), %s5298_s3, %s3798_s17 }
  0x14   : > { %s4324_s14 = scalar_lea.vmem %s5295_s0, %s3237_s11  ;;  %3925 = vmatpush3.bf16.msra.mxu0 %v4188_v4  ;;  %s186_s11 = sand.u32 1, %s4238_s15  }
  0x15   : > { %v4330_v7 = vld [vmem:[%s4324_s14] sm:$0xff]   ;;  %3965 = vmatpush3.bf16.msra.mxu1 %v4189_v5  ;;  %3926 = vmatprep.subr.bf16.mxu0 %v4190_v6  ;;  %v4346_v11 = vld [vmem:[%s4324_s14 + $0x8] sm:$0xff]   ;;  %v4349_v12 = vld [vmem:[%s4324_s14 + $0x10] sm:$0xff]   ;;  %s4621_s12 = sshll.u32 %s186_s11, 9 }
  0x16   : > { %3928 = vmatprep.mubr.msk.bf16.mxu0 %vm348_vm0, %v4330_v7  ;;  %3968 = vmatprep.mubr.msk.bf16.mxu1 %vm348_vm0, %v4330_v7  ;;  %v4364_v15 = vld [vmem:[%s4324_s14 + $0x18] sm:$0xff]   ;;  %v4369_v16 = vld [vmem:[%s4324_s14 + $0x20] sm:$0xff]   ;;  %v4392_v21 = vld [vmem:[%s4324_s14 + $0x28] sm:$0xff]   ;;  %s4624_s13 = scalar_lea.vmem [#allocation2], %s4621_s12  ;;  %s4883_s15 = scalar_lea.vmem [#allocation3], %s4621_s12 }
  0x17   : > { %3966 = vmatprep.subr.bf16.mxu1 %v4191_v8  ;;  %v4395_v22 = vld [vmem:[%s4324_s14 + $0x30] sm:$0xff]   ;;  %v4412_v25 = vld [vmem:[%s4324_s14 + $0x38] sm:$0xff]   ;;  %v4415_v26 = vld [vmem:[%s4324_s14 + $0x40] sm:$0xff]  }
  0x18   : > { %3927 = vmatpush3.bf16.msra.mxu0 %v4190_v6  ;;  %v4426_v27 = vld [vmem:[%s4324_s14 + $0x48] sm:$0xff]   ;;  %v4429_v28 = vld [vmem:[%s4324_s14 + $0x50] sm:$0xff]   ;;  %v4440_v29 = vld [vmem:[%s4324_s14 + $0x58] sm:$0xff]  }
  0x19   : > { %3967 = vmatpush3.bf16.msra.mxu1 %v4191_v8  ;;  %4000 = vmatprep.subr.bf16.mxu0 %v4194_v9  ;;  %v4443_v30 = vld [vmem:[%s4324_s14 + $0x60] sm:$0xff]   ;;  %v4454_v31 = vld [vmem:[%s4324_s14 + $0x68] sm:$0xff]   ;;  %v4457_v32 = vld [vmem:[%s4324_s14 + $0x70] sm:$0xff]  }
  0x1a   : > { %4040 = vmatprep.subr.bf16.mxu1 %v4195_v10  ;;  %v4468_v33 = vld [vmem:[%s4324_s14 + $0x78] sm:$0xff]  }
  0x1b   : > { %3929 = vmatmul.mubr.msk.bf16.vlgmr.msra.gmra.mrb[0].mxu0 %vm348_vm0, %v4346_v11 }
  0x1c   : > { %3969 = vmatmul.mubr.msk.bf16.vlgmr.msra.gmra.mrb[0].mxu1 %vm348_vm0, %v4346_v11  ;;  %4001 = vmatpush3.bf16.msra.mxu0 %v4194_v9 }
  0x1d   : > { %4041 = vmatpush3.bf16.msra.mxu1 %v4195_v10  ;;  %3932 = vmatprep.mubr.msk.bf16.mxu0 %vm348_vm0, %v4349_v12 }
  0x1e   : > { %3972 = vmatprep.mubr.msk.bf16.mxu1 %vm348_vm0, %v4349_v12  ;;  %4002 = vmatprep.subr.bf16.mxu0 %v4200_v13 }
  0x1f   : > { %4042 = vmatprep.subr.bf16.mxu1 %v4201_v14 }
  0x20   : > { %4003 = vmatpush3.bf16.msra.mxu0 %v4200_v13 }
  0x21   : > { %4043 = vmatpush3.bf16.msra.mxu1 %v4201_v14  ;;  %4004 = vmatprep.subr.bf16.mxu0 %v4206_v17 }
  0x22   : > { %4044 = vmatprep.subr.bf16.mxu1 %v4207_v18 }
  0x23   : > { %3933 = vmatmul.mubr.msk.bf16.gmra.mrb[4].mxu0 %vm348_vm0, %v4364_v15 }
  0x24   : > { %3973 = vmatmul.mubr.msk.bf16.gmra.mrb[4].mxu1 %vm348_vm0, %v4364_v15  ;;  %3936 = vmatprep.mubr.msk.bf16.mxu0 %vm348_vm0, %v4369_v16 }
  0x25   : > { %3976 = vmatprep.mubr.msk.bf16.mxu1 %vm348_vm0, %v4369_v16  ;;  %4005 = vmatpush3.bf16.msra.mxu0 %v4206_v17 }
  0x26   : > { %4045 = vmatpush3.bf16.msra.mxu1 %v4207_v18  ;;  %4006 = vmatprep.subr.bf16.mxu0 %v4212_v19 }
  0x27   : > { %4046 = vmatprep.subr.bf16.mxu1 %v4213_v20 }
  0x29   : > { %4007 = vmatpush3.bf16.msra.mxu0 %v4212_v19 }
  0x2a   : > { %4047 = vmatpush3.bf16.msra.mxu1 %v4213_v20  ;;  %4080 = vmatprep.subr.bf16.mxu0 %v4216_v23 }
  0x2b   : > { %3937 = vmatmul.mubr.msk.bf16.gmra.mrb[8].mxu0 %vm348_vm0, %v4392_v21  ;;  %4120 = vmatprep.subr.bf16.mxu1 %v4217_v24 }
  0x2c   : > { %3977 = vmatmul.mubr.msk.bf16.gmra.mrb[8].mxu1 %vm348_vm0, %v4392_v21  ;;  %3940 = vmatprep.mubr.msk.bf16.mxu0 %vm348_vm0, %v4395_v22 }
  0x2d   : > { %3980 = vmatprep.mubr.msk.bf16.mxu1 %vm348_vm0, %v4395_v22 }
  0x33   : > { %3941 = vmatmul.mubr.msk.bf16.gmra.mrb[12].mxu0 %vm348_vm0, %v4412_v25 }
  0x34   : > { %3981 = vmatmul.mubr.msk.bf16.gmra.mrb[12].mxu1 %vm348_vm0, %v4412_v25  ;;  %3944 = vmatprep.mubr.msk.bf16.mxu0 %vm348_vm0, %v4415_v26 }
  0x35   : > { %3984 = vmatprep.mubr.msk.bf16.mxu1 %vm348_vm0, %v4415_v26 }
  0x3b   : > { %3945 = vmatmul.mubr.msk.bf16.gmra.mrb[16].mxu0 %vm348_vm0, %v4426_v27 }
  0x3c   : > { %3985 = vmatmul.mubr.msk.bf16.gmra.mrb[16].mxu1 %vm348_vm0, %v4426_v27  ;;  %3948 = vmatprep.mubr.msk.bf16.mxu0 %vm348_vm0, %v4429_v28 }
  0x3d   : > { %3988 = vmatprep.mubr.msk.bf16.mxu1 %vm348_vm0, %v4429_v28 }
  0x43   : > { %3949 = vmatmul.mubr.msk.bf16.gmra.mrb[20].mxu0 %vm348_vm0, %v4440_v29 }
  0x44   : > { %3989 = vmatmul.mubr.msk.bf16.gmra.mrb[20].mxu1 %vm348_vm0, %v4440_v29  ;;  %3952 = vmatprep.mubr.msk.bf16.mxu0 %vm348_vm0, %v4443_v30 }
  0x45   : > { %3992 = vmatprep.mubr.msk.bf16.mxu1 %vm348_vm0, %v4443_v30 }
  0x4b   : > { %3953 = vmatmul.mubr.msk.bf16.gmra.mrb[24].mxu0 %vm348_vm0, %v4454_v31 }
  0x4c   : > { %3993 = vmatmul.mubr.msk.bf16.gmra.mrb[24].mxu1 %vm348_vm0, %v4454_v31  ;;  %3956 = vmatprep.mubr.msk.bf16.mxu0 %vm348_vm0, %v4457_v32 }
  0x4d   : > { %3996 = vmatprep.mubr.msk.bf16.mxu1 %vm348_vm0, %v4457_v32 }
  0x53   : > { %3957 = vmatmul.mubr.msk.bf16.gmra.mrb[28].mxu0 %vm348_vm0, %v4468_v33 }
  0x54   : > { %3997 = vmatmul.mubr.msk.bf16.gmra.mrb[28].mxu1 %vm348_vm0, %v4468_v33  ;;  %4008 = vmatprep.mubr.msk.bf16.mxu0 %vm348_vm0, %v4330_v7 }
  0x55   : > { %4048 = vmatprep.mubr.msk.bf16.mxu1 %vm348_vm0, %v4330_v7 }
  0x5b   : > { %4009 = vmatmul.mubr.msk.bf16.vlgmr.msra.gmra.mrb[32].mxu0 %vm348_vm0, %v4346_v11 }
  0x5c   : > { %4049 = vmatmul.mubr.msk.bf16.vlgmr.msra.gmra.mrb[32].mxu1 %vm348_vm0, %v4346_v11  ;;  %4081 = vmatpush3.bf16.msra.mxu0 %v4216_v23 }
  0x5d   : > { %4121 = vmatpush3.bf16.msra.mxu1 %v4217_v24  ;;  %4012 = vmatprep.mubr.msk.bf16.mxu0 %vm348_vm0, %v4349_v12 }
  0x5e   : > { %4052 = vmatprep.mubr.msk.bf16.mxu1 %vm348_vm0, %v4349_v12  ;;  %4082 = vmatprep.subr.bf16.mxu0 %v4218_v34 }
  0x5f   : > { %4122 = vmatprep.subr.bf16.mxu1 %v4219_v35 }
  0x60   : > { %4083 = vmatpush3.bf16.msra.mxu0 %v4218_v34 }
  0x61   : > { %4123 = vmatpush3.bf16.msra.mxu1 %v4219_v35  ;;  %4084 = vmatprep.subr.bf16.mxu0 %v4220_v36 }
  0x62   : > { %4124 = vmatprep.subr.bf16.mxu1 %v4221_v37 }
  0x63   : > { %4013 = vmatmul.mubr.msk.bf16.gmra.mrb[36].mxu0 %vm348_vm0, %v4364_v15 }
  0x64   : > { %4053 = vmatmul.mubr.msk.bf16.gmra.mrb[36].mxu1 %vm348_vm0, %v4364_v15  ;;  %4016 = vmatprep.mubr.msk.bf16.mxu0 %vm348_vm0, %v4369_v16 }
  0x65   : > { %4056 = vmatprep.mubr.msk.bf16.mxu1 %vm348_vm0, %v4369_v16  ;;  %4085 = vmatpush3.bf16.msra.mxu0 %v4220_v36 }
  0x66   : > { %4125 = vmatpush3.bf16.msra.mxu1 %v4221_v37  ;;  %4086 = vmatprep.subr.bf16.mxu0 %v4222_v38 }
  0x67   : > { %4126 = vmatprep.subr.bf16.mxu1 %v4223_v39 }
  0x69   : > { %4087 = vmatpush3.bf16.msra.mxu0 %v4222_v38 }
  0x6a   : > { %4127 = vmatpush3.bf16.msra.mxu1 %v4223_v39 }
  0x6b   : > { %4017 = vmatmul.mubr.msk.bf16.gmra.mrb[40].mxu0 %vm348_vm0, %v4392_v21 }
  0x6c   : > { %4057 = vmatmul.mubr.msk.bf16.gmra.mrb[40].mxu1 %vm348_vm0, %v4392_v21  ;;  %4020 = vmatprep.mubr.msk.bf16.mxu0 %vm348_vm0, %v4395_v22 }
  0x6d   : > { %4060 = vmatprep.mubr.msk.bf16.mxu1 %vm348_vm0, %v4395_v22 }
  0x73   : > { %4021 = vmatmul.mubr.msk.bf16.gmra.mrb[44].mxu0 %vm348_vm0, %v4412_v25 }
  0x74   : > { %4061 = vmatmul.mubr.msk.bf16.gmra.mrb[44].mxu1 %vm348_vm0, %v4412_v25  ;;  %4024 = vmatprep.mubr.msk.bf16.mxu0 %vm348_vm0, %v4415_v26 }
  0x75   : > { %4064 = vmatprep.mubr.msk.bf16.mxu1 %vm348_vm0, %v4415_v26 }
  0x7b   : > { %4025 = vmatmul.mubr.msk.bf16.gmra.mrb[48].mxu0 %vm348_vm0, %v4426_v27 }
  0x7c   : > { %4065 = vmatmul.mubr.msk.bf16.gmra.mrb[48].mxu1 %vm348_vm0, %v4426_v27  ;;  %4028 = vmatprep.mubr.msk.bf16.mxu0 %vm348_vm0, %v4429_v28 }
  0x7d   : > { %4068 = vmatprep.mubr.msk.bf16.mxu1 %vm348_vm0, %v4429_v28 }
  0x83   : > { %4029 = vmatmul.mubr.msk.bf16.gmra.mrb[52].mxu0 %vm348_vm0, %v4440_v29 }
  0x84   : > { %4069 = vmatmul.mubr.msk.bf16.gmra.mrb[52].mxu1 %vm348_vm0, %v4440_v29  ;;  %4032 = vmatprep.mubr.msk.bf16.mxu0 %vm348_vm0, %v4443_v30 }
  0x85   : > { %4072 = vmatprep.mubr.msk.bf16.mxu1 %vm348_vm0, %v4443_v30 }
  0x8b   : > { %4033 = vmatmul.mubr.msk.bf16.gmra.mrb[56].mxu0 %vm348_vm0, %v4454_v31 }
  0x8c   : > { %4073 = vmatmul.mubr.msk.bf16.gmra.mrb[56].mxu1 %vm348_vm0, %v4454_v31  ;;  %4036 = vmatprep.mubr.msk.bf16.mxu0 %vm348_vm0, %v4457_v32 }
  0x8d   : > { %4076 = vmatprep.mubr.msk.bf16.mxu1 %vm348_vm0, %v4457_v32 }
  0x93   : > { %4037 = vmatmul.mubr.msk.bf16.gmra.mrb[60].mxu0 %vm348_vm0, %v4468_v33 }
  0x94   : > { %4077 = vmatmul.mubr.msk.bf16.gmra.mrb[60].mxu1 %vm348_vm0, %v4468_v33  ;;  %4088 = vmatprep.mubr.msk.bf16.mxu0 %vm348_vm0, %v4330_v7 }
  0x95   : > { %4128 = vmatprep.mubr.msk.bf16.mxu1 %vm348_vm0, %v4330_v7 }
  0x9b   : > { %4089 = vmatmul.mubr.msk.bf16.vlgmr.msra.gmra.mrb[64].mxu0 %vm348_vm0, %v4346_v11 }
  0x9c   : > { %4129 = vmatmul.mubr.msk.bf16.vlgmr.msra.gmra.mrb[64].mxu1 %vm348_vm0, %v4346_v11  ;;  %4092 = vmatprep.mubr.msk.bf16.mxu0 %vm348_vm0, %v4349_v12 }
  0x9d   : > { %4132 = vmatprep.mubr.msk.bf16.mxu1 %vm348_vm0, %v4349_v12 }
  0xa3   : > { %4093 = vmatmul.mubr.msk.bf16.gmra.mrb[68].mxu0 %vm348_vm0, %v4364_v15 }
  0xa4   : > { %4133 = vmatmul.mubr.msk.bf16.gmra.mrb[68].mxu1 %vm348_vm0, %v4364_v15  ;;  %4096 = vmatprep.mubr.msk.bf16.mxu0 %vm348_vm0, %v4369_v16 }
  0xa5   : > { %4136 = vmatprep.mubr.msk.bf16.mxu1 %vm348_vm0, %v4369_v16 }
  0xab   : > { %4097 = vmatmul.mubr.msk.bf16.gmra.mrb[72].mxu0 %vm348_vm0, %v4392_v21 }
  0xac   : > { %4137 = vmatmul.mubr.msk.bf16.gmra.mrb[72].mxu1 %vm348_vm0, %v4392_v21  ;;  %4100 = vmatprep.mubr.msk.bf16.mxu0 %vm348_vm0, %v4395_v22 }
  0xad   : > { %4140 = vmatprep.mubr.msk.bf16.mxu1 %vm348_vm0, %v4395_v22 }
  0xb3   : > { %4101 = vmatmul.mubr.msk.bf16.gmra.mrb[76].mxu0 %vm348_vm0, %v4412_v25 }
  0xb4   : > { %4141 = vmatmul.mubr.msk.bf16.gmra.mrb[76].mxu1 %vm348_vm0, %v4412_v25  ;;  %4104 = vmatprep.mubr.msk.bf16.mxu0 %vm348_vm0, %v4415_v26 }
  0xb5   : > { %4144 = vmatprep.mubr.msk.bf16.mxu1 %vm348_vm0, %v4415_v26 }
  0xbb   : > { %4105 = vmatmul.mubr.msk.bf16.gmra.mrb[80].mxu0 %vm348_vm0, %v4426_v27 }
  0xbc   : > { %4145 = vmatmul.mubr.msk.bf16.gmra.mrb[80].mxu1 %vm348_vm0, %v4426_v27  ;;  %4108 = vmatprep.mubr.msk.bf16.mxu0 %vm348_vm0, %v4429_v28 }
  0xbd   : > { %4148 = vmatprep.mubr.msk.bf16.mxu1 %vm348_vm0, %v4429_v28 }
  0xc3   : > { %4109 = vmatmul.mubr.msk.bf16.gmra.mrb[84].mxu0 %vm348_vm0, %v4440_v29 }
  0xc4   : > { %4149 = vmatmul.mubr.msk.bf16.gmra.mrb[84].mxu1 %vm348_vm0, %v4440_v29  ;;  %4112 = vmatprep.mubr.msk.bf16.mxu0 %vm348_vm0, %v4443_v30 }
  0xc5   : > { %4152 = vmatprep.mubr.msk.bf16.mxu1 %vm348_vm0, %v4443_v30 }
  0xcb   : > { %4113 = vmatmul.mubr.msk.bf16.gmra.mrb[88].mxu0 %vm348_vm0, %v4454_v31 }
  0xcc   : > { %4153 = vmatmul.mubr.msk.bf16.gmra.mrb[88].mxu1 %vm348_vm0, %v4454_v31  ;;  %4116 = vmatprep.mubr.msk.bf16.mxu0 %vm348_vm0, %v4457_v32 }
  0xcd   : > { %4156 = vmatprep.mubr.msk.bf16.mxu1 %vm348_vm0, %v4457_v32 }
  0xd3   : > { %4117 = vmatmul.mubr.msk.bf16.gmra.mrb[92].mxu0 %vm348_vm0, %v4468_v33 }
  0xd4   : > { %4157 = vmatmul.mubr.msk.bf16.gmra.mrb[92].mxu1 %vm348_vm0, %v4468_v33 }
  0xee   : > { %v3930_v40 = vpop.f32.mrb[0].mxu0 }
  0xef   : > { %v3672_v41 = vpack.c.bf16 %v3930_v40, %v3930_v40  ;;  %v3970_v42 = vpop.f32.mrb[0].mxu1  ;;  %v431_v43 = vpop.f32.mrb[1].mxu0 }
  0xf0   : > { %v3704_v44 = vpack.c.bf16 %v3970_v42, %v3970_v42  ;;  %v3670_v45 = vpack.c.bf16 %v431_v43, %v431_v43  ;;  %v786_v46 = vpop.f32.mrb[1].mxu1  ;;  %v3931_v47 = vpop.f32.mrb[2].mxu0 }
  0xf1   : > { %689 = vst.msk [vmem:[%s4624_s13 + $0x8] sm:$0xf] %vm686_vm1, %v3672_v41  ;;  %v3702_v48 = vpack.c.bf16 %v786_v46, %v786_v46  ;;  %v3673_v49 = vpack.c.bf16 %v3931_v47, %v3931_v47  ;;  %v3971_v50 = vpop.f32.mrb[2].mxu1  ;;  %v434_v51 = vpop.f32.mrb[3].mxu0 }
  0xf2   : > { %3368 = vst.msk [vmem:[%s4624_s13 + $0x88] sm:$0xf] %vm686_vm1, %v3704_v44  ;;  %687 = vst.msk [vmem:[%s4624_s13] sm:$0xf] %vm686_vm1, %v3670_v45  ;;  %v3705_v52 = vpack.c.bf16 %v3971_v50, %v3971_v50  ;;  %v3671_v53 = vpack.c.bf16 %v434_v51, %v434_v51  ;;  %v789_v54 = vpop.f32.mrb[3].mxu1 }
  0xf3   : > { %3366 = vst.msk [vmem:[%s4624_s13 + $0x80] sm:$0xf] %vm686_vm1, %v3702_v48  ;;  %690 = vst.msk [vmem:[%s4624_s13 + $0xc] sm:$0xf] %vm686_vm1, %v3673_v49  ;;  %v3703_v55 = vpack.c.bf16 %v789_v54, %v789_v54 }
  0xf4   : > { %3369 = vst.msk [vmem:[%s4624_s13 + $0x8c] sm:$0xf] %vm686_vm1, %v3705_v52  ;;  %688 = vst.msk [vmem:[%s4624_s13 + $0x4] sm:$0xf] %vm686_vm1, %v3671_v53 }
  0xf5   : > { %3367 = vst.msk [vmem:[%s4624_s13 + $0x84] sm:$0xf] %vm686_vm1, %v3703_v55 }
  0xf6   : > { %v3934_v56 = vpop.f32.mrb[4].mxu0 }
  0xf7   : > { %v3676_v57 = vpack.c.bf16 %v3934_v56, %v3934_v56  ;;  %v3974_v58 = vpop.f32.mrb[4].mxu1  ;;  %v447_v59 = vpop.f32.mrb[5].mxu0 }
  0xf8   : > { %v3708_v60 = vpack.c.bf16 %v3974_v58, %v3974_v58  ;;  %v3674_v61 = vpack.c.bf16 %v447_v59, %v447_v59  ;;  %v802_v62 = vpop.f32.mrb[5].mxu1  ;;  %v3935_v63 = vpop.f32.mrb[6].mxu0 }
  0xf9   : > { %693 = vst.msk [vmem:[%s4624_s13 + $0x18] sm:$0xf] %vm686_vm1, %v3676_v57  ;;  %v3706_v0 = vpack.c.bf16 %v802_v62, %v802_v62  ;;  %v3677_v1 = vpack.c.bf16 %v3935_v63, %v3935_v63  ;;  %v3975_v2 = vpop.f32.mrb[6].mxu1  ;;  %v450_v3 = vpop.f32.mrb[7].mxu0 }
  0xfa   : > { %3372 = vst.msk [vmem:[%s4624_s13 + $0x98] sm:$0xf] %vm686_vm1, %v3708_v60  ;;  %691 = vst.msk [vmem:[%s4624_s13 + $0x10] sm:$0xf] %vm686_vm1, %v3674_v61  ;;  %v3709_v4 = vpack.c.bf16 %v3975_v2, %v3975_v2  ;;  %v3675_v5 = vpack.c.bf16 %v450_v3, %v450_v3  ;;  %v805_v6 = vpop.f32.mrb[7].mxu1 }
  0xfb   : > { %3370 = vst.msk [vmem:[%s4624_s13 + $0x90] sm:$0xf] %vm686_vm1, %v3706_v0  ;;  %694 = vst.msk [vmem:[%s4624_s13 + $0x1c] sm:$0xf] %vm686_vm1, %v3677_v1  ;;  %v3707_v7 = vpack.c.bf16 %v805_v6, %v805_v6 }
  0xfc   : > { %3373 = vst.msk [vmem:[%s4624_s13 + $0x9c] sm:$0xf] %vm686_vm1, %v3709_v4  ;;  %692 = vst.msk [vmem:[%s4624_s13 + $0x14] sm:$0xf] %vm686_vm1, %v3675_v5 }
  0xfd   : > { %3371 = vst.msk [vmem:[%s4624_s13 + $0x94] sm:$0xf] %vm686_vm1, %v3707_v7 }
  0xfe   : > { %v3938_v8 = vpop.f32.mrb[8].mxu0 }
  0xff   : > { %v3680_v9 = vpack.c.bf16 %v3938_v8, %v3938_v8  ;;  %v3978_v10 = vpop.f32.mrb[8].mxu1  ;;  %v463_v11 = vpop.f32.mrb[9].mxu0 }
 0x100   : > { %v3712_v12 = vpack.c.bf16 %v3978_v10, %v3978_v10  ;;  %v3678_v13 = vpack.c.bf16 %v463_v11, %v463_v11  ;;  %v818_v14 = vpop.f32.mrb[9].mxu1  ;;  %v3939_v15 = vpop.f32.mrb[10].mxu0 }
 0x101   : > { %697 = vst.msk [vmem:[%s4624_s13 + $0x28] sm:$0xf] %vm686_vm1, %v3680_v9  ;;  %v3710_v16 = vpack.c.bf16 %v818_v14, %v818_v14  ;;  %v3681_v17 = vpack.c.bf16 %v3939_v15, %v3939_v15  ;;  %v3979_v18 = vpop.f32.mrb[10].mxu1  ;;  %v466_v19 = vpop.f32.mrb[11].mxu0 }
 0x102   : > { %3376 = vst.msk [vmem:[%s4624_s13 + $0xa8] sm:$0xf] %vm686_vm1, %v3712_v12  ;;  %695 = vst.msk [vmem:[%s4624_s13 + $0x20] sm:$0xf] %vm686_vm1, %v3678_v13  ;;  %v3713_v20 = vpack.c.bf16 %v3979_v18, %v3979_v18  ;;  %v3679_v21 = vpack.c.bf16 %v466_v19, %v466_v19  ;;  %v821_v22 = vpop.f32.mrb[11].mxu1 }
 0x103   : > { %3374 = vst.msk [vmem:[%s4624_s13 + $0xa0] sm:$0xf] %vm686_vm1, %v3710_v16  ;;  %698 = vst.msk [vmem:[%s4624_s13 + $0x2c] sm:$0xf] %vm686_vm1, %v3681_v17  ;;  %v3711_v23 = vpack.c.bf16 %v821_v22, %v821_v22 }
 0x104   : > { %3377 = vst.msk [vmem:[%s4624_s13 + $0xac] sm:$0xf] %vm686_vm1, %v3713_v20  ;;  %696 = vst.msk [vmem:[%s4624_s13 + $0x24] sm:$0xf] %vm686_vm1, %v3679_v21 }
 0x105   : > { %3375 = vst.msk [vmem:[%s4624_s13 + $0xa4] sm:$0xf] %vm686_vm1, %v3711_v23 }
 0x106   : > { %v3942_v24 = vpop.f32.mrb[12].mxu0 }
 0x107   : > { %v3684_v25 = vpack.c.bf16 %v3942_v24, %v3942_v24  ;;  %v3982_v26 = vpop.f32.mrb[12].mxu1  ;;  %v479_v27 = vpop.f32.mrb[13].mxu0 }
 0x108   : > { %v3716_v28 = vpack.c.bf16 %v3982_v26, %v3982_v26  ;;  %v3682_v29 = vpack.c.bf16 %v479_v27, %v479_v27  ;;  %v834_v30 = vpop.f32.mrb[13].mxu1  ;;  %v3943_v31 = vpop.f32.mrb[14].mxu0 }
 0x109   : > { %701 = vst.msk [vmem:[%s4624_s13 + $0x38] sm:$0xf] %vm686_vm1, %v3684_v25  ;;  %v3714_v32 = vpack.c.bf16 %v834_v30, %v834_v30  ;;  %v3685_v33 = vpack.c.bf16 %v3943_v31, %v3943_v31  ;;  %v3983_v34 = vpop.f32.mrb[14].mxu1  ;;  %v482_v35 = vpop.f32.mrb[15].mxu0 }
 0x10a   : > { %3380 = vst.msk [vmem:[%s4624_s13 + $0xb8] sm:$0xf] %vm686_vm1, %v3716_v28  ;;  %699 = vst.msk [vmem:[%s4624_s13 + $0x30] sm:$0xf] %vm686_vm1, %v3682_v29  ;;  %v3717_v36 = vpack.c.bf16 %v3983_v34, %v3983_v34  ;;  %v3683_v37 = vpack.c.bf16 %v482_v35, %v482_v35  ;;  %v837_v38 = vpop.f32.mrb[15].mxu1 }
 0x10b   : > { %3378 = vst.msk [vmem:[%s4624_s13 + $0xb0] sm:$0xf] %vm686_vm1, %v3714_v32  ;;  %702 = vst.msk [vmem:[%s4624_s13 + $0x3c] sm:$0xf] %vm686_vm1, %v3685_v33  ;;  %v3715_v39 = vpack.c.bf16 %v837_v38, %v837_v38 }
 0x10c   : > { %3381 = vst.msk [vmem:[%s4624_s13 + $0xbc] sm:$0xf] %vm686_vm1, %v3717_v36  ;;  %700 = vst.msk [vmem:[%s4624_s13 + $0x34] sm:$0xf] %vm686_vm1, %v3683_v37 }
 0x10d   : > { %3379 = vst.msk [vmem:[%s4624_s13 + $0xb4] sm:$0xf] %vm686_vm1, %v3715_v39 }
 0x10e   : > { %v3946_v40 = vpop.f32.mrb[16].mxu0 }
 0x10f   : > { %v3688_v41 = vpack.c.bf16 %v3946_v40, %v3946_v40  ;;  %v3986_v42 = vpop.f32.mrb[16].mxu1  ;;  %v495_v43 = vpop.f32.mrb[17].mxu0 }
 0x110   : > { %v3720_v44 = vpack.c.bf16 %v3986_v42, %v3986_v42  ;;  %v3686_v45 = vpack.c.bf16 %v495_v43, %v495_v43  ;;  %v850_v46 = vpop.f32.mrb[17].mxu1  ;;  %v3947_v47 = vpop.f32.mrb[18].mxu0 }
 0x111   : > { %705 = vst.msk [vmem:[%s4624_s13 + $0x48] sm:$0xf] %vm686_vm1, %v3688_v41  ;;  %v3718_v48 = vpack.c.bf16 %v850_v46, %v850_v46  ;;  %v3689_v49 = vpack.c.bf16 %v3947_v47, %v3947_v47  ;;  %v3987_v50 = vpop.f32.mrb[18].mxu1  ;;  %v498_v51 = vpop.f32.mrb[19].mxu0 }
 0x112   : > { %3384 = vst.msk [vmem:[%s4624_s13 + $0xc8] sm:$0xf] %vm686_vm1, %v3720_v44  ;;  %703 = vst.msk [vmem:[%s4624_s13 + $0x40] sm:$0xf] %vm686_vm1, %v3686_v45  ;;  %v3721_v52 = vpack.c.bf16 %v3987_v50, %v3987_v50  ;;  %v3687_v53 = vpack.c.bf16 %v498_v51, %v498_v51  ;;  %v853_v54 = vpop.f32.mrb[19].mxu1 }
 0x113   : > { %3382 = vst.msk [vmem:[%s4624_s13 + $0xc0] sm:$0xf] %vm686_vm1, %v3718_v48  ;;  %706 = vst.msk [vmem:[%s4624_s13 + $0x4c] sm:$0xf] %vm686_vm1, %v3689_v49  ;;  %v3719_v55 = vpack.c.bf16 %v853_v54, %v853_v54 }
 0x114   : > { %3385 = vst.msk [vmem:[%s4624_s13 + $0xcc] sm:$0xf] %vm686_vm1, %v3721_v52  ;;  %704 = vst.msk [vmem:[%s4624_s13 + $0x44] sm:$0xf] %vm686_vm1, %v3687_v53 }
 0x115   : > { %3383 = vst.msk [vmem:[%s4624_s13 + $0xc4] sm:$0xf] %vm686_vm1, %v3719_v55 }
 0x116   : > { %v3950_v56 = vpop.f32.mrb[20].mxu0 }
 0x117   : > { %v3692_v57 = vpack.c.bf16 %v3950_v56, %v3950_v56  ;;  %v3990_v58 = vpop.f32.mrb[20].mxu1  ;;  %v511_v59 = vpop.f32.mrb[21].mxu0 }
 0x118   : > { %v3724_v60 = vpack.c.bf16 %v3990_v58, %v3990_v58  ;;  %v3690_v61 = vpack.c.bf16 %v511_v59, %v511_v59  ;;  %v866_v62 = vpop.f32.mrb[21].mxu1  ;;  %v3951_v63 = vpop.f32.mrb[22].mxu0 }
 0x119   : > { %709 = vst.msk [vmem:[%s4624_s13 + $0x58] sm:$0xf] %vm686_vm1, %v3692_v57  ;;  %v3722_v0 = vpack.c.bf16 %v866_v62, %v866_v62  ;;  %v3693_v1 = vpack.c.bf16 %v3951_v63, %v3951_v63  ;;  %v3991_v2 = vpop.f32.mrb[22].mxu1  ;;  %v514_v3 = vpop.f32.mrb[23].mxu0 }
 0x11a   : > { %3388 = vst.msk [vmem:[%s4624_s13 + $0xd8] sm:$0xf] %vm686_vm1, %v3724_v60  ;;  %707 = vst.msk [vmem:[%s4624_s13 + $0x50] sm:$0xf] %vm686_vm1, %v3690_v61  ;;  %v3725_v4 = vpack.c.bf16 %v3991_v2, %v3991_v2  ;;  %v3691_v5 = vpack.c.bf16 %v514_v3, %v514_v3  ;;  %v869_v6 = vpop.f32.mrb[23].mxu1 }
 0x11b   : > { %3386 = vst.msk [vmem:[%s4624_s13 + $0xd0] sm:$0xf] %vm686_vm1, %v3722_v0  ;;  %710 = vst.msk [vmem:[%s4624_s13 + $0x5c] sm:$0xf] %vm686_vm1, %v3693_v1  ;;  %v3723_v7 = vpack.c.bf16 %v869_v6, %v869_v6 }
 0x11c   : > { %3389 = vst.msk [vmem:[%s4624_s13 + $0xdc] sm:$0xf] %vm686_vm1, %v3725_v4  ;;  %708 = vst.msk [vmem:[%s4624_s13 + $0x54] sm:$0xf] %vm686_vm1, %v3691_v5 }
 0x11d   : > { %3387 = vst.msk [vmem:[%s4624_s13 + $0xd4] sm:$0xf] %vm686_vm1, %v3723_v7 }
 0x11e   : > { %v3954_v8 = vpop.f32.mrb[24].mxu0 }
 0x11f   : > { %v3696_v9 = vpack.c.bf16 %v3954_v8, %v3954_v8  ;;  %v3994_v10 = vpop.f32.mrb[24].mxu1  ;;  %v527_v11 = vpop.f32.mrb[25].mxu0 }
 0x120   : > { %v3728_v12 = vpack.c.bf16 %v3994_v10, %v3994_v10  ;;  %v3694_v13 = vpack.c.bf16 %v527_v11, %v527_v11  ;;  %v882_v14 = vpop.f32.mrb[25].mxu1  ;;  %v3955_v15 = vpop.f32.mrb[26].mxu0 }
 0x121   : > { %713 = vst.msk [vmem:[%s4624_s13 + $0x68] sm:$0xf] %vm686_vm1, %v3696_v9  ;;  %v3726_v16 = vpack.c.bf16 %v882_v14, %v882_v14  ;;  %v3697_v17 = vpack.c.bf16 %v3955_v15, %v3955_v15  ;;  %v3995_v18 = vpop.f32.mrb[26].mxu1  ;;  %v530_v19 = vpop.f32.mrb[27].mxu0 }
 0x122   : > { %3392 = vst.msk [vmem:[%s4624_s13 + $0xe8] sm:$0xf] %vm686_vm1, %v3728_v12  ;;  %711 = vst.msk [vmem:[%s4624_s13 + $0x60] sm:$0xf] %vm686_vm1, %v3694_v13  ;;  %v3729_v20 = vpack.c.bf16 %v3995_v18, %v3995_v18  ;;  %v3695_v21 = vpack.c.bf16 %v530_v19, %v530_v19  ;;  %v885_v22 = vpop.f32.mrb[27].mxu1 }
 0x123   : > { %3390 = vst.msk [vmem:[%s4624_s13 + $0xe0] sm:$0xf] %vm686_vm1, %v3726_v16  ;;  %714 = vst.msk [vmem:[%s4624_s13 + $0x6c] sm:$0xf] %vm686_vm1, %v3697_v17  ;;  %v3727_v23 = vpack.c.bf16 %v885_v22, %v885_v22 }
 0x124   : > { %3393 = vst.msk [vmem:[%s4624_s13 + $0xec] sm:$0xf] %vm686_vm1, %v3729_v20  ;;  %712 = vst.msk [vmem:[%s4624_s13 + $0x64] sm:$0xf] %vm686_vm1, %v3695_v21 }
 0x125   : > { %3391 = vst.msk [vmem:[%s4624_s13 + $0xe4] sm:$0xf] %vm686_vm1, %v3727_v23 }
 0x126   : > { %v3958_v24 = vpop.f32.mrb[28].mxu0 }
 0x127   : > { %v3700_v25 = vpack.c.bf16 %v3958_v24, %v3958_v24  ;;  %v3998_v26 = vpop.f32.mrb[28].mxu1  ;;  %v543_v27 = vpop.f32.mrb[29].mxu0 }
 0x128   : > { %v3732_v28 = vpack.c.bf16 %v3998_v26, %v3998_v26  ;;  %v3698_v29 = vpack.c.bf16 %v543_v27, %v543_v27  ;;  %v898_v30 = vpop.f32.mrb[29].mxu1  ;;  %v3959_v31 = vpop.f32.mrb[30].mxu0 }
 0x129   : > { %717 = vst.msk [vmem:[%s4624_s13 + $0x78] sm:$0xf] %vm686_vm1, %v3700_v25  ;;  %v3730_v32 = vpack.c.bf16 %v898_v30, %v898_v30  ;;  %v3701_v33 = vpack.c.bf16 %v3959_v31, %v3959_v31  ;;  %v3999_v34 = vpop.f32.mrb[30].mxu1  ;;  %v546_v35 = vpop.f32.mrb[31].mxu0 }
 0x12a   : > { %3396 = vst.msk [vmem:[%s4624_s13 + $0xf8] sm:$0xf] %vm686_vm1, %v3732_v28  ;;  %715 = vst.msk [vmem:[%s4624_s13 + $0x70] sm:$0xf] %vm686_vm1, %v3698_v29  ;;  %v3733_v36 = vpack.c.bf16 %v3999_v34, %v3999_v34  ;;  %v3699_v37 = vpack.c.bf16 %v546_v35, %v546_v35  ;;  %v901_v38 = vpop.f32.mrb[31].mxu1 }
 0x12b   : > { %3394 = vst.msk [vmem:[%s4624_s13 + $0xf0] sm:$0xf] %vm686_vm1, %v3730_v32  ;;  %718 = vst.msk [vmem:[%s4624_s13 + $0x7c] sm:$0xf] %vm686_vm1, %v3701_v33  ;;  %v3731_v39 = vpack.c.bf16 %v901_v38, %v901_v38 }
 0x12c   : > { %3397 = vst.msk [vmem:[%s4624_s13 + $0xfc] sm:$0xf] %vm686_vm1, %v3733_v36  ;;  %716 = vst.msk [vmem:[%s4624_s13 + $0x74] sm:$0xf] %vm686_vm1, %v3699_v37 }
 0x12d   : > { %3395 = vst.msk [vmem:[%s4624_s13 + $0xf4] sm:$0xf] %vm686_vm1, %v3731_v39 }
 0x12e   : > { %v4010_v40 = vpop.f32.mrb[32].mxu0 }
 0x12f   : > { %v3736_v41 = vpack.c.bf16 %v4010_v40, %v4010_v40  ;;  %v4050_v42 = vpop.f32.mrb[32].mxu1  ;;  %v1141_v43 = vpop.f32.mrb[33].mxu0 }
 0x130   : > { %v3768_v44 = vpack.c.bf16 %v4050_v42, %v4050_v42  ;;  %v3734_v45 = vpack.c.bf16 %v1141_v43, %v1141_v43  ;;  %v1496_v46 = vpop.f32.mrb[33].mxu1  ;;  %v4011_v47 = vpop.f32.mrb[34].mxu0 }
 0x131   : > { %3460 = vst.msk [vmem:[%s4624_s13 + $0x108] sm:$0xf] %vm686_vm1, %v3736_v41  ;;  %v3766_v48 = vpack.c.bf16 %v1496_v46, %v1496_v46  ;;  %v3737_v49 = vpack.c.bf16 %v4011_v47, %v4011_v47  ;;  %v4051_v50 = vpop.f32.mrb[34].mxu1  ;;  %v1144_v51 = vpop.f32.mrb[35].mxu0 }
 0x132   : > { %3552 = vst.msk [vmem:[%s4624_s13 + $0x188] sm:$0xf] %vm686_vm1, %v3768_v44  ;;  %3458 = vst.msk [vmem:[%s4624_s13 + $0x100] sm:$0xf] %vm686_vm1, %v3734_v45  ;;  %v3769_v52 = vpack.c.bf16 %v4051_v50, %v4051_v50  ;;  %v3735_v53 = vpack.c.bf16 %v1144_v51, %v1144_v51  ;;  %v1499_v54 = vpop.f32.mrb[35].mxu1 }
 0x133   : > { %3550 = vst.msk [vmem:[%s4624_s13 + $0x180] sm:$0xf] %vm686_vm1, %v3766_v48  ;;  %3461 = vst.msk [vmem:[%s4624_s13 + $0x10c] sm:$0xf] %vm686_vm1, %v3737_v49  ;;  %v3767_v55 = vpack.c.bf16 %v1499_v54, %v1499_v54 }
 0x134   : > { %3553 = vst.msk [vmem:[%s4624_s13 + $0x18c] sm:$0xf] %vm686_vm1, %v3769_v52  ;;  %3459 = vst.msk [vmem:[%s4624_s13 + $0x104] sm:$0xf] %vm686_vm1, %v3735_v53 }
 0x135   : > { %3551 = vst.msk [vmem:[%s4624_s13 + $0x184] sm:$0xf] %vm686_vm1, %v3767_v55 }
 0x136   : > { %v4014_v56 = vpop.f32.mrb[36].mxu0 }
 0x137   : > { %v3740_v57 = vpack.c.bf16 %v4014_v56, %v4014_v56  ;;  %v4054_v58 = vpop.f32.mrb[36].mxu1  ;;  %v1157_v59 = vpop.f32.mrb[37].mxu0 }
 0x138   : > { %v3772_v60 = vpack.c.bf16 %v4054_v58, %v4054_v58  ;;  %v3738_v61 = vpack.c.bf16 %v1157_v59, %v1157_v59  ;;  %v1512_v62 = vpop.f32.mrb[37].mxu1  ;;  %v4015_v63 = vpop.f32.mrb[38].mxu0 }
 0x139   : > { %3464 = vst.msk [vmem:[%s4624_s13 + $0x118] sm:$0xf] %vm686_vm1, %v3740_v57  ;;  %v3770_v0 = vpack.c.bf16 %v1512_v62, %v1512_v62  ;;  %v3741_v1 = vpack.c.bf16 %v4015_v63, %v4015_v63  ;;  %v4055_v2 = vpop.f32.mrb[38].mxu1  ;;  %v1160_v3 = vpop.f32.mrb[39].mxu0 }
 0x13a   : > { %3556 = vst.msk [vmem:[%s4624_s13 + $0x198] sm:$0xf] %vm686_vm1, %v3772_v60  ;;  %3462 = vst.msk [vmem:[%s4624_s13 + $0x110] sm:$0xf] %vm686_vm1, %v3738_v61  ;;  %v3773_v4 = vpack.c.bf16 %v4055_v2, %v4055_v2  ;;  %v3739_v5 = vpack.c.bf16 %v1160_v3, %v1160_v3  ;;  %v1515_v6 = vpop.f32.mrb[39].mxu1 }
 0x13b   : > { %3554 = vst.msk [vmem:[%s4624_s13 + $0x190] sm:$0xf] %vm686_vm1, %v3770_v0  ;;  %3465 = vst.msk [vmem:[%s4624_s13 + $0x11c] sm:$0xf] %vm686_vm1, %v3741_v1  ;;  %v3771_v7 = vpack.c.bf16 %v1515_v6, %v1515_v6 }
 0x13c   : > { %3557 = vst.msk [vmem:[%s4624_s13 + $0x19c] sm:$0xf] %vm686_vm1, %v3773_v4  ;;  %3463 = vst.msk [vmem:[%s4624_s13 + $0x114] sm:$0xf] %vm686_vm1, %v3739_v5 }
 0x13d   : > { %3555 = vst.msk [vmem:[%s4624_s13 + $0x194] sm:$0xf] %vm686_vm1, %v3771_v7 }
 0x13e   : > { %v4018_v8 = vpop.f32.mrb[40].mxu0 }
 0x13f   : > { %v3744_v9 = vpack.c.bf16 %v4018_v8, %v4018_v8  ;;  %v4058_v10 = vpop.f32.mrb[40].mxu1  ;;  %v1173_v11 = vpop.f32.mrb[41].mxu0 }
 0x140   : > { %v3776_v12 = vpack.c.bf16 %v4058_v10, %v4058_v10  ;;  %v3742_v13 = vpack.c.bf16 %v1173_v11, %v1173_v11  ;;  %v1528_v14 = vpop.f32.mrb[41].mxu1  ;;  %v4019_v15 = vpop.f32.mrb[42].mxu0 }
 0x141   : > { %3468 = vst.msk [vmem:[%s4624_s13 + $0x128] sm:$0xf] %vm686_vm1, %v3744_v9  ;;  %v3774_v16 = vpack.c.bf16 %v1528_v14, %v1528_v14  ;;  %v3745_v17 = vpack.c.bf16 %v4019_v15, %v4019_v15  ;;  %v4059_v18 = vpop.f32.mrb[42].mxu1  ;;  %v1176_v19 = vpop.f32.mrb[43].mxu0 }
 0x142   : > { %3560 = vst.msk [vmem:[%s4624_s13 + $0x1a8] sm:$0xf] %vm686_vm1, %v3776_v12  ;;  %3466 = vst.msk [vmem:[%s4624_s13 + $0x120] sm:$0xf] %vm686_vm1, %v3742_v13  ;;  %v3777_v20 = vpack.c.bf16 %v4059_v18, %v4059_v18  ;;  %v3743_v21 = vpack.c.bf16 %v1176_v19, %v1176_v19  ;;  %v1531_v22 = vpop.f32.mrb[43].mxu1 }
 0x143   : > { %3558 = vst.msk [vmem:[%s4624_s13 + $0x1a0] sm:$0xf] %vm686_vm1, %v3774_v16  ;;  %3469 = vst.msk [vmem:[%s4624_s13 + $0x12c] sm:$0xf] %vm686_vm1, %v3745_v17  ;;  %v3775_v23 = vpack.c.bf16 %v1531_v22, %v1531_v22 }
 0x144   : > { %3561 = vst.msk [vmem:[%s4624_s13 + $0x1ac] sm:$0xf] %vm686_vm1, %v3777_v20  ;;  %3467 = vst.msk [vmem:[%s4624_s13 + $0x124] sm:$0xf] %vm686_vm1, %v3743_v21 }
 0x145   : > { %3559 = vst.msk [vmem:[%s4624_s13 + $0x1a4] sm:$0xf] %vm686_vm1, %v3775_v23 }
 0x146   : > { %v4022_v24 = vpop.f32.mrb[44].mxu0 }
 0x147   : > { %v3748_v25 = vpack.c.bf16 %v4022_v24, %v4022_v24  ;;  %v4062_v26 = vpop.f32.mrb[44].mxu1  ;;  %v1189_v27 = vpop.f32.mrb[45].mxu0 }
 0x148   : > { %v3780_v28 = vpack.c.bf16 %v4062_v26, %v4062_v26  ;;  %v3746_v29 = vpack.c.bf16 %v1189_v27, %v1189_v27  ;;  %v1544_v30 = vpop.f32.mrb[45].mxu1  ;;  %v4023_v31 = vpop.f32.mrb[46].mxu0 }
 0x149   : > { %3472 = vst.msk [vmem:[%s4624_s13 + $0x138] sm:$0xf] %vm686_vm1, %v3748_v25  ;;  %v3778_v32 = vpack.c.bf16 %v1544_v30, %v1544_v30  ;;  %v3749_v33 = vpack.c.bf16 %v4023_v31, %v4023_v31  ;;  %v4063_v34 = vpop.f32.mrb[46].mxu1  ;;  %v1192_v35 = vpop.f32.mrb[47].mxu0 }
 0x14a   : > { %3564 = vst.msk [vmem:[%s4624_s13 + $0x1b8] sm:$0xf] %vm686_vm1, %v3780_v28  ;;  %3470 = vst.msk [vmem:[%s4624_s13 + $0x130] sm:$0xf] %vm686_vm1, %v3746_v29  ;;  %v3781_v36 = vpack.c.bf16 %v4063_v34, %v4063_v34  ;;  %v3747_v37 = vpack.c.bf16 %v1192_v35, %v1192_v35  ;;  %v1547_v38 = vpop.f32.mrb[47].mxu1 }
 0x14b   : > { %3562 = vst.msk [vmem:[%s4624_s13 + $0x1b0] sm:$0xf] %vm686_vm1, %v3778_v32  ;;  %3473 = vst.msk [vmem:[%s4624_s13 + $0x13c] sm:$0xf] %vm686_vm1, %v3749_v33  ;;  %v3779_v39 = vpack.c.bf16 %v1547_v38, %v1547_v38 }
 0x14c   : > { %3565 = vst.msk [vmem:[%s4624_s13 + $0x1bc] sm:$0xf] %vm686_vm1, %v3781_v36  ;;  %3471 = vst.msk [vmem:[%s4624_s13 + $0x134] sm:$0xf] %vm686_vm1, %v3747_v37 }
 0x14d   : > { %3563 = vst.msk [vmem:[%s4624_s13 + $0x1b4] sm:$0xf] %vm686_vm1, %v3779_v39 }
 0x14e   : > { %v4026_v40 = vpop.f32.mrb[48].mxu0 }
 0x14f   : > { %v3752_v41 = vpack.c.bf16 %v4026_v40, %v4026_v40  ;;  %v4066_v42 = vpop.f32.mrb[48].mxu1  ;;  %v1205_v43 = vpop.f32.mrb[49].mxu0 }
 0x150   : > { %v3784_v44 = vpack.c.bf16 %v4066_v42, %v4066_v42  ;;  %v3750_v45 = vpack.c.bf16 %v1205_v43, %v1205_v43  ;;  %v1560_v46 = vpop.f32.mrb[49].mxu1  ;;  %v4027_v47 = vpop.f32.mrb[50].mxu0 }
 0x151   : > { %3476 = vst.msk [vmem:[%s4624_s13 + $0x148] sm:$0xf] %vm686_vm1, %v3752_v41  ;;  %v3782_v48 = vpack.c.bf16 %v1560_v46, %v1560_v46  ;;  %v3753_v49 = vpack.c.bf16 %v4027_v47, %v4027_v47  ;;  %v4067_v50 = vpop.f32.mrb[50].mxu1  ;;  %v1208_v51 = vpop.f32.mrb[51].mxu0 }
 0x152   : > { %3568 = vst.msk [vmem:[%s4624_s13 + $0x1c8] sm:$0xf] %vm686_vm1, %v3784_v44  ;;  %3474 = vst.msk [vmem:[%s4624_s13 + $0x140] sm:$0xf] %vm686_vm1, %v3750_v45  ;;  %v3785_v52 = vpack.c.bf16 %v4067_v50, %v4067_v50  ;;  %v3751_v53 = vpack.c.bf16 %v1208_v51, %v1208_v51  ;;  %v1563_v54 = vpop.f32.mrb[51].mxu1 }
 0x153   : > { %3566 = vst.msk [vmem:[%s4624_s13 + $0x1c0] sm:$0xf] %vm686_vm1, %v3782_v48  ;;  %3477 = vst.msk [vmem:[%s4624_s13 + $0x14c] sm:$0xf] %vm686_vm1, %v3753_v49  ;;  %v3783_v55 = vpack.c.bf16 %v1563_v54, %v1563_v54 }
 0x154   : > { %3569 = vst.msk [vmem:[%s4624_s13 + $0x1cc] sm:$0xf] %vm686_vm1, %v3785_v52  ;;  %3475 = vst.msk [vmem:[%s4624_s13 + $0x144] sm:$0xf] %vm686_vm1, %v3751_v53 }
 0x155   : > { %3567 = vst.msk [vmem:[%s4624_s13 + $0x1c4] sm:$0xf] %vm686_vm1, %v3783_v55 }
 0x156   : > { %v4030_v56 = vpop.f32.mrb[52].mxu0 }
 0x157   : > { %v3756_v57 = vpack.c.bf16 %v4030_v56, %v4030_v56  ;;  %v4070_v58 = vpop.f32.mrb[52].mxu1  ;;  %v1221_v59 = vpop.f32.mrb[53].mxu0 }
 0x158   : > { %v3788_v60 = vpack.c.bf16 %v4070_v58, %v4070_v58  ;;  %v3754_v61 = vpack.c.bf16 %v1221_v59, %v1221_v59  ;;  %v1576_v62 = vpop.f32.mrb[53].mxu1  ;;  %v4031_v63 = vpop.f32.mrb[54].mxu0 }
 0x159   : > { %3480 = vst.msk [vmem:[%s4624_s13 + $0x158] sm:$0xf] %vm686_vm1, %v3756_v57  ;;  %v3786_v0 = vpack.c.bf16 %v1576_v62, %v1576_v62  ;;  %v3757_v1 = vpack.c.bf16 %v4031_v63, %v4031_v63  ;;  %v4071_v2 = vpop.f32.mrb[54].mxu1  ;;  %v1224_v3 = vpop.f32.mrb[55].mxu0 }
 0x15a   : > { %3572 = vst.msk [vmem:[%s4624_s13 + $0x1d8] sm:$0xf] %vm686_vm1, %v3788_v60  ;;  %3478 = vst.msk [vmem:[%s4624_s13 + $0x150] sm:$0xf] %vm686_vm1, %v3754_v61  ;;  %v3789_v4 = vpack.c.bf16 %v4071_v2, %v4071_v2  ;;  %v3755_v5 = vpack.c.bf16 %v1224_v3, %v1224_v3  ;;  %v1579_v6 = vpop.f32.mrb[55].mxu1 }
 0x15b   : > { %3570 = vst.msk [vmem:[%s4624_s13 + $0x1d0] sm:$0xf] %vm686_vm1, %v3786_v0  ;;  %3481 = vst.msk [vmem:[%s4624_s13 + $0x15c] sm:$0xf] %vm686_vm1, %v3757_v1  ;;  %v3787_v7 = vpack.c.bf16 %v1579_v6, %v1579_v6 }
 0x15c   : > { %3573 = vst.msk [vmem:[%s4624_s13 + $0x1dc] sm:$0xf] %vm686_vm1, %v3789_v4  ;;  %3479 = vst.msk [vmem:[%s4624_s13 + $0x154] sm:$0xf] %vm686_vm1, %v3755_v5 }
 0x15d   : > { %3571 = vst.msk [vmem:[%s4624_s13 + $0x1d4] sm:$0xf] %vm686_vm1, %v3787_v7 }
 0x15e   : > { %v4034_v8 = vpop.f32.mrb[56].mxu0 }
 0x15f   : > { %v3760_v9 = vpack.c.bf16 %v4034_v8, %v4034_v8  ;;  %v4074_v10 = vpop.f32.mrb[56].mxu1  ;;  %v1237_v11 = vpop.f32.mrb[57].mxu0 }
 0x160   : > { %v3792_v12 = vpack.c.bf16 %v4074_v10, %v4074_v10  ;;  %v3758_v13 = vpack.c.bf16 %v1237_v11, %v1237_v11  ;;  %v1592_v14 = vpop.f32.mrb[57].mxu1  ;;  %v4035_v15 = vpop.f32.mrb[58].mxu0 }
 0x161   : > { %3484 = vst.msk [vmem:[%s4624_s13 + $0x168] sm:$0xf] %vm686_vm1, %v3760_v9  ;;  %v3790_v16 = vpack.c.bf16 %v1592_v14, %v1592_v14  ;;  %v3761_v17 = vpack.c.bf16 %v4035_v15, %v4035_v15  ;;  %v4075_v18 = vpop.f32.mrb[58].mxu1  ;;  %v1240_v19 = vpop.f32.mrb[59].mxu0 }
 0x162   : > { %3576 = vst.msk [vmem:[%s4624_s13 + $0x1e8] sm:$0xf] %vm686_vm1, %v3792_v12  ;;  %3482 = vst.msk [vmem:[%s4624_s13 + $0x160] sm:$0xf] %vm686_vm1, %v3758_v13  ;;  %v3793_v20 = vpack.c.bf16 %v4075_v18, %v4075_v18  ;;  %v3759_v21 = vpack.c.bf16 %v1240_v19, %v1240_v19  ;;  %v1595_v22 = vpop.f32.mrb[59].mxu1 }
 0x163   : > { %3574 = vst.msk [vmem:[%s4624_s13 + $0x1e0] sm:$0xf] %vm686_vm1, %v3790_v16  ;;  %3485 = vst.msk [vmem:[%s4624_s13 + $0x16c] sm:$0xf] %vm686_vm1, %v3761_v17  ;;  %v3791_v23 = vpack.c.bf16 %v1595_v22, %v1595_v22 }
 0x164   : > { %3577 = vst.msk [vmem:[%s4624_s13 + $0x1ec] sm:$0xf] %vm686_vm1, %v3793_v20  ;;  %3483 = vst.msk [vmem:[%s4624_s13 + $0x164] sm:$0xf] %vm686_vm1, %v3759_v21 }
 0x165   : > { %3575 = vst.msk [vmem:[%s4624_s13 + $0x1e4] sm:$0xf] %vm686_vm1, %v3791_v23 }
 0x166   : > { %v4038_v24 = vpop.f32.mrb[60].mxu0 }
 0x167   : > { %v3764_v25 = vpack.c.bf16 %v4038_v24, %v4038_v24  ;;  %v4078_v26 = vpop.f32.mrb[60].mxu1  ;;  %v1253_v27 = vpop.f32.mrb[61].mxu0 }
 0x168   : > { %v3796_v28 = vpack.c.bf16 %v4078_v26, %v4078_v26  ;;  %v3762_v29 = vpack.c.bf16 %v1253_v27, %v1253_v27  ;;  %v1608_v30 = vpop.f32.mrb[61].mxu1  ;;  %v4039_v31 = vpop.f32.mrb[62].mxu0 }
 0x169   : > { %3488 = vst.msk [vmem:[%s4624_s13 + $0x178] sm:$0xf] %vm686_vm1, %v3764_v25  ;;  %v3794_v32 = vpack.c.bf16 %v1608_v30, %v1608_v30  ;;  %v3765_v33 = vpack.c.bf16 %v4039_v31, %v4039_v31  ;;  %v4079_v34 = vpop.f32.mrb[62].mxu1  ;;  %v1256_v35 = vpop.f32.mrb[63].mxu0 }
 0x16a   : > { %3580 = vst.msk [vmem:[%s4624_s13 + $0x1f8] sm:$0xf] %vm686_vm1, %v3796_v28  ;;  %3486 = vst.msk [vmem:[%s4624_s13 + $0x170] sm:$0xf] %vm686_vm1, %v3762_v29  ;;  %v3797_v36 = vpack.c.bf16 %v4079_v34, %v4079_v34  ;;  %v3763_v37 = vpack.c.bf16 %v1256_v35, %v1256_v35  ;;  %v1611_v38 = vpop.f32.mrb[63].mxu1 }
 0x16b   : > { %3578 = vst.msk [vmem:[%s4624_s13 + $0x1f0] sm:$0xf] %vm686_vm1, %v3794_v32  ;;  %3489 = vst.msk [vmem:[%s4624_s13 + $0x17c] sm:$0xf] %vm686_vm1, %v3765_v33  ;;  %v3795_v39 = vpack.c.bf16 %v1611_v38, %v1611_v38 }
 0x16c   : > { %3581 = vst.msk [vmem:[%s4624_s13 + $0x1fc] sm:$0xf] %vm686_vm1, %v3797_v36  ;;  %3487 = vst.msk [vmem:[%s4624_s13 + $0x174] sm:$0xf] %vm686_vm1, %v3763_v37 }
 0x16d   : > { %3579 = vst.msk [vmem:[%s4624_s13 + $0x1f4] sm:$0xf] %vm686_vm1, %v3795_v39 }
 0x16e   : > { %v4090_v40 = vpop.f32.mrb[64].mxu0 }
 0x16f   : > { %v1979_v41 = vmax.f32 %v4090_v40, 0.0  ;;  %v4130_v42 = vpop.f32.mrb[64].mxu1  ;;  %v1850_v43 = vpop.f32.mrb[65].mxu0 }
 0x170   : > { %v2237_v44 = vmax.f32 %v4130_v42, 0.0  ;;  %v1977_v45 = vmax.f32 %v1850_v43, 0.0  ;;  %v2108_v46 = vpop.f32.mrb[65].mxu1  ;;  %v4091_v47 = vpop.f32.mrb[66].mxu0 }
 0x171   : > { %2011 = vst.msk [vmem:[%s4883_s15 + $0x10] sm:$0xff] %vm348_vm0, %v1979_v41  ;;  %v2235_v48 = vmax.f32 %v2108_v46, 0.0  ;;  %v1980_v49 = vmax.f32 %v4091_v47, 0.0  ;;  %v4131_v50 = vpop.f32.mrb[66].mxu1  ;;  %v1853_v51 = vpop.f32.mrb[67].mxu0 }
 0x172   : > { %3632 = vst.msk [vmem:[%s4883_s15 + $0x110] sm:$0xff] %vm348_vm0, %v2237_v44  ;;  %2009 = vst.msk [vmem:[%s4883_s15] sm:$0xff] %vm348_vm0, %v1977_v45  ;;  %v2238_v52 = vmax.f32 %v4131_v50, 0.0  ;;  %v1978_v53 = vmax.f32 %v1853_v51, 0.0  ;;  %v2111_v54 = vpop.f32.mrb[67].mxu1 }
 0x173   : > { %3630 = vst.msk [vmem:[%s4883_s15 + $0x100] sm:$0xff] %vm348_vm0, %v2235_v48  ;;  %2012 = vst.msk [vmem:[%s4883_s15 + $0x18] sm:$0xff] %vm348_vm0, %v1980_v49  ;;  %v2236_v55 = vmax.f32 %v2111_v54, 0.0 }
 0x174   : > { %3633 = vst.msk [vmem:[%s4883_s15 + $0x118] sm:$0xff] %vm348_vm0, %v2238_v52  ;;  %2010 = vst.msk [vmem:[%s4883_s15 + $0x8] sm:$0xff] %vm348_vm0, %v1978_v53 }
 0x175   : > { %3631 = vst.msk [vmem:[%s4883_s15 + $0x108] sm:$0xff] %vm348_vm0, %v2236_v55 }
 0x176   : > { %v4094_v56 = vpop.f32.mrb[68].mxu0 }
 0x177   : > { %v1983_v57 = vmax.f32 %v4094_v56, 0.0  ;;  %v4134_v58 = vpop.f32.mrb[68].mxu1  ;;  %v1866_v59 = vpop.f32.mrb[69].mxu0 }
 0x178   : > { %v2241_v60 = vmax.f32 %v4134_v58, 0.0  ;;  %v1981_v61 = vmax.f32 %v1866_v59, 0.0  ;;  %v2124_v62 = vpop.f32.mrb[69].mxu1  ;;  %v4095_v63 = vpop.f32.mrb[70].mxu0 }
 0x179   : > { %2015 = vst.msk [vmem:[%s4883_s15 + $0x30] sm:$0xff] %vm348_vm0, %v1983_v57  ;;  %v2239_v0 = vmax.f32 %v2124_v62, 0.0  ;;  %v1984_v1 = vmax.f32 %v4095_v63, 0.0  ;;  %v4135_v2 = vpop.f32.mrb[70].mxu1  ;;  %v1869_v3 = vpop.f32.mrb[71].mxu0 }
 0x17a   : > { %3636 = vst.msk [vmem:[%s4883_s15 + $0x130] sm:$0xff] %vm348_vm0, %v2241_v60  ;;  %2013 = vst.msk [vmem:[%s4883_s15 + $0x20] sm:$0xff] %vm348_vm0, %v1981_v61  ;;  %v2242_v4 = vmax.f32 %v4135_v2, 0.0  ;;  %v1982_v5 = vmax.f32 %v1869_v3, 0.0  ;;  %v2127_v6 = vpop.f32.mrb[71].mxu1 }
 0x17b   : > { %3634 = vst.msk [vmem:[%s4883_s15 + $0x120] sm:$0xff] %vm348_vm0, %v2239_v0  ;;  %2016 = vst.msk [vmem:[%s4883_s15 + $0x38] sm:$0xff] %vm348_vm0, %v1984_v1  ;;  %v2240_v7 = vmax.f32 %v2127_v6, 0.0 }
 0x17c   : > { %3637 = vst.msk [vmem:[%s4883_s15 + $0x138] sm:$0xff] %vm348_vm0, %v2242_v4  ;;  %2014 = vst.msk [vmem:[%s4883_s15 + $0x28] sm:$0xff] %vm348_vm0, %v1982_v5 }
 0x17d   : > { %3635 = vst.msk [vmem:[%s4883_s15 + $0x128] sm:$0xff] %vm348_vm0, %v2240_v7 }
 0x17e   : > { %v4098_v8 = vpop.f32.mrb[72].mxu0 }
 0x17f   : > { %v1987_v9 = vmax.f32 %v4098_v8, 0.0  ;;  %v4138_v10 = vpop.f32.mrb[72].mxu1  ;;  %v1882_v11 = vpop.f32.mrb[73].mxu0 }
 0x180   : > { %v2245_v12 = vmax.f32 %v4138_v10, 0.0  ;;  %v1985_v13 = vmax.f32 %v1882_v11, 0.0  ;;  %v2140_v14 = vpop.f32.mrb[73].mxu1  ;;  %v4099_v15 = vpop.f32.mrb[74].mxu0 }
 0x181   : > { %2019 = vst.msk [vmem:[%s4883_s15 + $0x50] sm:$0xff] %vm348_vm0, %v1987_v9  ;;  %v2243_v16 = vmax.f32 %v2140_v14, 0.0  ;;  %v1988_v17 = vmax.f32 %v4099_v15, 0.0  ;;  %v4139_v18 = vpop.f32.mrb[74].mxu1  ;;  %v1885_v19 = vpop.f32.mrb[75].mxu0 }
 0x182   : > { %3640 = vst.msk [vmem:[%s4883_s15 + $0x150] sm:$0xff] %vm348_vm0, %v2245_v12  ;;  %2017 = vst.msk [vmem:[%s4883_s15 + $0x40] sm:$0xff] %vm348_vm0, %v1985_v13  ;;  %v2246_v20 = vmax.f32 %v4139_v18, 0.0  ;;  %v1986_v21 = vmax.f32 %v1885_v19, 0.0  ;;  %v2143_v22 = vpop.f32.mrb[75].mxu1 }
 0x183   : > { %3638 = vst.msk [vmem:[%s4883_s15 + $0x140] sm:$0xff] %vm348_vm0, %v2243_v16  ;;  %2020 = vst.msk [vmem:[%s4883_s15 + $0x58] sm:$0xff] %vm348_vm0, %v1988_v17  ;;  %v2244_v23 = vmax.f32 %v2143_v22, 0.0 }
 0x184   : > { %3641 = vst.msk [vmem:[%s4883_s15 + $0x158] sm:$0xff] %vm348_vm0, %v2246_v20  ;;  %2018 = vst.msk [vmem:[%s4883_s15 + $0x48] sm:$0xff] %vm348_vm0, %v1986_v21 }
 0x185   : > { %3639 = vst.msk [vmem:[%s4883_s15 + $0x148] sm:$0xff] %vm348_vm0, %v2244_v23 }
 0x186   : > { %v4102_v24 = vpop.f32.mrb[76].mxu0 }
 0x187   : > { %v1991_v25 = vmax.f32 %v4102_v24, 0.0  ;;  %v4142_v26 = vpop.f32.mrb[76].mxu1  ;;  %v1898_v27 = vpop.f32.mrb[77].mxu0 }
 0x188   : > { %v2249_v28 = vmax.f32 %v4142_v26, 0.0  ;;  %v1989_v29 = vmax.f32 %v1898_v27, 0.0  ;;  %v2156_v30 = vpop.f32.mrb[77].mxu1  ;;  %v4103_v31 = vpop.f32.mrb[78].mxu0 }
 0x189   : > { %2023 = vst.msk [vmem:[%s4883_s15 + $0x70] sm:$0xff] %vm348_vm0, %v1991_v25  ;;  %v2247_v32 = vmax.f32 %v2156_v30, 0.0  ;;  %v1992_v33 = vmax.f32 %v4103_v31, 0.0  ;;  %v4143_v34 = vpop.f32.mrb[78].mxu1  ;;  %v1901_v35 = vpop.f32.mrb[79].mxu0 }
 0x18a   : > { %3644 = vst.msk [vmem:[%s4883_s15 + $0x170] sm:$0xff] %vm348_vm0, %v2249_v28  ;;  %2021 = vst.msk [vmem:[%s4883_s15 + $0x60] sm:$0xff] %vm348_vm0, %v1989_v29  ;;  %v2250_v36 = vmax.f32 %v4143_v34, 0.0  ;;  %v1990_v37 = vmax.f32 %v1901_v35, 0.0  ;;  %v2159_v38 = vpop.f32.mrb[79].mxu1 }
 0x18b   : > { %3642 = vst.msk [vmem:[%s4883_s15 + $0x160] sm:$0xff] %vm348_vm0, %v2247_v32  ;;  %2024 = vst.msk [vmem:[%s4883_s15 + $0x78] sm:$0xff] %vm348_vm0, %v1992_v33  ;;  %v2248_v39 = vmax.f32 %v2159_v38, 0.0 }
 0x18c   : > { %3645 = vst.msk [vmem:[%s4883_s15 + $0x178] sm:$0xff] %vm348_vm0, %v2250_v36  ;;  %2022 = vst.msk [vmem:[%s4883_s15 + $0x68] sm:$0xff] %vm348_vm0, %v1990_v37 }
 0x18d   : > { %3643 = vst.msk [vmem:[%s4883_s15 + $0x168] sm:$0xff] %vm348_vm0, %v2248_v39 }
 0x18e   : > { %v4106_v40 = vpop.f32.mrb[80].mxu0 }
 0x18f   : > { %v1995_v41 = vmax.f32 %v4106_v40, 0.0  ;;  %v4146_v42 = vpop.f32.mrb[80].mxu1  ;;  %v1914_v43 = vpop.f32.mrb[81].mxu0  ;;  %v2329_v40 = vld [vmem:[%s4624_s13] sm:$0xff] (%p4298_p4)  }
 0x190   : > { %v2253_v44 = vmax.f32 %v4146_v42, 0.0  ;;  %v1993_v45 = vmax.f32 %v1914_v43, 0.0  ;;  %v2172_v46 = vpop.f32.mrb[81].mxu1  ;;  %v4107_v47 = vpop.f32.mrb[82].mxu0  ;;  %v2337_v42 = vld [vmem:[%s4624_s13 + $0x10] sm:$0xff] (%p4298_p4)   ;;  %v2341_v43 = vld [vmem:[%s4624_s13 + $0x18] sm:$0xff] (%p4298_p4)   ;;  %2330 = vst [vmem:[%s5022_s24] sm:$0xff] (%p4298_p4), %v2329_v40  }
 0x191   : > { %2027 = vst.msk [vmem:[%s4883_s15 + $0x90] sm:$0xff] %vm348_vm0, %v1995_v41  ;;  %v2251_v48 = vmax.f32 %v2172_v46, 0.0  ;;  %v1996_v49 = vmax.f32 %v4107_v47, 0.0  ;;  %v4147_v50 = vpop.f32.mrb[82].mxu1  ;;  %v1917_v51 = vpop.f32.mrb[83].mxu0  ;;  %v2333_v41 = vld [vmem:[%s4624_s13 + $0x8] sm:$0xff] (%p4298_p4)  }
 0x192   : > { %3648 = vst.msk [vmem:[%s4883_s15 + $0x190] sm:$0xff] %vm348_vm0, %v2253_v44  ;;  %2025 = vst.msk [vmem:[%s4883_s15 + $0x80] sm:$0xff] %vm348_vm0, %v1993_v45  ;;  %v2254_v52 = vmax.f32 %v4147_v50, 0.0  ;;  %v1994_v53 = vmax.f32 %v1917_v51, 0.0  ;;  %v2175_v54 = vpop.f32.mrb[83].mxu1  ;;  %v2345_v44 = vld [vmem:[%s4624_s13 + $0x20] sm:$0xff] (%p4298_p4)  }
 0x193   : > { %3646 = vst.msk [vmem:[%s4883_s15 + $0x180] sm:$0xff] %vm348_vm0, %v2251_v48  ;;  %2028 = vst.msk [vmem:[%s4883_s15 + $0x98] sm:$0xff] %vm348_vm0, %v1996_v49  ;;  %v2252_v55 = vmax.f32 %v2175_v54, 0.0  ;;  %v2349_v45 = vld [vmem:[%s4624_s13 + $0x28] sm:$0xff] (%p4298_p4)   ;;  %v2353_v46 = vld [vmem:[%s4624_s13 + $0x30] sm:$0xff] (%p4298_p4)  }
 0x194   : > { %3649 = vst.msk [vmem:[%s4883_s15 + $0x198] sm:$0xff] %vm348_vm0, %v2254_v52  ;;  %2026 = vst.msk [vmem:[%s4883_s15 + $0x88] sm:$0xff] %vm348_vm0, %v1994_v53  ;;  %v2357_v47 = vld [vmem:[%s4624_s13 + $0x38] sm:$0xff] (%p4298_p4)   ;;  %v2361_v48 = vld [vmem:[%s4624_s13 + $0x40] sm:$0xff] (%p4298_p4)  }
 0x195   : > { %3647 = vst.msk [vmem:[%s4883_s15 + $0x188] sm:$0xff] %vm348_vm0, %v2252_v55  ;;  %2334 = vst [vmem:[%s5022_s24 + $0x8] sm:$0xff] (%p4298_p4), %v2333_v41   ;;  %v2365_v49 = vld [vmem:[%s4624_s13 + $0x48] sm:$0xff] (%p4298_p4)   ;;  %v2369_v50 = vld [vmem:[%s4624_s13 + $0x50] sm:$0xff] (%p4298_p4)  }
 0x196   : > { %v4110_v56 = vpop.f32.mrb[84].mxu0  ;;  %2338 = vst [vmem:[%s5022_s24 + $0x10] sm:$0xff] (%p4298_p4), %v2337_v42   ;;  %2342 = vst [vmem:[%s5022_s24 + $0x18] sm:$0xff] (%p4298_p4), %v2341_v43   ;;  %v2373_v51 = vld [vmem:[%s4624_s13 + $0x58] sm:$0xff] (%p4298_p4)   ;;  %v2377_v52 = vld [vmem:[%s4624_s13 + $0x60] sm:$0xff] (%p4298_p4)  }
 0x197   : > { %v1999_v57 = vmax.f32 %v4110_v56, 0.0  ;;  %v4150_v58 = vpop.f32.mrb[84].mxu1  ;;  %v1930_v59 = vpop.f32.mrb[85].mxu0  ;;  %2346 = vst [vmem:[%s5022_s24 + $0x20] sm:$0xff] (%p4298_p4), %v2345_v44   ;;  %2350 = vst [vmem:[%s5022_s24 + $0x28] sm:$0xff] (%p4298_p4), %v2349_v45   ;;  %v2381_v53 = vld [vmem:[%s4624_s13 + $0x68] sm:$0xff] (%p4298_p4)  }
 0x198   : > { %v2257_v60 = vmax.f32 %v4150_v58, 0.0  ;;  %v1997_v61 = vmax.f32 %v1930_v59, 0.0  ;;  %v2188_v62 = vpop.f32.mrb[85].mxu1  ;;  %v4111_v63 = vpop.f32.mrb[86].mxu0  ;;  %2354 = vst [vmem:[%s5022_s24 + $0x30] sm:$0xff] (%p4298_p4), %v2353_v46   ;;  %2358 = vst [vmem:[%s5022_s24 + $0x38] sm:$0xff] (%p4298_p4), %v2357_v47  }
 0x199   : > { %2031 = vst.msk [vmem:[%s4883_s15 + $0xb0] sm:$0xff] %vm348_vm0, %v1999_v57  ;;  %v2255_v0 = vmax.f32 %v2188_v62, 0.0  ;;  %v2000_v1 = vmax.f32 %v4111_v63, 0.0  ;;  %v4151_v2 = vpop.f32.mrb[86].mxu1  ;;  %v1933_v3 = vpop.f32.mrb[87].mxu0  ;;  %2362 = vst [vmem:[%s5022_s24 + $0x40] sm:$0xff] (%p4298_p4), %v2361_v48  }
 0x19a   : > { %3652 = vst.msk [vmem:[%s4883_s15 + $0x1b0] sm:$0xff] %vm348_vm0, %v2257_v60  ;;  %2029 = vst.msk [vmem:[%s4883_s15 + $0xa0] sm:$0xff] %vm348_vm0, %v1997_v61  ;;  %v2258_v4 = vmax.f32 %v4151_v2, 0.0  ;;  %v1998_v5 = vmax.f32 %v1933_v3, 0.0  ;;  %v2191_v6 = vpop.f32.mrb[87].mxu1  ;;  %v2385_v54 = vld [vmem:[%s4624_s13 + $0x70] sm:$0xff] (%p4298_p4)  }
 0x19b   : > { %3650 = vst.msk [vmem:[%s4883_s15 + $0x1a0] sm:$0xff] %vm348_vm0, %v2255_v0  ;;  %2032 = vst.msk [vmem:[%s4883_s15 + $0xb8] sm:$0xff] %vm348_vm0, %v2000_v1  ;;  %v2256_v7 = vmax.f32 %v2191_v6, 0.0  ;;  %v2389_v55 = vld [vmem:[%s4624_s13 + $0x78] sm:$0xff] (%p4298_p4)   ;;  %v2393_v56 = vld [vmem:[%s4624_s13 + $0x80] sm:$0xff] (%p4298_p4)  }
 0x19c   : > { %3653 = vst.msk [vmem:[%s4883_s15 + $0x1b8] sm:$0xff] %vm348_vm0, %v2258_v4  ;;  %2030 = vst.msk [vmem:[%s4883_s15 + $0xa8] sm:$0xff] %vm348_vm0, %v1998_v5  ;;  %v2397_v57 = vld [vmem:[%s4624_s13 + $0x88] sm:$0xff] (%p4298_p4)   ;;  %v2401_v58 = vld [vmem:[%s4624_s13 + $0x90] sm:$0xff] (%p4298_p4)  }
 0x19d   : > { %3651 = vst.msk [vmem:[%s4883_s15 + $0x1a8] sm:$0xff] %vm348_vm0, %v2256_v7  ;;  %2366 = vst [vmem:[%s5022_s24 + $0x48] sm:$0xff] (%p4298_p4), %v2365_v49   ;;  %v2405_v59 = vld [vmem:[%s4624_s13 + $0x98] sm:$0xff] (%p4298_p4)   ;;  %v2409_v60 = vld [vmem:[%s4624_s13 + $0xa0] sm:$0xff] (%p4298_p4)  }
 0x19e   : > { %v4114_v8 = vpop.f32.mrb[88].mxu0  ;;  %2370 = vst [vmem:[%s5022_s24 + $0x50] sm:$0xff] (%p4298_p4), %v2369_v50   ;;  %2374 = vst [vmem:[%s5022_s24 + $0x58] sm:$0xff] (%p4298_p4), %v2373_v51   ;;  %v2413_v61 = vld [vmem:[%s4624_s13 + $0xa8] sm:$0xff] (%p4298_p4)   ;;  %v2417_v62 = vld [vmem:[%s4624_s13 + $0xb0] sm:$0xff] (%p4298_p4)  }
 0x19f   : > { %v2003_v9 = vmax.f32 %v4114_v8, 0.0  ;;  %v4154_v10 = vpop.f32.mrb[88].mxu1  ;;  %v1946_v11 = vpop.f32.mrb[89].mxu0  ;;  %2378 = vst [vmem:[%s5022_s24 + $0x60] sm:$0xff] (%p4298_p4), %v2377_v52   ;;  %2382 = vst [vmem:[%s5022_s24 + $0x68] sm:$0xff] (%p4298_p4), %v2381_v53   ;;  %v2421_v63 = vld [vmem:[%s4624_s13 + $0xb8] sm:$0xff] (%p4298_p4)  }
 0x1a0   : > { %v2261_v12 = vmax.f32 %v4154_v10, 0.0  ;;  %v2001_v13 = vmax.f32 %v1946_v11, 0.0  ;;  %v2204_v14 = vpop.f32.mrb[89].mxu1  ;;  %v4115_v15 = vpop.f32.mrb[90].mxu0  ;;  %2386 = vst [vmem:[%s5022_s24 + $0x70] sm:$0xff] (%p4298_p4), %v2385_v54   ;;  %2390 = vst [vmem:[%s5022_s24 + $0x78] sm:$0xff] (%p4298_p4), %v2389_v55  }
 0x1a1   : > { %2035 = vst.msk [vmem:[%s4883_s15 + $0xd0] sm:$0xff] %vm348_vm0, %v2003_v9  ;;  %v2259_v16 = vmax.f32 %v2204_v14, 0.0  ;;  %v2004_v17 = vmax.f32 %v4115_v15, 0.0  ;;  %v4155_v18 = vpop.f32.mrb[90].mxu1  ;;  %v1949_v19 = vpop.f32.mrb[91].mxu0  ;;  %2394 = vst [vmem:[%s5022_s24 + $0x100] sm:$0xff] (%p4298_p4), %v2393_v56  }
 0x1a2   : > { %3656 = vst.msk [vmem:[%s4883_s15 + $0x1d0] sm:$0xff] %vm348_vm0, %v2261_v12  ;;  %2033 = vst.msk [vmem:[%s4883_s15 + $0xc0] sm:$0xff] %vm348_vm0, %v2001_v13  ;;  %v2262_v20 = vmax.f32 %v4155_v18, 0.0  ;;  %v2002_v21 = vmax.f32 %v1949_v19, 0.0  ;;  %v2207_v22 = vpop.f32.mrb[91].mxu1  ;;  %v2425_v0 = vld [vmem:[%s4624_s13 + $0xc0] sm:$0xff] (%p4298_p4)  }
 0x1a3   : > { %3654 = vst.msk [vmem:[%s4883_s15 + $0x1c0] sm:$0xff] %vm348_vm0, %v2259_v16  ;;  %2036 = vst.msk [vmem:[%s4883_s15 + $0xd8] sm:$0xff] %vm348_vm0, %v2004_v17  ;;  %v2260_v23 = vmax.f32 %v2207_v22, 0.0  ;;  %v2429_v1 = vld [vmem:[%s4624_s13 + $0xc8] sm:$0xff] (%p4298_p4)   ;;  %v2433_v2 = vld [vmem:[%s4624_s13 + $0xd0] sm:$0xff] (%p4298_p4)  }
 0x1a4   : > { %3657 = vst.msk [vmem:[%s4883_s15 + $0x1d8] sm:$0xff] %vm348_vm0, %v2262_v20  ;;  %2034 = vst.msk [vmem:[%s4883_s15 + $0xc8] sm:$0xff] %vm348_vm0, %v2002_v21  ;;  %v2437_v3 = vld [vmem:[%s4624_s13 + $0xd8] sm:$0xff] (%p4298_p4)   ;;  %v2441_v4 = vld [vmem:[%s4624_s13 + $0xe0] sm:$0xff] (%p4298_p4)  }
 0x1a5   : > { %3655 = vst.msk [vmem:[%s4883_s15 + $0x1c8] sm:$0xff] %vm348_vm0, %v2260_v23  ;;  %2398 = vst [vmem:[%s5022_s24 + $0x108] sm:$0xff] (%p4298_p4), %v2397_v57   ;;  %v2445_v5 = vld [vmem:[%s4624_s13 + $0xe8] sm:$0xff] (%p4298_p4)   ;;  %v2449_v6 = vld [vmem:[%s4624_s13 + $0xf0] sm:$0xff] (%p4298_p4)  }
 0x1a6   : > { %v4118_v24 = vpop.f32.mrb[92].mxu0  ;;  %2402 = vst [vmem:[%s5022_s24 + $0x110] sm:$0xff] (%p4298_p4), %v2401_v58   ;;  %2406 = vst [vmem:[%s5022_s24 + $0x118] sm:$0xff] (%p4298_p4), %v2405_v59   ;;  %v2453_v7 = vld [vmem:[%s4624_s13 + $0xf8] sm:$0xff] (%p4298_p4)   ;;  %v2457_v8 = vld [vmem:[%s4624_s13 + $0x100] sm:$0xff] (%p4298_p4)  }
 0x1a7   : > { %v2007_v25 = vmax.f32 %v4118_v24, 0.0  ;;  %v4158_v26 = vpop.f32.mrb[92].mxu1  ;;  %v1962_v27 = vpop.f32.mrb[93].mxu0  ;;  %2310 = sbr.rel (!%p4298_p4) target bundleno = 449 (0x1c1), region = 36  ;;  %2410 = vst [vmem:[%s5022_s24 + $0x120] sm:$0xff] (%p4298_p4), %v2409_v60   ;;  %2414 = vst [vmem:[%s5022_s24 + $0x128] sm:$0xff] (%p4298_p4), %v2413_v61  }
 0x1a8   : > { %v2265_v28 = vmax.f32 %v4158_v26, 0.0  ;;  %v2005_v29 = vmax.f32 %v1962_v27, 0.0  ;;  %v2220_v30 = vpop.f32.mrb[93].mxu1  ;;  %v4119_v31 = vpop.f32.mrb[94].mxu0  ;;  %2418 = vst [vmem:[%s5022_s24 + $0x130] sm:$0xff] (%p4298_p4), %v2417_v62   ;;  %2422 = vst [vmem:[%s5022_s24 + $0x138] sm:$0xff] (%p4298_p4), %v2421_v63  }
 0x1a9   : > { %2039 = vst.msk [vmem:[%s4883_s15 + $0xf0] sm:$0xff] %vm348_vm0, %v2007_v25  ;;  %v2263_v32 = vmax.f32 %v2220_v30, 0.0  ;;  %v2008_v33 = vmax.f32 %v4119_v31, 0.0  ;;  %v4159_v34 = vpop.f32.mrb[94].mxu1  ;;  %v1965_v35 = vpop.f32.mrb[95].mxu0  ;;  %2426 = vst [vmem:[%s5022_s24 + $0x140] sm:$0xff] (%p4298_p4), %v2425_v0  }
 0x1aa   : > { %3660 = vst.msk [vmem:[%s4883_s15 + $0x1f0] sm:$0xff] %vm348_vm0, %v2265_v28  ;;  %2037 = vst.msk [vmem:[%s4883_s15 + $0xe0] sm:$0xff] %vm348_vm0, %v2005_v29  ;;  %v2266_v36 = vmax.f32 %v4159_v34, 0.0  ;;  %v2006_v37 = vmax.f32 %v1965_v35, 0.0  ;;  %v2223_v38 = vpop.f32.mrb[95].mxu1  ;;  %v2461_v9 = vld [vmem:[%s4624_s13 + $0x108] sm:$0xff] (%p4298_p4)  }
 0x1ab   : > { %3658 = vst.msk [vmem:[%s4883_s15 + $0x1e0] sm:$0xff] %vm348_vm0, %v2263_v32  ;;  %2040 = vst.msk [vmem:[%s4883_s15 + $0xf8] sm:$0xff] %vm348_vm0, %v2008_v33  ;;  %v2264_v39 = vmax.f32 %v2223_v38, 0.0  ;;  %v2465_v10 = vld [vmem:[%s4624_s13 + $0x110] sm:$0xff] (%p4298_p4)   ;;  %v2469_v11 = vld [vmem:[%s4624_s13 + $0x118] sm:$0xff] (%p4298_p4)  }
 0x1ac   : > { %3661 = vst.msk [vmem:[%s4883_s15 + $0x1f8] sm:$0xff] %vm348_vm0, %v2266_v36  ;;  %2038 = vst.msk [vmem:[%s4883_s15 + $0xe8] sm:$0xff] %vm348_vm0, %v2006_v37  ;;  %v2473_v12 = vld [vmem:[%s4624_s13 + $0x120] sm:$0xff] (%p4298_p4)   ;;  %v2477_v13 = vld [vmem:[%s4624_s13 + $0x128] sm:$0xff] (%p4298_p4)  }
 0x1ad   : > { %3659 = vst.msk [vmem:[%s4883_s15 + $0x1e8] sm:$0xff] %vm348_vm0, %v2264_v39  ;;  %2430 = vst [vmem:[%s5022_s24 + $0x148] sm:$0xff] (%p4298_p4), %v2429_v1   ;;  %v2481_v14 = vld [vmem:[%s4624_s13 + $0x130] sm:$0xff] (%p4298_p4)   ;;  %v2485_v15 = vld [vmem:[%s4624_s13 + $0x138] sm:$0xff] (%p4298_p4)  }
 0x1ae   : > { %2434 = vst [vmem:[%s5022_s24 + $0x150] sm:$0xff] %v2433_v2   ;;  %2438 = vst [vmem:[%s5022_s24 + $0x158] sm:$0xff] %v2437_v3   ;;  %v2489_v16 = vld [vmem:[%s4624_s13 + $0x140] sm:$0xff]   ;;  %v2493_v17 = vld [vmem:[%s4624_s13 + $0x148] sm:$0xff]  }
 0x1af   : > { %2442 = vst [vmem:[%s5022_s24 + $0x160] sm:$0xff] %v2441_v4   ;;  %2446 = vst [vmem:[%s5022_s24 + $0x168] sm:$0xff] %v2445_v5   ;;  %v2497_v18 = vld [vmem:[%s4624_s13 + $0x150] sm:$0xff]   ;;  %v2501_v19 = vld [vmem:[%s4624_s13 + $0x158] sm:$0xff]  }
 0x1b0   : > { %2450 = vst [vmem:[%s5022_s24 + $0x170] sm:$0xff] %v2449_v6   ;;  %2454 = vst [vmem:[%s5022_s24 + $0x178] sm:$0xff] %v2453_v7   ;;  %v2505_v20 = vld [vmem:[%s4624_s13 + $0x160] sm:$0xff]   ;;  %v2509_v21 = vld [vmem:[%s4624_s13 + $0x168] sm:$0xff]  }
 0x1b1   : > { %2458 = vst [vmem:[%s5022_s24 + $0x200] sm:$0xff] %v2457_v8   ;;  %2462 = vst [vmem:[%s5022_s24 + $0x208] sm:$0xff] %v2461_v9   ;;  %v2513_v22 = vld [vmem:[%s4624_s13 + $0x170] sm:$0xff]   ;;  %v2517_v23 = vld [vmem:[%s4624_s13 + $0x178] sm:$0xff]  }
 0x1b2   : > { %2466 = vst [vmem:[%s5022_s24 + $0x210] sm:$0xff] %v2465_v10   ;;  %2470 = vst [vmem:[%s5022_s24 + $0x218] sm:$0xff] %v2469_v11   ;;  %v2521_v24 = vld [vmem:[%s4624_s13 + $0x180] sm:$0xff]   ;;  %v2525_v25 = vld [vmem:[%s4624_s13 + $0x188] sm:$0xff]  }
 0x1b3   : > { %2474 = vst [vmem:[%s5022_s24 + $0x220] sm:$0xff] %v2473_v12   ;;  %2478 = vst [vmem:[%s5022_s24 + $0x228] sm:$0xff] %v2477_v13   ;;  %v2529_v26 = vld [vmem:[%s4624_s13 + $0x190] sm:$0xff]   ;;  %v2533_v27 = vld [vmem:[%s4624_s13 + $0x198] sm:$0xff]  }
 0x1b4   : > { %2482 = vst [vmem:[%s5022_s24 + $0x230] sm:$0xff] %v2481_v14   ;;  %2486 = vst [vmem:[%s5022_s24 + $0x238] sm:$0xff] %v2485_v15   ;;  %v2537_v28 = vld [vmem:[%s4624_s13 + $0x1a0] sm:$0xff]   ;;  %v2541_v29 = vld [vmem:[%s4624_s13 + $0x1a8] sm:$0xff]  }
 0x1b5   : > { %2490 = vst [vmem:[%s5022_s24 + $0x240] sm:$0xff] %v2489_v16   ;;  %2494 = vst [vmem:[%s5022_s24 + $0x248] sm:$0xff] %v2493_v17   ;;  %v2545_v30 = vld [vmem:[%s4624_s13 + $0x1b0] sm:$0xff]   ;;  %v2549_v31 = vld [vmem:[%s4624_s13 + $0x1b8] sm:$0xff]  }
 0x1b6   : > { %2498 = vst [vmem:[%s5022_s24 + $0x250] sm:$0xff] %v2497_v18   ;;  %2502 = vst [vmem:[%s5022_s24 + $0x258] sm:$0xff] %v2501_v19   ;;  %v2553_v32 = vld [vmem:[%s4624_s13 + $0x1c0] sm:$0xff]   ;;  %v2557_v33 = vld [vmem:[%s4624_s13 + $0x1c8] sm:$0xff]  }
 0x1b7   : > { %2506 = vst [vmem:[%s5022_s24 + $0x260] sm:$0xff] %v2505_v20   ;;  %2510 = vst [vmem:[%s5022_s24 + $0x268] sm:$0xff] %v2509_v21   ;;  %v2561_v34 = vld [vmem:[%s4624_s13 + $0x1d0] sm:$0xff]   ;;  %v2565_v35 = vld [vmem:[%s4624_s13 + $0x1d8] sm:$0xff]  }
 0x1b8   : > { %2514 = vst [vmem:[%s5022_s24 + $0x270] sm:$0xff] %v2513_v22   ;;  %2518 = vst [vmem:[%s5022_s24 + $0x278] sm:$0xff] %v2517_v23   ;;  %v2569_v36 = vld [vmem:[%s4624_s13 + $0x1e0] sm:$0xff]   ;;  %v2573_v37 = vld [vmem:[%s4624_s13 + $0x1e8] sm:$0xff]  }
 0x1b9   : > { %2522 = vst [vmem:[%s5022_s24 + $0x300] sm:$0xff] %v2521_v24   ;;  %2526 = vst [vmem:[%s5022_s24 + $0x308] sm:$0xff] %v2525_v25   ;;  %v2577_v38 = vld [vmem:[%s4624_s13 + $0x1f0] sm:$0xff]   ;;  %v2581_v39 = vld [vmem:[%s4624_s13 + $0x1f8] sm:$0xff]  }
 0x1ba   : > { %2530 = vst [vmem:[%s5022_s24 + $0x310] sm:$0xff] %v2529_v26   ;;  %2534 = vst [vmem:[%s5022_s24 + $0x318] sm:$0xff] %v2533_v27  }
 0x1bb   : > { %2538 = vst [vmem:[%s5022_s24 + $0x320] sm:$0xff] %v2537_v28   ;;  %2542 = vst [vmem:[%s5022_s24 + $0x328] sm:$0xff] %v2541_v29  }
 0x1bc   : > { %2546 = vst [vmem:[%s5022_s24 + $0x330] sm:$0xff] %v2545_v30   ;;  %2550 = vst [vmem:[%s5022_s24 + $0x338] sm:$0xff] %v2549_v31  }
 0x1bd   : > { %2554 = vst [vmem:[%s5022_s24 + $0x340] sm:$0xff] %v2553_v32   ;;  %2558 = vst [vmem:[%s5022_s24 + $0x348] sm:$0xff] %v2557_v33  }
 0x1be   : > { %2562 = vst [vmem:[%s5022_s24 + $0x350] sm:$0xff] %v2561_v34   ;;  %2566 = vst [vmem:[%s5022_s24 + $0x358] sm:$0xff] %v2565_v35  }
 0x1bf   : > { %2570 = vst [vmem:[%s5022_s24 + $0x360] sm:$0xff] %v2569_v36   ;;  %2574 = vst [vmem:[%s5022_s24 + $0x368] sm:$0xff] %v2573_v37  }
 0x1c0   : > { %2578 = vst [vmem:[%s5022_s24 + $0x370] sm:$0xff] %v2577_v38   ;;  %2582 = vst [vmem:[%s5022_s24 + $0x378] sm:$0xff] %v2581_v39  }
 0x1c1 PF: > { %2863 = sbr.rel (!%p4298_p4) target bundleno = 483 (0x1e3), region = 77  ;;  %s3799_s25 = sshll.u32 (%p4298_p4), %s4286_s18, 8  ;;  %v3020_v40 = vld [vmem:[%s4883_s15] sm:$0xff] (%p4298_p4)  ;;  %v3022_v41 = vld [vmem:[%s4883_s15 + $0x8] sm:$0xff] (%p4298_p4)  ;;  %v3024_v42 = vld [vmem:[%s4883_s15 + $0x10] sm:$0xff] (%p4298_p4) }
 0x1c2   : > { %s5158_s14 = scalar_lea.vmem (%p4298_p4), %s5299_s4, %s3799_s25  ;;  %v3026_v43 = vld [vmem:[%s4883_s15 + $0x18] sm:$0xff] (%p4298_p4)  ;;  %v3028_v44 = vld [vmem:[%s4883_s15 + $0x20] sm:$0xff] (%p4298_p4)  ;;  %v3030_v45 = vld [vmem:[%s4883_s15 + $0x28] sm:$0xff] (%p4298_p4) }
 0x1c3   : > { %3021 = vst [vmem:[%s5158_s14] sm:$0xff] (%p4298_p4), %v3020_v40  ;;  %3023 = vst [vmem:[%s5158_s14 + $0x8] sm:$0xff] (%p4298_p4), %v3022_v41  ;;  %v3032_v46 = vld [vmem:[%s4883_s15 + $0x30] sm:$0xff] (%p4298_p4)  ;;  %v3034_v47 = vld [vmem:[%s4883_s15 + $0x38] sm:$0xff] (%p4298_p4) }
 0x1c4   : > { %3025 = vst [vmem:[%s5158_s14 + $0x10] sm:$0xff] (%p4298_p4), %v3024_v42  ;;  %3027 = vst [vmem:[%s5158_s14 + $0x18] sm:$0xff] (%p4298_p4), %v3026_v43  ;;  %v3036_v48 = vld [vmem:[%s4883_s15 + $0x40] sm:$0xff] (%p4298_p4)  ;;  %v3038_v49 = vld [vmem:[%s4883_s15 + $0x48] sm:$0xff] (%p4298_p4) }
 0x1c5   : > { %3029 = vst [vmem:[%s5158_s14 + $0x20] sm:$0xff] (%p4298_p4), %v3028_v44  ;;  %3031 = vst [vmem:[%s5158_s14 + $0x28] sm:$0xff] (%p4298_p4), %v3030_v45  ;;  %v3040_v50 = vld [vmem:[%s4883_s15 + $0x50] sm:$0xff] (%p4298_p4)  ;;  %v3042_v51 = vld [vmem:[%s4883_s15 + $0x58] sm:$0xff] (%p4298_p4) }
 0x1c6   : > { %3033 = vst [vmem:[%s5158_s14 + $0x30] sm:$0xff] (%p4298_p4), %v3032_v46  ;;  %3035 = vst [vmem:[%s5158_s14 + $0x38] sm:$0xff] (%p4298_p4), %v3034_v47  ;;  %v3044_v52 = vld [vmem:[%s4883_s15 + $0x60] sm:$0xff] (%p4298_p4)  ;;  %v3046_v53 = vld [vmem:[%s4883_s15 + $0x68] sm:$0xff] (%p4298_p4) }
 0x1c7   : > { %3037 = vst [vmem:[%s5158_s14 + $0x40] sm:$0xff] (%p4298_p4), %v3036_v48  ;;  %3039 = vst [vmem:[%s5158_s14 + $0x48] sm:$0xff] (%p4298_p4), %v3038_v49  ;;  %v3048_v54 = vld [vmem:[%s4883_s15 + $0x70] sm:$0xff] (%p4298_p4)  ;;  %v3050_v55 = vld [vmem:[%s4883_s15 + $0x78] sm:$0xff] (%p4298_p4) }
 0x1c8   : > { %3041 = vst [vmem:[%s5158_s14 + $0x50] sm:$0xff] %v3040_v50  ;;  %3043 = vst [vmem:[%s5158_s14 + $0x58] sm:$0xff] %v3042_v51  ;;  %v3052_v56 = vld [vmem:[%s4883_s15 + $0x80] sm:$0xff]  ;;  %v3054_v57 = vld [vmem:[%s4883_s15 + $0x88] sm:$0xff] }
 0x1c9   : > { %3045 = vst [vmem:[%s5158_s14 + $0x60] sm:$0xff] %v3044_v52  ;;  %3047 = vst [vmem:[%s5158_s14 + $0x68] sm:$0xff] %v3046_v53  ;;  %v3056_v58 = vld [vmem:[%s4883_s15 + $0x90] sm:$0xff]  ;;  %v3058_v59 = vld [vmem:[%s4883_s15 + $0x98] sm:$0xff] }
 0x1ca   : > { %3049 = vst [vmem:[%s5158_s14 + $0x70] sm:$0xff] %v3048_v54  ;;  %3051 = vst [vmem:[%s5158_s14 + $0x78] sm:$0xff] %v3050_v55  ;;  %v3060_v60 = vld [vmem:[%s4883_s15 + $0xa0] sm:$0xff]  ;;  %v3062_v61 = vld [vmem:[%s4883_s15 + $0xa8] sm:$0xff] }
 0x1cb   : > { %3053 = vst [vmem:[%s5158_s14 + $0x80] sm:$0xff] %v3052_v56  ;;  %3055 = vst [vmem:[%s5158_s14 + $0x88] sm:$0xff] %v3054_v57  ;;  %v3064_v62 = vld [vmem:[%s4883_s15 + $0xb0] sm:$0xff]  ;;  %v3066_v63 = vld [vmem:[%s4883_s15 + $0xb8] sm:$0xff] }
 0x1cc   : > { %3057 = vst [vmem:[%s5158_s14 + $0x90] sm:$0xff] %v3056_v58  ;;  %3059 = vst [vmem:[%s5158_s14 + $0x98] sm:$0xff] %v3058_v59  ;;  %v3068_v0 = vld [vmem:[%s4883_s15 + $0xc0] sm:$0xff]  ;;  %v3070_v1 = vld [vmem:[%s4883_s15 + $0xc8] sm:$0xff] }
 0x1cd   : > { %3061 = vst [vmem:[%s5158_s14 + $0xa0] sm:$0xff] %v3060_v60  ;;  %3063 = vst [vmem:[%s5158_s14 + $0xa8] sm:$0xff] %v3062_v61  ;;  %v3072_v2 = vld [vmem:[%s4883_s15 + $0xd0] sm:$0xff]  ;;  %v3074_v3 = vld [vmem:[%s4883_s15 + $0xd8] sm:$0xff] }
 0x1ce   : > { %3065 = vst [vmem:[%s5158_s14 + $0xb0] sm:$0xff] %v3064_v62  ;;  %3067 = vst [vmem:[%s5158_s14 + $0xb8] sm:$0xff] %v3066_v63  ;;  %v3076_v4 = vld [vmem:[%s4883_s15 + $0xe0] sm:$0xff]  ;;  %v3078_v5 = vld [vmem:[%s4883_s15 + $0xe8] sm:$0xff] }
 0x1cf   : > { %3069 = vst [vmem:[%s5158_s14 + $0xc0] sm:$0xff] %v3068_v0  ;;  %3071 = vst [vmem:[%s5158_s14 + $0xc8] sm:$0xff] %v3070_v1  ;;  %v3080_v6 = vld [vmem:[%s4883_s15 + $0xf0] sm:$0xff]  ;;  %v3082_v7 = vld [vmem:[%s4883_s15 + $0xf8] sm:$0xff] }
 0x1d0   : > { %3073 = vst [vmem:[%s5158_s14 + $0xd0] sm:$0xff] %v3072_v2  ;;  %3075 = vst [vmem:[%s5158_s14 + $0xd8] sm:$0xff] %v3074_v3  ;;  %v3084_v8 = vld [vmem:[%s4883_s15 + $0x100] sm:$0xff]  ;;  %v3086_v9 = vld [vmem:[%s4883_s15 + $0x108] sm:$0xff] }
 0x1d1   : > { %3077 = vst [vmem:[%s5158_s14 + $0xe0] sm:$0xff] %v3076_v4  ;;  %3079 = vst [vmem:[%s5158_s14 + $0xe8] sm:$0xff] %v3078_v5  ;;  %v3088_v10 = vld [vmem:[%s4883_s15 + $0x110] sm:$0xff]  ;;  %v3090_v11 = vld [vmem:[%s4883_s15 + $0x118] sm:$0xff] }
 0x1d2   : > { %3081 = vst [vmem:[%s5158_s14 + $0xf0] sm:$0xff] %v3080_v6  ;;  %3083 = vst [vmem:[%s5158_s14 + $0xf8] sm:$0xff] %v3082_v7  ;;  %v3092_v12 = vld [vmem:[%s4883_s15 + $0x120] sm:$0xff]  ;;  %v3094_v13 = vld [vmem:[%s4883_s15 + $0x128] sm:$0xff] }
 0x1d3   : > { %3085 = vst [vmem:[%s5158_s14 + $0x200] sm:$0xff] %v3084_v8  ;;  %3087 = vst [vmem:[%s5158_s14 + $0x208] sm:$0xff] %v3086_v9  ;;  %v3096_v14 = vld [vmem:[%s4883_s15 + $0x130] sm:$0xff]  ;;  %v3098_v15 = vld [vmem:[%s4883_s15 + $0x138] sm:$0xff] }
 0x1d4   : > { %3089 = vst [vmem:[%s5158_s14 + $0x210] sm:$0xff] %v3088_v10  ;;  %3091 = vst [vmem:[%s5158_s14 + $0x218] sm:$0xff] %v3090_v11  ;;  %v3100_v16 = vld [vmem:[%s4883_s15 + $0x140] sm:$0xff]  ;;  %v3102_v17 = vld [vmem:[%s4883_s15 + $0x148] sm:$0xff] }
 0x1d5   : > { %3093 = vst [vmem:[%s5158_s14 + $0x220] sm:$0xff] %v3092_v12  ;;  %3095 = vst [vmem:[%s5158_s14 + $0x228] sm:$0xff] %v3094_v13  ;;  %v3104_v18 = vld [vmem:[%s4883_s15 + $0x150] sm:$0xff]  ;;  %v3106_v19 = vld [vmem:[%s4883_s15 + $0x158] sm:$0xff] }
 0x1d6   : > { %3097 = vst [vmem:[%s5158_s14 + $0x230] sm:$0xff] %v3096_v14  ;;  %3099 = vst [vmem:[%s5158_s14 + $0x238] sm:$0xff] %v3098_v15  ;;  %v3108_v20 = vld [vmem:[%s4883_s15 + $0x160] sm:$0xff]  ;;  %v3110_v21 = vld [vmem:[%s4883_s15 + $0x168] sm:$0xff] }
 0x1d7   : > { %3101 = vst [vmem:[%s5158_s14 + $0x240] sm:$0xff] %v3100_v16  ;;  %3103 = vst [vmem:[%s5158_s14 + $0x248] sm:$0xff] %v3102_v17  ;;  %v3112_v22 = vld [vmem:[%s4883_s15 + $0x170] sm:$0xff]  ;;  %v3114_v23 = vld [vmem:[%s4883_s15 + $0x178] sm:$0xff] }
 0x1d8   : > { %3105 = vst [vmem:[%s5158_s14 + $0x250] sm:$0xff] %v3104_v18  ;;  %3107 = vst [vmem:[%s5158_s14 + $0x258] sm:$0xff] %v3106_v19  ;;  %v3116_v24 = vld [vmem:[%s4883_s15 + $0x180] sm:$0xff]  ;;  %v3118_v25 = vld [vmem:[%s4883_s15 + $0x188] sm:$0xff] }
 0x1d9   : > { %3109 = vst [vmem:[%s5158_s14 + $0x260] sm:$0xff] %v3108_v20  ;;  %3111 = vst [vmem:[%s5158_s14 + $0x268] sm:$0xff] %v3110_v21  ;;  %v3120_v26 = vld [vmem:[%s4883_s15 + $0x190] sm:$0xff]  ;;  %v3122_v27 = vld [vmem:[%s4883_s15 + $0x198] sm:$0xff] }
 0x1da   : > { %3113 = vst [vmem:[%s5158_s14 + $0x270] sm:$0xff] %v3112_v22  ;;  %3115 = vst [vmem:[%s5158_s14 + $0x278] sm:$0xff] %v3114_v23  ;;  %v3124_v28 = vld [vmem:[%s4883_s15 + $0x1a0] sm:$0xff]  ;;  %v3126_v29 = vld [vmem:[%s4883_s15 + $0x1a8] sm:$0xff] }
 0x1db   : > { %3117 = vst [vmem:[%s5158_s14 + $0x280] sm:$0xff] %v3116_v24  ;;  %3119 = vst [vmem:[%s5158_s14 + $0x288] sm:$0xff] %v3118_v25  ;;  %v3128_v30 = vld [vmem:[%s4883_s15 + $0x1b0] sm:$0xff]  ;;  %v3130_v31 = vld [vmem:[%s4883_s15 + $0x1b8] sm:$0xff] }
 0x1dc   : > { %3121 = vst [vmem:[%s5158_s14 + $0x290] sm:$0xff] %v3120_v26  ;;  %3123 = vst [vmem:[%s5158_s14 + $0x298] sm:$0xff] %v3122_v27  ;;  %v3132_v32 = vld [vmem:[%s4883_s15 + $0x1c0] sm:$0xff]  ;;  %v3134_v33 = vld [vmem:[%s4883_s15 + $0x1c8] sm:$0xff] }
 0x1dd   : > { %3125 = vst [vmem:[%s5158_s14 + $0x2a0] sm:$0xff] %v3124_v28  ;;  %3127 = vst [vmem:[%s5158_s14 + $0x2a8] sm:$0xff] %v3126_v29  ;;  %v3136_v34 = vld [vmem:[%s4883_s15 + $0x1d0] sm:$0xff]  ;;  %v3138_v35 = vld [vmem:[%s4883_s15 + $0x1d8] sm:$0xff] }
 0x1de   : > { %3129 = vst [vmem:[%s5158_s14 + $0x2b0] sm:$0xff] %v3128_v30  ;;  %3131 = vst [vmem:[%s5158_s14 + $0x2b8] sm:$0xff] %v3130_v31  ;;  %v3140_v36 = vld [vmem:[%s4883_s15 + $0x1e0] sm:$0xff]  ;;  %v3142_v37 = vld [vmem:[%s4883_s15 + $0x1e8] sm:$0xff] }
 0x1df   : > { %3133 = vst [vmem:[%s5158_s14 + $0x2c0] sm:$0xff] %v3132_v32  ;;  %3135 = vst [vmem:[%s5158_s14 + $0x2c8] sm:$0xff] %v3134_v33  ;;  %v3144_v38 = vld [vmem:[%s4883_s15 + $0x1f0] sm:$0xff]  ;;  %v3146_v39 = vld [vmem:[%s4883_s15 + $0x1f8] sm:$0xff] }
 0x1e0   : > { %3137 = vst [vmem:[%s5158_s14 + $0x2d0] sm:$0xff] %v3136_v34  ;;  %3139 = vst [vmem:[%s5158_s14 + $0x2d8] sm:$0xff] %v3138_v35 }
 0x1e1   : > { %3141 = vst [vmem:[%s5158_s14 + $0x2e0] sm:$0xff] %v3140_v36  ;;  %3143 = vst [vmem:[%s5158_s14 + $0x2e8] sm:$0xff] %v3142_v37 }
 0x1e2   : > { %3145 = vst [vmem:[%s5158_s14 + $0x2f0] sm:$0xff] %v3144_v38  ;;  %3147 = vst [vmem:[%s5158_s14 + $0x2f8] sm:$0xff] %v3146_v39 }
 0x1e3 PF: > { %p12_p8 = scmp.ge.s32.totalorder %s4288_s19, 4   ;;  %s5301_s15 = smov %s4242_s16 }
 0x1e4   : > { %s5302_s16 = smov %s4296_s22  ;;  %s5303_s17 = smov %s4288_s19 }
 0x1e5   :  { %14 = sbr.rel (!%p12_p8) target bundleno = 2 (0x2), region = 161 }

// kernel: acsp_forward.5
= control target key start
LH: loop header
LB: loop body
LE: loop exit
PB: predicated region body
PF: predicated region fallthrough
CT: control target
= control target key end

     0   :  { %s6755_s9 = smov 0   ;;  %s6757_s10 = smov 0   ;;  %s7547_s0 = inlined_call_operand.vmem [shape: bf16[18,512,64], index: 0, kind: input, shape index: {}]   ;;  %s7548_s1 = inlined_call_operand.vmem [shape: bf16[18,64,64], index: 1, kind: input, shape index: {}]   ;;  %s7549_s2 = inlined_call_operand.vmem [shape: f32[2,512,64], index: 2, kind: output, shape index: {}]  }
   0x1   :  { %s6759_s11 = smov 0   ;;  %s6761_s12 = smov 0  }
   0x2   :  { %s6763_s13 = smov 0   ;;  %s6765_s14 = smov 0  }
   0x3   :  { %s6767_s15 = smov 0  }
   0x4 LB: > { %s21_s16 = sadd.s32 1, %s6730_s13  ;;  %s24_s17 = sadd.s32 1, %s6734_s14  ;;  %s6738_s15 = sphi %s6767_s15, %s12_s15   ;;  %s6734_s14 = sphi %s6765_s14, %s7555_s14   ;;  %s6730_s13 = sphi %s6763_s13, %s7554_s13   ;;  %s6726_s12 = sphi %s6761_s12, %s7553_s12   ;;  %s6722_s11 = sphi %s6759_s11, %s7552_s11   ;;  %s6718_s10 = sphi %s6757_s10, %s7551_s10   ;;  %s6714_s9 = sphi %s6755_s9, %s7550_s9  }
   0x5   : > { %p22_p0 = scmp.ge.s32.totalorder %s21_s16, 2  ;;  %p40_p1 = scmp.ne.s32.totalorder %s6718_s10, %s6714_s9 }
   0x6   : > { %p41_p2 = scmp.eq.s32.totalorder %s6738_s15, 0  ;;  %s33_s21 = sadd.s32 1, %s6718_s10 }
   0x7   : > { %s7557_s16 = smov (%p22_p0, %s21_s16), 0  ;;  %s7559_s17 = smov (!%p22_p0, %s24_s17), %s6734_s14 }
   0x8   : > { %p42_p3 = por %p41_p2, %p40_p1  ;;  %p26_p4 = scmp.ge.s32.totalorder %s7559_s17, 2 }
   0x9   : > { %s29_s18 = ssub.s32 %s6730_s13, %s7557_s16  ;;  %p4980_p6 = scmp.ge.s32.totalorder %s6738_s15, 4 }
   0xa   : > { %s7561_s17 = smov (%p26_p4, %s7559_s17), 0 }
   0xb   : > { %s28_s19 = ssub.s32 %s6734_s14, %s7561_s17  ;;  %120 = sbr.rel (%p4980_p6) target bundleno = 98 (0x62), region = 16 }
   0xc   : > { %s30_s20 = sor.u32 %s29_s18, %s28_s19 }
   0xd   : > { %p31_p5 = scmp.eq.s32.totalorder %s30_s20, 0 }
   0xf   : > { %s6806_s22 = scalar_select %p31_p5, %s6718_s10, %s33_s21  }
  0x12   : > { %123 = sbr.rel (!%p42_p3) target bundleno = 98 (0x62), region = 20  ;;  %s125_s23 = sand.u32 (%p42_p3), 1, %s6718_s10  }
  0x13   : > { %s6442_s24 = smul.u32 (%p42_p3), 1152, %s125_s23  ;;  %s4981_s25 = sshll.u32 (%p42_p3), %s6730_s13, 5 }
  0x14   : > { %s5636_s26 = smul.u32 (%p42_p3), 576, %s6734_s14 }
  0x15   : > { %s6820_s4 = scalar_lea.vmem (%p42_p3), [#allocation2], %s6442_s24 }
  0x16   : > { %s131_s27 = sadd.s32 (%p42_p3), %s5636_s26, %s4981_s25 }
  0x17   : > { %s4983_s28 = sshll.u32 (%p42_p3), %s131_s27, 2 }
  0x18   : > { %s6815_s3 = scalar_lea.vmem (%p42_p3), %s7547_s0, %s4983_s28 }
  0x19   : > { %v149_v0 = vld [vmem:[%s6815_s3] sm:$0xff]   ;;  %v153_v1 = vld [vmem:[%s6815_s3 + $0x8] sm:$0xff]   ;;  %v157_v2 = vld [vmem:[%s6815_s3 + $0x10] sm:$0xff]  }
  0x1a   : > { %150 = vst [vmem:[%s6820_s4] sm:$0xff] %v149_v0   ;;  %154 = vst [vmem:[%s6820_s4 + $0x8] sm:$0xff] %v153_v1   ;;  %v161_v3 = vld [vmem:[%s6815_s3 + $0x18] sm:$0xff]   ;;  %v165_v4 = vld [vmem:[%s6815_s3 + $0x20] sm:$0xff]  }
  0x1b   : > { %158 = vst [vmem:[%s6820_s4 + $0x10] sm:$0xff] %v157_v2   ;;  %v169_v5 = vld [vmem:[%s6815_s3 + $0x28] sm:$0xff]   ;;  %162 = vst [vmem:[%s6820_s4 + $0x18] sm:$0xff] %v161_v3   ;;  %v173_v6 = vld [vmem:[%s6815_s3 + $0x30] sm:$0xff]  }
  0x1c   : > { %166 = vst [vmem:[%s6820_s4 + $0x20] sm:$0xff] %v165_v4   ;;  %170 = vst [vmem:[%s6820_s4 + $0x28] sm:$0xff] %v169_v5   ;;  %v177_v7 = vld [vmem:[%s6815_s3 + $0x38] sm:$0xff]   ;;  %v181_v8 = vld [vmem:[%s6815_s3 + $0x40] sm:$0xff]  }
  0x1d   : > { %174 = vst [vmem:[%s6820_s4 + $0x30] sm:$0xff] %v173_v6   ;;  %178 = vst [vmem:[%s6820_s4 + $0x38] sm:$0xff] %v177_v7   ;;  %v185_v9 = vld [vmem:[%s6815_s3 + $0x48] sm:$0xff]   ;;  %v189_v10 = vld [vmem:[%s6815_s3 + $0x50] sm:$0xff]  }
  0x1e   : > { %182 = vst [vmem:[%s6820_s4 + $0x40] sm:$0xff] %v181_v8   ;;  %v193_v11 = vld [vmem:[%s6815_s3 + $0x58] sm:$0xff]   ;;  %186 = vst [vmem:[%s6820_s4 + $0x48] sm:$0xff] %v185_v9   ;;  %v197_v12 = vld [vmem:[%s6815_s3 + $0x60] sm:$0xff]  }
  0x1f   : > { %190 = vst [vmem:[%s6820_s4 + $0x50] sm:$0xff] %v189_v10   ;;  %194 = vst [vmem:[%s6820_s4 + $0x58] sm:$0xff] %v193_v11   ;;  %v201_v13 = vld [vmem:[%s6815_s3 + $0x68] sm:$0xff]   ;;  %v205_v14 = vld [vmem:[%s6815_s3 + $0x70] sm:$0xff]  }
  0x20   : > { %198 = vst [vmem:[%s6820_s4 + $0x60] sm:$0xff] %v197_v12   ;;  %202 = vst [vmem:[%s6820_s4 + $0x68] sm:$0xff] %v201_v13   ;;  %v209_v15 = vld [vmem:[%s6815_s3 + $0x78] sm:$0xff]   ;;  %v213_v16 = vld [vmem:[%s6815_s3 + $0x100] sm:$0xff]  }
  0x21   : > { %206 = vst [vmem:[%s6820_s4 + $0x70] sm:$0xff] %v205_v14   ;;  %v217_v17 = vld [vmem:[%s6815_s3 + $0x108] sm:$0xff]   ;;  %210 = vst [vmem:[%s6820_s4 + $0x78] sm:$0xff] %v209_v15   ;;  %v221_v18 = vld [vmem:[%s6815_s3 + $0x110] sm:$0xff]  }
  0x22   : > { %214 = vst [vmem:[%s6820_s4 + $0x80] sm:$0xff] %v213_v16   ;;  %218 = vst [vmem:[%s6820_s4 + $0x88] sm:$0xff] %v217_v17   ;;  %v225_v19 = vld [vmem:[%s6815_s3 + $0x118] sm:$0xff]   ;;  %v229_v20 = vld [vmem:[%s6815_s3 + $0x120] sm:$0xff]  }
  0x23   : > { %222 = vst [vmem:[%s6820_s4 + $0x90] sm:$0xff] %v221_v18   ;;  %226 = vst [vmem:[%s6820_s4 + $0x98] sm:$0xff] %v225_v19   ;;  %v233_v21 = vld [vmem:[%s6815_s3 + $0x128] sm:$0xff]   ;;  %v237_v22 = vld [vmem:[%s6815_s3 + $0x130] sm:$0xff]  }
  0x24   : > { %230 = vst [vmem:[%s6820_s4 + $0xa0] sm:$0xff] %v229_v20   ;;  %v241_v23 = vld [vmem:[%s6815_s3 + $0x138] sm:$0xff]   ;;  %234 = vst [vmem:[%s6820_s4 + $0xa8] sm:$0xff] %v233_v21   ;;  %v245_v24 = vld [vmem:[%s6815_s3 + $0x140] sm:$0xff]  }
  0x25   : > { %238 = vst [vmem:[%s6820_s4 + $0xb0] sm:$0xff] %v237_v22   ;;  %242 = vst [vmem:[%s6820_s4 + $0xb8] sm:$0xff] %v241_v23   ;;  %v249_v25 = vld [vmem:[%s6815_s3 + $0x148] sm:$0xff]   ;;  %v253_v26 = vld [vmem:[%s6815_s3 + $0x150] sm:$0xff]  }
  0x26   : > { %246 = vst [vmem:[%s6820_s4 + $0xc0] sm:$0xff] %v245_v24   ;;  %250 = vst [vmem:[%s6820_s4 + $0xc8] sm:$0xff] %v249_v25   ;;  %v257_v27 = vld [vmem:[%s6815_s3 + $0x158] sm:$0xff]   ;;  %v261_v28 = vld [vmem:[%s6815_s3 + $0x160] sm:$0xff]  }
  0x27   : > { %254 = vst [vmem:[%s6820_s4 + $0xd0] sm:$0xff] %v253_v26   ;;  %v265_v29 = vld [vmem:[%s6815_s3 + $0x168] sm:$0xff]   ;;  %258 = vst [vmem:[%s6820_s4 + $0xd8] sm:$0xff] %v257_v27   ;;  %v269_v30 = vld [vmem:[%s6815_s3 + $0x170] sm:$0xff]  }
  0x28   : > { %262 = vst [vmem:[%s6820_s4 + $0xe0] sm:$0xff] %v261_v28   ;;  %266 = vst [vmem:[%s6820_s4 + $0xe8] sm:$0xff] %v265_v29   ;;  %v273_v31 = vld [vmem:[%s6815_s3 + $0x178] sm:$0xff]   ;;  %v277_v32 = vld [vmem:[%s6815_s3 + $0x200] sm:$0xff]  }
  0x29   : > { %270 = vst [vmem:[%s6820_s4 + $0xf0] sm:$0xff] %v269_v30   ;;  %274 = vst [vmem:[%s6820_s4 + $0xf8] sm:$0xff] %v273_v31   ;;  %v281_v33 = vld [vmem:[%s6815_s3 + $0x208] sm:$0xff]   ;;  %v285_v34 = vld [vmem:[%s6815_s3 + $0x210] sm:$0xff]  }
  0x2a   : > { %278 = vst [vmem:[%s6820_s4 + $0x100] sm:$0xff] %v277_v32   ;;  %v289_v35 = vld [vmem:[%s6815_s3 + $0x218] sm:$0xff]   ;;  %282 = vst [vmem:[%s6820_s4 + $0x108] sm:$0xff] %v281_v33   ;;  %v293_v36 = vld [vmem:[%s6815_s3 + $0x220] sm:$0xff]  }
  0x2b   : > { %286 = vst [vmem:[%s6820_s4 + $0x110] sm:$0xff] %v285_v34   ;;  %290 = vst [vmem:[%s6820_s4 + $0x118] sm:$0xff] %v289_v35   ;;  %v297_v37 = vld [vmem:[%s6815_s3 + $0x228] sm:$0xff]   ;;  %v301_v38 = vld [vmem:[%s6815_s3 + $0x230] sm:$0xff]  }
  0x2c   : > { %294 = vst [vmem:[%s6820_s4 + $0x120] sm:$0xff] %v293_v36   ;;  %298 = vst [vmem:[%s6820_s4 + $0x128] sm:$0xff] %v297_v37   ;;  %v305_v39 = vld [vmem:[%s6815_s3 + $0x238] sm:$0xff]   ;;  %v309_v40 = vld [vmem:[%s6815_s3 + $0x240] sm:$0xff]  }
  0x2d   : > { %302 = vst [vmem:[%s6820_s4 + $0x130] sm:$0xff] %v301_v38   ;;  %v313_v41 = vld [vmem:[%s6815_s3 + $0x248] sm:$0xff]   ;;  %306 = vst [vmem:[%s6820_s4 + $0x138] sm:$0xff] %v305_v39   ;;  %v317_v42 = vld [vmem:[%s6815_s3 + $0x250] sm:$0xff]  }
  0x2e   : > { %310 = vst [vmem:[%s6820_s4 + $0x140] sm:$0xff] %v309_v40   ;;  %314 = vst [vmem:[%s6820_s4 + $0x148] sm:$0xff] %v313_v41   ;;  %v321_v43 = vld [vmem:[%s6815_s3 + $0x258] sm:$0xff]   ;;  %v325_v44 = vld [vmem:[%s6815_s3 + $0x260] sm:$0xff]  }
  0x2f   : > { %318 = vst [vmem:[%s6820_s4 + $0x150] sm:$0xff] %v317_v42   ;;  %322 = vst [vmem:[%s6820_s4 + $0x158] sm:$0xff] %v321_v43   ;;  %v329_v45 = vld [vmem:[%s6815_s3 + $0x268] sm:$0xff]   ;;  %v333_v46 = vld [vmem:[%s6815_s3 + $0x270] sm:$0xff]  }
  0x30   : > { %326 = vst [vmem:[%s6820_s4 + $0x160] sm:$0xff] %v325_v44   ;;  %v337_v47 = vld [vmem:[%s6815_s3 + $0x278] sm:$0xff]   ;;  %330 = vst [vmem:[%s6820_s4 + $0x168] sm:$0xff] %v329_v45   ;;  %v341_v48 = vld [vmem:[%s6815_s3 + $0x300] sm:$0xff]  }
  0x31   : > { %334 = vst [vmem:[%s6820_s4 + $0x170] sm:$0xff] %v333_v46   ;;  %338 = vst [vmem:[%s6820_s4 + $0x178] sm:$0xff] %v337_v47   ;;  %v345_v49 = vld [vmem:[%s6815_s3 + $0x308] sm:$0xff]   ;;  %v349_v50 = vld [vmem:[%s6815_s3 + $0x310] sm:$0xff]  }
  0x32   : > { %342 = vst [vmem:[%s6820_s4 + $0x180] sm:$0xff] %v341_v48   ;;  %346 = vst [vmem:[%s6820_s4 + $0x188] sm:$0xff] %v345_v49   ;;  %v353_v51 = vld [vmem:[%s6815_s3 + $0x318] sm:$0xff]   ;;  %v357_v52 = vld [vmem:[%s6815_s3 + $0x320] sm:$0xff]  }
  0x33   : > { %350 = vst [vmem:[%s6820_s4 + $0x190] sm:$0xff] %v349_v50   ;;  %v361_v53 = vld [vmem:[%s6815_s3 + $0x328] sm:$0xff]   ;;  %354 = vst [vmem:[%s6820_s4 + $0x198] sm:$0xff] %v353_v51   ;;  %v365_v54 = vld [vmem:[%s6815_s3 + $0x330] sm:$0xff]  }
  0x34   : > { %358 = vst [vmem:[%s6820_s4 + $0x1a0] sm:$0xff] %v357_v52   ;;  %362 = vst [vmem:[%s6820_s4 + $0x1a8] sm:$0xff] %v361_v53   ;;  %v369_v55 = vld [vmem:[%s6815_s3 + $0x338] sm:$0xff]   ;;  %v373_v56 = vld [vmem:[%s6815_s3 + $0x340] sm:$0xff]  }
  0x35   : > { %366 = vst [vmem:[%s6820_s4 + $0x1b0] sm:$0xff] %v365_v54   ;;  %370 = vst [vmem:[%s6820_s4 + $0x1b8] sm:$0xff] %v369_v55   ;;  %v377_v57 = vld [vmem:[%s6815_s3 + $0x348] sm:$0xff]   ;;  %v381_v58 = vld [vmem:[%s6815_s3 + $0x350] sm:$0xff]  }
  0x36   : > { %374 = vst [vmem:[%s6820_s4 + $0x1c0] sm:$0xff] %v373_v56   ;;  %v385_v59 = vld [vmem:[%s6815_s3 + $0x358] sm:$0xff]   ;;  %378 = vst [vmem:[%s6820_s4 + $0x1c8] sm:$0xff] %v377_v57   ;;  %v389_v60 = vld [vmem:[%s6815_s3 + $0x360] sm:$0xff]  }
  0x37   : > { %382 = vst [vmem:[%s6820_s4 + $0x1d0] sm:$0xff] %v381_v58   ;;  %386 = vst [vmem:[%s6820_s4 + $0x1d8] sm:$0xff] %v385_v59   ;;  %v393_v61 = vld [vmem:[%s6815_s3 + $0x368] sm:$0xff]   ;;  %v397_v62 = vld [vmem:[%s6815_s3 + $0x370] sm:$0xff]  }
  0x38   : > { %390 = vst [vmem:[%s6820_s4 + $0x1e0] sm:$0xff] %v389_v60   ;;  %394 = vst [vmem:[%s6820_s4 + $0x1e8] sm:$0xff] %v393_v61   ;;  %v401_v63 = vld [vmem:[%s6815_s3 + $0x378] sm:$0xff]   ;;  %v405_v0 = vld [vmem:[%s6815_s3 + $0x400] sm:$0xff]  }
  0x39   : > { %398 = vst [vmem:[%s6820_s4 + $0x1f0] sm:$0xff] %v397_v62   ;;  %v409_v1 = vld [vmem:[%s6815_s3 + $0x408] sm:$0xff]   ;;  %402 = vst [vmem:[%s6820_s4 + $0x1f8] sm:$0xff] %v401_v63   ;;  %v413_v2 = vld [vmem:[%s6815_s3 + $0x410] sm:$0xff]  }
  0x3a   : > { %406 = vst [vmem:[%s6820_s4 + $0x200] sm:$0xff] %v405_v0   ;;  %410 = vst [vmem:[%s6820_s4 + $0x208] sm:$0xff] %v409_v1   ;;  %v417_v3 = vld [vmem:[%s6815_s3 + $0x418] sm:$0xff]   ;;  %v421_v4 = vld [vmem:[%s6815_s3 + $0x420] sm:$0xff]  }
  0x3b   : > { %414 = vst [vmem:[%s6820_s4 + $0x210] sm:$0xff] %v413_v2   ;;  %418 = vst [vmem:[%s6820_s4 + $0x218] sm:$0xff] %v417_v3   ;;  %v425_v5 = vld [vmem:[%s6815_s3 + $0x428] sm:$0xff]   ;;  %v429_v6 = vld [vmem:[%s6815_s3 + $0x430] sm:$0xff]  }
  0x3c   : > { %422 = vst [vmem:[%s6820_s4 + $0x220] sm:$0xff] %v421_v4   ;;  %v433_v7 = vld [vmem:[%s6815_s3 + $0x438] sm:$0xff]   ;;  %426 = vst [vmem:[%s6820_s4 + $0x228] sm:$0xff] %v425_v5   ;;  %v437_v8 = vld [vmem:[%s6815_s3 + $0x440] sm:$0xff]  }
  0x3d   : > { %430 = vst [vmem:[%s6820_s4 + $0x230] sm:$0xff] %v429_v6   ;;  %434 = vst [vmem:[%s6820_s4 + $0x238] sm:$0xff] %v433_v7   ;;  %v441_v9 = vld [vmem:[%s6815_s3 + $0x448] sm:$0xff]   ;;  %v445_v10 = vld [vmem:[%s6815_s3 + $0x450] sm:$0xff]  }
  0x3e   : > { %438 = vst [vmem:[%s6820_s4 + $0x240] sm:$0xff] %v437_v8   ;;  %442 = vst [vmem:[%s6820_s4 + $0x248] sm:$0xff] %v441_v9   ;;  %v449_v11 = vld [vmem:[%s6815_s3 + $0x458] sm:$0xff]   ;;  %v453_v12 = vld [vmem:[%s6815_s3 + $0x460] sm:$0xff]  }
  0x3f   : > { %446 = vst [vmem:[%s6820_s4 + $0x250] sm:$0xff] %v445_v10   ;;  %v457_v13 = vld [vmem:[%s6815_s3 + $0x468] sm:$0xff]   ;;  %450 = vst [vmem:[%s6820_s4 + $0x258] sm:$0xff] %v449_v11   ;;  %v461_v14 = vld [vmem:[%s6815_s3 + $0x470] sm:$0xff]  }
  0x40   : > { %454 = vst [vmem:[%s6820_s4 + $0x260] sm:$0xff] %v453_v12   ;;  %458 = vst [vmem:[%s6820_s4 + $0x268] sm:$0xff] %v457_v13   ;;  %v465_v15 = vld [vmem:[%s6815_s3 + $0x478] sm:$0xff]   ;;  %v469_v16 = vld [vmem:[%s6815_s3 + $0x500] sm:$0xff]  }
  0x41   : > { %462 = vst [vmem:[%s6820_s4 + $0x270] sm:$0xff] %v461_v14   ;;  %466 = vst [vmem:[%s6820_s4 + $0x278] sm:$0xff] %v465_v15   ;;  %v473_v17 = vld [vmem:[%s6815_s3 + $0x508] sm:$0xff]   ;;  %v477_v18 = vld [vmem:[%s6815_s3 + $0x510] sm:$0xff]  }
  0x42   : > { %470 = vst [vmem:[%s6820_s4 + $0x280] sm:$0xff] %v469_v16   ;;  %v481_v19 = vld [vmem:[%s6815_s3 + $0x518] sm:$0xff]   ;;  %474 = vst [vmem:[%s6820_s4 + $0x288] sm:$0xff] %v473_v17   ;;  %v485_v20 = vld [vmem:[%s6815_s3 + $0x520] sm:$0xff]  }
  0x43   : > { %478 = vst [vmem:[%s6820_s4 + $0x290] sm:$0xff] %v477_v18   ;;  %482 = vst [vmem:[%s6820_s4 + $0x298] sm:$0xff] %v481_v19   ;;  %v489_v21 = vld [vmem:[%s6815_s3 + $0x528] sm:$0xff]   ;;  %v493_v22 = vld [vmem:[%s6815_s3 + $0x530] sm:$0xff]  }
  0x44   : > { %486 = vst [vmem:[%s6820_s4 + $0x2a0] sm:$0xff] %v485_v20   ;;  %490 = vst [vmem:[%s6820_s4 + $0x2a8] sm:$0xff] %v489_v21   ;;  %v497_v23 = vld [vmem:[%s6815_s3 + $0x538] sm:$0xff]   ;;  %v501_v24 = vld [vmem:[%s6815_s3 + $0x540] sm:$0xff]  }
  0x45   : > { %494 = vst [vmem:[%s6820_s4 + $0x2b0] sm:$0xff] %v493_v22   ;;  %v505_v25 = vld [vmem:[%s6815_s3 + $0x548] sm:$0xff]   ;;  %498 = vst [vmem:[%s6820_s4 + $0x2b8] sm:$0xff] %v497_v23   ;;  %v509_v26 = vld [vmem:[%s6815_s3 + $0x550] sm:$0xff]  }
  0x46   : > { %502 = vst [vmem:[%s6820_s4 + $0x2c0] sm:$0xff] %v501_v24   ;;  %506 = vst [vmem:[%s6820_s4 + $0x2c8] sm:$0xff] %v505_v25   ;;  %v513_v27 = vld [vmem:[%s6815_s3 + $0x558] sm:$0xff]   ;;  %v517_v28 = vld [vmem:[%s6815_s3 + $0x560] sm:$0xff]  }
  0x47   : > { %510 = vst [vmem:[%s6820_s4 + $0x2d0] sm:$0xff] %v509_v26   ;;  %514 = vst [vmem:[%s6820_s4 + $0x2d8] sm:$0xff] %v513_v27   ;;  %v521_v29 = vld [vmem:[%s6815_s3 + $0x568] sm:$0xff]   ;;  %v525_v30 = vld [vmem:[%s6815_s3 + $0x570] sm:$0xff]  }
  0x48   : > { %518 = vst [vmem:[%s6820_s4 + $0x2e0] sm:$0xff] %v517_v28   ;;  %v529_v31 = vld [vmem:[%s6815_s3 + $0x578] sm:$0xff]   ;;  %522 = vst [vmem:[%s6820_s4 + $0x2e8] sm:$0xff] %v521_v29   ;;  %v533_v32 = vld [vmem:[%s6815_s3 + $0x600] sm:$0xff]  }
  0x49   : > { %526 = vst [vmem:[%s6820_s4 + $0x2f0] sm:$0xff] %v525_v30   ;;  %530 = vst [vmem:[%s6820_s4 + $0x2f8] sm:$0xff] %v529_v31   ;;  %v537_v33 = vld [vmem:[%s6815_s3 + $0x608] sm:$0xff]   ;;  %v541_v34 = vld [vmem:[%s6815_s3 + $0x610] sm:$0xff]  }
  0x4a   : > { %534 = vst [vmem:[%s6820_s4 + $0x300] sm:$0xff] %v533_v32   ;;  %538 = vst [vmem:[%s6820_s4 + $0x308] sm:$0xff] %v537_v33   ;;  %v545_v35 = vld [vmem:[%s6815_s3 + $0x618] sm:$0xff]   ;;  %v549_v36 = vld [vmem:[%s6815_s3 + $0x620] sm:$0xff]  }
  0x4b   : > { %542 = vst [vmem:[%s6820_s4 + $0x310] sm:$0xff] %v541_v34   ;;  %v553_v37 = vld [vmem:[%s6815_s3 + $0x628] sm:$0xff]   ;;  %546 = vst [vmem:[%s6820_s4 + $0x318] sm:$0xff] %v545_v35   ;;  %v557_v38 = vld [vmem:[%s6815_s3 + $0x630] sm:$0xff]  }
  0x4c   : > { %550 = vst [vmem:[%s6820_s4 + $0x320] sm:$0xff] %v549_v36   ;;  %554 = vst [vmem:[%s6820_s4 + $0x328] sm:$0xff] %v553_v37   ;;  %v561_v39 = vld [vmem:[%s6815_s3 + $0x638] sm:$0xff]   ;;  %v565_v40 = vld [vmem:[%s6815_s3 + $0x640] sm:$0xff]  }
  0x4d   : > { %558 = vst [vmem:[%s6820_s4 + $0x330] sm:$0xff] %v557_v38   ;;  %562 = vst [vmem:[%s6820_s4 + $0x338] sm:$0xff] %v561_v39   ;;  %v569_v41 = vld [vmem:[%s6815_s3 + $0x648] sm:$0xff]   ;;  %v573_v42 = vld [vmem:[%s6815_s3 + $0x650] sm:$0xff]  }
  0x4e   : > { %566 = vst [vmem:[%s6820_s4 + $0x340] sm:$0xff] %v565_v40   ;;  %v577_v43 = vld [vmem:[%s6815_s3 + $0x658] sm:$0xff]   ;;  %570 = vst [vmem:[%s6820_s4 + $0x348] sm:$0xff] %v569_v41   ;;  %v581_v44 = vld [vmem:[%s6815_s3 + $0x660] sm:$0xff]  }
  0x4f   : > { %574 = vst [vmem:[%s6820_s4 + $0x350] sm:$0xff] %v573_v42   ;;  %578 = vst [vmem:[%s6820_s4 + $0x358] sm:$0xff] %v577_v43   ;;  %v585_v45 = vld [vmem:[%s6815_s3 + $0x668] sm:$0xff]   ;;  %v589_v46 = vld [vmem:[%s6815_s3 + $0x670] sm:$0xff]  }
  0x50   : > { %582 = vst [vmem:[%s6820_s4 + $0x360] sm:$0xff] %v581_v44   ;;  %586 = vst [vmem:[%s6820_s4 + $0x368] sm:$0xff] %v585_v45   ;;  %v593_v47 = vld [vmem:[%s6815_s3 + $0x678] sm:$0xff]   ;;  %v597_v48 = vld [vmem:[%s6815_s3 + $0x700] sm:$0xff]  }
  0x51   : > { %590 = vst [vmem:[%s6820_s4 + $0x370] sm:$0xff] %v589_v46   ;;  %v601_v49 = vld [vmem:[%s6815_s3 + $0x708] sm:$0xff]   ;;  %594 = vst [vmem:[%s6820_s4 + $0x378] sm:$0xff] %v593_v47   ;;  %v605_v50 = vld [vmem:[%s6815_s3 + $0x710] sm:$0xff]  }
  0x52   : > { %598 = vst [vmem:[%s6820_s4 + $0x380] sm:$0xff] %v597_v48   ;;  %602 = vst [vmem:[%s6820_s4 + $0x388] sm:$0xff] %v601_v49   ;;  %v609_v51 = vld [vmem:[%s6815_s3 + $0x718] sm:$0xff]   ;;  %v613_v52 = vld [vmem:[%s6815_s3 + $0x720] sm:$0xff]  }
  0x53   : > { %606 = vst [vmem:[%s6820_s4 + $0x390] sm:$0xff] %v605_v50   ;;  %610 = vst [vmem:[%s6820_s4 + $0x398] sm:$0xff] %v609_v51   ;;  %v617_v53 = vld [vmem:[%s6815_s3 + $0x728] sm:$0xff]   ;;  %v621_v54 = vld [vmem:[%s6815_s3 + $0x730] sm:$0xff]  }
  0x54   : > { %614 = vst [vmem:[%s6820_s4 + $0x3a0] sm:$0xff] %v613_v52   ;;  %v625_v55 = vld [vmem:[%s6815_s3 + $0x738] sm:$0xff]   ;;  %618 = vst [vmem:[%s6820_s4 + $0x3a8] sm:$0xff] %v617_v53   ;;  %v629_v56 = vld [vmem:[%s6815_s3 + $0x740] sm:$0xff]  }
  0x55   : > { %622 = vst [vmem:[%s6820_s4 + $0x3b0] sm:$0xff] %v621_v54   ;;  %626 = vst [vmem:[%s6820_s4 + $0x3b8] sm:$0xff] %v625_v55   ;;  %v633_v57 = vld [vmem:[%s6815_s3 + $0x748] sm:$0xff]   ;;  %v637_v58 = vld [vmem:[%s6815_s3 + $0x750] sm:$0xff]  }
  0x56   : > { %630 = vst [vmem:[%s6820_s4 + $0x3c0] sm:$0xff] %v629_v56   ;;  %634 = vst [vmem:[%s6820_s4 + $0x3c8] sm:$0xff] %v633_v57   ;;  %v641_v59 = vld [vmem:[%s6815_s3 + $0x758] sm:$0xff]   ;;  %v645_v60 = vld [vmem:[%s6815_s3 + $0x760] sm:$0xff]  }
  0x57   : > { %638 = vst [vmem:[%s6820_s4 + $0x3d0] sm:$0xff] %v637_v58   ;;  %v649_v61 = vld [vmem:[%s6815_s3 + $0x768] sm:$0xff]   ;;  %642 = vst [vmem:[%s6820_s4 + $0x3d8] sm:$0xff] %v641_v59   ;;  %v653_v62 = vld [vmem:[%s6815_s3 + $0x770] sm:$0xff]  }
  0x58   : > { %646 = vst [vmem:[%s6820_s4 + $0x3e0] sm:$0xff] %v645_v60   ;;  %650 = vst [vmem:[%s6820_s4 + $0x3e8] sm:$0xff] %v649_v61   ;;  %v657_v63 = vld [vmem:[%s6815_s3 + $0x778] sm:$0xff]   ;;  %v661_v0 = vld [vmem:[%s6815_s3 + $0x800] sm:$0xff]  }
  0x59   : > { %654 = vst [vmem:[%s6820_s4 + $0x3f0] sm:$0xff] %v653_v62   ;;  %658 = vst [vmem:[%s6820_s4 + $0x3f8] sm:$0xff] %v657_v63   ;;  %v665_v1 = vld [vmem:[%s6815_s3 + $0x808] sm:$0xff]   ;;  %v669_v2 = vld [vmem:[%s6815_s3 + $0x810] sm:$0xff]  }
  0x5a   : > { %662 = vst [vmem:[%s6820_s4 + $0x400] sm:$0xff] %v661_v0   ;;  %v673_v3 = vld [vmem:[%s6815_s3 + $0x818] sm:$0xff]   ;;  %666 = vst [vmem:[%s6820_s4 + $0x408] sm:$0xff] %v665_v1   ;;  %v677_v4 = vld [vmem:[%s6815_s3 + $0x820] sm:$0xff]  }
  0x5b   : > { %670 = vst [vmem:[%s6820_s4 + $0x410] sm:$0xff] %v669_v2   ;;  %674 = vst [vmem:[%s6820_s4 + $0x418] sm:$0xff] %v673_v3   ;;  %v681_v5 = vld [vmem:[%s6815_s3 + $0x828] sm:$0xff]   ;;  %v685_v6 = vld [vmem:[%s6815_s3 + $0x830] sm:$0xff]  }
  0x5c   : > { %678 = vst [vmem:[%s6820_s4 + $0x420] sm:$0xff] %v677_v4   ;;  %682 = vst [vmem:[%s6820_s4 + $0x428] sm:$0xff] %v681_v5   ;;  %v689_v7 = vld [vmem:[%s6815_s3 + $0x838] sm:$0xff]   ;;  %v693_v8 = vld [vmem:[%s6815_s3 + $0x840] sm:$0xff]  }
  0x5d   : > { %686 = vst [vmem:[%s6820_s4 + $0x430] sm:$0xff] %v685_v6   ;;  %v697_v9 = vld [vmem:[%s6815_s3 + $0x848] sm:$0xff]   ;;  %690 = vst [vmem:[%s6820_s4 + $0x438] sm:$0xff] %v689_v7   ;;  %v701_v10 = vld [vmem:[%s6815_s3 + $0x850] sm:$0xff]  }
  0x5e   : > { %694 = vst [vmem:[%s6820_s4 + $0x440] sm:$0xff] %v693_v8   ;;  %698 = vst [vmem:[%s6820_s4 + $0x448] sm:$0xff] %v697_v9   ;;  %v705_v11 = vld [vmem:[%s6815_s3 + $0x858] sm:$0xff]   ;;  %v709_v12 = vld [vmem:[%s6815_s3 + $0x860] sm:$0xff]  }
  0x5f   : > { %702 = vst [vmem:[%s6820_s4 + $0x450] sm:$0xff] %v701_v10   ;;  %706 = vst [vmem:[%s6820_s4 + $0x458] sm:$0xff] %v705_v11   ;;  %v713_v13 = vld [vmem:[%s6815_s3 + $0x868] sm:$0xff]   ;;  %v717_v14 = vld [vmem:[%s6815_s3 + $0x870] sm:$0xff]  }
  0x60   : > { %710 = vst [vmem:[%s6820_s4 + $0x460] sm:$0xff] %v709_v12   ;;  %v721_v15 = vld [vmem:[%s6815_s3 + $0x878] sm:$0xff]   ;;  %714 = vst [vmem:[%s6820_s4 + $0x468] sm:$0xff] %v713_v13  }
  0x61   : > { %718 = vst [vmem:[%s6820_s4 + $0x470] sm:$0xff] %v717_v14   ;;  %722 = vst [vmem:[%s6820_s4 + $0x478] sm:$0xff] %v721_v15  }
  0x62 PF: > { %p4984_p7 = scmp.ge.s32.totalorder %s6738_s15, 1  ;;  %p1332_p8 = scmp.lt.s32.totalorder %s6738_s15, 5 }
  0x64   : > { %p1333_p9 = pnand %p4984_p7, %p1332_p8 }
  0x65   : > { %s1372_s5 = smul.u32 (!%p1333_p9), 9, %s6726_s12  ;;  %s1339_s6 = sand.u32 (!%p1333_p9), 1, %s6714_s9   ;;  %vm1576_vm0 = vcmask (!%p1333_p9), 523264  }
  0x66   : > { %1336 = sbr.rel (%p1333_p9) target bundleno = 630 (0x276), region = 65  ;;  %s4987_s9 = sshll.u32 (!%p1333_p9), %s6722_s11, 5 }
  0x67   : > { %s6443_s7 = smul.u32 (!%p1333_p9), 1152, %s1339_s6  ;;  %p1373_p10 = scmp.lt.s32.totalorder (!%p1333_p9), %s1372_s5, 17 }
  0x68   : > { %p1380_p11 = scmp.lt.s32.totalorder (!%p1333_p9), %s6726_s12, 1  ;;  %p1382_p12 = scmp.lt.s32.totalorder (!%p1333_p9), %s4987_s9, 63 }
  0x69   : > { %s7111_s8 = scalar_lea.vmem (!%p1333_p9), [#allocation2], %s6443_s7 }
  0x6a   : > { %v6508_v16 = vld [vmem:[%s7111_s8 + $0x80] sm:$0xff] (!%p1333_p9)   ;;  %v6510_v26 = vld [vmem:[%s7111_s8 + $0x88] sm:$0xff] (!%p1333_p9)   ;;  %v6514_v30 = vld [vmem:[%s7111_s8 + $0x90] sm:$0xff] (!%p1333_p9)  }
  0x6b   : > { %v6509_v17 = vld [vmem:[%s7111_s8 + $0x200] sm:$0xff] (!%p1333_p9)   ;;  %5826 = vmatprep.mubr.msk.bf16.mxu1 (!%p1333_p9), %vm1576_vm0, %v6508_v16  ;;  %v6512_v29 = vld [vmem:[%s7111_s8 + $0x208] sm:$0xff] (!%p1333_p9)   ;;  %v6515_v31 = vld [vmem:[%s7111_s8 + $0x210] sm:$0xff] (!%p1333_p9)  }
  0x6c   : > { %5986 = vmatprep.mubr.msk.bf16.mxu0 (!%p1333_p9), %vm1576_vm0, %v6509_v17  ;;  %v6516_v34 = vld [vmem:[%s7111_s8 + $0x98] sm:$0xff] (!%p1333_p9)   ;;  %v6519_v37 = vld [vmem:[%s7111_s8 + $0xa0] sm:$0xff] (!%p1333_p9)   ;;  %v6521_v40 = vld [vmem:[%s7111_s8 + $0xa8] sm:$0xff] (!%p1333_p9)  }
  0x6d   : > { %s7563_s5 = smov (!%p1373_p10, %s1372_s5), 17  ;;  %v6517_v36 = vld [vmem:[%s7111_s8 + $0x218] sm:$0xff]   ;;  %v6520_v38 = vld [vmem:[%s7111_s8 + $0x220] sm:$0xff]   ;;  %v6523_v41 = vld [vmem:[%s7111_s8 + $0x228] sm:$0xff]   ;;  %s7565_s12 = smov (!%p1380_p11, %s6726_s12), 1 }
  0x6e   : > { %s5637_s18 = sshll.u32 %s7563_s5, 5  ;;  %v6525_v43 = vld [vmem:[%s7111_s8 + $0xb0] sm:$0xff]   ;;  %v6527_v46 = vld [vmem:[%s7111_s8 + $0xb8] sm:$0xff]   ;;  %v6530_v48 = vld [vmem:[%s7111_s8 + $0xc0] sm:$0xff]   ;;  %s7567_s9 = smov (!%p1382_p12, %s4987_s9), 63 }
  0x6f   : > { %s7119_s21 = scalar_lea.vmem %s7548_s1, %s5637_s18  ;;  %v6526_v45 = vld [vmem:[%s7111_s8 + $0x230] sm:$0xff]   ;;  %v6528_v47 = vld [vmem:[%s7111_s8 + $0x238] sm:$0xff]   ;;  %v6531_v50 = vld [vmem:[%s7111_s8 + $0x280] sm:$0xff]   ;;  %s4988_s23 = sshll.u32 %s7565_s12, 6 }
  0x70   : > { %v6500_v18 = vld [vmem:[%s7119_s21 + $0x20] sm:$0xff]   ;;  %v6502_v20 = vld [vmem:[%s7119_s21 + $0x28] sm:$0xff]   ;;  %v6504_v22 = vld [vmem:[%s7119_s21 + $0x30] sm:$0xff]   ;;  %s1385_s24 = sadd.s32 %s4988_s23, %s7567_s9 }
  0x71   : > { %v6501_v19 = vld [vmem:[%s7119_s21 + $0x80] sm:$0xff]   ;;  %5818 = vmatprep.subr.bf16.mxu1 %v6500_v18  ;;  %v6503_v21 = vld [vmem:[%s7119_s21 + $0x88] sm:$0xff]   ;;  %v6505_v23 = vld [vmem:[%s7119_s21 + $0x90] sm:$0xff]   ;;  %s4989_s25 = sshll.u32 %s1385_s24, 3 }
  0x72   : > { %5978 = vmatprep.subr.bf16.mxu0 %v6501_v19  ;;  %5819 = vmatpush3.bf16.msra.mxu1 %v6500_v18  ;;  %v6506_v24 = vld [vmem:[%s7119_s21 + $0x38] sm:$0xff]   ;;  %v6511_v27 = vld [vmem:[%s7119_s21] sm:$0xff]   ;;  %v6518_v32 = vld [vmem:[%s7119_s21 + $0xa8] sm:$0xff]   ;;  %s7460_s28 = scalar_lea.vmem %s7549_s2, %s4989_s25 }
  0x73   : > { %5979 = vmatpush3.bf16.msra.mxu0 %v6501_v19  ;;  %5820 = vmatprep.subr.bf16.mxu1 %v6502_v20  ;;  %v6507_v25 = vld [vmem:[%s7119_s21 + $0x98] sm:$0xff]   ;;  %v6513_v28 = vld [vmem:[%s7119_s21 + $0xa0] sm:$0xff]   ;;  %v6522_v33 = vld [vmem:[%s7119_s21 + $0x8] sm:$0xff]  }
  0x74   : > { %5980 = vmatprep.subr.bf16.mxu0 %v6503_v21  ;;  %v6524_v35 = vld [vmem:[%s7119_s21 + $0xb0] sm:$0xff]   ;;  %v6529_v39 = vld [vmem:[%s7119_s21 + $0xb8] sm:$0xff]   ;;  %v6535_v44 = vld [vmem:[%s7119_s21 + $0xc0] sm:$0xff]  }
  0x75   : > { %v6533_v42 = vld [vmem:[%s7119_s21 + $0x10] sm:$0xff]   ;;  %v6543_v49 = vld [vmem:[%s7119_s21 + $0x18] sm:$0xff]   ;;  %v6532_v51 = vld [vmem:[%s7111_s8 + $0xc8] sm:$0xff]  }
  0x76   : > { %5821 = vmatpush3.bf16.msra.mxu1 %v6502_v20  ;;  %v6534_v52 = vld [vmem:[%s7111_s8 + $0x288] sm:$0xff]   ;;  %v6536_v53 = vld [vmem:[%s7111_s8 + $0xd0] sm:$0xff]   ;;  %v6553_v56 = vld [vmem:[%s7119_s21 + $0x40] sm:$0xff]  }
  0x77   : > { %5981 = vmatpush3.bf16.msra.mxu0 %v6503_v21  ;;  %5822 = vmatprep.subr.bf16.mxu1 %v6504_v22  ;;  %v6537_v54 = vld [vmem:[%s7111_s8 + $0x290] sm:$0xff]   ;;  %v6545_v55 = vld [vmem:[%s7119_s21 + $0xc8] sm:$0xff]   ;;  %v6538_v57 = vld [vmem:[%s7111_s8 + $0xd8] sm:$0xff]  }
  0x78   : > { %5982 = vmatprep.subr.bf16.mxu0 %v6505_v23  ;;  %v6555_v58 = vld [vmem:[%s7119_s21 + $0xd0] sm:$0xff]   ;;  %v6539_v59 = vld [vmem:[%s7111_s8 + $0x298] sm:$0xff]   ;;  %v6540_v60 = vld [vmem:[%s7111_s8 + $0xe0] sm:$0xff]  }
  0x79   : > { %v6541_v61 = vld [vmem:[%s7111_s8 + $0x2a0] sm:$0xff]   ;;  %v6542_v62 = vld [vmem:[%s7111_s8 + $0xe8] sm:$0xff]   ;;  %v6565_v63 = vld [vmem:[%s7119_s21 + $0xd8] sm:$0xff]  }
  0x7a   : > { %5823 = vmatpush3.bf16.msra.mxu1 %v6504_v22  ;;  %v6544_v0 = vld [vmem:[%s7111_s8 + $0x2a8] sm:$0xff]   ;;  %v6546_v1 = vld [vmem:[%s7111_s8 + $0xf0] sm:$0xff]   ;;  %v6548_v3 = vld [vmem:[%s7111_s8 + $0xf8] sm:$0xff]  }
  0x7b   : > { %5983 = vmatpush3.bf16.msra.mxu0 %v6505_v23  ;;  %5824 = vmatprep.subr.bf16.mxu1 %v6506_v24  ;;  %v6547_v2 = vld [vmem:[%s7111_s8 + $0x2b0] sm:$0xff]   ;;  %v6549_v4 = vld [vmem:[%s7111_s8 + $0x2b8] sm:$0xff]   ;;  %v6550_v5 = vld [vmem:[%s7111_s8] sm:$0xff]  }
  0x7c   : > { %5984 = vmatprep.subr.bf16.mxu0 %v6507_v25  ;;  %v6575_v6 = vld [vmem:[%s7119_s21 + $0xe0] sm:$0xff]   ;;  %v6552_v8 = vld [vmem:[%s7111_s8 + $0x8] sm:$0xff]   ;;  %v6556_v10 = vld [vmem:[%s7111_s8 + $0x10] sm:$0xff]  }
  0x7d   : > { %v6551_v7 = vld [vmem:[%s7111_s8 + $0x2c0] sm:$0xff]   ;;  %v6554_v9 = vld [vmem:[%s7111_s8 + $0x2c8] sm:$0xff]   ;;  %v6557_v11 = vld [vmem:[%s7111_s8 + $0x2d0] sm:$0xff]  }
  0x7e   : > { %5825 = vmatpush3.bf16.msra.mxu1 %v6506_v24  ;;  %v6563_v12 = vld [vmem:[%s7119_s21 + $0x48] sm:$0xff]   ;;  %v6573_v13 = vld [vmem:[%s7119_s21 + $0x50] sm:$0xff]   ;;  %v6558_v14 = vld [vmem:[%s7111_s8 + $0x18] sm:$0xff]  }
  0x7f   : > { %5985 = vmatpush3.bf16.msra.mxu0 %v6507_v25  ;;  %5858 = vmatprep.subr.bf16.mxu1 %v6511_v27  ;;  %v6559_v15 = vld [vmem:[%s7111_s8 + $0x2d8] sm:$0xff]   ;;  %v6560_v16 = vld [vmem:[%s7111_s8 + $0x20] sm:$0xff]   ;;  %v6562_v19 = vld [vmem:[%s7111_s8 + $0x28] sm:$0xff]  }
  0x80   : > { %6018 = vmatprep.subr.bf16.mxu0 %v6513_v28  ;;  %v6561_v17 = vld [vmem:[%s7111_s8 + $0x2e0] sm:$0xff]   ;;  %v6583_v18 = vld [vmem:[%s7119_s21 + $0x58] sm:$0xff]   ;;  %v6564_v21 = vld [vmem:[%s7111_s8 + $0x2e8] sm:$0xff]  }
  0x81   : > { %5827 = vmatmul.mubr.msk.bf16.vlgmr.msra.gmra.mrb[0].mxu1 %vm1576_vm0, %v6510_v26  ;;  %v7229_v20 = vld [vmem:[%s7119_s21 + $0x60] sm:$0xff]   ;;  %v6566_v22 = vld [vmem:[%s7111_s8 + $0x30] sm:$0xff]   ;;  %v6568_v24 = vld [vmem:[%s7111_s8 + $0x38] sm:$0xff]  }
  0x82   : > { %5987 = vmatmul.mubr.msk.bf16.vlgmr.msra.gmra.mrb[0].mxu0 %vm1576_vm0, %v6512_v29  ;;  %5859 = vmatpush3.bf16.msra.mxu1 %v6511_v27  ;;  %v6567_v23 = vld [vmem:[%s7111_s8 + $0x2f0] sm:$0xff]   ;;  %v6569_v25 = vld [vmem:[%s7111_s8 + $0x2f8] sm:$0xff]   ;;  %v6570_v26 = vld [vmem:[%s7111_s8 + $0x40] sm:$0xff]  }
  0x83   : > { %6019 = vmatpush3.bf16.msra.mxu0 %v6513_v28  ;;  %5830 = vmatprep.mubr.msk.bf16.mxu1 %vm1576_vm0, %v6514_v30  ;;  %v6571_v27 = vld [vmem:[%s7111_s8 + $0x300] sm:$0xff]   ;;  %v6572_v28 = vld [vmem:[%s7111_s8 + $0x48] sm:$0xff]   ;;  %v6576_v30 = vld [vmem:[%s7111_s8 + $0x50] sm:$0xff]  }
  0x84   : > { %5990 = vmatprep.mubr.msk.bf16.mxu0 %vm1576_vm0, %v6515_v31  ;;  %6020 = vmatprep.subr.bf16.mxu0 %v6518_v32  ;;  %v6574_v29 = vld [vmem:[%s7111_s8 + $0x308] sm:$0xff]   ;;  %v6577_v31 = vld [vmem:[%s7111_s8 + $0x310] sm:$0xff]  }
  0x85   : > { %5860 = vmatprep.subr.bf16.mxu1 %v6522_v33 }
  0x86   : > { %5861 = vmatpush3.bf16.msra.mxu1 %v6522_v33  ;;  %v6578_v33 = vld [vmem:[%s7111_s8 + $0x58] sm:$0xff]  }
  0x87   : > { %6021 = vmatpush3.bf16.msra.mxu0 %v6518_v32  ;;  %5862 = vmatprep.subr.bf16.mxu1 %v6533_v42  ;;  %v6585_v32 = vld [vmem:[%s7119_s21 + $0xe8] sm:$0xff]  }
  0x88   : > { %6022 = vmatprep.subr.bf16.mxu0 %v6524_v35 }
  0x89   : > { %5831 = vmatmul.mubr.msk.bf16.gmra.mrb[4].mxu1 %vm1576_vm0, %v6516_v34  ;;  %v6595_v34 = vld [vmem:[%s7119_s21 + $0xf0] sm:$0xff]  }
  0x8a   : > { %5991 = vmatmul.mubr.msk.bf16.gmra.mrb[4].mxu0 %vm1576_vm0, %v6517_v36  ;;  %5834 = vmatprep.mubr.msk.bf16.mxu1 %vm1576_vm0, %v6519_v37  ;;  %v6580_v36 = vld [vmem:[%s7111_s8 + $0x60] sm:$0xff]  }
  0x8b   : > { %5994 = vmatprep.mubr.msk.bf16.mxu0 %vm1576_vm0, %v6520_v38  ;;  %6023 = vmatpush3.bf16.msra.mxu0 %v6524_v35  ;;  %v6579_v35 = vld [vmem:[%s7111_s8 + $0x318] sm:$0xff]   ;;  %v6581_v37 = vld [vmem:[%s7111_s8 + $0x320] sm:$0xff]  }
  0x8c   : > { %6024 = vmatprep.subr.bf16.mxu0 %v6529_v39  ;;  %5863 = vmatpush3.bf16.msra.mxu1 %v6533_v42  ;;  %v6605_v38 = vld [vmem:[%s7119_s21 + $0xf8] sm:$0xff]   ;;  %v6586_v42 = vld [vmem:[%s7111_s8 + $0x70] sm:$0xff]  }
  0x8d   : > { %5864 = vmatprep.subr.bf16.mxu1 %v6543_v49 }
  0x8f   : > { %6025 = vmatpush3.bf16.msra.mxu0 %v6529_v39  ;;  %v6582_v39 = vld [vmem:[%s7111_s8 + $0x68] sm:$0xff]  }
  0x90   : > { %6058 = vmatprep.subr.bf16.mxu0 %v6535_v44  ;;  %5865 = vmatpush3.bf16.msra.mxu1 %v6543_v49  ;;  %v6594_v49 = vld [vmem:[%s7111_s8 + $0x348] sm:$0xff]  }
  0x91   : > { %5835 = vmatmul.mubr.msk.bf16.gmra.mrb[8].mxu1 %vm1576_vm0, %v6521_v40  ;;  %5898 = vmatprep.subr.bf16.mxu1 %v6553_v56  ;;  %v7268_v40 = vld [vmem:[%s7119_s21 + $0x100] sm:$0xff]  }
  0x92   : > { %5995 = vmatmul.mubr.msk.bf16.gmra.mrb[8].mxu0 %vm1576_vm0, %v6523_v41  ;;  %5838 = vmatprep.mubr.msk.bf16.mxu1 %vm1576_vm0, %v6525_v43  ;;  %v6584_v41 = vld [vmem:[%s7111_s8 + $0x328] sm:$0xff]   ;;  %v6587_v43 = vld [vmem:[%s7111_s8 + $0x330] sm:$0xff]  }
  0x93   : > { %5998 = vmatprep.mubr.msk.bf16.mxu0 %vm1576_vm0, %v6526_v45  ;;  %v6589_v45 = vld [vmem:[%s7111_s8 + $0x338] sm:$0xff]  }
  0x99   : > { %5839 = vmatmul.mubr.msk.bf16.gmra.mrb[12].mxu1 %vm1576_vm0, %v6527_v46  ;;  %v6590_v46 = vld [vmem:[%s7111_s8 + $0x100] sm:$0xff]  }
  0x9a   : > { %5999 = vmatmul.mubr.msk.bf16.gmra.mrb[12].mxu0 %vm1576_vm0, %v6528_v47  ;;  %5842 = vmatprep.mubr.msk.bf16.mxu1 %vm1576_vm0, %v6530_v48  ;;  %v6591_v47 = vld [vmem:[%s7111_s8 + $0x340] sm:$0xff]   ;;  %v6592_v48 = vld [vmem:[%s7111_s8 + $0x108] sm:$0xff]  }
  0x9b   : > { %6026 = vmatprep.mubr.msk.bf16.mxu0 %vm1576_vm0, %v6531_v50  ;;  %v6596_v50 = vld [vmem:[%s7111_s8 + $0x110] sm:$0xff]  }
  0xa1   : > { %5843 = vmatmul.mubr.msk.bf16.gmra.mrb[16].mxu1 %vm1576_vm0, %v6532_v51  ;;  %v6597_v51 = vld [vmem:[%s7111_s8 + $0x350] sm:$0xff]  }
  0xa2   : > { %6027 = vmatmul.mubr.msk.bf16.vlgmr.msra.gmra.mrb[0].mxu0 %vm1576_vm0, %v6534_v52  ;;  %5846 = vmatprep.mubr.msk.bf16.mxu1 %vm1576_vm0, %v6536_v53  ;;  %v6603_v52 = vld [vmem:[%s7119_s21 + $0x68] sm:$0xff]   ;;  %v6613_v53 = vld [vmem:[%s7119_s21 + $0x70] sm:$0xff]  }
  0xa3   : > { %6059 = vmatpush3.bf16.msra.mxu0 %v6535_v44  ;;  %6030 = vmatprep.mubr.msk.bf16.mxu0 %vm1576_vm0, %v6537_v54  ;;  %v6588_v44 = vld [vmem:[%s7111_s8 + $0x78] sm:$0xff]  }
  0xa4   : > { %6060 = vmatprep.subr.bf16.mxu0 %v6545_v55  ;;  %v6598_v54 = vld [vmem:[%s7111_s8 + $0x118] sm:$0xff]  }
  0xa7   : > { %6061 = vmatpush3.bf16.msra.mxu0 %v6545_v55  ;;  %v6599_v55 = vld [vmem:[%s7111_s8 + $0x358] sm:$0xff]  }
  0xa8   : > { %6062 = vmatprep.subr.bf16.mxu0 %v6555_v58 }
  0xa9   : > { %5847 = vmatmul.mubr.msk.bf16.gmra.mrb[20].mxu1 %vm1576_vm0, %v6538_v57  ;;  %v6601_v57 = vld [vmem:[%s7111_s8 + $0x360] sm:$0xff]  }
  0xaa   : > { %6031 = vmatmul.mubr.msk.bf16.gmra.mrb[4].mxu0 %vm1576_vm0, %v6539_v59  ;;  %5850 = vmatprep.mubr.msk.bf16.mxu1 %vm1576_vm0, %v6540_v60  ;;  %v6602_v59 = vld [vmem:[%s7111_s8 + $0x128] sm:$0xff]  }
  0xab   : > { %6034 = vmatprep.mubr.msk.bf16.mxu0 %vm1576_vm0, %v6541_v61  ;;  %6063 = vmatpush3.bf16.msra.mxu0 %v6555_v58  ;;  %v6623_v58 = vld [vmem:[%s7119_s21 + $0x78] sm:$0xff]   ;;  %v6604_v60 = vld [vmem:[%s7111_s8 + $0x368] sm:$0xff]   ;;  %v6606_v61 = vld [vmem:[%s7111_s8 + $0x130] sm:$0xff]  }
  0xac   : > { %6064 = vmatprep.subr.bf16.mxu0 %v6565_v63 }
  0xaf   : > { %6065 = vmatpush3.bf16.msra.mxu0 %v6565_v63  ;;  %v6680_v63 = vld [vmem:[%s7119_s21 + $0x80] sm:$0xff]  }
  0xb0   : > { %6098 = vmatprep.subr.bf16.mxu0 %v6575_v6 }
  0xb1   : > { %5851 = vmatmul.mubr.msk.bf16.gmra.mrb[24].mxu1 %vm1576_vm0, %v6542_v62  ;;  %v6607_v62 = vld [vmem:[%s7111_s8 + $0x370] sm:$0xff]  }
  0xb2   : > { %6035 = vmatmul.mubr.msk.bf16.gmra.mrb[8].mxu0 %vm1576_vm0, %v6544_v0  ;;  %5854 = vmatprep.mubr.msk.bf16.mxu1 %vm1576_vm0, %v6546_v1  ;;  %v6608_v0 = vld [vmem:[%s7111_s8 + $0x138] sm:$0xff]  }
  0xb3   : > { %6038 = vmatprep.mubr.msk.bf16.mxu0 %vm1576_vm0, %v6547_v2  ;;  %v6609_v1 = vld [vmem:[%s7111_s8 + $0x378] sm:$0xff]   ;;  %v6610_v2 = vld [vmem:[%s7111_s8 + $0x140] sm:$0xff]  }
  0xb9   : > { %5855 = vmatmul.mubr.msk.bf16.gmra.mrb[28].mxu1 %vm1576_vm0, %v6548_v3  ;;  %v6611_v3 = vld [vmem:[%s7111_s8 + $0x380] sm:$0xff]  }
  0xba   : > { %6039 = vmatmul.mubr.msk.bf16.gmra.mrb[12].mxu0 %vm1576_vm0, %v6549_v4  ;;  %5866 = vmatprep.mubr.msk.bf16.mxu1 %vm1576_vm0, %v6550_v5  ;;  %v6612_v4 = vld [vmem:[%s7111_s8 + $0x148] sm:$0xff]  }
  0xbb   : > { %6042 = vmatprep.mubr.msk.bf16.mxu0 %vm1576_vm0, %v6551_v7  ;;  %v6614_v5 = vld [vmem:[%s7111_s8 + $0x388] sm:$0xff]   ;;  %v6617_v7 = vld [vmem:[%s7111_s8 + $0x390] sm:$0xff]  }
  0xc1   : > { %5867 = vmatmul.mubr.msk.bf16.vlgmr.msra.gmra.mrb[0].mxu1 %vm1576_vm0, %v6552_v8  ;;  %v6625_v8 = vld [vmem:[%s7119_s21 + $0x108] sm:$0xff]  }
  0xc2   : > { %6043 = vmatmul.mubr.msk.bf16.gmra.mrb[16].mxu0 %vm1576_vm0, %v6554_v9  ;;  %5899 = vmatpush3.bf16.msra.mxu1 %v6553_v56  ;;  %v6600_v56 = vld [vmem:[%s7111_s8 + $0x120] sm:$0xff]   ;;  %v6634_v9 = vld [vmem:[%s7119_s21 + $0x110] sm:$0xff]  }
  0xc3   : > { %5870 = vmatprep.mubr.msk.bf16.mxu1 %vm1576_vm0, %v6556_v10  ;;  %6046 = vmatprep.mubr.msk.bf16.mxu0 %vm1576_vm0, %v6557_v11  ;;  %v6618_v10 = vld [vmem:[%s7111_s8 + $0x158] sm:$0xff]  }
  0xc4   : > { %5900 = vmatprep.subr.bf16.mxu1 %v6563_v12  ;;  %v6619_v11 = vld [vmem:[%s7111_s8 + $0x398] sm:$0xff]  }
  0xc6   : > { %5901 = vmatpush3.bf16.msra.mxu1 %v6563_v12  ;;  %v6620_v12 = vld [vmem:[%s7111_s8 + $0x160] sm:$0xff]  }
  0xc7   : > { %5902 = vmatprep.subr.bf16.mxu1 %v6573_v13 }
  0xc9   : > { %5871 = vmatmul.mubr.msk.bf16.gmra.mrb[4].mxu1 %vm1576_vm0, %v6558_v14  ;;  %v6643_v14 = vld [vmem:[%s7119_s21 + $0x118] sm:$0xff]  }
  0xca   : > { %6047 = vmatmul.mubr.msk.bf16.gmra.mrb[20].mxu0 %vm1576_vm0, %v6559_v15  ;;  %5874 = vmatprep.mubr.msk.bf16.mxu1 %vm1576_vm0, %v6560_v16  ;;  %v6622_v15 = vld [vmem:[%s7111_s8 + $0x168] sm:$0xff]  }
  0xcb   : > { %6050 = vmatprep.mubr.msk.bf16.mxu0 %vm1576_vm0, %v6561_v17  ;;  %5903 = vmatpush3.bf16.msra.mxu1 %v6573_v13  ;;  %v6621_v13 = vld [vmem:[%s7111_s8 + $0x3a0] sm:$0xff]   ;;  %v6624_v16 = vld [vmem:[%s7111_s8 + $0x3a8] sm:$0xff]   ;;  %v6626_v17 = vld [vmem:[%s7111_s8 + $0x170] sm:$0xff]  }
  0xcc   : > { %5904 = vmatprep.subr.bf16.mxu1 %v6583_v18 }
  0xcf   : > { %5905 = vmatpush3.bf16.msra.mxu1 %v6583_v18  ;;  %v6627_v18 = vld [vmem:[%s7111_s8 + $0x3b0] sm:$0xff]  }
  0xd0   : > { %5938 = vmatprep.subr.bf16.mxu1 %v7229_v20 }
  0xd1   : > { %5875 = vmatmul.mubr.msk.bf16.gmra.mrb[8].mxu1 %vm1576_vm0, %v6562_v19  ;;  %v6628_v19 = vld [vmem:[%s7111_s8 + $0x178] sm:$0xff]  }
  0xd2   : > { %6051 = vmatmul.mubr.msk.bf16.gmra.mrb[24].mxu0 %vm1576_vm0, %v6564_v21  ;;  %5878 = vmatprep.mubr.msk.bf16.mxu1 %vm1576_vm0, %v6566_v22  ;;  %v6630_v21 = vld [vmem:[%s7111_s8 + $0x180] sm:$0xff]  }
  0xd3   : > { %6054 = vmatprep.mubr.msk.bf16.mxu0 %vm1576_vm0, %v6567_v23  ;;  %v6631_v22 = vld [vmem:[%s7111_s8 + $0x3c0] sm:$0xff]   ;;  %v6632_v23 = vld [vmem:[%s7111_s8 + $0x188] sm:$0xff]  }
  0xd9   : > { %5879 = vmatmul.mubr.msk.bf16.gmra.mrb[12].mxu1 %vm1576_vm0, %v6568_v24  ;;  %v6633_v24 = vld [vmem:[%s7111_s8 + $0x3c8] sm:$0xff]  }
  0xda   : > { %6055 = vmatmul.mubr.msk.bf16.gmra.mrb[28].mxu0 %vm1576_vm0, %v6569_v25  ;;  %5882 = vmatprep.mubr.msk.bf16.mxu1 %vm1576_vm0, %v6570_v26  ;;  %v6635_v25 = vld [vmem:[%s7111_s8 + $0x190] sm:$0xff]  }
  0xdb   : > { %6066 = vmatprep.mubr.msk.bf16.mxu0 %vm1576_vm0, %v6571_v27  ;;  %v6636_v26 = vld [vmem:[%s7111_s8 + $0x3d0] sm:$0xff]   ;;  %v6681_v27 = vld [vmem:[%s7119_s21 + $0x88] sm:$0xff]  }
  0xe1   : > { %5883 = vmatmul.mubr.msk.bf16.gmra.mrb[16].mxu1 %vm1576_vm0, %v6572_v28  ;;  %v6637_v28 = vld [vmem:[%s7111_s8 + $0x198] sm:$0xff]  }
  0xe2   : > { %6067 = vmatmul.mubr.msk.bf16.vlgmr.msra.gmra.mrb[0].mxu0 %vm1576_vm0, %v6574_v29  ;;  %5886 = vmatprep.mubr.msk.bf16.mxu1 %vm1576_vm0, %v6576_v30  ;;  %v6638_v29 = vld [vmem:[%s7111_s8 + $0x3d8] sm:$0xff]   ;;  %v6639_v30 = vld [vmem:[%s7111_s8 + $0x1a0] sm:$0xff]  }
  0xe3   : > { %6099 = vmatpush3.bf16.msra.mxu0 %v6575_v6  ;;  %6070 = vmatprep.mubr.msk.bf16.mxu0 %vm1576_vm0, %v6577_v31  ;;  %v6616_v6 = vld [vmem:[%s7111_s8 + $0x150] sm:$0xff]   ;;  %v6640_v31 = vld [vmem:[%s7111_s8 + $0x3e0] sm:$0xff]  }
  0xe4   : > { %6100 = vmatprep.subr.bf16.mxu0 %v6585_v32 }
  0xe7   : > { %6101 = vmatpush3.bf16.msra.mxu0 %v6585_v32  ;;  %v6682_v32 = vld [vmem:[%s7119_s21 + $0x90] sm:$0xff]  }
  0xe8   : > { %6102 = vmatprep.subr.bf16.mxu0 %v6595_v34 }
  0xe9   : > { %5887 = vmatmul.mubr.msk.bf16.gmra.mrb[20].mxu1 %vm1576_vm0, %v6578_v33  ;;  %v6683_v33 = vld [vmem:[%s7119_s21 + $0x98] sm:$0xff]  }
  0xea   : > { %6071 = vmatmul.mubr.msk.bf16.gmra.mrb[4].mxu0 %vm1576_vm0, %v6579_v35  ;;  %5890 = vmatprep.mubr.msk.bf16.mxu1 %vm1576_vm0, %v6580_v36  ;;  %v6642_v35 = vld [vmem:[%s7111_s8 + $0x3e8] sm:$0xff]   ;;  %v6644_v36 = vld [vmem:[%s7111_s8 + $0x1b0] sm:$0xff]  }
  0xeb   : > { %6074 = vmatprep.mubr.msk.bf16.mxu0 %vm1576_vm0, %v6581_v37  ;;  %6103 = vmatpush3.bf16.msra.mxu0 %v6595_v34  ;;  %v6641_v34 = vld [vmem:[%s7111_s8 + $0x1a8] sm:$0xff]   ;;  %v6645_v37 = vld [vmem:[%s7111_s8 + $0x3f0] sm:$0xff]  }
  0xec   : > { %6104 = vmatprep.subr.bf16.mxu0 %v6605_v38 }
  0xef   : > { %6105 = vmatpush3.bf16.msra.mxu0 %v6605_v38  ;;  %v6646_v38 = vld [vmem:[%s7111_s8 + $0x1b8] sm:$0xff]  }
  0xf0   : > { %6138 = vmatprep.subr.bf16.mxu0 %v7268_v40 }
  0xf1   : > { %5891 = vmatmul.mubr.msk.bf16.gmra.mrb[24].mxu1 %vm1576_vm0, %v6582_v39  ;;  %v6647_v39 = vld [vmem:[%s7111_s8 + $0x3f8] sm:$0xff]  }
  0xf2   : > { %6075 = vmatmul.mubr.msk.bf16.gmra.mrb[8].mxu0 %vm1576_vm0, %v6584_v41  ;;  %5894 = vmatprep.mubr.msk.bf16.mxu1 %vm1576_vm0, %v6586_v42  ;;  %v6649_v41 = vld [vmem:[%s7111_s8 + $0x400] sm:$0xff]   ;;  %v6650_v42 = vld [vmem:[%s7111_s8 + $0x1c8] sm:$0xff]  }
  0xf3   : > { %6078 = vmatprep.mubr.msk.bf16.mxu0 %vm1576_vm0, %v6587_v43  ;;  %v6651_v43 = vld [vmem:[%s7111_s8 + $0x408] sm:$0xff]  }
  0xf9   : > { %5895 = vmatmul.mubr.msk.bf16.gmra.mrb[28].mxu1 %vm1576_vm0, %v6588_v44  ;;  %v6652_v44 = vld [vmem:[%s7111_s8 + $0x1d0] sm:$0xff]  }
  0xfa   : > { %6079 = vmatmul.mubr.msk.bf16.gmra.mrb[12].mxu0 %vm1576_vm0, %v6589_v45  ;;  %5906 = vmatprep.mubr.msk.bf16.mxu1 %vm1576_vm0, %v6590_v46  ;;  %v6653_v45 = vld [vmem:[%s7111_s8 + $0x410] sm:$0xff]   ;;  %v6654_v46 = vld [vmem:[%s7111_s8 + $0x1d8] sm:$0xff]  }
  0xfb   : > { %6082 = vmatprep.mubr.msk.bf16.mxu0 %vm1576_vm0, %v6591_v47  ;;  %v6655_v47 = vld [vmem:[%s7111_s8 + $0x418] sm:$0xff]  }
 0x101   : > { %5907 = vmatmul.mubr.msk.bf16.vlgmr.msra.gmra.mrb[0].mxu1 %vm1576_vm0, %v6592_v48  ;;  %v6656_v48 = vld [vmem:[%s7111_s8 + $0x1e0] sm:$0xff]  }
 0x102   : > { %6083 = vmatmul.mubr.msk.bf16.gmra.mrb[16].mxu0 %vm1576_vm0, %v6594_v49  ;;  %5939 = vmatpush3.bf16.msra.mxu1 %v7229_v20  ;;  %v6629_v20 = vld [vmem:[%s7111_s8 + $0x3b8] sm:$0xff]   ;;  %v6657_v49 = vld [vmem:[%s7111_s8 + $0x420] sm:$0xff]  }
 0x103   : > { %5910 = vmatprep.mubr.msk.bf16.mxu1 %vm1576_vm0, %v6596_v50  ;;  %6086 = vmatprep.mubr.msk.bf16.mxu0 %vm1576_vm0, %v6597_v51  ;;  %v6658_v50 = vld [vmem:[%s7111_s8 + $0x1e8] sm:$0xff]  }
 0x104   : > { %5940 = vmatprep.subr.bf16.mxu1 %v6603_v52  ;;  %v6659_v51 = vld [vmem:[%s7111_s8 + $0x428] sm:$0xff]  }
 0x106   : > { %5941 = vmatpush3.bf16.msra.mxu1 %v6603_v52  ;;  %v6660_v52 = vld [vmem:[%s7111_s8 + $0x1f0] sm:$0xff]  }
 0x107   : > { %5942 = vmatprep.subr.bf16.mxu1 %v6613_v53 }
 0x109   : > { %5911 = vmatmul.mubr.msk.bf16.gmra.mrb[4].mxu1 %vm1576_vm0, %v6598_v54  ;;  %v6662_v54 = vld [vmem:[%s7111_s8 + $0x1f8] sm:$0xff]  }
 0x10a   : > { %6087 = vmatmul.mubr.msk.bf16.gmra.mrb[20].mxu0 %vm1576_vm0, %v6599_v55  ;;  %5914 = vmatprep.mubr.msk.bf16.mxu1 %vm1576_vm0, %v6600_v56  ;;  %v6663_v55 = vld [vmem:[%s7111_s8 + $0x438] sm:$0xff]   ;;  %v6664_v56 = vld [vmem:[%s7111_s8 + $0x240] sm:$0xff]  }
 0x10b   : > { %6090 = vmatprep.mubr.msk.bf16.mxu0 %vm1576_vm0, %v6601_v57  ;;  %5943 = vmatpush3.bf16.msra.mxu1 %v6613_v53  ;;  %v6661_v53 = vld [vmem:[%s7111_s8 + $0x430] sm:$0xff]   ;;  %v6665_v57 = vld [vmem:[%s7111_s8 + $0x440] sm:$0xff]  }
 0x10c   : > { %5944 = vmatprep.subr.bf16.mxu1 %v6623_v58 }
 0x10f   : > { %5945 = vmatpush3.bf16.msra.mxu1 %v6623_v58  ;;  %v6666_v58 = vld [vmem:[%s7111_s8 + $0x248] sm:$0xff]  }
 0x110   : > { %6178 = vmatprep.subr.bf16.mxu1 %v6680_v63 }
 0x111   : > { %5915 = vmatmul.mubr.msk.bf16.gmra.mrb[8].mxu1 %vm1576_vm0, %v6602_v59  ;;  %v6667_v59 = vld [vmem:[%s7111_s8 + $0x448] sm:$0xff]  }
 0x112   : > { %6091 = vmatmul.mubr.msk.bf16.gmra.mrb[24].mxu0 %vm1576_vm0, %v6604_v60  ;;  %5918 = vmatprep.mubr.msk.bf16.mxu1 %vm1576_vm0, %v6606_v61  ;;  %v6668_v60 = vld [vmem:[%s7111_s8 + $0x250] sm:$0xff]  }
 0x113   : > { %6094 = vmatprep.mubr.msk.bf16.mxu0 %vm1576_vm0, %v6607_v62  ;;  %v6669_v61 = vld [vmem:[%s7111_s8 + $0x450] sm:$0xff]   ;;  %v6670_v62 = vld [vmem:[%s7111_s8 + $0x258] sm:$0xff]  }
 0x119   : > { %5919 = vmatmul.mubr.msk.bf16.gmra.mrb[12].mxu1 %vm1576_vm0, %v6608_v0  ;;  %v6672_v0 = vld [vmem:[%s7111_s8 + $0x260] sm:$0xff]  }
 0x11a   : > { %6095 = vmatmul.mubr.msk.bf16.gmra.mrb[28].mxu0 %vm1576_vm0, %v6609_v1  ;;  %5922 = vmatprep.mubr.msk.bf16.mxu1 %vm1576_vm0, %v6610_v2  ;;  %v6673_v1 = vld [vmem:[%s7111_s8 + $0x460] sm:$0xff]   ;;  %v6674_v2 = vld [vmem:[%s7111_s8 + $0x268] sm:$0xff]  }
 0x11b   : > { %6106 = vmatprep.mubr.msk.bf16.mxu0 %vm1576_vm0, %v6611_v3  ;;  %v6675_v3 = vld [vmem:[%s7111_s8 + $0x468] sm:$0xff]  }
 0x121   : > { %5923 = vmatmul.mubr.msk.bf16.gmra.mrb[16].mxu1 %vm1576_vm0, %v6612_v4  ;;  %v6676_v4 = vld [vmem:[%s7111_s8 + $0x270] sm:$0xff]  }
 0x122   : > { %6107 = vmatmul.mubr.msk.bf16.vlgmr.msra.gmra.mrb[0].mxu0 %vm1576_vm0, %v6614_v5  ;;  %5926 = vmatprep.mubr.msk.bf16.mxu1 %vm1576_vm0, %v6616_v6  ;;  %v6677_v5 = vld [vmem:[%s7111_s8 + $0x470] sm:$0xff]   ;;  %v6678_v6 = vld [vmem:[%s7111_s8 + $0x278] sm:$0xff]  }
 0x123   : > { %6139 = vmatpush3.bf16.msra.mxu0 %v7268_v40  ;;  %6110 = vmatprep.mubr.msk.bf16.mxu0 %vm1576_vm0, %v6617_v7  ;;  %v6648_v40 = vld [vmem:[%s7111_s8 + $0x1c0] sm:$0xff]   ;;  %v6679_v7 = vld [vmem:[%s7111_s8 + $0x478] sm:$0xff]  }
 0x124   : > { %6140 = vmatprep.subr.bf16.mxu0 %v6625_v8 }
 0x127   : > { %6141 = vmatpush3.bf16.msra.mxu0 %v6625_v8 }
 0x128   : > { %6142 = vmatprep.subr.bf16.mxu0 %v6634_v9 }
 0x129   : > { %5927 = vmatmul.mubr.msk.bf16.gmra.mrb[20].mxu1 %vm1576_vm0, %v6618_v10 }
 0x12a   : > { %6111 = vmatmul.mubr.msk.bf16.gmra.mrb[4].mxu0 %vm1576_vm0, %v6619_v11  ;;  %5930 = vmatprep.mubr.msk.bf16.mxu1 %vm1576_vm0, %v6620_v12 }
 0x12b   : > { %6114 = vmatprep.mubr.msk.bf16.mxu0 %vm1576_vm0, %v6621_v13  ;;  %6143 = vmatpush3.bf16.msra.mxu0 %v6634_v9 }
 0x12c   : > { %6144 = vmatprep.subr.bf16.mxu0 %v6643_v14 }
 0x12f   : > { %6145 = vmatpush3.bf16.msra.mxu0 %v6643_v14 }
 0x131   : > { %5931 = vmatmul.mubr.msk.bf16.gmra.mrb[24].mxu1 %vm1576_vm0, %v6622_v15 }
 0x132   : > { %6115 = vmatmul.mubr.msk.bf16.gmra.mrb[8].mxu0 %vm1576_vm0, %v6624_v16  ;;  %5934 = vmatprep.mubr.msk.bf16.mxu1 %vm1576_vm0, %v6626_v17 }
 0x133   : > { %6118 = vmatprep.mubr.msk.bf16.mxu0 %vm1576_vm0, %v6627_v18 }
 0x139   : > { %5935 = vmatmul.mubr.msk.bf16.gmra.mrb[28].mxu1 %vm1576_vm0, %v6628_v19 }
 0x13a   : > { %6119 = vmatmul.mubr.msk.bf16.gmra.mrb[12].mxu0 %vm1576_vm0, %v6629_v20  ;;  %5946 = vmatprep.mubr.msk.bf16.mxu1 %vm1576_vm0, %v6630_v21 }
 0x13b   : > { %6122 = vmatprep.mubr.msk.bf16.mxu0 %vm1576_vm0, %v6631_v22 }
 0x141   : > { %5947 = vmatmul.mubr.msk.bf16.vlgmr.msra.gmra.mrb[0].mxu1 %vm1576_vm0, %v6632_v23 }
 0x142   : > { %6123 = vmatmul.mubr.msk.bf16.gmra.mrb[16].mxu0 %vm1576_vm0, %v6633_v24  ;;  %6182 = vmatpush3.bf16.msra.mxu1 %v6680_v63  ;;  %v6671_v63 = vld [vmem:[%s7111_s8 + $0x458] sm:$0xff]  }
 0x143   : > { %5950 = vmatprep.mubr.msk.bf16.mxu1 %vm1576_vm0, %v6635_v25  ;;  %6126 = vmatprep.mubr.msk.bf16.mxu0 %vm1576_vm0, %v6636_v26 }
 0x144   : > { %6179 = vmatprep.subr.bf16.mxu1 %v6681_v27 }
 0x146   : > { %6183 = vmatpush3.bf16.msra.mxu1 %v6681_v27 }
 0x147   : > { %6180 = vmatprep.subr.bf16.mxu1 %v6682_v32 }
 0x149   : > { %5951 = vmatmul.mubr.msk.bf16.gmra.mrb[4].mxu1 %vm1576_vm0, %v6637_v28 }
 0x14a   : > { %6127 = vmatmul.mubr.msk.bf16.gmra.mrb[20].mxu0 %vm1576_vm0, %v6638_v29  ;;  %5954 = vmatprep.mubr.msk.bf16.mxu1 %vm1576_vm0, %v6639_v30 }
 0x14b   : > { %6130 = vmatprep.mubr.msk.bf16.mxu0 %vm1576_vm0, %v6640_v31  ;;  %6184 = vmatpush3.bf16.msra.mxu1 %v6682_v32 }
 0x14c   : > { %6181 = vmatprep.subr.bf16.mxu1 %v6683_v33 }
 0x14f   : > { %6185 = vmatpush3.bf16.msra.mxu1 %v6683_v33 }
 0x151   : > { %5955 = vmatmul.mubr.msk.bf16.gmra.mrb[8].mxu1 %vm1576_vm0, %v6641_v34 }
 0x152   : > { %6131 = vmatmul.mubr.msk.bf16.gmra.mrb[24].mxu0 %vm1576_vm0, %v6642_v35  ;;  %5958 = vmatprep.mubr.msk.bf16.mxu1 %vm1576_vm0, %v6644_v36 }
 0x153   : > { %6134 = vmatprep.mubr.msk.bf16.mxu0 %vm1576_vm0, %v6645_v37 }
 0x159   : > { %5959 = vmatmul.mubr.msk.bf16.gmra.mrb[12].mxu1 %vm1576_vm0, %v6646_v38 }
 0x15a   : > { %6135 = vmatmul.mubr.msk.bf16.gmra.mrb[28].mxu0 %vm1576_vm0, %v6647_v39  ;;  %5962 = vmatprep.mubr.msk.bf16.mxu1 %vm1576_vm0, %v6648_v40 }
 0x15b   : > { %6146 = vmatprep.mubr.msk.bf16.mxu0 %vm1576_vm0, %v6649_v41 }
 0x161   : > { %5963 = vmatmul.mubr.msk.bf16.gmra.mrb[16].mxu1 %vm1576_vm0, %v6650_v42 }
 0x162   : > { %6147 = vmatmul.mubr.msk.bf16.vlgmr.msra.gmra.mrb[0].mxu0 %vm1576_vm0, %v6651_v43  ;;  %5966 = vmatprep.mubr.msk.bf16.mxu1 %vm1576_vm0, %v6652_v44 }
 0x163   : > { %6150 = vmatprep.mubr.msk.bf16.mxu0 %vm1576_vm0, %v6653_v45 }
 0x169   : > { %5967 = vmatmul.mubr.msk.bf16.gmra.mrb[20].mxu1 %vm1576_vm0, %v6654_v46 }
 0x16a   : > { %6151 = vmatmul.mubr.msk.bf16.gmra.mrb[4].mxu0 %vm1576_vm0, %v6655_v47  ;;  %5970 = vmatprep.mubr.msk.bf16.mxu1 %vm1576_vm0, %v6656_v48 }
 0x16b   : > { %6154 = vmatprep.mubr.msk.bf16.mxu0 %vm1576_vm0, %v6657_v49 }
 0x171   : > { %5971 = vmatmul.mubr.msk.bf16.gmra.mrb[24].mxu1 %vm1576_vm0, %v6658_v50 }
 0x172   : > { %6155 = vmatmul.mubr.msk.bf16.gmra.mrb[8].mxu0 %vm1576_vm0, %v6659_v51  ;;  %5974 = vmatprep.mubr.msk.bf16.mxu1 %vm1576_vm0, %v6660_v52 }
 0x173   : > { %6158 = vmatprep.mubr.msk.bf16.mxu0 %vm1576_vm0, %v6661_v53 }
 0x179   : > { %5975 = vmatmul.mubr.msk.bf16.gmra.mrb[28].mxu1 %vm1576_vm0, %v6662_v54 }
 0x17a   : > { %6159 = vmatmul.mubr.msk.bf16.gmra.mrb[12].mxu0 %vm1576_vm0, %v6663_v55  ;;  %6002 = vmatprep.mubr.msk.bf16.mxu1 %vm1576_vm0, %v6664_v56 }
 0x17b   : > { %6162 = vmatprep.mubr.msk.bf16.mxu0 %vm1576_vm0, %v6665_v57 }
 0x181   : > { %6003 = vmatmul.mubr.msk.bf16.vlgmr.msra.gmra.mrb[16].mxu1 %vm1576_vm0, %v6666_v58 }
 0x182   : > { %6163 = vmatmul.mubr.msk.bf16.gmra.mrb[16].mxu0 %vm1576_vm0, %v6667_v59  ;;  %6006 = vmatprep.mubr.msk.bf16.mxu1 %vm1576_vm0, %v6668_v60 }
 0x183   : > { %6166 = vmatprep.mubr.msk.bf16.mxu0 %vm1576_vm0, %v6669_v61 }
 0x189   : > { %6007 = vmatmul.mubr.msk.bf16.gmra.mrb[20].mxu1 %vm1576_vm0, %v6670_v62 }
 0x18a   : > { %6167 = vmatmul.mubr.msk.bf16.gmra.mrb[20].mxu0 %vm1576_vm0, %v6671_v63  ;;  %6010 = vmatprep.mubr.msk.bf16.mxu1 %vm1576_vm0, %v6672_v0 }
 0x18b   : > { %6170 = vmatprep.mubr.msk.bf16.mxu0 %vm1576_vm0, %v6673_v1 }
 0x191   : > { %6011 = vmatmul.mubr.msk.bf16.gmra.mrb[24].mxu1 %vm1576_vm0, %v6674_v2 }
 0x192   : > { %6171 = vmatmul.mubr.msk.bf16.gmra.mrb[24].mxu0 %vm1576_vm0, %v6675_v3  ;;  %6014 = vmatprep.mubr.msk.bf16.mxu1 %vm1576_vm0, %v6676_v4 }
 0x193   : > { %6174 = vmatprep.mubr.msk.bf16.mxu0 %vm1576_vm0, %v6677_v5 }
 0x199   : > { %6015 = vmatmul.mubr.msk.bf16.gmra.mrb[28].mxu1 %vm1576_vm0, %v6678_v6 }
 0x19a   : > { %6175 = vmatmul.mubr.msk.bf16.gmra.mrb[28].mxu0 %vm1576_vm0, %v6679_v7 }
 0x214   : > { %v5948_v8 = vpop.f32.mrb[0].mxu1 }
 0x215   : > { %v2714_v9 = vpop.f32.mrb[1].mxu1 }
 0x216   : > { %v5949_v10 = vpop.f32.mrb[2].mxu1 }
 0x217   : > { %v2717_v11 = vpop.f32.mrb[3].mxu1 }
 0x21c   : > { %v5952_v12 = vpop.f32.mrb[4].mxu1 }
 0x21d   : > { %v2730_v13 = vpop.f32.mrb[5].mxu1 }
 0x21e   : > { %v5953_v14 = vpop.f32.mrb[6].mxu1 }
 0x21f   : > { %v2733_v15 = vpop.f32.mrb[7].mxu1 }
 0x224   : > { %v5956_v16 = vpop.f32.mrb[8].mxu1 }
 0x225   : > { %v2746_v17 = vpop.f32.mrb[9].mxu1 }
 0x226   : > { %v5957_v18 = vpop.f32.mrb[10].mxu1 }
 0x227   : > { %v2749_v19 = vpop.f32.mrb[11].mxu1 }
 0x22c   : > { %v5960_v20 = vpop.f32.mrb[12].mxu1 }
 0x22d   : > { %v2762_v21 = vpop.f32.mrb[13].mxu1 }
 0x22e   : > { %v5961_v22 = vpop.f32.mrb[14].mxu1 }
 0x22f   : > { %v2765_v23 = vpop.f32.mrb[15].mxu1 }
 0x235   : > { %v6148_v24 = vpop.f32.mrb[0].mxu0 }
 0x236   : > { %v6186_v25 = vadd.f32 %v6148_v24, %v5948_v8  ;;  %v4649_v26 = vpop.f32.mrb[1].mxu0 }
 0x237   : > { %v6187_v27 = vadd.f32 %v4649_v26, %v2714_v9  ;;  %v6149_v28 = vpop.f32.mrb[2].mxu0 }
 0x238   : > { %v4810_v29 = vmax.f32 %v6186_v25, 0.0  ;;  %v6188_v30 = vadd.f32 %v6149_v28, %v5949_v10  ;;  %v4652_v31 = vpop.f32.mrb[3].mxu0 }
 0x239   : > { %v4808_v32 = vmax.f32 %v6187_v27, 0.0  ;;  %v6189_v33 = vadd.f32 %v4652_v31, %v2717_v11 }
 0x23a   : > { %4842 = vst.msk [vmem:[%s7460_s28 + $0x10] sm:$0xff] %vm1576_vm0, %v4810_v29  ;;  %v4811_v34 = vmax.f32 %v6188_v30, 0.0 }
 0x23b   : > { %4840 = vst.msk [vmem:[%s7460_s28] sm:$0xff] %vm1576_vm0, %v4808_v32  ;;  %v4809_v35 = vmax.f32 %v6189_v33, 0.0 }
 0x23c   : > { %4843 = vst.msk [vmem:[%s7460_s28 + $0x18] sm:$0xff] %vm1576_vm0, %v4811_v34 }
 0x23d   : > { %4841 = vst.msk [vmem:[%s7460_s28 + $0x8] sm:$0xff] %vm1576_vm0, %v4809_v35  ;;  %v6152_v36 = vpop.f32.mrb[4].mxu0 }
 0x23e   : > { %v6190_v37 = vadd.f32 %v6152_v36, %v5952_v12  ;;  %v4665_v38 = vpop.f32.mrb[5].mxu0 }
 0x23f   : > { %v6191_v39 = vadd.f32 %v4665_v38, %v2730_v13  ;;  %v6153_v40 = vpop.f32.mrb[6].mxu0 }
 0x240   : > { %v4814_v41 = vmax.f32 %v6190_v37, 0.0  ;;  %v6192_v42 = vadd.f32 %v6153_v40, %v5953_v14  ;;  %v4668_v43 = vpop.f32.mrb[7].mxu0 }
 0x241   : > { %v4812_v44 = vmax.f32 %v6191_v39, 0.0  ;;  %v6193_v45 = vadd.f32 %v4668_v43, %v2733_v15 }
 0x242   : > { %4846 = vst.msk [vmem:[%s7460_s28 + $0x30] sm:$0xff] %vm1576_vm0, %v4814_v41  ;;  %v4815_v46 = vmax.f32 %v6192_v42, 0.0 }
 0x243   : > { %4844 = vst.msk [vmem:[%s7460_s28 + $0x20] sm:$0xff] %vm1576_vm0, %v4812_v44  ;;  %v4813_v47 = vmax.f32 %v6193_v45, 0.0 }
 0x244   : > { %4847 = vst.msk [vmem:[%s7460_s28 + $0x38] sm:$0xff] %vm1576_vm0, %v4815_v46 }
 0x245   : > { %4845 = vst.msk [vmem:[%s7460_s28 + $0x28] sm:$0xff] %vm1576_vm0, %v4813_v47  ;;  %v6156_v48 = vpop.f32.mrb[8].mxu0 }
 0x246   : > { %v6194_v49 = vadd.f32 %v6156_v48, %v5956_v16  ;;  %v4681_v50 = vpop.f32.mrb[9].mxu0 }
 0x247   : > { %v6195_v51 = vadd.f32 %v4681_v50, %v2746_v17  ;;  %v6157_v52 = vpop.f32.mrb[10].mxu0 }
 0x248   : > { %v4818_v53 = vmax.f32 %v6194_v49, 0.0  ;;  %v6196_v54 = vadd.f32 %v6157_v52, %v5957_v18  ;;  %v4684_v55 = vpop.f32.mrb[11].mxu0 }
 0x249   : > { %v4816_v56 = vmax.f32 %v6195_v51, 0.0  ;;  %v6197_v57 = vadd.f32 %v4684_v55, %v2749_v19 }
 0x24a   : > { %4850 = vst.msk [vmem:[%s7460_s28 + $0x50] sm:$0xff] %vm1576_vm0, %v4818_v53  ;;  %v4819_v58 = vmax.f32 %v6196_v54, 0.0 }
 0x24b   : > { %4848 = vst.msk [vmem:[%s7460_s28 + $0x40] sm:$0xff] %vm1576_vm0, %v4816_v56  ;;  %v4817_v59 = vmax.f32 %v6197_v57, 0.0 }
 0x24c   : > { %4851 = vst.msk [vmem:[%s7460_s28 + $0x58] sm:$0xff] %vm1576_vm0, %v4819_v58 }
 0x24d   : > { %4849 = vst.msk [vmem:[%s7460_s28 + $0x48] sm:$0xff] %vm1576_vm0, %v4817_v59  ;;  %v6160_v60 = vpop.f32.mrb[12].mxu0 }
 0x24e   : > { %v6198_v61 = vadd.f32 %v6160_v60, %v5960_v20  ;;  %v4697_v62 = vpop.f32.mrb[13].mxu0 }
 0x24f   : > { %v6199_v63 = vadd.f32 %v4697_v62, %v2762_v21  ;;  %v6161_v0 = vpop.f32.mrb[14].mxu0 }
 0x250   : > { %v4822_v1 = vmax.f32 %v6198_v61, 0.0  ;;  %v6200_v2 = vadd.f32 %v6161_v0, %v5961_v22  ;;  %v4700_v3 = vpop.f32.mrb[15].mxu0 }
 0x251   : > { %v4820_v4 = vmax.f32 %v6199_v63, 0.0  ;;  %v6201_v5 = vadd.f32 %v4700_v3, %v2765_v23 }
 0x252   : > { %4854 = vst.msk [vmem:[%s7460_s28 + $0x70] sm:$0xff] %vm1576_vm0, %v4822_v1  ;;  %v4823_v6 = vmax.f32 %v6200_v2, 0.0 }
 0x253   : > { %4852 = vst.msk [vmem:[%s7460_s28 + $0x60] sm:$0xff] %vm1576_vm0, %v4820_v4  ;;  %v4821_v7 = vmax.f32 %v6201_v5, 0.0 }
 0x254   : > { %4855 = vst.msk [vmem:[%s7460_s28 + $0x78] sm:$0xff] %vm1576_vm0, %v4823_v6  ;;  %v6004_v8 = vpop.f32.mrb[16].mxu1 }
 0x255   : > { %4853 = vst.msk [vmem:[%s7460_s28 + $0x68] sm:$0xff] %vm1576_vm0, %v4821_v7  ;;  %v6164_v9 = vpop.f32.mrb[16].mxu0  ;;  %v3165_v10 = vpop.f32.mrb[17].mxu1 }
 0x256   : > { %v6202_v11 = vadd.f32 %v6164_v9, %v6004_v8  ;;  %v4713_v12 = vpop.f32.mrb[17].mxu0  ;;  %v6005_v13 = vpop.f32.mrb[18].mxu1 }
 0x257   : > { %v6203_v14 = vadd.f32 %v4713_v12, %v3165_v10  ;;  %v6165_v15 = vpop.f32.mrb[18].mxu0  ;;  %v3168_v16 = vpop.f32.mrb[19].mxu1 }
 0x258   : > { %v4826_v17 = vmax.f32 %v6202_v11, 0.0  ;;  %v6204_v18 = vadd.f32 %v6165_v15, %v6005_v13  ;;  %v4716_v19 = vpop.f32.mrb[19].mxu0 }
 0x259   : > { %v4824_v20 = vmax.f32 %v6203_v14, 0.0  ;;  %v6205_v21 = vadd.f32 %v4716_v19, %v3168_v16 }
 0x25a   : > { %4858 = vst.msk [vmem:[%s7460_s28 + $0x90] sm:$0xff] %vm1576_vm0, %v4826_v17  ;;  %v4827_v22 = vmax.f32 %v6204_v18, 0.0 }
 0x25b   : > { %4856 = vst.msk [vmem:[%s7460_s28 + $0x80] sm:$0xff] %vm1576_vm0, %v4824_v20  ;;  %v4825_v23 = vmax.f32 %v6205_v21, 0.0 }
 0x25c   : > { %4859 = vst.msk [vmem:[%s7460_s28 + $0x98] sm:$0xff] %vm1576_vm0, %v4827_v22  ;;  %v6008_v24 = vpop.f32.mrb[20].mxu1 }
 0x25d   : > { %4857 = vst.msk [vmem:[%s7460_s28 + $0x88] sm:$0xff] %vm1576_vm0, %v4825_v23  ;;  %v6168_v25 = vpop.f32.mrb[20].mxu0  ;;  %v3181_v26 = vpop.f32.mrb[21].mxu1 }
 0x25e   : > { %v6206_v27 = vadd.f32 %v6168_v25, %v6008_v24  ;;  %v4729_v28 = vpop.f32.mrb[21].mxu0  ;;  %v6009_v29 = vpop.f32.mrb[22].mxu1 }
 0x25f   : > { %v6207_v30 = vadd.f32 %v4729_v28, %v3181_v26  ;;  %v6169_v31 = vpop.f32.mrb[22].mxu0  ;;  %v3184_v32 = vpop.f32.mrb[23].mxu1 }
 0x260   : > { %v4830_v33 = vmax.f32 %v6206_v27, 0.0  ;;  %v6208_v34 = vadd.f32 %v6169_v31, %v6009_v29  ;;  %v4732_v35 = vpop.f32.mrb[23].mxu0 }
 0x261   : > { %v4828_v36 = vmax.f32 %v6207_v30, 0.0  ;;  %v6209_v37 = vadd.f32 %v4732_v35, %v3184_v32 }
 0x262   : > { %4862 = vst.msk [vmem:[%s7460_s28 + $0xb0] sm:$0xff] %vm1576_vm0, %v4830_v33  ;;  %v4831_v38 = vmax.f32 %v6208_v34, 0.0 }
 0x263   : > { %4860 = vst.msk [vmem:[%s7460_s28 + $0xa0] sm:$0xff] %vm1576_vm0, %v4828_v36  ;;  %v4829_v39 = vmax.f32 %v6209_v37, 0.0 }
 0x264   : > { %4863 = vst.msk [vmem:[%s7460_s28 + $0xb8] sm:$0xff] %vm1576_vm0, %v4831_v38  ;;  %v6012_v40 = vpop.f32.mrb[24].mxu1 }
 0x265   : > { %4861 = vst.msk [vmem:[%s7460_s28 + $0xa8] sm:$0xff] %vm1576_vm0, %v4829_v39  ;;  %v6172_v41 = vpop.f32.mrb[24].mxu0  ;;  %v3197_v42 = vpop.f32.mrb[25].mxu1 }
 0x266   : > { %v6210_v43 = vadd.f32 %v6172_v41, %v6012_v40  ;;  %v4745_v44 = vpop.f32.mrb[25].mxu0  ;;  %v6013_v45 = vpop.f32.mrb[26].mxu1 }
 0x267   : > { %v6211_v46 = vadd.f32 %v4745_v44, %v3197_v42  ;;  %v6173_v47 = vpop.f32.mrb[26].mxu0  ;;  %v3200_v48 = vpop.f32.mrb[27].mxu1 }
 0x268   : > { %v4834_v49 = vmax.f32 %v6210_v43, 0.0  ;;  %v6212_v50 = vadd.f32 %v6173_v47, %v6013_v45  ;;  %v4748_v51 = vpop.f32.mrb[27].mxu0 }
 0x269   : > { %v4832_v52 = vmax.f32 %v6211_v46, 0.0  ;;  %v6213_v53 = vadd.f32 %v4748_v51, %v3200_v48 }
 0x26a   : > { %4866 = vst.msk [vmem:[%s7460_s28 + $0xd0] sm:$0xff] %vm1576_vm0, %v4834_v49  ;;  %v4835_v54 = vmax.f32 %v6212_v50, 0.0 }
 0x26b   : > { %4864 = vst.msk [vmem:[%s7460_s28 + $0xc0] sm:$0xff] %vm1576_vm0, %v4832_v52  ;;  %v4833_v55 = vmax.f32 %v6213_v53, 0.0 }
 0x26c   : > { %4867 = vst.msk [vmem:[%s7460_s28 + $0xd8] sm:$0xff] %vm1576_vm0, %v4835_v54  ;;  %v6016_v56 = vpop.f32.mrb[28].mxu1 }
 0x26d   : > { %4865 = vst.msk [vmem:[%s7460_s28 + $0xc8] sm:$0xff] %vm1576_vm0, %v4833_v55  ;;  %v6176_v57 = vpop.f32.mrb[28].mxu0  ;;  %v3213_v58 = vpop.f32.mrb[29].mxu1 }
 0x26e   : > { %v6214_v59 = vadd.f32 %v6176_v57, %v6016_v56  ;;  %v4761_v60 = vpop.f32.mrb[29].mxu0  ;;  %v6017_v61 = vpop.f32.mrb[30].mxu1 }
 0x26f   : > { %v6215_v62 = vadd.f32 %v4761_v60, %v3213_v58  ;;  %v6177_v63 = vpop.f32.mrb[30].mxu0  ;;  %v3216_v0 = vpop.f32.mrb[31].mxu1 }
 0x270   : > { %v4838_v1 = vmax.f32 %v6214_v59, 0.0  ;;  %v6216_v2 = vadd.f32 %v6177_v63, %v6017_v61  ;;  %v4764_v3 = vpop.f32.mrb[31].mxu0 }
 0x271   : > { %v4836_v4 = vmax.f32 %v6215_v62, 0.0  ;;  %v6217_v5 = vadd.f32 %v4764_v3, %v3216_v0 }
 0x272   : > { %4870 = vst.msk [vmem:[%s7460_s28 + $0xf0] sm:$0xff] %vm1576_vm0, %v4838_v1  ;;  %v4839_v6 = vmax.f32 %v6216_v2, 0.0 }
 0x273   : > { %4868 = vst.msk [vmem:[%s7460_s28 + $0xe0] sm:$0xff] %vm1576_vm0, %v4836_v4  ;;  %v4837_v7 = vmax.f32 %v6217_v5, 0.0 }
 0x274   : > { %4871 = vst.msk [vmem:[%s7460_s28 + $0xf8] sm:$0xff] %vm1576_vm0, %v4839_v6 }
 0x275   : > { %4869 = vst.msk [vmem:[%s7460_s28 + $0xe8] sm:$0xff] %vm1576_vm0, %v4837_v7 }
 0x276 PF: > { %s12_s15 = sadd.s32 1, %s6738_s15   ;;  %s7550_s9 = smov %s6718_s10 }
 0x277   : > { %p9_p13 = scmp.ge.s32.totalorder %s12_s15, 6   ;;  %s7551_s10 = smov %s6806_s22 }
 0x278   : > { %s7552_s11 = smov %s6730_s13  ;;  %s7553_s12 = smov %s6734_s14 }
 0x279   : > { %s7554_s13 = smov %s7557_s16  ;;  %s7555_s14 = smov %s7561_s17 }
 0x27a   :  { %11 = sbr.rel (!%p9_p13) target bundleno = 4 (0x4), region = 123 }

// kernel: acsp_forward.7
= control target key start
LH: loop header
LB: loop body
LE: loop exit
PB: predicated region body
PF: predicated region fallthrough
CT: control target
= control target key end

     0   :  { %7 = vsyncpa [#allocation4], 0  ;;  %s3632_s0 = inlined_call_operand.vmem [shape: bf16[4,512,64], index: 0, kind: input, shape index: {}]   ;;  %s3633_s1 = inlined_call_operand.vmem [shape: bf16[4,64,64], index: 1, kind: input, shape index: {}]   ;;  %s3634_s2 = inlined_call_operand.hbm [shape: f32[512,64], index: 2, kind: output, shape index: {}]  }
   0x1   :  { %9 = vsyncpa [#allocation4 + $0x1], 0  ;;  %s3143_s9 = smov 0   ;;  %s3145_s10 = smov 0  }
   0x2   :  { %s3147_s11 = smov 0   ;;  %s3149_s12 = smov 0  }
   0x3 LB: > { %s2323_s13 = sadd.s32 4294967295, %s3123_s12   ;;  %s2324_s14 = sadd.s32 4294967294, %s3123_s12   ;;  %s3123_s12 = sphi %s3149_s12, %s3640_s12   ;;  %s3119_s11 = sphi %s3147_s11, %s3639_s11   ;;  %s3115_s10 = sphi %s3145_s10, %s3638_s10   ;;  %s3111_s9 = sphi %s3143_s9, %s3637_s9  }
   0x4   : > { %s3166_s15 = sadd.s32 1, %s3123_s12   ;;  %s22_s16 = sadd.s32 1, %s3119_s11 }
   0x5   : > { %s19_s17 = ssub.s32 %s3123_s12, %s3166_s15  ;;  %p29_p0 = scmp.ne.s32.totalorder %s3119_s11, %s3115_s10 }
   0x6   : > { %p20_p1 = scmp.eq.s32.totalorder %s19_s17, 0  ;;  %p30_p2 = scmp.eq.s32.totalorder %s3123_s12, 0 }
   0x7   : > { %p80_p3 = scmp.eq.s32.totalorder %s2323_s13, 1  ;;  %p85_p4 = scmp.ne.s32.totalorder %s3115_s10, %s3111_s9 }
   0x8   : > { %s3179_s18 = scalar_select %p20_p1, %s3119_s11, %s22_s16  }
   0x9   : > { %p31_p5 = por %p30_p2, %p29_p0  ;;  %p3181_p6 = por %p80_p3, %p29_p0 }
   0xa   : > { %p86_p7 = scmp.eq.s32.totalorder %s2324_s14, 1  ;;  %p2326_p9 = scmp.ge.s32.totalorder %s3123_s12, 2 }
   0xc   : > { %p3185_p8 = por %p86_p7, %p85_p4  ;;  %105 = sbr.rel (%p2326_p9) target bundleno = 55 (0x37), region = 20 }
  0x13   : > { %108 = sbr.rel (!%p31_p5) target bundleno = 55 (0x37), region = 24  ;;  %s110_s21 = sand.u32 (%p31_p5), 1, %s3119_s11  }
  0x14   : > { %s2602_s22 = sshll.u32 (%p31_p5), %s3123_s12, 7  ;;  %s2327_s23 = sshll.u32 (%p31_p5), %s110_s21, 9 }
  0x15   : > { %s3197_s26 = scalar_lea.vmem (%p31_p5), %s3632_s0, %s2602_s22  ;;  %s3202_s27 = scalar_lea.vmem (%p31_p5), [#allocation2], %s2327_s23 }
  0x16   : > { %v131_v0 = vld [vmem:[%s3197_s26] sm:$0xff] (%p31_p5)   ;;  %v135_v1 = vld [vmem:[%s3197_s26 + $0x8] sm:$0xff] (%p31_p5)   ;;  %v139_v2 = vld [vmem:[%s3197_s26 + $0x10] sm:$0xff] (%p31_p5)  }
  0x17   : > { %132 = vst [vmem:[%s3202_s27] sm:$0xff] (%p31_p5), %v131_v0   ;;  %136 = vst [vmem:[%s3202_s27 + $0x8] sm:$0xff] (%p31_p5), %v135_v1   ;;  %v143_v3 = vld [vmem:[%s3197_s26 + $0x18] sm:$0xff] (%p31_p5)   ;;  %v147_v4 = vld [vmem:[%s3197_s26 + $0x20] sm:$0xff] (%p31_p5)  }
  0x18   : > { %140 = vst [vmem:[%s3202_s27 + $0x10] sm:$0xff] (%p31_p5), %v139_v2   ;;  %v151_v5 = vld [vmem:[%s3197_s26 + $0x28] sm:$0xff] (%p31_p5)   ;;  %144 = vst [vmem:[%s3202_s27 + $0x18] sm:$0xff] (%p31_p5), %v143_v3   ;;  %v155_v6 = vld [vmem:[%s3197_s26 + $0x30] sm:$0xff] (%p31_p5)  }
  0x19   : > { %148 = vst [vmem:[%s3202_s27 + $0x20] sm:$0xff] (%p31_p5), %v147_v4   ;;  %152 = vst [vmem:[%s3202_s27 + $0x28] sm:$0xff] (%p31_p5), %v151_v5   ;;  %v159_v7 = vld [vmem:[%s3197_s26 + $0x38] sm:$0xff] (%p31_p5)   ;;  %v163_v8 = vld [vmem:[%s3197_s26 + $0x40] sm:$0xff] (%p31_p5)  }
  0x1a   : > { %156 = vst [vmem:[%s3202_s27 + $0x30] sm:$0xff] %v155_v6   ;;  %160 = vst [vmem:[%s3202_s27 + $0x38] sm:$0xff] %v159_v7   ;;  %v167_v9 = vld [vmem:[%s3197_s26 + $0x48] sm:$0xff]   ;;  %v171_v10 = vld [vmem:[%s3197_s26 + $0x50] sm:$0xff]  }
  0x1b   : > { %164 = vst [vmem:[%s3202_s27 + $0x40] sm:$0xff] %v163_v8   ;;  %v175_v11 = vld [vmem:[%s3197_s26 + $0x58] sm:$0xff]   ;;  %168 = vst [vmem:[%s3202_s27 + $0x48] sm:$0xff] %v167_v9   ;;  %v179_v12 = vld [vmem:[%s3197_s26 + $0x60] sm:$0xff]  }
  0x1c   : > { %172 = vst [vmem:[%s3202_s27 + $0x50] sm:$0xff] %v171_v10   ;;  %176 = vst [vmem:[%s3202_s27 + $0x58] sm:$0xff] %v175_v11   ;;  %v183_v13 = vld [vmem:[%s3197_s26 + $0x68] sm:$0xff]   ;;  %v187_v14 = vld [vmem:[%s3197_s26 + $0x70] sm:$0xff]  }
  0x1d   : > { %180 = vst [vmem:[%s3202_s27 + $0x60] sm:$0xff] %v179_v12   ;;  %184 = vst [vmem:[%s3202_s27 + $0x68] sm:$0xff] %v183_v13   ;;  %v191_v15 = vld [vmem:[%s3197_s26 + $0x78] sm:$0xff]   ;;  %v195_v16 = vld [vmem:[%s3197_s26 + $0x100] sm:$0xff]  }
  0x1e   : > { %188 = vst [vmem:[%s3202_s27 + $0x70] sm:$0xff] %v187_v14   ;;  %v199_v17 = vld [vmem:[%s3197_s26 + $0x108] sm:$0xff]   ;;  %192 = vst [vmem:[%s3202_s27 + $0x78] sm:$0xff] %v191_v15   ;;  %v203_v18 = vld [vmem:[%s3197_s26 + $0x110] sm:$0xff]  }
  0x1f   : > { %196 = vst [vmem:[%s3202_s27 + $0x80] sm:$0xff] %v195_v16   ;;  %200 = vst [vmem:[%s3202_s27 + $0x88] sm:$0xff] %v199_v17   ;;  %v207_v19 = vld [vmem:[%s3197_s26 + $0x118] sm:$0xff]   ;;  %v211_v20 = vld [vmem:[%s3197_s26 + $0x120] sm:$0xff]  }
  0x20   : > { %204 = vst [vmem:[%s3202_s27 + $0x90] sm:$0xff] %v203_v18   ;;  %208 = vst [vmem:[%s3202_s27 + $0x98] sm:$0xff] %v207_v19   ;;  %v215_v21 = vld [vmem:[%s3197_s26 + $0x128] sm:$0xff]   ;;  %v219_v22 = vld [vmem:[%s3197_s26 + $0x130] sm:$0xff]  }
  0x21   : > { %212 = vst [vmem:[%s3202_s27 + $0xa0] sm:$0xff] %v211_v20   ;;  %v223_v23 = vld [vmem:[%s3197_s26 + $0x138] sm:$0xff]   ;;  %216 = vst [vmem:[%s3202_s27 + $0xa8] sm:$0xff] %v215_v21   ;;  %v227_v24 = vld [vmem:[%s3197_s26 + $0x140] sm:$0xff]  }
  0x22   : > { %220 = vst [vmem:[%s3202_s27 + $0xb0] sm:$0xff] %v219_v22   ;;  %224 = vst [vmem:[%s3202_s27 + $0xb8] sm:$0xff] %v223_v23   ;;  %v231_v25 = vld [vmem:[%s3197_s26 + $0x148] sm:$0xff]   ;;  %v235_v26 = vld [vmem:[%s3197_s26 + $0x150] sm:$0xff]  }
  0x23   : > { %228 = vst [vmem:[%s3202_s27 + $0xc0] sm:$0xff] %v227_v24   ;;  %232 = vst [vmem:[%s3202_s27 + $0xc8] sm:$0xff] %v231_v25   ;;  %v239_v27 = vld [vmem:[%s3197_s26 + $0x158] sm:$0xff]   ;;  %v243_v28 = vld [vmem:[%s3197_s26 + $0x160] sm:$0xff]  }
  0x24   : > { %236 = vst [vmem:[%s3202_s27 + $0xd0] sm:$0xff] %v235_v26   ;;  %v247_v29 = vld [vmem:[%s3197_s26 + $0x168] sm:$0xff]   ;;  %240 = vst [vmem:[%s3202_s27 + $0xd8] sm:$0xff] %v239_v27   ;;  %v251_v30 = vld [vmem:[%s3197_s26 + $0x170] sm:$0xff]  }
  0x25   : > { %244 = vst [vmem:[%s3202_s27 + $0xe0] sm:$0xff] %v243_v28   ;;  %248 = vst [vmem:[%s3202_s27 + $0xe8] sm:$0xff] %v247_v29   ;;  %v255_v31 = vld [vmem:[%s3197_s26 + $0x178] sm:$0xff]   ;;  %v259_v32 = vld [vmem:[%s3197_s26 + $0x200] sm:$0xff]  }
  0x26   : > { %252 = vst [vmem:[%s3202_s27 + $0xf0] sm:$0xff] %v251_v30   ;;  %256 = vst [vmem:[%s3202_s27 + $0xf8] sm:$0xff] %v255_v31   ;;  %v263_v33 = vld [vmem:[%s3197_s26 + $0x208] sm:$0xff]   ;;  %v267_v34 = vld [vmem:[%s3197_s26 + $0x210] sm:$0xff]  }
  0x27   : > { %260 = vst [vmem:[%s3202_s27 + $0x100] sm:$0xff] %v259_v32   ;;  %v271_v35 = vld [vmem:[%s3197_s26 + $0x218] sm:$0xff]   ;;  %264 = vst [vmem:[%s3202_s27 + $0x108] sm:$0xff] %v263_v33   ;;  %v275_v36 = vld [vmem:[%s3197_s26 + $0x220] sm:$0xff]  }
  0x28   : > { %268 = vst [vmem:[%s3202_s27 + $0x110] sm:$0xff] %v267_v34   ;;  %272 = vst [vmem:[%s3202_s27 + $0x118] sm:$0xff] %v271_v35   ;;  %v279_v37 = vld [vmem:[%s3197_s26 + $0x228] sm:$0xff]   ;;  %v283_v38 = vld [vmem:[%s3197_s26 + $0x230] sm:$0xff]  }
  0x29   : > { %276 = vst [vmem:[%s3202_s27 + $0x120] sm:$0xff] %v275_v36   ;;  %280 = vst [vmem:[%s3202_s27 + $0x128] sm:$0xff] %v279_v37   ;;  %v287_v39 = vld [vmem:[%s3197_s26 + $0x238] sm:$0xff]   ;;  %v291_v40 = vld [vmem:[%s3197_s26 + $0x240] sm:$0xff]  }
  0x2a   : > { %284 = vst [vmem:[%s3202_s27 + $0x130] sm:$0xff] %v283_v38   ;;  %v295_v41 = vld [vmem:[%s3197_s26 + $0x248] sm:$0xff]   ;;  %288 = vst [vmem:[%s3202_s27 + $0x138] sm:$0xff] %v287_v39   ;;  %v299_v42 = vld [vmem:[%s3197_s26 + $0x250] sm:$0xff]  }
  0x2b   : > { %292 = vst [vmem:[%s3202_s27 + $0x140] sm:$0xff] %v291_v40   ;;  %296 = vst [vmem:[%s3202_s27 + $0x148] sm:$0xff] %v295_v41   ;;  %v303_v43 = vld [vmem:[%s3197_s26 + $0x258] sm:$0xff]   ;;  %v307_v44 = vld [vmem:[%s3197_s26 + $0x260] sm:$0xff]  }
  0x2c   : > { %300 = vst [vmem:[%s3202_s27 + $0x150] sm:$0xff] %v299_v42   ;;  %304 = vst [vmem:[%s3202_s27 + $0x158] sm:$0xff] %v303_v43   ;;  %v311_v45 = vld [vmem:[%s3197_s26 + $0x268] sm:$0xff]   ;;  %v315_v46 = vld [vmem:[%s3197_s26 + $0x270] sm:$0xff]  }
  0x2d   : > { %308 = vst [vmem:[%s3202_s27 + $0x160] sm:$0xff] %v307_v44   ;;  %v319_v47 = vld [vmem:[%s3197_s26 + $0x278] sm:$0xff]   ;;  %312 = vst [vmem:[%s3202_s27 + $0x168] sm:$0xff] %v311_v45   ;;  %v323_v48 = vld [vmem:[%s3197_s26 + $0x300] sm:$0xff]  }
  0x2e   : > { %316 = vst [vmem:[%s3202_s27 + $0x170] sm:$0xff] %v315_v46   ;;  %320 = vst [vmem:[%s3202_s27 + $0x178] sm:$0xff] %v319_v47   ;;  %v327_v49 = vld [vmem:[%s3197_s26 + $0x308] sm:$0xff]   ;;  %v331_v50 = vld [vmem:[%s3197_s26 + $0x310] sm:$0xff]  }
  0x2f   : > { %324 = vst [vmem:[%s3202_s27 + $0x180] sm:$0xff] %v323_v48   ;;  %328 = vst [vmem:[%s3202_s27 + $0x188] sm:$0xff] %v327_v49   ;;  %v335_v51 = vld [vmem:[%s3197_s26 + $0x318] sm:$0xff]   ;;  %v339_v52 = vld [vmem:[%s3197_s26 + $0x320] sm:$0xff]  }
  0x30   : > { %332 = vst [vmem:[%s3202_s27 + $0x190] sm:$0xff] %v331_v50   ;;  %v343_v53 = vld [vmem:[%s3197_s26 + $0x328] sm:$0xff]   ;;  %336 = vst [vmem:[%s3202_s27 + $0x198] sm:$0xff] %v335_v51   ;;  %v347_v54 = vld [vmem:[%s3197_s26 + $0x330] sm:$0xff]  }
  0x31   : > { %340 = vst [vmem:[%s3202_s27 + $0x1a0] sm:$0xff] %v339_v52   ;;  %344 = vst [vmem:[%s3202_s27 + $0x1a8] sm:$0xff] %v343_v53   ;;  %v351_v55 = vld [vmem:[%s3197_s26 + $0x338] sm:$0xff]   ;;  %v355_v56 = vld [vmem:[%s3197_s26 + $0x340] sm:$0xff]  }
  0x32   : > { %348 = vst [vmem:[%s3202_s27 + $0x1b0] sm:$0xff] %v347_v54   ;;  %352 = vst [vmem:[%s3202_s27 + $0x1b8] sm:$0xff] %v351_v55   ;;  %v359_v57 = vld [vmem:[%s3197_s26 + $0x348] sm:$0xff]   ;;  %v363_v58 = vld [vmem:[%s3197_s26 + $0x350] sm:$0xff]  }
  0x33   : > { %356 = vst [vmem:[%s3202_s27 + $0x1c0] sm:$0xff] %v355_v56   ;;  %v367_v59 = vld [vmem:[%s3197_s26 + $0x358] sm:$0xff]   ;;  %360 = vst [vmem:[%s3202_s27 + $0x1c8] sm:$0xff] %v359_v57   ;;  %v371_v60 = vld [vmem:[%s3197_s26 + $0x360] sm:$0xff]  }
  0x34   : > { %364 = vst [vmem:[%s3202_s27 + $0x1d0] sm:$0xff] %v363_v58   ;;  %368 = vst [vmem:[%s3202_s27 + $0x1d8] sm:$0xff] %v367_v59   ;;  %v375_v61 = vld [vmem:[%s3197_s26 + $0x368] sm:$0xff]   ;;  %v379_v62 = vld [vmem:[%s3197_s26 + $0x370] sm:$0xff]  }
  0x35   : > { %372 = vst [vmem:[%s3202_s27 + $0x1e0] sm:$0xff] %v371_v60   ;;  %376 = vst [vmem:[%s3202_s27 + $0x1e8] sm:$0xff] %v375_v61   ;;  %v383_v63 = vld [vmem:[%s3197_s26 + $0x378] sm:$0xff]  }
  0x36   : > { %380 = vst [vmem:[%s3202_s27 + $0x1f0] sm:$0xff] %v379_v62   ;;  %384 = vst [vmem:[%s3202_s27 + $0x1f8] sm:$0xff] %v383_v63  }
  0x37 PF: > { %p2330_p10 = scmp.ge.s32.totalorder %s3123_s12, 1  ;;  %p664_p11 = scmp.lt.s32.totalorder %s3123_s12, 3 }
  0x39   : > { %p665_p12 = pnand %p2330_p10, %p664_p11 }
  0x3a   : > { %v2981_v0 = vld [vmem:[%s3633_s1 + $0x20] sm:$0xff] (!%p665_p12)   ;;  %s3335_s30 = sand.u32 (!%p665_p12), 1, %s3115_s10   ;;  %v2983_v2 = vld [vmem:[%s3633_s1 + $0x28] sm:$0xff] (!%p665_p12)   ;;  %v2985_v4 = vld [vmem:[%s3633_s1 + $0x30] sm:$0xff] (!%p665_p12)   ;;  %vm881_vm0 = vcmask (!%p665_p12), 523264   ;;  %s2603_s28 = sshll.u32 (!%p665_p12), %s2323_s13, 12 }
  0x3b   : > { %668 = sbr.rel (%p665_p12) target bundleno = 430 (0x1ae), region = 65  ;;  %v2982_v1 = vld [vmem:[%s3633_s1 + $0x40] sm:$0xff] (!%p665_p12)   ;;  %2684 = vmatprep.subr.bf16.mxu1 (!%p665_p12), %v2981_v0  ;;  %s2331_s7 = sshll.u32 (!%p665_p12), %s3335_s30, 9  ;;  %v2984_v3 = vld [vmem:[%s3633_s1 + $0x48] sm:$0xff] (!%p665_p12)   ;;  %v2986_v5 = vld [vmem:[%s3633_s1 + $0x50] sm:$0xff] (!%p665_p12)  }
  0x3c   : > { %2764 = vmatprep.subr.bf16.mxu0 (!%p665_p12), %v2982_v1  ;;  %2685 = vmatpush3.bf16.msra.mxu1 (!%p665_p12), %v2981_v0  ;;  %v2987_v6 = vld [vmem:[%s3633_s1 + $0x38] sm:$0xff] (!%p665_p12)   ;;  %s3359_s27 = scalar_lea.vmem (!%p665_p12), [#allocation2], %s2331_s7  ;;  %v2992_v10 = vld [vmem:[%s3633_s1] sm:$0xff] (!%p665_p12)   ;;  %v3002_v18 = vld [vmem:[%s3633_s1 + $0x8] sm:$0xff] (!%p665_p12)   ;;  %s2332_s26 = sshll.u32 (!%p665_p12), %s3335_s30, 8 }
  0x3d   : > { %2765 = vmatpush3.bf16.msra.mxu0 (!%p665_p12), %v2982_v1  ;;  %2686 = vmatprep.subr.bf16.mxu1 (!%p665_p12), %v2983_v2  ;;  %v2988_v7 = vld [vmem:[%s3633_s1 + $0x58] sm:$0xff] (!%p665_p12)   ;;  %v2989_v8 = vld [vmem:[%s3359_s27 + $0x80] sm:$0xff] (!%p665_p12)   ;;  %v2991_v12 = vld [vmem:[%s3359_s27 + $0x88] sm:$0xff] (!%p665_p12)   ;;  %s3580_s5 = scalar_lea.hbm (!%p665_p12), %s3634_s2, %s2603_s28  ;;  %s2243_s13 = scalar_lea.sflag (!%p665_p12), [#allocation4], %s3335_s30 }
  0x3e   : > { %2766 = vmatprep.subr.bf16.mxu0 (!%p665_p12), %v2984_v3  ;;  %v2990_v9 = vld [vmem:[%s3359_s27 + $0x100] sm:$0xff] (!%p665_p12)   ;;  %2692 = vmatprep.mubr.msk.bf16.mxu1 (!%p665_p12), %vm881_vm0, %v2989_v8  ;;  %v2993_v13 = vld [vmem:[%s3359_s27 + $0x108] sm:$0xff] (!%p665_p12)   ;;  %v2995_v14 = vld [vmem:[%s3359_s27 + $0x90] sm:$0xff] (!%p665_p12)   ;;  %s3125_s7 = smov (!%p665_p12), [#allocation3]  }
  0x3f   : > { %2772 = vmatprep.mubr.msk.bf16.mxu0 (!%p665_p12), %vm881_vm0, %v2990_v9  ;;  %v2994_v11 = vld [vmem:[%s3633_s1 + $0x60] sm:$0xff] (!%p665_p12)   ;;  %v2996_v15 = vld [vmem:[%s3359_s27 + $0x110] sm:$0xff] (!%p665_p12)   ;;  %v2997_v16 = vld [vmem:[%s3359_s27 + $0x98] sm:$0xff] (!%p665_p12)   ;;  %s3065_s8 = sshll.u32 (!%p665_p12), %s3125_s7, 4  ;;  %s3066_s8 = int_to_ptr.vmem [resolvable:$false] %s3065_s8 }
  0x40   : > { %2687 = vmatpush3.bf16.msra.mxu1 (!%p665_p12), %v2983_v2  ;;  %v2998_v17 = vld [vmem:[%s3359_s27 + $0x118] sm:$0xff] (!%p665_p12)   ;;  %v2999_v19 = vld [vmem:[%s3359_s27 + $0xa0] sm:$0xff] (!%p665_p12)   ;;  %v3004_v20 = vld [vmem:[%s3633_s1 + $0x68] sm:$0xff] (!%p665_p12)   ;;  %s3067_s14 = scalar_lea.vmem (!%p665_p12), %s3066_s8, 8192 }
  0x41   : > { %2767 = vmatpush3.bf16.msra.mxu0 (!%p665_p12), %v2984_v3  ;;  %2688 = vmatprep.subr.bf16.mxu1 (!%p665_p12), %v2985_v4  ;;  %v3000_v21 = vld [vmem:[%s3359_s27 + $0x120] sm:$0xff] (!%p665_p12)   ;;  %v3001_v22 = vld [vmem:[%s3359_s27 + $0xa8] sm:$0xff] (!%p665_p12)   ;;  %v3005_v24 = vld [vmem:[%s3359_s27 + $0xb0] sm:$0xff] (!%p665_p12)  }
  0x42   : > { %2768 = vmatprep.subr.bf16.mxu0 %v2986_v5  ;;  %v3003_v23 = vld [vmem:[%s3359_s27 + $0x128] sm:$0xff]   ;;  %v3012_v25 = vld [vmem:[%s3633_s1 + $0x10] sm:$0xff]   ;;  %v3007_v28 = vld [vmem:[%s3359_s27 + $0xb8] sm:$0xff]  }
  0x43   : > { %v3006_v26 = vld [vmem:[%s3359_s27 + $0x130] sm:$0xff]   ;;  %v3008_v29 = vld [vmem:[%s3359_s27 + $0x138] sm:$0xff]   ;;  %v3009_v30 = vld [vmem:[%s3359_s27 + $0xc0] sm:$0xff]  }
  0x44   : > { %2689 = vmatpush3.bf16.msra.mxu1 %v2985_v4  ;;  %v3014_v27 = vld [vmem:[%s3633_s1 + $0x70] sm:$0xff]   ;;  %v3010_v31 = vld [vmem:[%s3359_s27 + $0x140] sm:$0xff]   ;;  %v3022_v32 = vld [vmem:[%s3633_s1 + $0x18] sm:$0xff]  }
  0x45   : > { %2769 = vmatpush3.bf16.msra.mxu0 %v2986_v5  ;;  %2690 = vmatprep.subr.bf16.mxu1 %v2987_v6  ;;  %v3024_v33 = vld [vmem:[%s3633_s1 + $0x78] sm:$0xff]   ;;  %v3011_v34 = vld [vmem:[%s3359_s27 + $0xc8] sm:$0xff]   ;;  %v3015_v36 = vld [vmem:[%s3359_s27 + $0xd0] sm:$0xff]  }
  0x46   : > { %2770 = vmatprep.subr.bf16.mxu0 %v2988_v7  ;;  %v3013_v35 = vld [vmem:[%s3359_s27 + $0x148] sm:$0xff]   ;;  %v3016_v37 = vld [vmem:[%s3359_s27 + $0x150] sm:$0xff]   ;;  %v3017_v38 = vld [vmem:[%s3359_s27 + $0xd8] sm:$0xff]  }
  0x47   : > { %v3018_v39 = vld [vmem:[%s3359_s27 + $0x158] sm:$0xff]   ;;  %v3019_v40 = vld [vmem:[%s3359_s27 + $0xe0] sm:$0xff]   ;;  %v3021_v42 = vld [vmem:[%s3359_s27 + $0xe8] sm:$0xff]  }
  0x48   : > { %2691 = vmatpush3.bf16.msra.mxu1 %v2987_v6  ;;  %v3020_v41 = vld [vmem:[%s3359_s27 + $0x160] sm:$0xff]   ;;  %v3023_v43 = vld [vmem:[%s3359_s27 + $0x168] sm:$0xff]   ;;  %v3025_v44 = vld [vmem:[%s3359_s27 + $0xf0] sm:$0xff]  }
  0x49   : > { %2771 = vmatpush3.bf16.msra.mxu0 %v2988_v7  ;;  %2724 = vmatprep.subr.bf16.mxu1 %v2992_v10  ;;  %v3026_v45 = vld [vmem:[%s3359_s27 + $0x170] sm:$0xff]   ;;  %v3027_v46 = vld [vmem:[%s3359_s27 + $0xf8] sm:$0xff]   ;;  %v3029_v48 = vld [vmem:[%s3359_s27] sm:$0xff]  }
  0x4a   : > { %2804 = vmatprep.subr.bf16.mxu0 %v2994_v11  ;;  %v3028_v47 = vld [vmem:[%s3359_s27 + $0x178] sm:$0xff]   ;;  %v3030_v49 = vld [vmem:[%s3359_s27 + $0x180] sm:$0xff]   ;;  %v3031_v50 = vld [vmem:[%s3359_s27 + $0x8] sm:$0xff]  }
  0x4b   : > { %2693 = vmatmul.mubr.msk.bf16.vlgmr.msra.gmra.mrb[0].mxu1 %vm881_vm0, %v2991_v12  ;;  %v3032_v51 = vld [vmem:[%s3359_s27 + $0x188] sm:$0xff]   ;;  %v3033_v52 = vld [vmem:[%s3359_s27 + $0x10] sm:$0xff]   ;;  %v3035_v54 = vld [vmem:[%s3359_s27 + $0x18] sm:$0xff]  }
  0x4c   : > { %2773 = vmatmul.mubr.msk.bf16.vlgmr.msra.gmra.mrb[0].mxu0 %vm881_vm0, %v2993_v13  ;;  %2725 = vmatpush3.bf16.msra.mxu1 %v2992_v10  ;;  %v3034_v53 = vld [vmem:[%s3359_s27 + $0x190] sm:$0xff]   ;;  %v3036_v55 = vld [vmem:[%s3359_s27 + $0x198] sm:$0xff]   ;;  %v3037_v56 = vld [vmem:[%s3359_s27 + $0x20] sm:$0xff]  }
  0x4d   : > { %2805 = vmatpush3.bf16.msra.mxu0 %v2994_v11  ;;  %2696 = vmatprep.mubr.msk.bf16.mxu1 %vm881_vm0, %v2995_v14  ;;  %v3038_v57 = vld [vmem:[%s3359_s27 + $0x1a0] sm:$0xff]   ;;  %v3039_v58 = vld [vmem:[%s3359_s27 + $0x28] sm:$0xff]   ;;  %v3041_v60 = vld [vmem:[%s3359_s27 + $0x30] sm:$0xff]  }
  0x4e   : > { %2776 = vmatprep.mubr.msk.bf16.mxu0 %vm881_vm0, %v2996_v15  ;;  %2726 = vmatprep.subr.bf16.mxu1 %v3002_v18  ;;  %v3040_v59 = vld [vmem:[%s3359_s27 + $0x1a8] sm:$0xff]   ;;  %v3042_v61 = vld [vmem:[%s3359_s27 + $0x1b0] sm:$0xff]   ;;  %v3043_v62 = vld [vmem:[%s3359_s27 + $0x38] sm:$0xff]  }
  0x4f   : > { %2806 = vmatprep.subr.bf16.mxu0 %v3004_v20  ;;  %v3044_v63 = vld [vmem:[%s3359_s27 + $0x1b8] sm:$0xff]   ;;  %v3045_v0 = vld [vmem:[%s3359_s27 + $0x40] sm:$0xff]   ;;  %v3047_v2 = vld [vmem:[%s3359_s27 + $0x48] sm:$0xff]  }
  0x50   : > { %2727 = vmatpush3.bf16.msra.mxu1 %v3002_v18  ;;  %v3046_v1 = vld [vmem:[%s3359_s27 + $0x1c0] sm:$0xff]   ;;  %v3048_v3 = vld [vmem:[%s3359_s27 + $0x1c8] sm:$0xff]   ;;  %v3049_v4 = vld [vmem:[%s3359_s27 + $0x50] sm:$0xff]  }
  0x51   : > { %2807 = vmatpush3.bf16.msra.mxu0 %v3004_v20  ;;  %2728 = vmatprep.subr.bf16.mxu1 %v3012_v25  ;;  %v3050_v5 = vld [vmem:[%s3359_s27 + $0x1d0] sm:$0xff]   ;;  %v3051_v6 = vld [vmem:[%s3359_s27 + $0x58] sm:$0xff]   ;;  %v3053_v8 = vld [vmem:[%s3359_s27 + $0x60] sm:$0xff]  }
  0x52   : > { %2808 = vmatprep.subr.bf16.mxu0 %v3014_v27  ;;  %v3052_v7 = vld [vmem:[%s3359_s27 + $0x1d8] sm:$0xff]   ;;  %v3054_v9 = vld [vmem:[%s3359_s27 + $0x1e0] sm:$0xff]   ;;  %v3055_v10 = vld [vmem:[%s3359_s27 + $0x68] sm:$0xff]  }
  0x53   : > { %2697 = vmatmul.mubr.msk.bf16.gmra.mrb[4].mxu1 %vm881_vm0, %v2997_v16  ;;  %v3056_v11 = vld [vmem:[%s3359_s27 + $0x1e8] sm:$0xff]   ;;  %v3057_v12 = vld [vmem:[%s3359_s27 + $0x70] sm:$0xff]   ;;  %v3059_v14 = vld [vmem:[%s3359_s27 + $0x78] sm:$0xff]  }
  0x54   : > { %2777 = vmatmul.mubr.msk.bf16.gmra.mrb[4].mxu0 %vm881_vm0, %v2998_v17  ;;  %2700 = vmatprep.mubr.msk.bf16.mxu1 %vm881_vm0, %v2999_v19  ;;  %v3058_v13 = vld [vmem:[%s3359_s27 + $0x1f0] sm:$0xff]   ;;  %v3060_v15 = vld [vmem:[%s3359_s27 + $0x1f8] sm:$0xff]   ;;  %s3514_s27 = scalar_lea.vmem [#allocation3], %s2332_s26 }
  0x55   : > { %2780 = vmatprep.mubr.msk.bf16.mxu0 %vm881_vm0, %v3000_v21  ;;  %2729 = vmatpush3.bf16.msra.mxu1 %v3012_v25  ;;  %s2256_s29 = sshll.u32 %s3514_s27, 4  ;;  %s3582_s29 = int_to_ptr.vmem [resolvable:$true] %s2256_s29 }
  0x56   : > { %2809 = vmatpush3.bf16.msra.mxu0 %v3014_v27  ;;  %2730 = vmatprep.subr.bf16.mxu1 %v3022_v32  ;;  %s3061_s6 = scalar_lea.vmem %s3582_s29, 4096  ;;  %p3068_p2 = scmp.lt.s32.totalorder %s3582_s29, %s3066_s8 }
  0x57   : > { %2810 = vmatprep.subr.bf16.mxu0 %v3024_v33  ;;  %p3062_p13 = scmp.ne.s32.totalorder %s3582_s29, %s3061_s6  ;;  %p3069_p3 = scmp.lt.s32.totalorder %s3067_s14, %s3061_s6 }
  0x59   : > { %2731 = vmatpush3.bf16.msra.mxu1 %v3022_v32  ;;  %p3063_p0 = pnand %p3062_p13, %p3181_p6  ;;  %p3070_p4 = por %p3069_p3, %p3068_p2 }
  0x5a   : > { %2811 = vmatpush3.bf16.msra.mxu0 %v3024_v33 }
  0x5b   : > { %2701 = vmatmul.mubr.msk.bf16.gmra.mrb[8].mxu1 %vm881_vm0, %v3001_v22  ;;  %p3064_p1 = pneg %p3063_p0 }
  0x5c   : > { %2781 = vmatmul.mubr.msk.bf16.gmra.mrb[8].mxu0 %vm881_vm0, %v3003_v23  ;;  %2704 = vmatprep.mubr.msk.bf16.mxu1 %vm881_vm0, %v3005_v24 }
  0x5d   : > { %2784 = vmatprep.mubr.msk.bf16.mxu0 %vm881_vm0, %v3006_v26  ;;  %p3071_p5 = pnand %p3070_p4, %p3064_p1 }
  0x63   : > { %2705 = vmatmul.mubr.msk.bf16.gmra.mrb[12].mxu1 %vm881_vm0, %v3007_v28 }
  0x64   : > { %2785 = vmatmul.mubr.msk.bf16.gmra.mrb[12].mxu0 %vm881_vm0, %v3008_v29  ;;  %2708 = vmatprep.mubr.msk.bf16.mxu1 %vm881_vm0, %v3009_v30 }
  0x65   : > { %2788 = vmatprep.mubr.msk.bf16.mxu0 %vm881_vm0, %v3010_v31 }
  0x6b   : > { %2709 = vmatmul.mubr.msk.bf16.gmra.mrb[16].mxu1 %vm881_vm0, %v3011_v34 }
  0x6c   : > { %2789 = vmatmul.mubr.msk.bf16.gmra.mrb[16].mxu0 %vm881_vm0, %v3013_v35  ;;  %2712 = vmatprep.mubr.msk.bf16.mxu1 %vm881_vm0, %v3015_v36 }
  0x6d   : > { %2792 = vmatprep.mubr.msk.bf16.mxu0 %vm881_vm0, %v3016_v37 }
  0x73   : > { %2713 = vmatmul.mubr.msk.bf16.gmra.mrb[20].mxu1 %vm881_vm0, %v3017_v38 }
  0x74   : > { %2793 = vmatmul.mubr.msk.bf16.gmra.mrb[20].mxu0 %vm881_vm0, %v3018_v39  ;;  %2716 = vmatprep.mubr.msk.bf16.mxu1 %vm881_vm0, %v3019_v40 }
  0x75   : > { %2796 = vmatprep.mubr.msk.bf16.mxu0 %vm881_vm0, %v3020_v41 }
  0x7b   : > { %2717 = vmatmul.mubr.msk.bf16.gmra.mrb[24].mxu1 %vm881_vm0, %v3021_v42 }
  0x7c   : > { %2797 = vmatmul.mubr.msk.bf16.gmra.mrb[24].mxu0 %vm881_vm0, %v3023_v43  ;;  %2720 = vmatprep.mubr.msk.bf16.mxu1 %vm881_vm0, %v3025_v44 }
  0x7d   : > { %2800 = vmatprep.mubr.msk.bf16.mxu0 %vm881_vm0, %v3026_v45 }
  0x83   : > { %2721 = vmatmul.mubr.msk.bf16.gmra.mrb[28].mxu1 %vm881_vm0, %v3027_v46 }
  0x84   : > { %2801 = vmatmul.mubr.msk.bf16.gmra.mrb[28].mxu0 %vm881_vm0, %v3028_v47  ;;  %2732 = vmatprep.mubr.msk.bf16.mxu1 %vm881_vm0, %v3029_v48 }
  0x85   : > { %2812 = vmatprep.mubr.msk.bf16.mxu0 %vm881_vm0, %v3030_v49 }
  0x8b   : > { %2733 = vmatmul.mubr.msk.bf16.vlgmr.msra.gmra.mrb[0].mxu1 %vm881_vm0, %v3031_v50 }
  0x8c   : > { %2813 = vmatmul.mubr.msk.bf16.vlgmr.msra.gmra.mrb[0].mxu0 %vm881_vm0, %v3032_v51  ;;  %2736 = vmatprep.mubr.msk.bf16.mxu1 %vm881_vm0, %v3033_v52 }
  0x8d   : > { %2816 = vmatprep.mubr.msk.bf16.mxu0 %vm881_vm0, %v3034_v53 }
  0x93   : > { %2737 = vmatmul.mubr.msk.bf16.gmra.mrb[4].mxu1 %vm881_vm0, %v3035_v54 }
  0x94   : > { %2817 = vmatmul.mubr.msk.bf16.gmra.mrb[4].mxu0 %vm881_vm0, %v3036_v55  ;;  %2740 = vmatprep.mubr.msk.bf16.mxu1 %vm881_vm0, %v3037_v56 }
  0x95   : > { %2820 = vmatprep.mubr.msk.bf16.mxu0 %vm881_vm0, %v3038_v57 }
  0x9b   : > { %2741 = vmatmul.mubr.msk.bf16.gmra.mrb[8].mxu1 %vm881_vm0, %v3039_v58 }
  0x9c   : > { %2821 = vmatmul.mubr.msk.bf16.gmra.mrb[8].mxu0 %vm881_vm0, %v3040_v59  ;;  %2744 = vmatprep.mubr.msk.bf16.mxu1 %vm881_vm0, %v3041_v60 }
  0x9d   : > { %2824 = vmatprep.mubr.msk.bf16.mxu0 %vm881_vm0, %v3042_v61 }
  0xa3   : > { %2745 = vmatmul.mubr.msk.bf16.gmra.mrb[12].mxu1 %vm881_vm0, %v3043_v62 }
  0xa4   : > { %2825 = vmatmul.mubr.msk.bf16.gmra.mrb[12].mxu0 %vm881_vm0, %v3044_v63  ;;  %2748 = vmatprep.mubr.msk.bf16.mxu1 %vm881_vm0, %v3045_v0 }
  0xa5   : > { %2828 = vmatprep.mubr.msk.bf16.mxu0 %vm881_vm0, %v3046_v1 }
  0xab   : > { %2749 = vmatmul.mubr.msk.bf16.gmra.mrb[16].mxu1 %vm881_vm0, %v3047_v2 }
  0xac   : > { %2829 = vmatmul.mubr.msk.bf16.gmra.mrb[16].mxu0 %vm881_vm0, %v3048_v3  ;;  %2752 = vmatprep.mubr.msk.bf16.mxu1 %vm881_vm0, %v3049_v4 }
  0xad   : > { %2832 = vmatprep.mubr.msk.bf16.mxu0 %vm881_vm0, %v3050_v5 }
  0xb3   : > { %2753 = vmatmul.mubr.msk.bf16.gmra.mrb[20].mxu1 %vm881_vm0, %v3051_v6 }
  0xb4   : > { %2833 = vmatmul.mubr.msk.bf16.gmra.mrb[20].mxu0 %vm881_vm0, %v3052_v7  ;;  %2756 = vmatprep.mubr.msk.bf16.mxu1 %vm881_vm0, %v3053_v8 }
  0xb5   : > { %2836 = vmatprep.mubr.msk.bf16.mxu0 %vm881_vm0, %v3054_v9 }
  0xbb   : > { %2757 = vmatmul.mubr.msk.bf16.gmra.mrb[24].mxu1 %vm881_vm0, %v3055_v10 }
  0xbc   : > { %2837 = vmatmul.mubr.msk.bf16.gmra.mrb[24].mxu0 %vm881_vm0, %v3056_v11  ;;  %2760 = vmatprep.mubr.msk.bf16.mxu1 %vm881_vm0, %v3057_v12 }
  0xbd   : > { %2840 = vmatprep.mubr.msk.bf16.mxu0 %vm881_vm0, %v3058_v13 }
  0xc3   : > { %2761 = vmatmul.mubr.msk.bf16.gmra.mrb[28].mxu1 %vm881_vm0, %v3059_v14 }
  0xc4   : > { %2841 = vmatmul.mubr.msk.bf16.gmra.mrb[28].mxu0 %vm881_vm0, %v3060_v15 }
 0x15e   : > { %v2734_v16 = vpop.f32.mrb[0].mxu1 }
 0x15f   : > { %v2814_v17 = vpop.f32.mrb[0].mxu0  ;;  %v1277_v18 = vpop.f32.mrb[1].mxu1 }
 0x160   : > { %v2844_v19 = vadd.f32 %v2814_v17, %v2734_v16  ;;  %v2019_v20 = vpop.f32.mrb[1].mxu0  ;;  %v2735_v21 = vpop.f32.mrb[2].mxu1 }
 0x161   : > { %v2845_v22 = vadd.f32 %v2019_v20, %v1277_v18  ;;  %v2815_v23 = vpop.f32.mrb[2].mxu0  ;;  %v1280_v24 = vpop.f32.mrb[3].mxu1 }
 0x162   : > { %v2180_v25 = vmax.f32 %v2844_v19, 0.0  ;;  %v2846_v26 = vadd.f32 %v2815_v23, %v2735_v21  ;;  %v2022_v27 = vpop.f32.mrb[3].mxu0 }
 0x163   : > { %v2178_v28 = vmax.f32 %v2845_v22, 0.0  ;;  %v2847_v29 = vadd.f32 %v2022_v27, %v1280_v24 }
 0x164   : > { %2212 = vst.msk [vmem:[%s3514_s27 + $0x10] sm:$0xff] %vm881_vm0, %v2180_v25  ;;  %v2181_v30 = vmax.f32 %v2846_v26, 0.0 }
 0x165   : > { %2210 = vst.msk [vmem:[%s3514_s27] sm:$0xff] %vm881_vm0, %v2178_v28  ;;  %v2179_v31 = vmax.f32 %v2847_v29, 0.0 }
 0x166   : > { %2213 = vst.msk [vmem:[%s3514_s27 + $0x18] sm:$0xff] %vm881_vm0, %v2181_v30  ;;  %v2738_v32 = vpop.f32.mrb[4].mxu1 }
 0x167   : > { %2211 = vst.msk [vmem:[%s3514_s27 + $0x8] sm:$0xff] %vm881_vm0, %v2179_v31  ;;  %v2818_v33 = vpop.f32.mrb[4].mxu0  ;;  %v1293_v34 = vpop.f32.mrb[5].mxu1 }
 0x168   : > { %v2848_v35 = vadd.f32 %v2818_v33, %v2738_v32  ;;  %v2035_v36 = vpop.f32.mrb[5].mxu0  ;;  %v2739_v37 = vpop.f32.mrb[6].mxu1 }
 0x169   : > { %v2849_v38 = vadd.f32 %v2035_v36, %v1293_v34  ;;  %v2819_v39 = vpop.f32.mrb[6].mxu0  ;;  %v1296_v40 = vpop.f32.mrb[7].mxu1 }
 0x16a   : > { %v2184_v41 = vmax.f32 %v2848_v35, 0.0  ;;  %v2850_v42 = vadd.f32 %v2819_v39, %v2739_v37  ;;  %v2038_v43 = vpop.f32.mrb[7].mxu0 }
 0x16b   : > { %v2182_v44 = vmax.f32 %v2849_v38, 0.0  ;;  %v2851_v45 = vadd.f32 %v2038_v43, %v1296_v40 }
 0x16c   : > { %2216 = vst.msk [vmem:[%s3514_s27 + $0x30] sm:$0xff] %vm881_vm0, %v2184_v41  ;;  %v2185_v46 = vmax.f32 %v2850_v42, 0.0 }
 0x16d   : > { %2214 = vst.msk [vmem:[%s3514_s27 + $0x20] sm:$0xff] %vm881_vm0, %v2182_v44  ;;  %v2183_v47 = vmax.f32 %v2851_v45, 0.0 }
 0x16e   : > { %2217 = vst.msk [vmem:[%s3514_s27 + $0x38] sm:$0xff] %vm881_vm0, %v2185_v46  ;;  %v2742_v48 = vpop.f32.mrb[8].mxu1 }
 0x16f   : > { %2215 = vst.msk [vmem:[%s3514_s27 + $0x28] sm:$0xff] %vm881_vm0, %v2183_v47  ;;  %v2822_v49 = vpop.f32.mrb[8].mxu0  ;;  %v1309_v50 = vpop.f32.mrb[9].mxu1 }
 0x170   : > { %v2852_v51 = vadd.f32 %v2822_v49, %v2742_v48  ;;  %v2051_v52 = vpop.f32.mrb[9].mxu0  ;;  %v2743_v53 = vpop.f32.mrb[10].mxu1 }
 0x171   : > { %v2853_v54 = vadd.f32 %v2051_v52, %v1309_v50  ;;  %v2823_v55 = vpop.f32.mrb[10].mxu0  ;;  %v1312_v56 = vpop.f32.mrb[11].mxu1 }
 0x172   : > { %v2188_v57 = vmax.f32 %v2852_v51, 0.0  ;;  %v2854_v58 = vadd.f32 %v2823_v55, %v2743_v53  ;;  %v2054_v59 = vpop.f32.mrb[11].mxu0 }
 0x173   : > { %v2186_v60 = vmax.f32 %v2853_v54, 0.0  ;;  %v2855_v61 = vadd.f32 %v2054_v59, %v1312_v56 }
 0x174   : > { %2220 = vst.msk [vmem:[%s3514_s27 + $0x50] sm:$0xff] %vm881_vm0, %v2188_v57  ;;  %v2189_v62 = vmax.f32 %v2854_v58, 0.0 }
 0x175   : > { %2218 = vst.msk [vmem:[%s3514_s27 + $0x40] sm:$0xff] %vm881_vm0, %v2186_v60  ;;  %v2187_v63 = vmax.f32 %v2855_v61, 0.0 }
 0x176   : > { %2221 = vst.msk [vmem:[%s3514_s27 + $0x58] sm:$0xff] %vm881_vm0, %v2189_v62  ;;  %v2746_v0 = vpop.f32.mrb[12].mxu1 }
 0x177   : > { %2219 = vst.msk [vmem:[%s3514_s27 + $0x48] sm:$0xff] %vm881_vm0, %v2187_v63  ;;  %v2826_v1 = vpop.f32.mrb[12].mxu0  ;;  %v1325_v2 = vpop.f32.mrb[13].mxu1 }
 0x178   : > { %v2856_v3 = vadd.f32 %v2826_v1, %v2746_v0  ;;  %v2067_v4 = vpop.f32.mrb[13].mxu0  ;;  %v2747_v5 = vpop.f32.mrb[14].mxu1 }
 0x179   : > { %v2857_v6 = vadd.f32 %v2067_v4, %v1325_v2  ;;  %v2827_v7 = vpop.f32.mrb[14].mxu0  ;;  %v1328_v8 = vpop.f32.mrb[15].mxu1 }
 0x17a   : > { %v2192_v9 = vmax.f32 %v2856_v3, 0.0  ;;  %v2858_v10 = vadd.f32 %v2827_v7, %v2747_v5  ;;  %v2070_v11 = vpop.f32.mrb[15].mxu0 }
 0x17b   : > { %v2190_v12 = vmax.f32 %v2857_v6, 0.0  ;;  %v2859_v13 = vadd.f32 %v2070_v11, %v1328_v8 }
 0x17c   : > { %2224 = vst.msk [vmem:[%s3514_s27 + $0x70] sm:$0xff] %vm881_vm0, %v2192_v9  ;;  %v2193_v14 = vmax.f32 %v2858_v10, 0.0 }
 0x17d   : > { %2222 = vst.msk [vmem:[%s3514_s27 + $0x60] sm:$0xff] %vm881_vm0, %v2190_v12  ;;  %v2191_v15 = vmax.f32 %v2859_v13, 0.0 }
 0x17e   : > { %2225 = vst.msk [vmem:[%s3514_s27 + $0x78] sm:$0xff] %vm881_vm0, %v2193_v14  ;;  %v2750_v16 = vpop.f32.mrb[16].mxu1 }
 0x17f   : > { %2223 = vst.msk [vmem:[%s3514_s27 + $0x68] sm:$0xff] %vm881_vm0, %v2191_v15  ;;  %v2830_v17 = vpop.f32.mrb[16].mxu0  ;;  %v1341_v18 = vpop.f32.mrb[17].mxu1 }
 0x180   : > { %v2860_v19 = vadd.f32 %v2830_v17, %v2750_v16  ;;  %v2083_v20 = vpop.f32.mrb[17].mxu0  ;;  %v2751_v21 = vpop.f32.mrb[18].mxu1 }
 0x181   : > { %v2861_v22 = vadd.f32 %v2083_v20, %v1341_v18  ;;  %v2831_v23 = vpop.f32.mrb[18].mxu0  ;;  %v1344_v24 = vpop.f32.mrb[19].mxu1 }
 0x182   : > { %v2196_v25 = vmax.f32 %v2860_v19, 0.0  ;;  %v2862_v26 = vadd.f32 %v2831_v23, %v2751_v21  ;;  %v2086_v27 = vpop.f32.mrb[19].mxu0 }
 0x183   : > { %v2194_v28 = vmax.f32 %v2861_v22, 0.0  ;;  %v2863_v29 = vadd.f32 %v2086_v27, %v1344_v24 }
 0x184   : > { %2228 = vst.msk [vmem:[%s3514_s27 + $0x90] sm:$0xff] %vm881_vm0, %v2196_v25  ;;  %v2197_v30 = vmax.f32 %v2862_v26, 0.0 }
 0x185   : > { %2226 = vst.msk [vmem:[%s3514_s27 + $0x80] sm:$0xff] %vm881_vm0, %v2194_v28  ;;  %v2195_v31 = vmax.f32 %v2863_v29, 0.0 }
 0x186   : > { %2229 = vst.msk [vmem:[%s3514_s27 + $0x98] sm:$0xff] %vm881_vm0, %v2197_v30  ;;  %v2754_v32 = vpop.f32.mrb[20].mxu1 }
 0x187   : > { %2227 = vst.msk [vmem:[%s3514_s27 + $0x88] sm:$0xff] %vm881_vm0, %v2195_v31  ;;  %v2834_v33 = vpop.f32.mrb[20].mxu0  ;;  %v1357_v34 = vpop.f32.mrb[21].mxu1 }
 0x188   : > { %v2864_v35 = vadd.f32 %v2834_v33, %v2754_v32  ;;  %v2099_v36 = vpop.f32.mrb[21].mxu0  ;;  %v2755_v37 = vpop.f32.mrb[22].mxu1 }
 0x189   : > { %v2865_v38 = vadd.f32 %v2099_v36, %v1357_v34  ;;  %v2835_v39 = vpop.f32.mrb[22].mxu0  ;;  %v1360_v40 = vpop.f32.mrb[23].mxu1 }
 0x18a   : > { %v2200_v41 = vmax.f32 %v2864_v35, 0.0  ;;  %v2866_v42 = vadd.f32 %v2835_v39, %v2755_v37  ;;  %v2102_v43 = vpop.f32.mrb[23].mxu0 }
 0x18b   : > { %v2198_v44 = vmax.f32 %v2865_v38, 0.0  ;;  %v2867_v45 = vadd.f32 %v2102_v43, %v1360_v40 }
 0x18c   : > { %2232 = vst.msk [vmem:[%s3514_s27 + $0xb0] sm:$0xff] %vm881_vm0, %v2200_v41  ;;  %v2201_v46 = vmax.f32 %v2866_v42, 0.0 }
 0x18d   : > { %2230 = vst.msk [vmem:[%s3514_s27 + $0xa0] sm:$0xff] %vm881_vm0, %v2198_v44  ;;  %v2199_v47 = vmax.f32 %v2867_v45, 0.0 }
 0x18e   : > { %2233 = vst.msk [vmem:[%s3514_s27 + $0xb8] sm:$0xff] %vm881_vm0, %v2201_v46  ;;  %v2758_v48 = vpop.f32.mrb[24].mxu1 }
 0x18f   : > { %2231 = vst.msk [vmem:[%s3514_s27 + $0xa8] sm:$0xff] %vm881_vm0, %v2199_v47  ;;  %v2838_v49 = vpop.f32.mrb[24].mxu0  ;;  %v1373_v50 = vpop.f32.mrb[25].mxu1 }
 0x190   : > { %v2868_v51 = vadd.f32 %v2838_v49, %v2758_v48  ;;  %v2115_v52 = vpop.f32.mrb[25].mxu0  ;;  %v2759_v53 = vpop.f32.mrb[26].mxu1 }
 0x191   : > { %v2869_v54 = vadd.f32 %v2115_v52, %v1373_v50  ;;  %v2839_v55 = vpop.f32.mrb[26].mxu0  ;;  %v1376_v56 = vpop.f32.mrb[27].mxu1 }
 0x192   : > { %v2204_v57 = vmax.f32 %v2868_v51, 0.0  ;;  %v2870_v58 = vadd.f32 %v2839_v55, %v2759_v53  ;;  %v2118_v59 = vpop.f32.mrb[27].mxu0 }
 0x193   : > { %v2202_v60 = vmax.f32 %v2869_v54, 0.0  ;;  %v2871_v61 = vadd.f32 %v2118_v59, %v1376_v56 }
 0x194   : > { %2236 = vst.msk [vmem:[%s3514_s27 + $0xd0] sm:$0xff] %vm881_vm0, %v2204_v57  ;;  %v2205_v62 = vmax.f32 %v2870_v58, 0.0 }
 0x195   : > { %2234 = vst.msk [vmem:[%s3514_s27 + $0xc0] sm:$0xff] %vm881_vm0, %v2202_v60  ;;  %v2203_v63 = vmax.f32 %v2871_v61, 0.0 }
 0x196   : > { %2237 = vst.msk [vmem:[%s3514_s27 + $0xd8] sm:$0xff] %vm881_vm0, %v2205_v62  ;;  %v2762_v0 = vpop.f32.mrb[28].mxu1 }
 0x197   : > { %2235 = vst.msk [vmem:[%s3514_s27 + $0xc8] sm:$0xff] %vm881_vm0, %v2203_v63  ;;  %v2842_v1 = vpop.f32.mrb[28].mxu0  ;;  %v1389_v2 = vpop.f32.mrb[29].mxu1 }
 0x198   : > { %v2872_v3 = vadd.f32 %v2842_v1, %v2762_v0  ;;  %v2131_v4 = vpop.f32.mrb[29].mxu0  ;;  %v2763_v5 = vpop.f32.mrb[30].mxu1 }
 0x199   : > { %v2873_v6 = vadd.f32 %v2131_v4, %v1389_v2  ;;  %v2843_v7 = vpop.f32.mrb[30].mxu0  ;;  %v1392_v8 = vpop.f32.mrb[31].mxu1 }
 0x19a   : > { %v2208_v9 = vmax.f32 %v2872_v3, 0.0  ;;  %v2874_v10 = vadd.f32 %v2843_v7, %v2763_v5  ;;  %v2134_v11 = vpop.f32.mrb[31].mxu0 }
 0x19b   : > { %v2206_v12 = vmax.f32 %v2873_v6, 0.0  ;;  %v2875_v13 = vadd.f32 %v2134_v11, %v1392_v8 }
 0x19c   : > { %2240 = vst.msk [vmem:[%s3514_s27 + $0xf0] sm:$0xff] %vm881_vm0, %v2208_v9  ;;  %v2209_v14 = vmax.f32 %v2874_v10, 0.0 }
 0x19d   : > { %2238 = vst.msk [vmem:[%s3514_s27 + $0xe0] sm:$0xff] %vm881_vm0, %v2206_v12  ;;  %v2207_v15 = vmax.f32 %v2875_v13, 0.0 }
 0x19e   : > { %2241 = vst.msk [vmem:[%s3514_s27 + $0xf8] sm:$0xff] %vm881_vm0, %v2209_v14 }
 0x19f   : > { %2239 = vst.msk [vmem:[%s3514_s27 + $0xe8] sm:$0xff] %vm881_vm0, %v2207_v15 }
 0x1a0   : > { %3074 = shalt.err (!%p3071_p5)
}
 0x1a1   : > { %s3075_s16 = scalar_lea.hbm %s3580_s5, 4096  ;;  %s3079_s22 = scalar_lea.hbm %s3634_s2, 8192 }
 0x1a2   : > { %p3076_p7 = scmp.ne.s32.totalorder %s3580_s5, %s3075_s16  ;;  %p3080_p12 = scmp.lt.u32.totalorder %s3580_s5, %s3634_s2 }
 0x1a3   : > { %p3081_p13 = scmp.lt.u32.totalorder %s3079_s22, %s3075_s16  ;;  %p3083_p1 = scmp.lt.u32.totalorder %s3075_s16, %s3580_s5 }
 0x1a4   : > { %p3077_p10 = pnand %p3076_p7, %p3181_p6 }
 0x1a5   : > { %p3082_p0 = por %p3081_p13, %p3080_p12 }
 0x1a6   : > { %p3078_p11 = pneg %p3077_p10 }
 0x1a7   : > { %p3084_p2 = por %p3083_p1, %p3082_p0 }
 0x1a9   : > { %p3085_p3 = pnand %p3084_p2, %p3078_p11 }
 0x1ab   : > { %3088 = shalt.err (!%p3085_p3)
}
 0x1ac   : > { %s3126_s25 = smov 128   ;;  %s3127_s26 = smov 8  }
 0x1ad   : > { %2940 = dma.vmem_to_hbm [thread:$0]  (%p3181_p6), %s3582_s29, 4096, %s3580_s5, %s2243_s13, %s3126_s25, %s3126_s25, %s3127_s26  }
 0x1ae PF: > { %s2271_s27 = sand.u32 1, %s3111_s9   ;;  %p2943_p4 = pnand %p2326_p9, %p3185_p8 }
 0x1af   : > { %s2272_s28 = scalar_lea.sflag [#allocation4], %s2271_s27 }
 0x1b0   : > { %3106 = dma.done.wait (!%p2943_p4), %s2272_s28, 4096  }
 0x1b1   : > { %3108 = vsyncadd (!%p2943_p4), %s2272_s28, 4294963200  ;;  %p12_p5 = scmp.ge.s32.totalorder %s3166_s15, 4   ;;  %s3637_s9 = smov %s3115_s10 }
 0x1b2   : > { %s3638_s10 = smov %s3119_s11  ;;  %s3639_s11 = smov %s3179_s18 }
 0x1b3   : > { %s3640_s12 = smov %s3166_s15  ;;  %14 = sbr.rel (!%p12_p5) target bundleno = 3 (0x3), region = 115 }
 0x1ba   :  { %2277 = vsyncpa [#allocation4], 1 }
 0x1bb   :  { %2279 = vsyncpa [#allocation4 + $0x1], 1 }

// kernel: acsp_forward.6
= control target key start
LH: loop header
LB: loop body
LE: loop exit
PB: predicated region body
PF: predicated region fallthrough
CT: control target
= control target key end

     0   :  { %s10614_s18 = smov 0   ;;  %s10616_s19 = smov 0   ;;  %s13645_s0 = inlined_call_operand.vmem [shape: bf16[2,256,64], index: 0, kind: input, shape index: {}]   ;;  %s13646_s1 = inlined_call_operand.vmem [shape: f32[8,256,64], index: 1, kind: input, shape index: {}]   ;;  %s13647_s2 = inlined_call_operand.vmem [shape: bf16[4,64,32], index: 2, kind: input, shape index: {}]   ;;  %s13648_s3 = inlined_call_operand.vmem [shape: bf16[4,64,32], index: 3, kind: input, shape index: {}]   ;;  %s13649_s4 = inlined_call_operand.vmem [shape: bf16[4,32,72], index: 4, kind: input, shape index: {}]   ;;  %s13650_s5 = inlined_call_operand.vmem [shape: f32[4,1,72], index: 5, kind: input, shape index: {}]   ;;  %s13651_s6 = inlined_call_operand.vmem [shape: f32[72,72], index: 6, kind: input, shape index: {}]   ;;  %s13652_s7 = inlined_call_operand.vmem [shape: bf16[72,256,64], index: 7, kind: input, shape index: {}]   ;;  %s13653_s8 = inlined_call_operand.vmem [shape: f32[9,72,64], index: 8, kind: input, shape index: {}]   ;;  %s13654_s9 = inlined_call_operand.vmem [shape: f32[4,64,32], index: 9, kind: input, shape index: {}]   ;;  %s13655_s10 = inlined_call_operand.vmem [shape: f32[4,1,32], index: 10, kind: input, shape index: {}]   ;;  %s13656_s11 = inlined_call_operand.vmem [shape: f32[4,32,64], index: 11, kind: input, shape index: {}]   ;;  %s13657_s12 = inlined_call_operand.vmem [shape: f32[4,1,64], index: 12, kind: input, shape index: {}]   ;;  %s13658_s13 = inlined_call_operand.vmem [shape: f32[4,32,64], index: 13, kind: input, shape index: {}]   ;;  %s13659_s14 = inlined_call_operand.vmem [shape: f32[4,1,64], index: 14, kind: input, shape index: {}]   ;;  %s13660_s15 = inlined_call_operand.vmem [shape: bf16[8,256,64], index: 15, kind: output, shape index: {}]  }
   0x1   :  { %13689 = sst [smem:[#allocation35_spill]] %s13645_s0  ;;  %s10618_s20 = smov 0  }
   0x2   :  { %13690 = sst [smem:[#allocation36_spill]] %s13646_s1  ;;  %s10620_s21 = smov 0  }
   0x3   :  { %13691 = sst [smem:[#allocation37_spill]] %s13648_s3  ;;  %s10622_s22 = smov 0  }
   0x4 LB: > { %s34_s23 = sadd.s32 1, %s10521_s20  ;;  %s37_s24 = sadd.s32 1, %s10525_s21  ;;  %s10529_s22 = sphi %s10622_s22, %s25_s22   ;;  %s10525_s21 = sphi %s10620_s21, %s13802_s21   ;;  %s10521_s20 = sphi %s10618_s20, %s13801_s20   ;;  %s10517_s19 = sphi %s10616_s19, %s13800_s19   ;;  %s10513_s18 = sphi %s10614_s18, %s13799_s18  }
   0x5   : > { %p35_p0 = scmp.ge.s32.totalorder %s34_s23, 2  ;;  %p7002_p1 = scmp.ge.s32.totalorder %s10529_s22, 1 }
   0x6   : > { %p583_p2 = scmp.lt.s32.totalorder %s10529_s22, 9 }
   0x7   : > { %s13804_s23 = smov (%p35_p0, %s34_s23), 0  ;;  %s13806_s24 = smov (!%p35_p0, %s37_s24), %s10525_s21 }
   0x8   : > { %13692 = sst [smem:[#allocation2_spill]] %s13804_s23  ;;  %p584_p3 = pnand %p7002_p1, %p583_p2 }
   0x9   : > { %p39_p4 = scmp.ge.s32.totalorder %s13806_s24, 4 }
   0xa   : > { %587 = sbr.rel (%p584_p3) target bundleno = 2253 (0x8cd), region = 80 }
   0xb   : > { %s13808_s24 = smov (%p39_p4, %s13806_s24), 0 }
   0xc   : > { %13693 = sst [smem:[#allocation3_spill]] %s13808_s24 }
  0x11   : > { %p704_p5 = scmp.lt.s32.totalorder %s10517_s19, 3  ;;  %s7005_s25 = sshll.u32 %s10517_s19, 1  ;;  %vm887_vm0 = vcmask 523264   ;;  %vm1481_vm1 = vcmask 261120   ;;  %vm1700_vm2 = vcmask 588800   ;;  %vm10532_vm3 = vmmov 0  }
  0x12   : > { %s10647_s26 = sadd.s32 %s10513_s18, %s7005_s25  ;;  %s13694_s3 = sld [smem:[#allocation37_spill]]  ;;  %vm6754_vm4 = vcmask 519168  }
  0x13   : > { %s13810_s19 = smov (!%p704_p5, %s10517_s19), 3  ;;  %p697_p6 = scmp.lt.s32.totalorder %s10647_s26, 7 }
  0x14   : > { %s10653_s27 = sshll.u32 %s13810_s19, 5  ;;  %s13695_s1 = sld [smem:[#allocation36_spill]] }
  0x15   : > { %s10660_s16 = scalar_select %p697_p6, %s10647_s26, 7 }
  0x16   : > { %p690_p7 = scmp.lt.s32.totalorder %s10513_s18, 1  ;;  %s13696_s0 = sld [smem:[#allocation35_spill]] }
  0x17   : > { %s7851_s17 = sshll.u32 %s10660_s16, 8  ;;  %s745_s28 = scalar_lea.vmem %s13656_s11, %s10653_s27 }
  0x18   : > { %s713_s30 = scalar_lea.vmem %s13694_s3, %s10653_s27  ;;  %s10674_s3 = scalar_lea.vmem %s13647_s2, %s10653_s27 }
  0x19   : > { %v10297_v0 = vld [vmem:[%s713_s30] sm:$0xff]   ;;  %v10298_v1 = vld [vmem:[%s713_s30 + $0x8] sm:$0xff]   ;;  %v10299_v2 = vld [vmem:[%s713_s30 + $0x10] sm:$0xff]   ;;  %s13812_s18 = smov (!%p690_p7, %s10513_s18), 1 }
  0x1a   : > { %9139 = vmatprep.subr.bf16.mxu0 %v10297_v0  ;;  %s10666_s23 = scalar_lea.vmem %s13695_s1, %s7851_s17  ;;  %v10300_v6 = vld [vmem:[%s713_s30 + $0x18] sm:$0xff]   ;;  %v10301_v9 = vld [vmem:[%s10674_s3] sm:$0xff]   ;;  %s7850_s24 = sshll.u32 %s13812_s18, 7  ;;  %v10302_v14 = vld [vmem:[%s10674_s3 + $0x8] sm:$0xff]  }
  0x1b   : > { %9140 = vmatpush3.bf16.msra.mxu0 %v10297_v0  ;;  %v799_v3 = vld [vmem:[%s10666_s23] sm:$0xff]  ;;  %v800_v4 = vld [vmem:[%s10666_s23 + $0x8] sm:$0xff]  ;;  %v801_v7 = vld [vmem:[%s10666_s23 + $0x10] sm:$0xff]  ;;  %s721_s30 = scalar_lea.vmem %s13650_s5, %s13810_s19  ;;  %s724_s17 = smul.u32 9, %s10647_s26 }
  0x1c   : > { %9141 = vmatprep.subr.bf16.mxu0 %v10298_v1  ;;  %v831_v5 = vpack.c.bf16 %v800_v4, %v799_v3  ;;  %v802_v8 = vld [vmem:[%s10666_s23 + $0x18] sm:$0xff]  ;;  %v803_v10 = vld [vmem:[%s10666_s23 + $0x20] sm:$0xff]  ;;  %v804_v11 = vld [vmem:[%s10666_s23 + $0x28] sm:$0xff]  ;;  %s10689_s25 = scalar_lea.vmem %s13696_s0, %s7850_s24  ;;  %s7856_s24 = sshll.u32 %s13810_s19, 6 }
  0x1d   : > { %v832_v12 = vpack.c.bf16 %v802_v8, %v801_v7  ;;  %v833_v13 = vpack.c.bf16 %v804_v11, %v803_v10  ;;  %v805_v15 = vld [vmem:[%s10666_s23 + $0x30] sm:$0xff]  ;;  %v806_v16 = vld [vmem:[%s10666_s23 + $0x38] sm:$0xff]  ;;  %v807_v17 = vld [vmem:[%s10666_s23 + $0x40] sm:$0xff]  ;;  %p725_p8 = scmp.lt.s32.totalorder %s724_s17, 71 }
  0x1e   : > { %9147 = vmatprep.mubr.msk.bf16.mxu0 %vm887_vm0, %v831_v5  ;;  %v808_v18 = vld [vmem:[%s10666_s23 + $0x48] sm:$0xff]  ;;  %v10303_v19 = vld [vmem:[%s10674_s3 + $0x10] sm:$0xff]   ;;  %v834_v20 = vpack.c.bf16 %v806_v16, %v805_v15  ;;  %v10304_v22 = vld [vmem:[%s10674_s3 + $0x18] sm:$0xff]   ;;  %s7854_s3 = sshll.u32 %s13810_s19, 4 }
  0x1f   : > { %9142 = vmatpush3.bf16.msra.mxu0 %v10298_v1  ;;  %v835_v21 = vpack.c.bf16 %v808_v18, %v807_v17  ;;  %v809_v23 = vld [vmem:[%s10666_s23 + $0x50] sm:$0xff]  ;;  %v810_v24 = vld [vmem:[%s10666_s23 + $0x58] sm:$0xff]  ;;  %v811_v25 = vld [vmem:[%s10666_s23 + $0x60] sm:$0xff]  ;;  %s718_s29 = scalar_lea.vmem %s13649_s4, %s7854_s3  ;;  %s13814_s17 = smov (!%p725_p8, %s724_s17), 71 }
  0x20   : > { %9143 = vmatprep.subr.bf16.mxu0 %v10299_v2  ;;  %v812_v26 = vld [vmem:[%s10666_s23 + $0x68] sm:$0xff]  ;;  %v836_v27 = vpack.c.bf16 %v810_v24, %v809_v23  ;;  %v813_v29 = vld [vmem:[%s10666_s23 + $0x70] sm:$0xff]  ;;  %v814_v30 = vld [vmem:[%s10666_s23 + $0x78] sm:$0xff]  ;;  %s7855_s18 = sshll.u32 %s13814_s17, 7  ;;  %s753_s17 = scalar_lea.vmem %s13658_s13, %s10653_s27 }
  0x21   : > { %v837_v28 = vpack.c.bf16 %v812_v26, %v811_v25  ;;  %v815_v31 = vld [vmem:[%s10666_s23 + $0x80] sm:$0xff]  ;;  %v816_v32 = vld [vmem:[%s10666_s23 + $0x88] sm:$0xff]  ;;  %v838_v33 = vpack.c.bf16 %v814_v30, %v813_v29  ;;  %v817_v35 = vld [vmem:[%s10666_s23 + $0x90] sm:$0xff]  ;;  %s12112_s0 = scalar_lea.vmem %s13652_s7, %s7855_s18  ;;  %s756_s18 = scalar_lea.vmem %s13659_s14, %s13810_s19 }
  0x22   : > { %v839_v34 = vpack.c.bf16 %v816_v32, %v815_v31  ;;  %v818_v36 = vld [vmem:[%s10666_s23 + $0x98] sm:$0xff]  ;;  %v819_v37 = vld [vmem:[%s10666_s23 + $0xa0] sm:$0xff]  ;;  %v820_v38 = vld [vmem:[%s10666_s23 + $0xa8] sm:$0xff] }
  0x23   : > { %9144 = vmatpush3.bf16.msra.mxu0 %v10299_v2  ;;  %v840_v39 = vpack.c.bf16 %v818_v36, %v817_v35  ;;  %v841_v40 = vpack.c.bf16 %v820_v38, %v819_v37  ;;  %v821_v41 = vld [vmem:[%s10666_s23 + $0xb0] sm:$0xff]  ;;  %v822_v42 = vld [vmem:[%s10666_s23 + $0xb8] sm:$0xff]  ;;  %v823_v43 = vld [vmem:[%s10666_s23 + $0xc0] sm:$0xff] }
  0x24   : > { %9145 = vmatprep.subr.bf16.mxu0 %v10300_v6  ;;  %v824_v44 = vld [vmem:[%s10666_s23 + $0xc8] sm:$0xff]  ;;  %v842_v45 = vpack.c.bf16 %v822_v42, %v821_v41  ;;  %v825_v47 = vld [vmem:[%s10666_s23 + $0xd0] sm:$0xff]  ;;  %v826_v48 = vld [vmem:[%s10666_s23 + $0xd8] sm:$0xff] }
  0x25   : > { %v843_v46 = vpack.c.bf16 %v824_v44, %v823_v43  ;;  %v827_v49 = vld [vmem:[%s10666_s23 + $0xe0] sm:$0xff]  ;;  %v828_v50 = vld [vmem:[%s10666_s23 + $0xe8] sm:$0xff]  ;;  %v844_v51 = vpack.c.bf16 %v826_v48, %v825_v47  ;;  %v829_v53 = vld [vmem:[%s10666_s23 + $0xf0] sm:$0xff] }
  0x26   : > { %v845_v52 = vpack.c.bf16 %v828_v50, %v827_v49  ;;  %v830_v54 = vld [vmem:[%s10666_s23 + $0xf8] sm:$0xff]  ;;  %v10305_v56 = vld [vmem:[%s10689_s25] sm:$0xff]   ;;  %v10306_v57 = vld [vmem:[%s10689_s25 + $0x8] sm:$0xff]  }
  0x27   : > { %9146 = vmatpush3.bf16.msra.mxu0 %v10300_v6  ;;  %v846_v55 = vpack.c.bf16 %v830_v54, %v829_v53  ;;  %v10307_v58 = vld [vmem:[%s10689_s25 + $0x10] sm:$0xff]   ;;  %v10308_v59 = vld [vmem:[%s10689_s25 + $0x18] sm:$0xff]   ;;  %v10309_v60 = vld [vmem:[%s10689_s25 + $0x20] sm:$0xff]  }
  0x28   : > { %9179 = vmatprep.subr.bf16.mxu0 %v10301_v9  ;;  %v10310_v61 = vld [vmem:[%s10689_s25 + $0x28] sm:$0xff]   ;;  %v10311_v62 = vld [vmem:[%s10689_s25 + $0x30] sm:$0xff]   ;;  %v10312_v63 = vld [vmem:[%s10689_s25 + $0x38] sm:$0xff]  }
  0x29   : > { %v10313_v0 = vld [vmem:[%s10689_s25 + $0x40] sm:$0xff]   ;;  %v10314_v1 = vld [vmem:[%s10689_s25 + $0x48] sm:$0xff]   ;;  %v10315_v2 = vld [vmem:[%s10689_s25 + $0x50] sm:$0xff]  }
  0x2a   : > { %9148 = vmatmul.mubr.msk.bf16.vlgmr.msra.gmra.mrb[0].mxu0 %vm887_vm0, %v832_v12  ;;  %v10316_v3 = vld [vmem:[%s10689_s25 + $0x58] sm:$0xff]   ;;  %v10317_v4 = vld [vmem:[%s10689_s25 + $0x60] sm:$0xff]   ;;  %v10318_v5 = vld [vmem:[%s10689_s25 + $0x68] sm:$0xff]  }
  0x2b   : > { %9180 = vmatpush3.bf16.msra.mxu0 %v10301_v9  ;;  %9151 = vmatprep.mubr.msk.bf16.mxu0 %vm887_vm0, %v833_v13  ;;  %v10319_v6 = vld [vmem:[%s10689_s25 + $0x70] sm:$0xff]   ;;  %v10320_v7 = vld [vmem:[%s10689_s25 + $0x78] sm:$0xff]   ;;  %v10321_v8 = vld [vmem:[%s718_s29] sm:$0xff]   ;;  %s12709_s25 = scalar_lea.vmem %s13654_s9, %s7856_s24 }
  0x2c   : > { %9181 = vmatprep.subr.bf16.mxu0 %v10302_v14  ;;  %9219 = vmatprep.subr.bf16.mxu1 %v10321_v8  ;;  %v10322_v9 = vld [vmem:[%s718_s29 + $0x8] sm:$0xff]   ;;  %v1691_v10 = vld [vmem:[%s13651_s6] sm:$0xff]  ;;  %v1697_v37 = vld [vmem:[%s13651_s6 + $0x30] sm:$0xff]  ;;  %s740_s29 = scalar_lea.vmem %s13655_s10, %s13810_s19 }
  0x2d   : > { %9220 = vmatpush3.bf16.msra.mxu1 %v10321_v8  ;;  %v1692_v11 = vld [vmem:[%s13651_s6 + $0x8] sm:$0xff]  ;;  %v1698_v38 = vld [vmem:[%s13651_s6 + $0x38] sm:$0xff]  ;;  %v10815_v50 = vld [vmem:[%s13651_s6 + $0x40] sm:$0xff] }
  0x2e   : > { %9221 = vmatprep.subr.bf16.mxu1 %v10322_v9  ;;  %v10775_v12 = vpack.c.bf16 %v1692_v11, %v1691_v10  ;;  %v10806_v41 = vpack.c.bf16 %v1698_v38, %v1697_v37 }
  0x2f   : > { %9182 = vmatpush3.bf16.msra.mxu0 %v10302_v14 }
  0x30   : > { %9183 = vmatprep.subr.bf16.mxu0 %v10303_v19 }
  0x31   : > { %9222 = vmatpush3.bf16.msra.mxu1 %v10322_v9 }
  0x32   : > { %9152 = vmatmul.mubr.msk.bf16.gmra.mrb[4].mxu0 %vm887_vm0, %v834_v20  ;;  %10023 = vmatprep.subr.bf16.mxu1 %v10775_v12 }
  0x33   : > { %9155 = vmatprep.mubr.msk.bf16.mxu0 %vm887_vm0, %v835_v21  ;;  %9184 = vmatpush3.bf16.msra.mxu0 %v10303_v19  ;;  %v1693_v21 = vld [vmem:[%s13651_s6 + $0x10] sm:$0xff] }
  0x34   : > { %9185 = vmatprep.subr.bf16.mxu0 %v10304_v22 }
  0x37   : > { %9186 = vmatpush3.bf16.msra.mxu0 %v10304_v22  ;;  %v1694_v22 = vld [vmem:[%s13651_s6 + $0x18] sm:$0xff] }
  0x38   : > { %v10784_v25 = vpack.c.bf16 %v1694_v22, %v1693_v21 }
  0x3a   : > { %9156 = vmatmul.mubr.msk.bf16.gmra.mrb[8].mxu0 %vm887_vm0, %v836_v27  ;;  %v1695_v27 = vld [vmem:[%s13651_s6 + $0x20] sm:$0xff] }
  0x3b   : > { %9159 = vmatprep.mubr.msk.bf16.mxu0 %vm887_vm0, %v837_v28  ;;  %v1696_v28 = vld [vmem:[%s13651_s6 + $0x28] sm:$0xff] }
  0x42   : > { %9160 = vmatmul.mubr.msk.bf16.gmra.mrb[12].mxu0 %vm887_vm0, %v838_v33 }
  0x43   : > { %9163 = vmatprep.mubr.msk.bf16.mxu0 %vm887_vm0, %v839_v34  ;;  %v10796_v34 = vpack.c.bf16 %v1696_v28, %v1695_v27 }
  0x4a   : > { %9164 = vmatmul.mubr.msk.bf16.gmra.mrb[16].mxu0 %vm887_vm0, %v840_v39 }
  0x4b   : > { %9167 = vmatprep.mubr.msk.bf16.mxu0 %vm887_vm0, %v841_v40 }
  0x52   : > { %9168 = vmatmul.mubr.msk.bf16.gmra.mrb[20].mxu0 %vm887_vm0, %v842_v45 }
  0x53   : > { %9171 = vmatprep.mubr.msk.bf16.mxu0 %vm887_vm0, %v843_v46 }
  0x5a   : > { %9172 = vmatmul.mubr.msk.bf16.gmra.mrb[24].mxu0 %vm887_vm0, %v844_v51 }
  0x5b   : > { %9175 = vmatprep.mubr.msk.bf16.mxu0 %vm887_vm0, %v845_v52 }
  0x62   : > { %9176 = vmatmul.mubr.msk.bf16.gmra.mrb[28].mxu0 %vm887_vm0, %v846_v55 }
  0x63   : > { %9187 = vmatprep.mubr.msk.bf16.mxu0 %vm887_vm0, %v10305_v56 }
  0x6a   : > { %9188 = vmatmul.mubr.msk.bf16.vlgmr.msra.gmra.mrb[0].mxu0 %vm887_vm0, %v10306_v57 }
  0x6b   : > { %9191 = vmatprep.mubr.msk.bf16.mxu0 %vm887_vm0, %v10307_v58 }
  0x72   : > { %9192 = vmatmul.mubr.msk.bf16.gmra.mrb[4].mxu0 %vm887_vm0, %v10308_v59 }
  0x73   : > { %9195 = vmatprep.mubr.msk.bf16.mxu0 %vm887_vm0, %v10309_v60 }
  0x7a   : > { %9196 = vmatmul.mubr.msk.bf16.gmra.mrb[8].mxu0 %vm887_vm0, %v10310_v61 }
  0x7b   : > { %9199 = vmatprep.mubr.msk.bf16.mxu0 %vm887_vm0, %v10311_v62 }
  0x82   : > { %9200 = vmatmul.mubr.msk.bf16.gmra.mrb[12].mxu0 %vm887_vm0, %v10312_v63 }
  0x83   : > { %9203 = vmatprep.mubr.msk.bf16.mxu0 %vm887_vm0, %v10313_v0 }
  0x8a   : > { %9204 = vmatmul.mubr.msk.bf16.gmra.mrb[16].mxu0 %vm887_vm0, %v10314_v1 }
  0x8b   : > { %9207 = vmatprep.mubr.msk.bf16.mxu0 %vm887_vm0, %v10315_v2 }
  0x92   : > { %9208 = vmatmul.mubr.msk.bf16.gmra.mrb[20].mxu0 %vm887_vm0, %v10316_v3 }
  0x93   : > { %9211 = vmatprep.mubr.msk.bf16.mxu0 %vm887_vm0, %v10317_v4 }
  0x9a   : > { %9212 = vmatmul.mubr.msk.bf16.gmra.mrb[24].mxu0 %vm887_vm0, %v10318_v5 }
  0x9b   : > { %9215 = vmatprep.mubr.msk.bf16.mxu0 %vm887_vm0, %v10319_v6 }
  0xa2   : > { %9216 = vmatmul.mubr.msk.bf16.gmra.mrb[28].mxu0 %vm887_vm0, %v10320_v7 }
 0x13d   : > { %v9189_v13 = vpop.f32.mrb[0].mxu0 }
 0x13e   : > { %v1283_v14 = vpop.f32.mrb[1].mxu0  ;;  %v1412_v16 = vmax.f32 %v9189_v13, 0.0 }
 0x13f   : > { %v9190_v15 = vpop.f32.mrb[2].mxu0  ;;  %v1410_v19 = vmax.f32 %v1283_v14, 0.0 }
 0x140   : > { %v1413_v17 = vmax.f32 %v9190_v15, 0.0  ;;  %v1286_v18 = vpop.f32.mrb[3].mxu0 }
 0x141   : > { %v1411_v20 = vmax.f32 %v1286_v18, 0.0 }
 0x142   : > { %v1443_v23 = vpack.c.bf16 %v1413_v17, %v1412_v16 }
 0x143   : > { %v1442_v24 = vpack.c.bf16 %v1411_v20, %v1410_v19 }
 0x145   : > { %v9193_v26 = vpop.f32.mrb[4].mxu0  ;;  %9223 = vmatprep.mubr.msk.bf16.mxu1 %vm1481_vm1, %v1442_v24 }
 0x146   : > { %v1299_v29 = vpop.f32.mrb[5].mxu0  ;;  %9224 = vmatmul.mubr.msk.bf16.vlgmr.msra.gmra.mrb[0].mxu1 %vm1481_vm1, %v1443_v23  ;;  %v1416_v31 = vmax.f32 %v9193_v26, 0.0 }
 0x147   : > { %v9194_v30 = vpop.f32.mrb[6].mxu0  ;;  %10025 = vmatpush3.bf16.msra.mxu1 %v10775_v12  ;;  %v1414_v35 = vmax.f32 %v1299_v29, 0.0 }
 0x148   : > { %v1417_v32 = vmax.f32 %v9194_v30, 0.0  ;;  %v1302_v33 = vpop.f32.mrb[7].mxu0  ;;  %10027 = vmatprep.subr.bf16.mxu1 %v10784_v25 }
 0x149   : > { %v1415_v36 = vmax.f32 %v1302_v33, 0.0 }
 0x14a   : > { %v1445_v39 = vpack.c.bf16 %v1417_v32, %v1416_v31 }
 0x14b   : > { %v1444_v40 = vpack.c.bf16 %v1415_v36, %v1414_v35  ;;  %10029 = vmatpush3.bf16.msra.mxu1 %v10784_v25 }
 0x14c   : > { %10031 = vmatprep.subr.bf16.mxu1 %v10796_v34 }
 0x14d   : > { %v9197_v42 = vpop.f32.mrb[8].mxu0  ;;  %9227 = vmatprep.mubr.msk.bf16.mxu1 %vm1481_vm1, %v1444_v40 }
 0x14e   : > { %v1315_v43 = vpop.f32.mrb[9].mxu0  ;;  %9228 = vmatmul.mubr.msk.bf16.gmra.mrb[4].mxu1 %vm1481_vm1, %v1445_v39  ;;  %v1420_v45 = vmax.f32 %v9197_v42, 0.0 }
 0x14f   : > { %v9198_v44 = vpop.f32.mrb[10].mxu0  ;;  %10033 = vmatpush3.bf16.msra.mxu1 %v10796_v34  ;;  %v1418_v48 = vmax.f32 %v1315_v43, 0.0  ;;  %v10837_v43 = vld [vmem:[%s721_s30] ss:$0 sm:$0xff]  ;;  %s748_s30 = scalar_lea.vmem %s13657_s12, %s13810_s19  ;;  %s7859_s19 = sshll.u32 %s10660_s16, 7 }
 0x150   : > { %v1421_v46 = vmax.f32 %v9198_v44, 0.0  ;;  %v1318_v47 = vpop.f32.mrb[11].mxu0  ;;  %10035 = vmatprep.subr.bf16.mxu1 %v10806_v41  ;;  %s13528_s26 = scalar_lea.vmem %s13660_s15, %s7859_s19 }
 0x151   : > { %v1419_v49 = vmax.f32 %v1318_v47, 0.0 }
 0x152   : > { %v1447_v51 = vpack.c.bf16 %v1421_v46, %v1420_v45 }
 0x153   : > { %v1446_v52 = vpack.c.bf16 %v1419_v49, %v1418_v48  ;;  %10037 = vmatpush3.bf16.msra.mxu1 %v10806_v41 }
 0x154   : > { %9271 = vmatprep.subr.mxu1 %v10815_v50 }
 0x155   : > { %v9201_v53 = vpop.f32.mrb[12].mxu0  ;;  %9231 = vmatprep.mubr.msk.bf16.mxu1 %vm1481_vm1, %v1446_v52 }
 0x156   : > { %v1331_v54 = vpop.f32.mrb[13].mxu0  ;;  %9232 = vmatmul.mubr.msk.bf16.gmra.mrb[8].mxu1 %vm1481_vm1, %v1447_v51  ;;  %v1424_v56 = vmax.f32 %v9201_v53, 0.0 }
 0x157   : > { %v9202_v55 = vpop.f32.mrb[14].mxu0  ;;  %9272 = vmatpush3.msra.mxu1 %v10815_v50  ;;  %v1422_v59 = vmax.f32 %v1331_v54, 0.0 }
 0x158   : > { %v1425_v57 = vmax.f32 %v9202_v55, 0.0  ;;  %v1334_v58 = vpop.f32.mrb[15].mxu0  ;;  %10039 = vmatprep.subr.bf16.mxu1 %v10775_v12 }
 0x159   : > { %v1423_v60 = vmax.f32 %v1334_v58, 0.0 }
 0x15a   : > { %v1449_v61 = vpack.c.bf16 %v1425_v57, %v1424_v56 }
 0x15b   : > { %v1448_v62 = vpack.c.bf16 %v1423_v60, %v1422_v59 }
 0x15d   : > { %v9205_v63 = vpop.f32.mrb[16].mxu0  ;;  %9235 = vmatprep.mubr.msk.bf16.mxu1 %vm1481_vm1, %v1448_v62 }
 0x15e   : > { %v1347_v0 = vpop.f32.mrb[17].mxu0  ;;  %9236 = vmatmul.mubr.msk.bf16.gmra.mrb[12].mxu1 %vm1481_vm1, %v1449_v61  ;;  %v1428_v2 = vmax.f32 %v9205_v63, 0.0 }
 0x15f   : > { %v9206_v1 = vpop.f32.mrb[18].mxu0  ;;  %v1426_v5 = vmax.f32 %v1347_v0, 0.0 }
 0x160   : > { %v1429_v3 = vmax.f32 %v9206_v1, 0.0  ;;  %v1350_v4 = vpop.f32.mrb[19].mxu0 }
 0x161   : > { %v1427_v6 = vmax.f32 %v1350_v4, 0.0 }
 0x162   : > { %v1451_v7 = vpack.c.bf16 %v1429_v3, %v1428_v2 }
 0x163   : > { %v1450_v8 = vpack.c.bf16 %v1427_v6, %v1426_v5 }
 0x165   : > { %v9209_v9 = vpop.f32.mrb[20].mxu0  ;;  %9239 = vmatprep.mubr.msk.bf16.mxu1 %vm1481_vm1, %v1450_v8 }
 0x166   : > { %v1363_v10 = vpop.f32.mrb[21].mxu0  ;;  %9240 = vmatmul.mubr.msk.bf16.gmra.mrb[16].mxu1 %vm1481_vm1, %v1451_v7  ;;  %v1432_v13 = vmax.f32 %v9209_v9, 0.0 }
 0x167   : > { %v9210_v11 = vpop.f32.mrb[22].mxu0  ;;  %v1430_v16 = vmax.f32 %v1363_v10, 0.0 }
 0x168   : > { %v1433_v14 = vmax.f32 %v9210_v11, 0.0  ;;  %v1366_v15 = vpop.f32.mrb[23].mxu0 }
 0x169   : > { %v1431_v17 = vmax.f32 %v1366_v15, 0.0 }
 0x16a   : > { %v1453_v18 = vpack.c.bf16 %v1433_v14, %v1432_v13 }
 0x16b   : > { %v1452_v19 = vpack.c.bf16 %v1431_v17, %v1430_v16 }
 0x16d   : > { %v9213_v20 = vpop.f32.mrb[24].mxu0  ;;  %9243 = vmatprep.mubr.msk.bf16.mxu1 %vm1481_vm1, %v1452_v19 }
 0x16e   : > { %v1379_v21 = vpop.f32.mrb[25].mxu0  ;;  %9244 = vmatmul.mubr.msk.bf16.gmra.mrb[20].mxu1 %vm1481_vm1, %v1453_v18  ;;  %v1436_v23 = vmax.f32 %v9213_v20, 0.0 }
 0x16f   : > { %v9214_v22 = vpop.f32.mrb[26].mxu0  ;;  %v1434_v27 = vmax.f32 %v1379_v21, 0.0 }
 0x170   : > { %v1437_v24 = vmax.f32 %v9214_v22, 0.0  ;;  %v1382_v26 = vpop.f32.mrb[27].mxu0 }
 0x171   : > { %v1435_v28 = vmax.f32 %v1382_v26, 0.0 }
 0x172   : > { %v1455_v29 = vpack.c.bf16 %v1437_v24, %v1436_v23 }
 0x173   : > { %v1454_v30 = vpack.c.bf16 %v1435_v28, %v1434_v27 }
 0x175   : > { %v9217_v31 = vpop.f32.mrb[28].mxu0  ;;  %9247 = vmatprep.mubr.msk.bf16.mxu1 %vm1481_vm1, %v1454_v30 }
 0x176   : > { %v1395_v32 = vpop.f32.mrb[29].mxu0  ;;  %9248 = vmatmul.mubr.msk.bf16.gmra.mrb[24].mxu1 %vm1481_vm1, %v1455_v29  ;;  %v1440_v35 = vmax.f32 %v9217_v31, 0.0 }
 0x177   : > { %v9218_v33 = vpop.f32.mrb[30].mxu0  ;;  %v1438_v38 = vmax.f32 %v1395_v32, 0.0 }
 0x178   : > { %v1441_v36 = vmax.f32 %v9218_v33, 0.0  ;;  %v1398_v37 = vpop.f32.mrb[31].mxu0 }
 0x179   : > { %v1439_v39 = vmax.f32 %v1398_v37, 0.0 }
 0x17a   : > { %v1457_v40 = vpack.c.bf16 %v1441_v36, %v1440_v35 }
 0x17b   : > { %v1456_v42 = vpack.c.bf16 %v1439_v39, %v1438_v38 }
 0x17d   : > { %9251 = vmatprep.mubr.msk.bf16.mxu1 %vm1481_vm1, %v1456_v42 }
 0x17e   : > { %9252 = vmatmul.mubr.msk.bf16.gmra.mrb[28].mxu1 %vm1481_vm1, %v1457_v40 }
 0x219   : > { %v9225_v44 = vpop.f32.mrb[0].mxu1 }
 0x21a   : > { %v1564_v45 = vpop.f32.mrb[1].mxu1  ;;  %v10848_v51 = vadd.f32 %v9225_v44, %v10837_v43 }
 0x21b   : > { %v10840_v46 = vadd.f32 %v10837_v43, %v1564_v45  ;;  %v9226_v47 = vpop.f32.mrb[2].mxu1 }
 0x21c   : > { %v1567_v48 = vpop.f32.mrb[3].mxu1  ;;  %v10856_v52 = vadd.f32 %v9226_v47, %v10837_v43 }
 0x21d   : > { %v10843_v49 = vadd.f32 %v10837_v43, %v1567_v48  ;;  %9273 = vmatprep.mubr.msk.f32.mxu1 %vm1700_vm2, %v10840_v46 }
 0x21f   : > { %9274 = vmatmul.mubr.msk.f32.vlgmr.msra.gmra.mrb[32].mxu1 %vm1700_vm2, %v10843_v49 }
 0x220   : > { %9276 = vmatprep.mubr.msk.f32.mxu1 %vm1700_vm2, %v10848_v51  ;;  %10041 = vmatpush3.bf16.msra.mxu1 %v10775_v12 }
 0x221   : > { %v9229_v53 = vpop.f32.mrb[4].mxu1  ;;  %10043 = vmatprep.subr.bf16.mxu1 %v10784_v25 }
 0x222   : > { %v1580_v54 = vpop.f32.mrb[5].mxu1  ;;  %v10872_v12 = vadd.f32 %v9229_v53, %v10837_v43 }
 0x223   : > { %v10860_v55 = vadd.f32 %v10837_v43, %v1580_v54  ;;  %v9230_v56 = vpop.f32.mrb[6].mxu1  ;;  %9277 = vmatmul.mubr.msk.f32.gmra.mrb[34].mxu1 %vm1700_vm2, %v10856_v52 }
 0x224   : > { %v1583_v57 = vpop.f32.mrb[7].mxu1  ;;  %10045 = vmatpush3.bf16.msra.mxu1 %v10784_v25  ;;  %v10880_v25 = vadd.f32 %v9230_v56, %v10837_v43 }
 0x225   : > { %v10866_v58 = vadd.f32 %v10837_v43, %v1583_v57  ;;  %9279 = vmatprep.mubr.msk.f32.mxu1 %vm1700_vm2, %v10860_v55  ;;  %10047 = vmatprep.subr.bf16.mxu1 %v10796_v34 }
 0x227   : > { %9280 = vmatmul.mubr.msk.f32.gmra.mrb[36].mxu1 %vm1700_vm2, %v10866_v58 }
 0x228   : > { %9282 = vmatprep.mubr.msk.f32.mxu1 %vm1700_vm2, %v10872_v12  ;;  %10049 = vmatpush3.bf16.msra.mxu1 %v10796_v34 }
 0x229   : > { %v9233_v59 = vpop.f32.mrb[8].mxu1  ;;  %10051 = vmatprep.subr.bf16.mxu1 %v10806_v41 }
 0x22a   : > { %v1596_v60 = vpop.f32.mrb[9].mxu1  ;;  %v10896_v34 = vadd.f32 %v9233_v59, %v10837_v43 }
 0x22b   : > { %v10884_v61 = vadd.f32 %v10837_v43, %v1596_v60  ;;  %v9234_v62 = vpop.f32.mrb[10].mxu1  ;;  %9283 = vmatmul.mubr.msk.f32.gmra.mrb[38].mxu1 %vm1700_vm2, %v10880_v25 }
 0x22c   : > { %v1599_v63 = vpop.f32.mrb[11].mxu1  ;;  %10053 = vmatpush3.bf16.msra.mxu1 %v10806_v41  ;;  %v10904_v41 = vadd.f32 %v9234_v62, %v10837_v43 }
 0x22d   : > { %v10890_v0 = vadd.f32 %v10837_v43, %v1599_v63  ;;  %9285 = vmatprep.mubr.msk.f32.mxu1 %vm1700_vm2, %v10884_v61  ;;  %9337 = vmatprep.subr.mxu1 %v10815_v50 }
 0x22f   : > { %9286 = vmatmul.mubr.msk.f32.gmra.mrb[40].mxu1 %vm1700_vm2, %v10890_v0 }
 0x230   : > { %9288 = vmatprep.mubr.msk.f32.mxu1 %vm1700_vm2, %v10896_v34  ;;  %9338 = vmatpush3.msra.mxu1 %v10815_v50 }
 0x231   : > { %v9237_v1 = vpop.f32.mrb[12].mxu1 }
 0x232   : > { %v1612_v2 = vpop.f32.mrb[13].mxu1  ;;  %v10917_v50 = vadd.f32 %v9237_v1, %v10837_v43 }
 0x233   : > { %v10907_v3 = vadd.f32 %v10837_v43, %v1612_v2  ;;  %v9238_v4 = vpop.f32.mrb[14].mxu1  ;;  %9289 = vmatmul.mubr.msk.f32.gmra.mrb[42].mxu1 %vm1700_vm2, %v10904_v41 }
 0x234   : > { %v1615_v5 = vpop.f32.mrb[15].mxu1  ;;  %v10924_v7 = vadd.f32 %v9238_v4, %v10837_v43 }
 0x235   : > { %v10912_v6 = vadd.f32 %v10837_v43, %v1615_v5  ;;  %9291 = vmatprep.mubr.msk.f32.mxu1 %vm1700_vm2, %v10907_v3 }
 0x237   : > { %9292 = vmatmul.mubr.msk.f32.gmra.mrb[44].mxu1 %vm1700_vm2, %v10912_v6 }
 0x238   : > { %9294 = vmatprep.mubr.msk.f32.mxu1 %vm1700_vm2, %v10917_v50 }
 0x239   : > { %v9241_v8 = vpop.f32.mrb[16].mxu1 }
 0x23a   : > { %v1628_v9 = vpop.f32.mrb[17].mxu1  ;;  %v10937_v15 = vadd.f32 %v9241_v8, %v10837_v43 }
 0x23b   : > { %v10927_v10 = vadd.f32 %v10837_v43, %v1628_v9  ;;  %v9242_v11 = vpop.f32.mrb[18].mxu1  ;;  %9295 = vmatmul.mubr.msk.f32.gmra.mrb[46].mxu1 %vm1700_vm2, %v10924_v7 }
 0x23c   : > { %v1631_v13 = vpop.f32.mrb[19].mxu1  ;;  %v10944_v16 = vadd.f32 %v9242_v11, %v10837_v43 }
 0x23d   : > { %v10932_v14 = vadd.f32 %v10837_v43, %v1631_v13  ;;  %9297 = vmatprep.mubr.msk.f32.mxu1 %vm1700_vm2, %v10927_v10 }
 0x23f   : > { %9298 = vmatmul.mubr.msk.f32.gmra.mrb[48].mxu1 %vm1700_vm2, %v10932_v14 }
 0x240   : > { %9300 = vmatprep.mubr.msk.f32.mxu1 %vm1700_vm2, %v10937_v15 }
 0x241   : > { %v9245_v17 = vpop.f32.mrb[20].mxu1 }
 0x242   : > { %v1644_v18 = vpop.f32.mrb[21].mxu1  ;;  %v10957_v23 = vadd.f32 %v9245_v17, %v10837_v43 }
 0x243   : > { %v10947_v19 = vadd.f32 %v10837_v43, %v1644_v18  ;;  %v9246_v20 = vpop.f32.mrb[22].mxu1  ;;  %9301 = vmatmul.mubr.msk.f32.gmra.mrb[50].mxu1 %vm1700_vm2, %v10944_v16 }
 0x244   : > { %v1647_v21 = vpop.f32.mrb[23].mxu1  ;;  %v10964_v24 = vadd.f32 %v9246_v20, %v10837_v43 }
 0x245   : > { %v10952_v22 = vadd.f32 %v10837_v43, %v1647_v21  ;;  %9303 = vmatprep.mubr.msk.f32.mxu1 %vm1700_vm2, %v10947_v19 }
 0x247   : > { %9304 = vmatmul.mubr.msk.f32.gmra.mrb[52].mxu1 %vm1700_vm2, %v10952_v22 }
 0x248   : > { %9306 = vmatprep.mubr.msk.f32.mxu1 %vm1700_vm2, %v10957_v23 }
 0x249   : > { %v9249_v26 = vpop.f32.mrb[24].mxu1 }
 0x24a   : > { %v1660_v27 = vpop.f32.mrb[25].mxu1  ;;  %v10977_v32 = vadd.f32 %v9249_v26, %v10837_v43 }
 0x24b   : > { %v10967_v28 = vadd.f32 %v10837_v43, %v1660_v27  ;;  %v9250_v29 = vpop.f32.mrb[26].mxu1  ;;  %9307 = vmatmul.mubr.msk.f32.gmra.mrb[54].mxu1 %vm1700_vm2, %v10964_v24 }
 0x24c   : > { %v1663_v30 = vpop.f32.mrb[27].mxu1  ;;  %v10984_v33 = vadd.f32 %v9250_v29, %v10837_v43 }
 0x24d   : > { %v10972_v31 = vadd.f32 %v10837_v43, %v1663_v30  ;;  %9309 = vmatprep.mubr.msk.f32.mxu1 %vm1700_vm2, %v10967_v28 }
 0x24f   : > { %9310 = vmatmul.mubr.msk.f32.gmra.mrb[56].mxu1 %vm1700_vm2, %v10972_v31 }
 0x250   : > { %9312 = vmatprep.mubr.msk.f32.mxu1 %vm1700_vm2, %v10977_v32 }
 0x251   : > { %v9253_v35 = vpop.f32.mrb[28].mxu1 }
 0x252   : > { %v1676_v36 = vpop.f32.mrb[29].mxu1  ;;  %v10997_v42 = vadd.f32 %v9253_v35, %v10837_v43 }
 0x253   : > { %v10987_v37 = vadd.f32 %v10837_v43, %v1676_v36  ;;  %v9254_v38 = vpop.f32.mrb[30].mxu1  ;;  %9313 = vmatmul.mubr.msk.f32.gmra.mrb[58].mxu1 %vm1700_vm2, %v10984_v33 }
 0x254   : > { %v1679_v39 = vpop.f32.mrb[31].mxu1  ;;  %v11004_v44 = vadd.f32 %v9254_v38, %v10837_v43 }
 0x255   : > { %v10992_v40 = vadd.f32 %v10837_v43, %v1679_v39  ;;  %9315 = vmatprep.mubr.msk.f32.mxu1 %vm1700_vm2, %v10987_v37 }
 0x257   : > { %9316 = vmatmul.mubr.msk.f32.gmra.mrb[60].mxu1 %vm1700_vm2, %v10992_v40 }
 0x258   : > { %9318 = vmatprep.mubr.msk.f32.mxu1 %vm1700_vm2, %v10997_v42 }
 0x25b   : > { %9319 = vmatmul.mubr.msk.f32.gmra.mrb[62].mxu1 %vm1700_vm2, %v11004_v44 }
 0x2f2   : > { %v9275_v45 = vpop.f32.mrb[32].mxu1 }
 0x2f3   : > { %v2023_v47 = vsel %vm1700_vm2, %v9275_v45, 0.0  ;;  %v1863_v48 = vpop.f32.mrb[33].mxu1 }
 0x2f4   : > { %v2022_v53 = vsel %vm1700_vm2, %v1863_v48, 0.0 }
 0x2f5   : > { %v2024_v54 = vadd.f32 %v2023_v47, %v2022_v53 }
 0x2f6   : > { %v9278_v56 = vpop.f32.mrb[34].mxu1 }
 0x2f7   : > { %v1873_v57 = vpop.f32.mrb[35].mxu1  ;;  %v2027_v62 = vsel %vm1700_vm2, %v9278_v56, 0.0 }
 0x2f8   : > { %v2025_v59 = vsel %vm1700_vm2, %v1873_v57, 0.0 }
 0x2f9   : > { %v2026_v60 = vadd.f32 %v2025_v59, %v2024_v54 }
 0x2fa   : > { %v9281_v63 = vpop.f32.mrb[36].mxu1 }
 0x2fb   : > { %v1883_v43 = vpop.f32.mrb[37].mxu1  ;;  %v2028_v1 = vadd.f32 %v2027_v62, %v2026_v60  ;;  %v2031_v5 = vsel %vm1700_vm2, %v9281_v63, 0.0 }
 0x2fc   : > { %v2029_v2 = vsel %vm1700_vm2, %v1883_v43, 0.0 }
 0x2fd   : > { %v2030_v4 = vadd.f32 %v2029_v2, %v2028_v1 }
 0x2fe   : > { %v9284_v8 = vpop.f32.mrb[38].mxu1 }
 0x2ff   : > { %v1893_v9 = vpop.f32.mrb[39].mxu1  ;;  %v2032_v11 = vadd.f32 %v2031_v5, %v2030_v4  ;;  %v2035_v18 = vsel %vm1700_vm2, %v9284_v8, 0.0 }
 0x300   : > { %v2033_v13 = vsel %vm1700_vm2, %v1893_v9, 0.0 }
 0x301   : > { %v2034_v17 = vadd.f32 %v2033_v13, %v2032_v11 }
 0x302   : > { %v9287_v20 = vpop.f32.mrb[40].mxu1 }
 0x303   : > { %v1903_v21 = vpop.f32.mrb[41].mxu1  ;;  %v2036_v26 = vadd.f32 %v2035_v18, %v2034_v17  ;;  %v2039_v30 = vsel %vm1700_vm2, %v9287_v20, 0.0 }
 0x304   : > { %v2037_v27 = vsel %vm1700_vm2, %v1903_v21, 0.0 }
 0x305   : > { %v2038_v29 = vadd.f32 %v2037_v27, %v2036_v26 }
 0x306   : > { %v9290_v35 = vpop.f32.mrb[42].mxu1 }
 0x307   : > { %v1913_v36 = vpop.f32.mrb[43].mxu1  ;;  %v2040_v38 = vadd.f32 %v2039_v30, %v2038_v29  ;;  %v2043_v47 = vsel %vm1700_vm2, %v9290_v35, 0.0 }
 0x308   : > { %v2041_v39 = vsel %vm1700_vm2, %v1913_v36, 0.0 }
 0x309   : > { %v2042_v45 = vadd.f32 %v2041_v39, %v2040_v38 }
 0x30a   : > { %v9293_v48 = vpop.f32.mrb[44].mxu1 }
 0x30b   : > { %v1923_v53 = vpop.f32.mrb[45].mxu1  ;;  %v2044_v54 = vadd.f32 %v2043_v47, %v2042_v45  ;;  %v2047_v59 = vsel %vm1700_vm2, %v9293_v48, 0.0 }
 0x30c   : > { %v2045_v56 = vsel %vm1700_vm2, %v1923_v53, 0.0 }
 0x30d   : > { %v2046_v57 = vadd.f32 %v2045_v56, %v2044_v54 }
 0x30e   : > { %v9296_v60 = vpop.f32.mrb[46].mxu1 }
 0x30f   : > { %v1933_v62 = vpop.f32.mrb[47].mxu1  ;;  %v2048_v63 = vadd.f32 %v2047_v59, %v2046_v57  ;;  %v2051_v2 = vsel %vm1700_vm2, %v9296_v60, 0.0 }
 0x310   : > { %v2049_v43 = vsel %vm1700_vm2, %v1933_v62, 0.0 }
 0x311   : > { %v2050_v1 = vadd.f32 %v2049_v43, %v2048_v63 }
 0x312   : > { %v9299_v4 = vpop.f32.mrb[48].mxu1 }
 0x313   : > { %v1943_v5 = vpop.f32.mrb[49].mxu1  ;;  %v2052_v8 = vadd.f32 %v2051_v2, %v2050_v1  ;;  %v2055_v13 = vsel %vm1700_vm2, %v9299_v4, 0.0 }
 0x314   : > { %v2053_v9 = vsel %vm1700_vm2, %v1943_v5, 0.0 }
 0x315   : > { %v2054_v11 = vadd.f32 %v2053_v9, %v2052_v8 }
 0x316   : > { %v9302_v17 = vpop.f32.mrb[50].mxu1 }
 0x317   : > { %v1953_v18 = vpop.f32.mrb[51].mxu1  ;;  %v2056_v20 = vadd.f32 %v2055_v13, %v2054_v11  ;;  %v2059_v27 = vsel %vm1700_vm2, %v9302_v17, 0.0 }
 0x318   : > { %v2057_v21 = vsel %vm1700_vm2, %v1953_v18, 0.0 }
 0x319   : > { %v2058_v26 = vadd.f32 %v2057_v21, %v2056_v20 }
 0x31a   : > { %v9305_v29 = vpop.f32.mrb[52].mxu1 }
 0x31b   : > { %v1963_v30 = vpop.f32.mrb[53].mxu1  ;;  %v2060_v35 = vadd.f32 %v2059_v27, %v2058_v26  ;;  %v2063_v39 = vsel %vm1700_vm2, %v9305_v29, 0.0 }
 0x31c   : > { %v2061_v36 = vsel %vm1700_vm2, %v1963_v30, 0.0 }
 0x31d   : > { %v2062_v38 = vadd.f32 %v2061_v36, %v2060_v35 }
 0x31e   : > { %v9308_v45 = vpop.f32.mrb[54].mxu1 }
 0x31f   : > { %v1973_v47 = vpop.f32.mrb[55].mxu1  ;;  %v2064_v48 = vadd.f32 %v2063_v39, %v2062_v38  ;;  %v2067_v56 = vsel %vm1700_vm2, %v9308_v45, 0.0 }
 0x320   : > { %v2065_v53 = vsel %vm1700_vm2, %v1973_v47, 0.0 }
 0x321   : > { %v2066_v54 = vadd.f32 %v2065_v53, %v2064_v48 }
 0x322   : > { %v9311_v57 = vpop.f32.mrb[56].mxu1 }
 0x323   : > { %v1983_v59 = vpop.f32.mrb[57].mxu1  ;;  %v2068_v60 = vadd.f32 %v2067_v56, %v2066_v54  ;;  %v2071_v43 = vsel %vm1700_vm2, %v9311_v57, 0.0 }
 0x324   : > { %v2069_v62 = vsel %vm1700_vm2, %v1983_v59, 0.0 }
 0x325   : > { %v2070_v63 = vadd.f32 %v2069_v62, %v2068_v60 }
 0x326   : > { %v9314_v1 = vpop.f32.mrb[58].mxu1 }
 0x327   : > { %v1993_v2 = vpop.f32.mrb[59].mxu1  ;;  %v2072_v4 = vadd.f32 %v2071_v43, %v2070_v63  ;;  %v2075_v9 = vsel %vm1700_vm2, %v9314_v1, 0.0 }
 0x328   : > { %v2073_v5 = vsel %vm1700_vm2, %v1993_v2, 0.0 }
 0x329   : > { %v2074_v8 = vadd.f32 %v2073_v5, %v2072_v4 }
 0x32a   : > { %v9317_v11 = vpop.f32.mrb[60].mxu1 }
 0x32b   : > { %v2003_v13 = vpop.f32.mrb[61].mxu1  ;;  %v2076_v17 = vadd.f32 %v2075_v9, %v2074_v8  ;;  %v2079_v21 = vsel %vm1700_vm2, %v9317_v11, 0.0 }
 0x32c   : > { %v2077_v18 = vsel %vm1700_vm2, %v2003_v13, 0.0 }
 0x32d   : > { %v2078_v20 = vadd.f32 %v2077_v18, %v2076_v17 }
 0x32e   : > { %v9320_v26 = vpop.f32.mrb[62].mxu1 }
 0x32f   : > { %v2013_v27 = vpop.f32.mrb[63].mxu1  ;;  %v2080_v29 = vadd.f32 %v2079_v21, %v2078_v20  ;;  %v2083_v36 = vsel %vm1700_vm2, %v9320_v26, 0.0 }
 0x330   : > { %v2081_v30 = vsel %vm1700_vm2, %v2013_v27, 0.0 }
 0x331   : > { %v2082_v35 = vadd.f32 %v2081_v30, %v2080_v29 }
 0x333   : > { %v2084_v38 = vadd.f32 %v2083_v36, %v2082_v35 }
 0x335   : > { %v2085_v39 = vrot.slane %v2084_v38, 4 }
 0x337   : > { %v2086_v45 = vadd.f32 %v2085_v39, %v2084_v38 }
 0x339   : > { %v2087_v47 = vrot.slane %v2086_v45, 2 }
 0x33b   : > { %v2088_v48 = vadd.f32 %v2087_v47, %v2086_v45 }
 0x33d   : > { %v2089_v53 = vrot.slane %v2088_v48, 1 }
 0x33f   : > { %v11040_v54 = vadd.f32 %v2089_v53, %v2088_v48 }
 0x341   : > { %v11044_v56 = vsub.f32 %v10840_v46, %v11040_v54  ;;  %v11048_v57 = vsub.f32 %v10843_v49, %v11040_v54  ;;  %v11052_v59 = vsub.f32 %v10848_v51, %v11040_v54  ;;  %v11060_v63 = vsub.f32 %v10856_v52, %v11040_v54 }
 0x342   : > { %v11064_v46 = vsub.f32 %v10860_v55, %v11040_v54  ;;  %v11073_v51 = vsub.f32 %v10866_v58, %v11040_v54  ;;  %v11079_v55 = vsub.f32 %v10872_v12, %v11040_v54  ;;  %v11087_v1 = vsub.f32 %v10880_v25, %v11040_v54 }
 0x343   : > { %v2123_v60 = vmul.f32 %v11044_v56, %v11044_v56  ;;  %v2124_v62 = vmul.f32 %v11048_v57, %v11048_v57  ;;  %v2125_v49 = vmul.f32 %v11052_v59, %v11052_v59  ;;  %v2126_v52 = vmul.f32 %v11060_v63, %v11060_v63 }
 0x344   : > { %v2127_v43 = vmul.f32 %v11064_v46, %v11064_v46  ;;  %v2128_v58 = vmul.f32 %v11073_v51, %v11073_v51  ;;  %v11093_v2 = vsub.f32 %v10884_v61, %v11040_v54  ;;  %v2129_v12 = vmul.f32 %v11079_v55, %v11079_v55 }
 0x345   : > { %9339 = vmatprep.mubr.msk.f32.mxu1 %vm1700_vm2, %v2123_v60  ;;  %v11101_v4 = vsub.f32 %v10890_v0, %v11040_v54  ;;  %v2130_v25 = vmul.f32 %v11087_v1, %v11087_v1  ;;  %v11107_v5 = vsub.f32 %v10896_v34, %v11040_v54  ;;  %v11115_v8 = vsub.f32 %v10904_v41, %v11040_v54 }
 0x346   : > { %9340 = vmatmul.mubr.msk.f32.vlgmr.msra.gmra.mrb[64].mxu1 %vm1700_vm2, %v2124_v62  ;;  %v2131_v61 = vmul.f32 %v11093_v2, %v11093_v2  ;;  %v11121_v9 = vsub.f32 %v10907_v3, %v11040_v54  ;;  %v11129_v11 = vsub.f32 %v10912_v6, %v11040_v54  ;;  %v11135_v13 = vsub.f32 %v10917_v50, %v11040_v54 }
 0x347   : > { %9342 = vmatprep.mubr.msk.f32.mxu1 %vm1700_vm2, %v2125_v49  ;;  %v2132_v0 = vmul.f32 %v11101_v4, %v11101_v4  ;;  %v2133_v34 = vmul.f32 %v11107_v5, %v11107_v5  ;;  %v2134_v41 = vmul.f32 %v11115_v8, %v11115_v8  ;;  %v11143_v17 = vsub.f32 %v10924_v7, %v11040_v54 }
 0x348   : > { %v2135_v3 = vmul.f32 %v11121_v9, %v11121_v9  ;;  %v2136_v6 = vmul.f32 %v11129_v11, %v11129_v11  ;;  %v11149_v18 = vsub.f32 %v10927_v10, %v11040_v54  ;;  %v2137_v50 = vmul.f32 %v11135_v13, %v11135_v13 }
 0x349   : > { %v11157_v20 = vsub.f32 %v10932_v14, %v11040_v54  ;;  %v2138_v7 = vmul.f32 %v11143_v17, %v11143_v17  ;;  %v11163_v21 = vsub.f32 %v10937_v15, %v11040_v54  ;;  %v11171_v26 = vsub.f32 %v10944_v16, %v11040_v54 }
 0x34a   : > { %9343 = vmatmul.mubr.msk.f32.gmra.mrb[66].mxu1 %vm1700_vm2, %v2126_v52  ;;  %v2139_v10 = vmul.f32 %v11149_v18, %v11149_v18  ;;  %v11177_v27 = vsub.f32 %v10947_v19, %v11040_v54  ;;  %v11185_v29 = vsub.f32 %v10952_v22, %v11040_v54  ;;  %v11191_v30 = vsub.f32 %v10957_v23, %v11040_v54  ;;  %v2677_v52 = vld [vmem:[%s13653_s8 + $0x10] sm:$0xff] }
 0x34b   : > { %9345 = vmatprep.mubr.msk.f32.mxu1 %vm1700_vm2, %v2127_v43  ;;  %v2140_v14 = vmul.f32 %v11157_v20, %v11157_v20  ;;  %v2141_v15 = vmul.f32 %v11163_v21, %v11163_v21  ;;  %v2142_v16 = vmul.f32 %v11171_v26, %v11171_v26  ;;  %v11199_v35 = vsub.f32 %v10964_v24, %v11040_v54  ;;  %v2678_v43 = vld [vmem:[%s13653_s8 + $0x18] sm:$0xff] }
 0x34c   : > { %v2143_v19 = vmul.f32 %v11177_v27, %v11177_v27  ;;  %v2144_v22 = vmul.f32 %v11185_v29, %v11185_v29  ;;  %v11205_v36 = vsub.f32 %v10967_v28, %v11040_v54  ;;  %v2145_v23 = vmul.f32 %v11191_v30, %v11191_v30 }
 0x34d   : > { %v11213_v38 = vsub.f32 %v10972_v31, %v11040_v54  ;;  %v2146_v24 = vmul.f32 %v11199_v35, %v11199_v35  ;;  %v11219_v39 = vsub.f32 %v10977_v32, %v11040_v54  ;;  %v11227_v45 = vsub.f32 %v10984_v33, %v11040_v54 }
 0x34e   : > { %9346 = vmatmul.mubr.msk.f32.gmra.mrb[68].mxu1 %vm1700_vm2, %v2128_v58  ;;  %v2147_v28 = vmul.f32 %v11205_v36, %v11205_v36  ;;  %v11233_v47 = vsub.f32 %v10987_v37, %v11040_v54  ;;  %v11241_v48 = vsub.f32 %v10992_v40, %v11040_v54  ;;  %v11247_v53 = vsub.f32 %v10997_v42, %v11040_v54 }
 0x34f   : > { %9348 = vmatprep.mubr.msk.f32.mxu1 %vm1700_vm2, %v2129_v12  ;;  %v2148_v31 = vmul.f32 %v11213_v38, %v11213_v38  ;;  %v2149_v32 = vmul.f32 %v11219_v39, %v11219_v39  ;;  %v2150_v33 = vmul.f32 %v11227_v45, %v11227_v45  ;;  %v11255_v60 = vsub.f32 %v11004_v44, %v11040_v54  ;;  %v2675_v44 = vld [vmem:[%s13653_s8] sm:$0xff]  ;;  %v2676_v54 = vld [vmem:[%s13653_s8 + $0x8] sm:$0xff] }
 0x350   : > { %v2151_v37 = vmul.f32 %v11233_v47, %v11233_v47  ;;  %v2152_v40 = vmul.f32 %v11241_v48, %v11241_v48  ;;  %v2153_v62 = vmul.f32 %v11247_v53, %v11247_v53  ;;  %v10054_v49 = vpack.c.bf16 %v2676_v54, %v2675_v44  ;;  %v2679_v12 = vld [vmem:[%s13653_s8 + $0x20] sm:$0xff] }
 0x351   : > { %v2154_v42 = vmul.f32 %v11255_v60, %v11255_v60  ;;  %v10058_v58 = vpack.c.bf16 %v2678_v43, %v2677_v52 }
 0x352   : > { %9349 = vmatmul.mubr.msk.f32.gmra.mrb[70].mxu1 %vm1700_vm2, %v2130_v25  ;;  %10055 = vmatprep.subr.bf16.mxu0 %v10054_v49  ;;  %v2680_v25 = vld [vmem:[%s13653_s8 + $0x28] sm:$0xff] }
 0x353   : > { %9351 = vmatprep.mubr.msk.f32.mxu1 %vm1700_vm2, %v2131_v61  ;;  %10057 = vmatpush3.bf16.msra.mxu0 %v10054_v49  ;;  %v10062_v61 = vpack.c.bf16 %v2680_v25, %v2679_v12 }
 0x354   : > { %10059 = vmatprep.subr.bf16.mxu0 %v10058_v58 }
 0x356   : > { %9352 = vmatmul.mubr.msk.f32.gmra.mrb[72].mxu1 %vm1700_vm2, %v2132_v0  ;;  %v7197_v0 = vld [vmem:[%s13653_s8 + $0x48] sm:$0xff] }
 0x357   : > { %9354 = vmatprep.mubr.msk.f32.mxu1 %vm1700_vm2, %v2133_v34  ;;  %10061 = vmatpush3.bf16.msra.mxu0 %v10058_v58  ;;  %v7198_v34 = vld [vmem:[%s13653_s8 + $0x50] sm:$0xff] }
 0x358   : > { %10063 = vmatprep.subr.bf16.mxu0 %v10062_v61 }
 0x35a   : > { %9355 = vmatmul.mubr.msk.f32.gmra.mrb[74].mxu1 %vm1700_vm2, %v2134_v41  ;;  %v10070_v41 = vpack.c.bf16 %v7198_v34, %v7197_v0 }
 0x35b   : > { %9357 = vmatprep.mubr.msk.f32.mxu1 %vm1700_vm2, %v2135_v3  ;;  %10065 = vmatpush3.bf16.msra.mxu0 %v10062_v61  ;;  %v7199_v3 = vld [vmem:[%s13653_s8 + $0x58] sm:$0xff] }
 0x35c   : > { %10071 = vmatprep.subr.bf16.mxu1 %v10070_v41 }
 0x35d   : > { %10073 = vmatpush3.bf16.msra.mxu1 %v10070_v41 }
 0x35e   : > { %9358 = vmatmul.mubr.msk.f32.gmra.mrb[76].mxu1 %vm1700_vm2, %v2136_v6  ;;  %v7200_v6 = vld [vmem:[%s13653_s8 + $0x60] sm:$0xff] }
 0x35f   : > { %9360 = vmatprep.mubr.msk.f32.mxu1 %vm1700_vm2, %v2137_v50  ;;  %v10074_v50 = vpack.c.bf16 %v7200_v6, %v7199_v3 }
 0x361   : > { %10075 = vmatprep.subr.bf16.mxu1 %v10074_v50 }
 0x362   : > { %9361 = vmatmul.mubr.msk.f32.gmra.mrb[78].mxu1 %vm1700_vm2, %v2138_v7  ;;  %v7201_v7 = vld [vmem:[%s13653_s8 + $0x68] sm:$0xff] }
 0x363   : > { %9363 = vmatprep.mubr.msk.f32.mxu1 %vm1700_vm2, %v2139_v10  ;;  %10077 = vmatpush3.bf16.msra.mxu1 %v10074_v50  ;;  %v7202_v10 = vld [vmem:[%s13653_s8 + $0x70] sm:$0xff] }
 0x366   : > { %9364 = vmatmul.mubr.msk.f32.gmra.mrb[80].mxu1 %vm1700_vm2, %v2140_v14  ;;  %v10078_v14 = vpack.c.bf16 %v7202_v10, %v7201_v7 }
 0x367   : > { %9366 = vmatprep.mubr.msk.f32.mxu1 %vm1700_vm2, %v2141_v15  ;;  %v2681_v15 = vld [vmem:[%s13653_s8 + $0x30] sm:$0xff] }
 0x368   : > { %10079 = vmatprep.subr.bf16.mxu1 %v10078_v14 }
 0x369   : > { %10081 = vmatpush3.bf16.msra.mxu1 %v10078_v14 }
 0x36a   : > { %9367 = vmatmul.mubr.msk.f32.gmra.mrb[82].mxu1 %vm1700_vm2, %v2142_v16  ;;  %v2682_v16 = vld [vmem:[%s13653_s8 + $0x38] sm:$0xff] }
 0x36b   : > { %9369 = vmatprep.mubr.msk.f32.mxu1 %vm1700_vm2, %v2143_v19  ;;  %v7203_v19 = vld [vmem:[%s13653_s8 + $0x78] sm:$0xff] }
 0x36e   : > { %9370 = vmatmul.mubr.msk.f32.gmra.mrb[84].mxu1 %vm1700_vm2, %v2144_v22  ;;  %v10066_v22 = vpack.c.bf16 %v2682_v16, %v2681_v15 }
 0x36f   : > { %9372 = vmatprep.mubr.msk.f32.mxu1 %vm1700_vm2, %v2145_v23  ;;  %v7204_v23 = vld [vmem:[%s13653_s8 + $0x80] sm:$0xff] }
 0x370   : > { %10067 = vmatprep.subr.bf16.mxu0 %v10066_v22 }
 0x371   : > { %10069 = vmatpush3.bf16.msra.mxu0 %v10066_v22 }
 0x372   : > { %9373 = vmatmul.mubr.msk.f32.gmra.mrb[86].mxu1 %vm1700_vm2, %v2146_v24  ;;  %v10082_v24 = vpack.c.bf16 %v7204_v23, %v7203_v19 }
 0x373   : > { %9375 = vmatprep.mubr.msk.f32.mxu1 %vm1700_vm2, %v2147_v28  ;;  %v2683_v28 = vld [vmem:[%s13653_s8 + $0x40] sm:$0xff] }
 0x374   : > { %10083 = vmatprep.subr.bf16.mxu1 %v10082_v24  ;;  %9403 = vmatprep.subr.mxu0 %v2683_v28 }
 0x375   : > { %10085 = vmatpush3.bf16.msra.mxu1 %v10082_v24  ;;  %9404 = vmatpush3.msra.mxu0 %v2683_v28 }
 0x376   : > { %9376 = vmatmul.mubr.msk.f32.gmra.mrb[88].mxu1 %vm1700_vm2, %v2148_v31  ;;  %v7205_v31 = vld [vmem:[%s13653_s8 + $0x88] sm:$0xff] }
 0x377   : > { %9378 = vmatprep.mubr.msk.f32.mxu1 %vm1700_vm2, %v2149_v32  ;;  %v7270_v32 = vld [vmem:[%s13653_s8 + $0x90] sm:$0xff]  ;;  %9469 = vmatprep.subr.mxu1 %v7205_v31 }
 0x379   : > { %9470 = vmatpush3.msra.mxu1 %v7205_v31 }
 0x37a   : > { %9379 = vmatmul.mubr.msk.f32.gmra.mrb[90].mxu1 %vm1700_vm2, %v2150_v33  ;;  %v7271_v33 = vld [vmem:[%s13653_s8 + $0x98] sm:$0xff] }
 0x37b   : > { %9381 = vmatprep.mubr.msk.f32.mxu1 %vm1700_vm2, %v2151_v37  ;;  %v11326_v37 = vpack.c.bf16 %v7271_v33, %v7270_v32  ;;  %v7343_v32 = vld [vmem:[%s13653_s8 + $0xd8] sm:$0xff]  ;;  %v7344_v33 = vld [vmem:[%s13653_s8 + $0xe0] sm:$0xff] }
 0x37d   : > { %10087 = vmatprep.subr.bf16.mxu0 %v11326_v37 }
 0x37e   : > { %9382 = vmatmul.mubr.msk.f32.gmra.mrb[92].mxu1 %vm1700_vm2, %v2152_v40 }
 0x37f   : > { %9384 = vmatprep.mubr.msk.f32.mxu1 %vm1700_vm2, %v2153_v62 }
 0x382   : > { %9385 = vmatmul.mubr.msk.f32.gmra.mrb[94].mxu1 %vm1700_vm2, %v2154_v42 }
 0x419   : > { %v9341_v40 = vpop.f32.mrb[64].mxu1 }
 0x41a   : > { %v2477_v62 = vsel %vm1700_vm2, %v9341_v40, 0.0  ;;  %v2317_v42 = vpop.f32.mrb[65].mxu1 }
 0x41b   : > { %v2476_v44 = vsel %vm1700_vm2, %v2317_v42, 0.0  ;;  %v11345_v42 = vpack.c.bf16 %v7344_v33, %v7343_v32 }
 0x41c   : > { %v2478_v54 = vadd.f32 %v2477_v62, %v2476_v44 }
 0x41d   : > { %v9344_v49 = vpop.f32.mrb[66].mxu1  ;;  %10103 = vmatprep.subr.bf16.mxu1 %v11345_v42 }
 0x41e   : > { %v2327_v52 = vpop.f32.mrb[67].mxu1  ;;  %v2481_v12 = vsel %vm1700_vm2, %v9344_v49, 0.0 }
 0x41f   : > { %v2479_v43 = vsel %vm1700_vm2, %v2327_v52, 0.0 }
 0x420   : > { %v2480_v58 = vadd.f32 %v2479_v43, %v2478_v54 }
 0x421   : > { %v9347_v25 = vpop.f32.mrb[68].mxu1 }
 0x422   : > { %v2337_v61 = vpop.f32.mrb[69].mxu1  ;;  %v2482_v0 = vadd.f32 %v2481_v12, %v2480_v58  ;;  %v2485_v3 = vsel %vm1700_vm2, %v9347_v25, 0.0 }
 0x423   : > { %v2483_v34 = vsel %vm1700_vm2, %v2337_v61, 0.0 }
 0x424   : > { %v2484_v41 = vadd.f32 %v2483_v34, %v2482_v0 }
 0x425   : > { %v9350_v6 = vpop.f32.mrb[70].mxu1 }
 0x426   : > { %v2347_v50 = vpop.f32.mrb[71].mxu1  ;;  %v2486_v7 = vadd.f32 %v2485_v3, %v2484_v41  ;;  %v2489_v15 = vsel %vm1700_vm2, %v9350_v6, 0.0 }
 0x427   : > { %v2487_v10 = vsel %vm1700_vm2, %v2347_v50, 0.0 }
 0x428   : > { %v2488_v14 = vadd.f32 %v2487_v10, %v2486_v7 }
 0x429   : > { %v9353_v16 = vpop.f32.mrb[72].mxu1 }
 0x42a   : > { %v2357_v19 = vpop.f32.mrb[73].mxu1  ;;  %v2490_v22 = vadd.f32 %v2489_v15, %v2488_v14  ;;  %v2493_v28 = vsel %vm1700_vm2, %v9353_v16, 0.0 }
 0x42b   : > { %v2491_v23 = vsel %vm1700_vm2, %v2357_v19, 0.0 }
 0x42c   : > { %v2492_v24 = vadd.f32 %v2491_v23, %v2490_v22 }
 0x42d   : > { %v9356_v31 = vpop.f32.mrb[74].mxu1 }
 0x42e   : > { %v2367_v40 = vpop.f32.mrb[75].mxu1  ;;  %v2494_v62 = vadd.f32 %v2493_v28, %v2492_v24  ;;  %v2497_v49 = vsel %vm1700_vm2, %v9356_v31, 0.0 }
 0x42f   : > { %v2495_v44 = vsel %vm1700_vm2, %v2367_v40, 0.0 }
 0x430   : > { %v2496_v54 = vadd.f32 %v2495_v44, %v2494_v62 }
 0x431   : > { %v9359_v52 = vpop.f32.mrb[76].mxu1 }
 0x432   : > { %v2377_v43 = vpop.f32.mrb[77].mxu1  ;;  %v2498_v58 = vadd.f32 %v2497_v49, %v2496_v54  ;;  %v2501_v61 = vsel %vm1700_vm2, %v9359_v52, 0.0 }
 0x433   : > { %v2499_v12 = vsel %vm1700_vm2, %v2377_v43, 0.0 }
 0x434   : > { %v2500_v25 = vadd.f32 %v2499_v12, %v2498_v58 }
 0x435   : > { %v9362_v0 = vpop.f32.mrb[78].mxu1 }
 0x436   : > { %v2387_v34 = vpop.f32.mrb[79].mxu1  ;;  %v2502_v41 = vadd.f32 %v2501_v61, %v2500_v25  ;;  %v2505_v50 = vsel %vm1700_vm2, %v9362_v0, 0.0 }
 0x437   : > { %v2503_v3 = vsel %vm1700_vm2, %v2387_v34, 0.0 }
 0x438   : > { %v2504_v6 = vadd.f32 %v2503_v3, %v2502_v41 }
 0x439   : > { %v9365_v7 = vpop.f32.mrb[80].mxu1 }
 0x43a   : > { %v2397_v10 = vpop.f32.mrb[81].mxu1  ;;  %v2506_v14 = vadd.f32 %v2505_v50, %v2504_v6  ;;  %v2509_v19 = vsel %vm1700_vm2, %v9365_v7, 0.0 }
 0x43b   : > { %v2507_v15 = vsel %vm1700_vm2, %v2397_v10, 0.0 }
 0x43c   : > { %v2508_v16 = vadd.f32 %v2507_v15, %v2506_v14 }
 0x43d   : > { %v9368_v22 = vpop.f32.mrb[82].mxu1 }
 0x43e   : > { %v2407_v23 = vpop.f32.mrb[83].mxu1  ;;  %v2510_v24 = vadd.f32 %v2509_v19, %v2508_v16  ;;  %v2513_v32 = vsel %vm1700_vm2, %v9368_v22, 0.0 }
 0x43f   : > { %v2511_v28 = vsel %vm1700_vm2, %v2407_v23, 0.0 }
 0x440   : > { %v2512_v31 = vadd.f32 %v2511_v28, %v2510_v24 }
 0x441   : > { %v9371_v33 = vpop.f32.mrb[84].mxu1 }
 0x442   : > { %v2417_v40 = vpop.f32.mrb[85].mxu1  ;;  %v2514_v62 = vadd.f32 %v2513_v32, %v2512_v31  ;;  %v2517_v49 = vsel %vm1700_vm2, %v9371_v33, 0.0 }
 0x443   : > { %v2515_v44 = vsel %vm1700_vm2, %v2417_v40, 0.0 }
 0x444   : > { %v2516_v54 = vadd.f32 %v2515_v44, %v2514_v62 }
 0x445   : > { %v9374_v52 = vpop.f32.mrb[86].mxu1 }
 0x446   : > { %v2427_v43 = vpop.f32.mrb[87].mxu1  ;;  %v2518_v58 = vadd.f32 %v2517_v49, %v2516_v54  ;;  %v2521_v61 = vsel %vm1700_vm2, %v9374_v52, 0.0 }
 0x447   : > { %v2519_v12 = vsel %vm1700_vm2, %v2427_v43, 0.0 }
 0x448   : > { %v2520_v25 = vadd.f32 %v2519_v12, %v2518_v58 }
 0x449   : > { %v9377_v0 = vpop.f32.mrb[88].mxu1 }
 0x44a   : > { %v2437_v34 = vpop.f32.mrb[89].mxu1  ;;  %v2522_v41 = vadd.f32 %v2521_v61, %v2520_v25  ;;  %v2525_v50 = vsel %vm1700_vm2, %v9377_v0, 0.0 }
 0x44b   : > { %v2523_v3 = vsel %vm1700_vm2, %v2437_v34, 0.0 }
 0x44c   : > { %v2524_v6 = vadd.f32 %v2523_v3, %v2522_v41 }
 0x44d   : > { %v9380_v7 = vpop.f32.mrb[90].mxu1 }
 0x44e   : > { %v2447_v10 = vpop.f32.mrb[91].mxu1  ;;  %v2526_v14 = vadd.f32 %v2525_v50, %v2524_v6  ;;  %v2529_v19 = vsel %vm1700_vm2, %v9380_v7, 0.0  ;;  %v7272_v7 = vld [vmem:[%s13653_s8 + $0xa0] sm:$0xff] }
 0x44f   : > { %v2527_v15 = vsel %vm1700_vm2, %v2447_v10, 0.0  ;;  %v7273_v10 = vld [vmem:[%s13653_s8 + $0xa8] sm:$0xff] }
 0x450   : > { %v2528_v16 = vadd.f32 %v2527_v15, %v2526_v14  ;;  %v7345_v14 = vld [vmem:[%s13653_s8 + $0xe8] sm:$0xff] }
 0x451   : > { %v9383_v22 = vpop.f32.mrb[92].mxu1 }
 0x452   : > { %v2457_v23 = vpop.f32.mrb[93].mxu1  ;;  %v2530_v24 = vadd.f32 %v2529_v19, %v2528_v16  ;;  %v2533_v32 = vsel %vm1700_vm2, %v9383_v22, 0.0  ;;  %v10090_v22 = vpack.c.bf16 %v7273_v10, %v7272_v7 }
 0x453   : > { %v2531_v28 = vsel %vm1700_vm2, %v2457_v23, 0.0  ;;  %v7274_v23 = vld [vmem:[%s13653_s8 + $0xb0] sm:$0xff] }
 0x454   : > { %v2532_v31 = vadd.f32 %v2531_v28, %v2530_v24  ;;  %v7348_v28 = vld [vmem:[%s13653_s8 + $0x100] sm:$0xff] }
 0x455   : > { %v9386_v33 = vpop.f32.mrb[94].mxu1 }
 0x456   : > { %v2467_v40 = vpop.f32.mrb[95].mxu1  ;;  %v2534_v62 = vadd.f32 %v2533_v32, %v2532_v31  ;;  %v2537_v49 = vsel %vm1700_vm2, %v9386_v33, 0.0 }
 0x457   : > { %v2535_v44 = vsel %vm1700_vm2, %v2467_v40, 0.0 }
 0x458   : > { %v2536_v54 = vadd.f32 %v2535_v44, %v2534_v62  ;;  %v7276_v44 = vld [vmem:[%s13653_s8 + $0xc0] sm:$0xff] }
 0x45a   : > { %v2538_v52 = vadd.f32 %v2537_v49, %v2536_v54 }
 0x45c   : > { %v2539_v43 = vrot.slane %v2538_v52, 4 }
 0x45e   : > { %v2540_v58 = vadd.f32 %v2539_v43, %v2538_v52 }
 0x460   : > { %v2541_v12 = vrot.slane %v2540_v58, 2 }
 0x462   : > { %v2542_v25 = vadd.f32 %v2541_v12, %v2540_v58 }
 0x464   : > { %v2543_v61 = vrot.slane %v2542_v25, 1 }
 0x466   : > { %v2544_v0 = vadd.f32 %v2543_v61, %v2542_v25 }
 0x468   : > { %v2545_v34 = vadd.f32 1e-05, %v2544_v0  ;;  %v7278_v0 = vld [vmem:[%s13653_s8 + $0xd0] sm:$0xff] }
 0x46a   : > { %10323 = vrsqrt.f32 %v2545_v34  ;;  %v7351_v34 = vld [vmem:[%s13653_s8 + $0x118] sm:$0xff] }
 0x474   : > { %v11370_v41 = vpop.eup %10323 }
 0x475   : > { %v2547_v3 = vmul.f32 %v11370_v41, %v11044_v56  ;;  %v2548_v6 = vmul.f32 %v11370_v41, %v11048_v57  ;;  %v2549_v50 = vmul.f32 %v11370_v41, %v11052_v59  ;;  %v7346_v56 = vld [vmem:[%s13653_s8 + $0xf0] sm:$0xff]  ;;  %v2550_v59 = vmul.f32 %v11370_v41, %v11060_v63  ;;  %v7275_v63 = vld [vmem:[%s13653_s8 + $0xb8] sm:$0xff] }
 0x476   : > { %v2551_v16 = vmul.f32 %v11370_v41, %v11064_v46  ;;  %v10106_v24 = vpack.c.bf16 %v7346_v56, %v7345_v14  ;;  %v7347_v46 = vld [vmem:[%s13653_s8 + $0xf8] sm:$0xff]  ;;  %v2552_v31 = vmul.f32 %v11370_v41, %v11073_v51  ;;  %v2553_v33 = vmul.f32 %v11370_v41, %v11079_v55  ;;  %v7277_v51 = vld [vmem:[%s13653_s8 + $0xc8] sm:$0xff] }
 0x477   : > { %v11390_v57 = vmul.f32 0.999995, %v2547_v3  ;;  %v11392_v15 = vmul.f32 0.999995, %v2548_v6  ;;  %v11398_v19 = vmul.f32 0.999995, %v2549_v50  ;;  %v10094_v62 = vpack.c.bf16 %v7275_v63, %v7274_v23 }
 0x478   : > { %v11426_v32 = vmul.f32 0.999995, %v2550_v59  ;;  %v11432_v40 = vmul.f32 0.999995, %v2551_v16  ;;  %v10110_v54 = vpack.c.bf16 %v7348_v28, %v7347_v46  ;;  %v7349_v55 = vld [vmem:[%s13653_s8 + $0x108] sm:$0xff]  ;;  %v2555_v52 = vmul.f32 %v11370_v41, %v11093_v2  ;;  %v7490_v6 = vld [vmem:[%s13653_s8 + $0x170] sm:$0xff] }
 0x479   : > { %9405 = vmatprep.mubr.msk.f32.mxu0 %vm1700_vm2, %v11390_v57  ;;  %9471 = vmatprep.mubr.msk.f32.mxu1 %vm1700_vm2, %v11390_v57  ;;  %v11456_v49 = vmul.f32 0.999995, %v2552_v31  ;;  %v11460_v43 = vmul.f32 0.999995, %v2553_v33  ;;  %v10098_v58 = vpack.c.bf16 %v7277_v51, %v7276_v44  ;;  %v2557_v25 = vmul.f32 %v11370_v41, %v11107_v5  ;;  %v7417_v5 = vld [vmem:[%s13653_s8 + $0x128] sm:$0xff] }
 0x47a   : > { %9406 = vmatmul.mubr.msk.f32.vlgmr.msra.gmra.mrb[32].mxu0 %vm1700_vm2, %v11392_v15  ;;  %9472 = vmatmul.mubr.msk.f32.vlgmr.msra.gmra.mrb[96].mxu1 %vm1700_vm2, %v11392_v15  ;;  %v11476_v61 = vmul.f32 0.999995, %v2555_v52  ;;  %v7489_v3 = vld [vmem:[%s13653_s8 + $0x168] sm:$0xff]  ;;  %v2558_v50 = vmul.f32 %v11370_v41, %v11115_v8  ;;  %v2559_v10 = vmul.f32 %v11370_v41, %v11121_v9  ;;  %v2560_v8 = vmul.f32 %v11370_v41, %v11129_v11 }
 0x47b   : > { %9408 = vmatprep.mubr.msk.f32.mxu0 %vm1700_vm2, %v11398_v19  ;;  %9474 = vmatprep.mubr.msk.f32.mxu1 %vm1700_vm2, %v11398_v19  ;;  %v11510_v14 = vmul.f32 0.999995, %v2557_v25  ;;  %v11514_v59 = vpack.c.bf16 %v7490_v6, %v7489_v3  ;;  %v2561_v16 = vmul.f32 %v11370_v41, %v11135_v13  ;;  %v2562_v11 = vmul.f32 %v11370_v41, %v11143_v17  ;;  %v7491_v25 = vld [vmem:[%s13653_s8 + $0x178] sm:$0xff]  ;;  %v7421_v3 = vld [vmem:[%s13653_s8 + $0x148] sm:$0xff] }
 0x47c   : > { %10089 = vmatpush3.bf16.msra.mxu0 %v11326_v37  ;;  %10105 = vmatpush3.bf16.msra.mxu1 %v11345_v42  ;;  %v7350_v37 = vld [vmem:[%s13653_s8 + $0x110] sm:$0xff]  ;;  %v2554_v42 = vmul.f32 %v11370_v41, %v11087_v1  ;;  %v2556_v1 = vmul.f32 %v11370_v41, %v11101_v4  ;;  %v7416_v4 = vld [vmem:[%s13653_s8 + $0x120] sm:$0xff]  ;;  %v11526_v9 = vmul.f32 0.999995, %v2558_v50  ;;  %v11544_v13 = vmul.f32 0.999995, %v2560_v8 }
 0x47d   : > { %10091 = vmatprep.subr.bf16.mxu0 %v10090_v22  ;;  %10107 = vmatprep.subr.bf16.mxu1 %v10106_v24  ;;  %v10114_v12 = vpack.c.bf16 %v7350_v37, %v7349_v55  ;;  %v11512_v56 = vpack.c.bf16 %v7417_v5, %v7416_v4  ;;  %v2563_v23 = vmul.f32 %v11370_v41, %v11149_v18  ;;  %v11560_v63 = vmul.f32 0.999995, %v2562_v11  ;;  %v7420_v4 = vld [vmem:[%s13653_s8 + $0x140] sm:$0xff]  ;;  %v7493_v6 = vld [vmem:[%s13653_s8 + $0x188] sm:$0xff]  ;;  %v7494_v50 = vld [vmem:[%s13653_s8 + $0x190] sm:$0xff] }
 0x47e   : > { %9409 = vmatmul.mubr.msk.f32.gmra.mrb[34].mxu0 %vm1700_vm2, %v11426_v32  ;;  %9475 = vmatmul.mubr.msk.f32.gmra.mrb[98].mxu1 %vm1700_vm2, %v11426_v32  ;;  %v11472_v2 = vmul.f32 0.999995, %v2554_v42  ;;  %v11506_v7 = vmul.f32 0.999995, %v2556_v1  ;;  %v2564_v17 = vmul.f32 %v11370_v41, %v11157_v20  ;;  %v2565_v18 = vmul.f32 %v11370_v41, %v11163_v21  ;;  %v7422_v8 = vld [vmem:[%s13653_s8 + $0x150] sm:$0xff]  ;;  %v7496_v11 = vld [vmem:[%s13653_s8 + $0x1a0] sm:$0xff] }
 0x47f   : > { %9411 = vmatprep.mubr.msk.f32.mxu0 %vm1700_vm2, %v11432_v40  ;;  %9477 = vmatprep.mubr.msk.f32.mxu1 %vm1700_vm2, %v11432_v40  ;;  %v11564_v46 = vmul.f32 0.999995, %v2563_v23  ;;  %v2566_v20 = vmul.f32 %v11370_v41, %v11171_v26  ;;  %v2567_v21 = vmul.f32 %v11370_v41, %v11177_v27  ;;  %v2568_v26 = vmul.f32 %v11370_v41, %v11185_v29 }
 0x480   : > { %10093 = vmatpush3.bf16.msra.mxu0 %v10090_v22  ;;  %10109 = vmatpush3.bf16.msra.mxu1 %v10106_v24  ;;  %v11530_v22 = vmul.f32 0.999995, %v2559_v10  ;;  %v11548_v24 = vmul.f32 0.999995, %v2561_v16  ;;  %v11576_v28 = vmul.f32 0.999995, %v2564_v17  ;;  %v2569_v27 = vmul.f32 %v11370_v41, %v11191_v30 }
 0x481   : > { %10095 = vmatprep.subr.bf16.mxu0 %v10094_v62  ;;  %10111 = vmatprep.subr.bf16.mxu1 %v10110_v54  ;;  %v11580_v31 = vmul.f32 0.999995, %v2565_v18  ;;  %v11592_v33 = vmul.f32 0.999995, %v2566_v20  ;;  %v2570_v29 = vmul.f32 %v11370_v41, %v11199_v35  ;;  %v11608_v44 = vmul.f32 0.999995, %v2568_v26 }
 0x482   : > { %9412 = vmatmul.mubr.msk.f32.gmra.mrb[36].mxu0 %vm1700_vm2, %v11456_v49  ;;  %9478 = vmatmul.mubr.msk.f32.gmra.mrb[100].mxu1 %vm1700_vm2, %v11456_v49  ;;  %v2571_v30 = vmul.f32 %v11370_v41, %v11205_v36  ;;  %v2572_v35 = vmul.f32 %v11370_v41, %v11213_v38  ;;  %v2573_v36 = vmul.f32 %v11370_v41, %v11219_v39  ;;  %v7424_v18 = vld [vmem:[%s13653_s8 + $0x160] sm:$0xff]  ;;  %v7497_v20 = vld [vmem:[%s13653_s8 + $0x1a8] sm:$0xff]  ;;  %v7563_v26 = vld [vmem:[%s13653_s8 + $0x1b8] sm:$0xff] }
 0x483   : > { %9414 = vmatprep.mubr.msk.f32.mxu0 %vm1700_vm2, %v11460_v43  ;;  %9480 = vmatprep.mubr.msk.f32.mxu1 %vm1700_vm2, %v11460_v43  ;;  %v11624_v51 = vmul.f32 0.999995, %v2570_v29  ;;  %v2574_v38 = vmul.f32 %v11370_v41, %v11227_v45  ;;  %v2575_v39 = vmul.f32 %v11370_v41, %v11233_v47  ;;  %v2576_v45 = vmul.f32 %v11370_v41, %v11241_v48  ;;  %v7636_v29 = vld [vmem:[%s13653_s8 + $0x200] sm:$0xff] }
 0x484   : > { %10097 = vmatpush3.bf16.msra.mxu0 %v10094_v62  ;;  %10113 = vmatpush3.bf16.msra.mxu1 %v10110_v54  ;;  %v11596_v62 = vmul.f32 0.999995, %v2567_v21  ;;  %v11612_v54 = vmul.f32 0.999995, %v2569_v27  ;;  %v11628_v55 = vmul.f32 0.999995, %v2571_v30  ;;  %v2577_v47 = vmul.f32 %v11370_v41, %v11247_v53 }
 0x485   : > { %10099 = vmatprep.subr.bf16.mxu0 %v10098_v58  ;;  %10115 = vmatprep.subr.bf16.mxu1 %v10114_v12  ;;  %v11640_v37 = vmul.f32 0.999995, %v2572_v35  ;;  %v11644_v42 = vmul.f32 0.999995, %v2573_v36  ;;  %v11656_v52 = vmul.f32 0.999995, %v2574_v38  ;;  %v2578_v48 = vmul.f32 %v11370_v41, %v11255_v60 }
 0x486   : > { %9415 = vmatmul.mubr.msk.f32.gmra.mrb[38].mxu0 %vm1700_vm2, %v11472_v2  ;;  %9481 = vmatmul.mubr.msk.f32.gmra.mrb[102].mxu1 %vm1700_vm2, %v11472_v2  ;;  %v11674_v53 = vmul.f32 0.999995, %v2577_v47  ;;  %v7418_v60 = vld [vmem:[%s13653_s8 + $0x130] sm:$0xff]  ;;  %v7419_v41 = vld [vmem:[%s13653_s8 + $0x138] sm:$0xff]  ;;  %v10126_v10 = vpack.c.bf16 %v7421_v3, %v7420_v4  ;;  %v10142_v16 = vpack.c.bf16 %v7494_v50, %v7493_v6  ;;  %v7564_v36 = vld [vmem:[%s13653_s8 + $0x1c0] sm:$0xff] }
 0x487   : > { %9417 = vmatprep.mubr.msk.f32.mxu0 %vm1700_vm2, %v11476_v61  ;;  %9483 = vmatprep.mubr.msk.f32.mxu1 %vm1700_vm2, %v11476_v61  ;;  %13697 = vst [vmem:[#allocation4_spill] sm:$0xff] %v11640_v37  ;;  %13698 = vst [vmem:[#allocation5_spill] sm:$0xff] %v11656_v52  ;;  %v11684_v1 = vmul.f32 0.999995, %v2578_v48  ;;  %v7562_v21 = vld [vmem:[%s13653_s8 + $0x1b0] sm:$0xff]  ;;  %v7635_v27 = vld [vmem:[%s13653_s8 + $0x1f8] sm:$0xff] }
 0x488   : > { %10101 = vmatpush3.bf16.msra.mxu0 %v10098_v58  ;;  %10117 = vmatpush3.bf16.msra.mxu1 %v10114_v12  ;;  %v11660_v58 = vmul.f32 0.999995, %v2575_v39  ;;  %v11672_v12 = vmul.f32 0.999995, %v2576_v45  ;;  %13700 = vst [vmem:[#allocation7_spill] sm:$0xff] %v11674_v53  ;;  %v11782_v30 = vpack.c.bf16 %v7563_v26, %v7562_v21  ;;  %v11784_v35 = vpack.c.bf16 %v7636_v29, %v7635_v27  ;;  %v7565_v38 = vld [vmem:[%s13653_s8 + $0x1c8] sm:$0xff] }
 0x489   : > { %9535 = vmatprep.subr.mxu0 %v7278_v0  ;;  %9601 = vmatprep.subr.mxu1 %v7351_v34  ;;  %13701 = vst [vmem:[#allocation8_spill] sm:$0xff] %v11684_v1  ;;  %v7637_v39 = vld [vmem:[%s13653_s8 + $0x208] sm:$0xff]  ;;  %v7638_v45 = vld [vmem:[%s13653_s8 + $0x210] sm:$0xff]  ;;  %v10154_v47 = vpack.c.bf16 %v7565_v38, %v7564_v36  ;;  %v7568_v4 = vld [vmem:[%s13653_s8 + $0x1e0] sm:$0xff] }
 0x48a   : > { %9418 = vmatmul.mubr.msk.f32.gmra.mrb[40].mxu0 %vm1700_vm2, %v11506_v7  ;;  %9484 = vmatmul.mubr.msk.f32.gmra.mrb[104].mxu1 %vm1700_vm2, %v11506_v7  ;;  %13699 = vst [vmem:[#allocation6_spill] sm:$0xff] %v11672_v12  ;;  %v7566_v48 = vld [vmem:[%s13653_s8 + $0x1d0] sm:$0xff]  ;;  %v7569_v3 = vld [vmem:[%s13653_s8 + $0x1e8] sm:$0xff]  ;;  %v7712_v21 = vld [vmem:[%s13653_s8 + $0x260] sm:$0xff] }
 0x48b   : > { %9420 = vmatprep.mubr.msk.f32.mxu0 %vm1700_vm2, %v11510_v14  ;;  %9486 = vmatprep.mubr.msk.f32.mxu1 %vm1700_vm2, %v11510_v14  ;;  %v7641_v6 = vld [vmem:[%s13653_s8 + $0x228] sm:$0xff]  ;;  %v7642_v50 = vld [vmem:[%s13653_s8 + $0x230] sm:$0xff]  ;;  %v7716_v36 = vld [vmem:[%s13653_s8 + $0x280] sm:$0xff] }
 0x48c   : > { %9536 = vmatpush3.msra.mxu0 %v7278_v0  ;;  %9602 = vmatpush3.msra.mxu1 %v7351_v34  ;;  %v7492_v0 = vld [vmem:[%s13653_s8 + $0x180] sm:$0xff]  ;;  %v10122_v34 = vpack.c.bf16 %v7419_v41, %v7418_v60  ;;  %v10170_v60 = vpack.c.bf16 %v7638_v45, %v7637_v39  ;;  %v7567_v41 = vld [vmem:[%s13653_s8 + $0x1d8] sm:$0xff]  ;;  %v7713_v26 = vld [vmem:[%s13653_s8 + $0x268] sm:$0xff] }
 0x48d   : > { %10119 = vmatprep.subr.bf16.mxu0 %v11512_v56  ;;  %10135 = vmatprep.subr.bf16.mxu1 %v11514_v59  ;;  %v10138_v5 = vpack.c.bf16 %v7492_v0, %v7491_v25  ;;  %v7639_v25 = vld [vmem:[%s13653_s8 + $0x218] sm:$0xff]  ;;  %v7640_v0 = vld [vmem:[%s13653_s8 + $0x220] sm:$0xff]  ;;  %v10190_v27 = vpack.c.bf16 %v7713_v26, %v7712_v21  ;;  %v7714_v29 = vld [vmem:[%s13653_s8 + $0x270] sm:$0xff] }
 0x48e   : > { %9421 = vmatmul.mubr.msk.f32.gmra.mrb[42].mxu0 %vm1700_vm2, %v11526_v9  ;;  %9487 = vmatmul.mubr.msk.f32.gmra.mrb[106].mxu1 %vm1700_vm2, %v11526_v9  ;;  %v7893_v38 = vld [vmem:[%s12112_s0] sm:$0xff]  }
 0x48f   : > { %9423 = vmatprep.mubr.msk.f32.mxu0 %vm1700_vm2, %v11530_v22  ;;  %9489 = vmatprep.mubr.msk.f32.mxu1 %vm1700_vm2, %v11530_v22  ;;  %v8483_v39 = vld [vmem:[%s12112_s0 + $0x80] sm:$0xff]   ;;  %v7895_v45 = vunpack.c.h.bf16 %v7893_v38 }
 0x492   : > { %9424 = vmatmul.mubr.msk.f32.gmra.mrb[44].mxu0 %vm1700_vm2, %v11544_v13  ;;  %9490 = vmatmul.mubr.msk.f32.gmra.mrb[108].mxu1 %vm1700_vm2, %v11544_v13 }
 0x493   : > { %9426 = vmatprep.mubr.msk.f32.mxu0 %vm1700_vm2, %v11548_v24  ;;  %9492 = vmatprep.mubr.msk.f32.mxu1 %vm1700_vm2, %v11548_v24 }
 0x496   : > { %9427 = vmatmul.mubr.msk.f32.gmra.mrb[46].mxu0 %vm1700_vm2, %v11560_v63  ;;  %9493 = vmatmul.mubr.msk.f32.gmra.mrb[110].mxu1 %vm1700_vm2, %v11560_v63 }
 0x497   : > { %9429 = vmatprep.mubr.msk.f32.mxu0 %vm1700_vm2, %v11564_v46  ;;  %9495 = vmatprep.mubr.msk.f32.mxu1 %vm1700_vm2, %v11564_v46 }
 0x49a   : > { %9430 = vmatmul.mubr.msk.f32.gmra.mrb[48].mxu0 %vm1700_vm2, %v11576_v28  ;;  %9496 = vmatmul.mubr.msk.f32.gmra.mrb[112].mxu1 %vm1700_vm2, %v11576_v28 }
 0x49b   : > { %9432 = vmatprep.mubr.msk.f32.mxu0 %vm1700_vm2, %v11580_v31  ;;  %9498 = vmatprep.mubr.msk.f32.mxu1 %vm1700_vm2, %v11580_v31 }
 0x49e   : > { %9433 = vmatmul.mubr.msk.f32.gmra.mrb[50].mxu0 %vm1700_vm2, %v11592_v33  ;;  %9499 = vmatmul.mubr.msk.f32.gmra.mrb[114].mxu1 %vm1700_vm2, %v11592_v33 }
 0x49f   : > { %9435 = vmatprep.mubr.msk.f32.mxu0 %vm1700_vm2, %v11596_v62  ;;  %9501 = vmatprep.mubr.msk.f32.mxu1 %vm1700_vm2, %v11596_v62 }
 0x4a2   : > { %9436 = vmatmul.mubr.msk.f32.gmra.mrb[52].mxu0 %vm1700_vm2, %v11608_v44  ;;  %9502 = vmatmul.mubr.msk.f32.gmra.mrb[116].mxu1 %vm1700_vm2, %v11608_v44 }
 0x4a3   : > { %9438 = vmatprep.mubr.msk.f32.mxu0 %vm1700_vm2, %v11612_v54  ;;  %9504 = vmatprep.mubr.msk.f32.mxu1 %vm1700_vm2, %v11612_v54 }
 0x4a6   : > { %9439 = vmatmul.mubr.msk.f32.gmra.mrb[54].mxu0 %vm1700_vm2, %v11624_v51  ;;  %9505 = vmatmul.mubr.msk.f32.gmra.mrb[118].mxu1 %vm1700_vm2, %v11624_v51 }
 0x4a7   : > { %9441 = vmatprep.mubr.msk.f32.mxu0 %vm1700_vm2, %v11628_v55  ;;  %9507 = vmatprep.mubr.msk.f32.mxu1 %vm1700_vm2, %v11628_v55 }
 0x4aa   : > { %9442 = vmatmul.mubr.msk.f32.gmra.mrb[56].mxu0 %vm1700_vm2, %v11640_v37  ;;  %9508 = vmatmul.mubr.msk.f32.gmra.mrb[120].mxu1 %vm1700_vm2, %v11640_v37 }
 0x4ab   : > { %9444 = vmatprep.mubr.msk.f32.mxu0 %vm1700_vm2, %v11644_v42  ;;  %9510 = vmatprep.mubr.msk.f32.mxu1 %vm1700_vm2, %v11644_v42 }
 0x4ae   : > { %9445 = vmatmul.mubr.msk.f32.gmra.mrb[58].mxu0 %vm1700_vm2, %v11656_v52  ;;  %9511 = vmatmul.mubr.msk.f32.gmra.mrb[122].mxu1 %vm1700_vm2, %v11656_v52 }
 0x4af   : > { %9447 = vmatprep.mubr.msk.f32.mxu0 %vm1700_vm2, %v11660_v58  ;;  %9513 = vmatprep.mubr.msk.f32.mxu1 %vm1700_vm2, %v11660_v58 }
 0x4b2   : > { %9448 = vmatmul.mubr.msk.f32.gmra.mrb[60].mxu0 %vm1700_vm2, %v11672_v12  ;;  %9514 = vmatmul.mubr.msk.f32.gmra.mrb[124].mxu1 %vm1700_vm2, %v11672_v12 }
 0x4b3   : > { %9450 = vmatprep.mubr.msk.f32.mxu0 %vm1700_vm2, %v11674_v53  ;;  %9516 = vmatprep.mubr.msk.f32.mxu1 %vm1700_vm2, %v11674_v53 }
 0x4b6   : > { %9451 = vmatmul.mubr.msk.f32.gmra.mrb[62].mxu0 %vm1700_vm2, %v11684_v1  ;;  %9517 = vmatmul.mubr.msk.f32.gmra.mrb[126].mxu1 %vm1700_vm2, %v11684_v1 }
 0x4b7   : > { %9537 = vmatprep.mubr.msk.f32.mxu0 %vm1700_vm2, %v11390_v57  ;;  %9603 = vmatprep.mubr.msk.f32.mxu1 %vm1700_vm2, %v11390_v57 }
 0x4ba   : > { %9538 = vmatmul.mubr.msk.f32.vlgmr.msra.gmra.mrb[64].mxu0 %vm1700_vm2, %v11392_v15  ;;  %9604 = vmatmul.mubr.msk.f32.vlgmr.msra.gmra.mrb[128].mxu1 %vm1700_vm2, %v11392_v15 }
 0x4bb   : > { %9540 = vmatprep.mubr.msk.f32.mxu0 %vm1700_vm2, %v11398_v19  ;;  %9606 = vmatprep.mubr.msk.f32.mxu1 %vm1700_vm2, %v11398_v19 }
 0x4bc   : > { %10121 = vmatpush3.bf16.msra.mxu0 %v11512_v56  ;;  %10137 = vmatpush3.bf16.msra.mxu1 %v11514_v59  ;;  %v7423_v56 = vld [vmem:[%s13653_s8 + $0x158] sm:$0xff] }
 0x4bd   : > { %10123 = vmatprep.subr.bf16.mxu0 %v10122_v34  ;;  %10139 = vmatprep.subr.bf16.mxu1 %v10138_v5  ;;  %v7495_v59 = vld [vmem:[%s13653_s8 + $0x198] sm:$0xff]  ;;  %v10130_v23 = vpack.c.bf16 %v7423_v56, %v7422_v8  ;;  %v10178_v8 = vpack.c.bf16 %v7642_v50, %v7641_v6 }
 0x4be   : > { %9541 = vmatmul.mubr.msk.f32.gmra.mrb[66].mxu0 %vm1700_vm2, %v11426_v32  ;;  %9607 = vmatmul.mubr.msk.f32.gmra.mrb[130].mxu1 %vm1700_vm2, %v11426_v32  ;;  %v10146_v17 = vpack.c.bf16 %v7496_v11, %v7495_v59  ;;  %v7643_v56 = vld [vmem:[%s13653_s8 + $0x238] sm:$0xff]  ;;  %v7708_v59 = vld [vmem:[%s13653_s8 + $0x240] sm:$0xff]  ;;  %v7709_v11 = vld [vmem:[%s13653_s8 + $0x248] sm:$0xff] }
 0x4bf   : > { %9543 = vmatprep.mubr.msk.f32.mxu0 %vm1700_vm2, %v11432_v40  ;;  %9609 = vmatprep.mubr.msk.f32.mxu1 %vm1700_vm2, %v11432_v40 }
 0x4c0   : > { %10125 = vmatpush3.bf16.msra.mxu0 %v10122_v34  ;;  %10141 = vmatpush3.bf16.msra.mxu1 %v10138_v5  ;;  %v10158_v34 = vpack.c.bf16 %v7567_v41, %v7566_v48  ;;  %v10174_v5 = vpack.c.bf16 %v7640_v0, %v7639_v25  ;;  %v7894_v48 = vunpack.c.l.bf16 %v7893_v38  ;;  %v8468_v41 = vld [vmem:[%s12112_s0 + $0x8] sm:$0xff]  }
 0x4c1   : > { %10127 = vmatprep.subr.bf16.mxu0 %v10126_v10  ;;  %10143 = vmatprep.subr.bf16.mxu1 %v10142_v16  ;;  %v8484_v25 = vld [vmem:[%s12112_s0 + $0x88] sm:$0xff]   ;;  %v7899_v50 = vunpack.c.h.bf16 %v8468_v41 }
 0x4c2   : > { %9544 = vmatmul.mubr.msk.f32.gmra.mrb[68].mxu0 %vm1700_vm2, %v11456_v49  ;;  %9610 = vmatmul.mubr.msk.f32.gmra.mrb[132].mxu1 %vm1700_vm2, %v11456_v49 }
 0x4c3   : > { %9546 = vmatprep.mubr.msk.f32.mxu0 %vm1700_vm2, %v11460_v43  ;;  %9612 = vmatprep.mubr.msk.f32.mxu1 %vm1700_vm2, %v11460_v43 }
 0x4c4   : > { %10129 = vmatpush3.bf16.msra.mxu0 %v10126_v10  ;;  %10145 = vmatpush3.bf16.msra.mxu1 %v10142_v16  ;;  %v10162_v10 = vpack.c.bf16 %v7569_v3, %v7568_v4  ;;  %v7570_v16 = vld [vmem:[%s13653_s8 + $0x1f0] sm:$0xff] }
 0x4c5   : > { %10131 = vmatprep.subr.bf16.mxu0 %v10130_v23  ;;  %10147 = vmatprep.subr.bf16.mxu1 %v10146_v17 }
 0x4c6   : > { %9547 = vmatmul.mubr.msk.f32.gmra.mrb[70].mxu0 %vm1700_vm2, %v11472_v2  ;;  %9613 = vmatmul.mubr.msk.f32.gmra.mrb[134].mxu1 %vm1700_vm2, %v11472_v2 }
 0x4c7   : > { %9549 = vmatprep.mubr.msk.f32.mxu0 %vm1700_vm2, %v11476_v61  ;;  %9615 = vmatprep.mubr.msk.f32.mxu1 %vm1700_vm2, %v11476_v61 }
 0x4c8   : > { %10133 = vmatpush3.bf16.msra.mxu0 %v10130_v23  ;;  %10149 = vmatpush3.bf16.msra.mxu1 %v10146_v17  ;;  %v11966_v23 = vpack.c.bf16 %v7709_v11, %v7708_v59  ;;  %v7710_v17 = vld [vmem:[%s13653_s8 + $0x250] sm:$0xff]  ;;  %v7962_v59 = vunpack.c.l.bf16 %v8484_v25 }
 0x4c9   : > { %9667 = vmatprep.subr.mxu0 %v7424_v18  ;;  %9733 = vmatprep.subr.mxu1 %v7497_v20  ;;  %v8469_v11 = vld [vmem:[%s12112_s0 + $0x10] sm:$0xff]  }
 0x4ca   : > { %9550 = vmatmul.mubr.msk.f32.gmra.mrb[72].mxu0 %vm1700_vm2, %v11506_v7  ;;  %9616 = vmatmul.mubr.msk.f32.gmra.mrb[136].mxu1 %vm1700_vm2, %v11506_v7 }
 0x4cb   : > { %9552 = vmatprep.mubr.msk.f32.mxu0 %vm1700_vm2, %v11510_v14  ;;  %9618 = vmatprep.mubr.msk.f32.mxu1 %vm1700_vm2, %v11510_v14 }
 0x4cc   : > { %9668 = vmatpush3.msra.mxu0 %v7424_v18  ;;  %9734 = vmatpush3.msra.mxu1 %v7497_v20  ;;  %v7711_v18 = vld [vmem:[%s13653_s8 + $0x258] sm:$0xff] }
 0x4cd   : > { %10151 = vmatprep.subr.bf16.mxu0 %v11782_v30  ;;  %10167 = vmatprep.subr.bf16.mxu1 %v11784_v35  ;;  %v10186_v20 = vpack.c.bf16 %v7711_v18, %v7710_v17 }
 0x4ce   : > { %9553 = vmatmul.mubr.msk.f32.gmra.mrb[74].mxu0 %vm1700_vm2, %v11526_v9  ;;  %9619 = vmatmul.mubr.msk.f32.gmra.mrb[138].mxu1 %vm1700_vm2, %v11526_v9 }
 0x4cf   : > { %9555 = vmatprep.mubr.msk.f32.mxu0 %vm1700_vm2, %v11530_v22  ;;  %9621 = vmatprep.mubr.msk.f32.mxu1 %vm1700_vm2, %v11530_v22 }
 0x4d2   : > { %9556 = vmatmul.mubr.msk.f32.gmra.mrb[76].mxu0 %vm1700_vm2, %v11544_v13  ;;  %9622 = vmatmul.mubr.msk.f32.gmra.mrb[140].mxu1 %vm1700_vm2, %v11544_v13 }
 0x4d3   : > { %9558 = vmatprep.mubr.msk.f32.mxu0 %vm1700_vm2, %v11548_v24  ;;  %9624 = vmatprep.mubr.msk.f32.mxu1 %vm1700_vm2, %v11548_v24 }
 0x4d6   : > { %9559 = vmatmul.mubr.msk.f32.gmra.mrb[78].mxu0 %vm1700_vm2, %v11560_v63  ;;  %9625 = vmatmul.mubr.msk.f32.gmra.mrb[142].mxu1 %vm1700_vm2, %v11560_v63 }
 0x4d7   : > { %9561 = vmatprep.mubr.msk.f32.mxu0 %vm1700_vm2, %v11564_v46  ;;  %9627 = vmatprep.mubr.msk.f32.mxu1 %vm1700_vm2, %v11564_v46 }
 0x4da   : > { %9562 = vmatmul.mubr.msk.f32.gmra.mrb[80].mxu0 %vm1700_vm2, %v11576_v28  ;;  %9628 = vmatmul.mubr.msk.f32.gmra.mrb[144].mxu1 %vm1700_vm2, %v11576_v28 }
 0x4db   : > { %9564 = vmatprep.mubr.msk.f32.mxu0 %vm1700_vm2, %v11580_v31  ;;  %9630 = vmatprep.mubr.msk.f32.mxu1 %vm1700_vm2, %v11580_v31 }
 0x4de   : > { %9565 = vmatmul.mubr.msk.f32.gmra.mrb[82].mxu0 %vm1700_vm2, %v11592_v33  ;;  %9631 = vmatmul.mubr.msk.f32.gmra.mrb[146].mxu1 %vm1700_vm2, %v11592_v33 }
 0x4df   : > { %9567 = vmatprep.mubr.msk.f32.mxu0 %vm1700_vm2, %v11596_v62  ;;  %9633 = vmatprep.mubr.msk.f32.mxu1 %vm1700_vm2, %v11596_v62 }
 0x4e2   : > { %9568 = vmatmul.mubr.msk.f32.gmra.mrb[84].mxu0 %vm1700_vm2, %v11608_v44  ;;  %9634 = vmatmul.mubr.msk.f32.gmra.mrb[148].mxu1 %vm1700_vm2, %v11608_v44 }
 0x4e3   : > { %9570 = vmatprep.mubr.msk.f32.mxu0 %vm1700_vm2, %v11612_v54  ;;  %9636 = vmatprep.mubr.msk.f32.mxu1 %vm1700_vm2, %v11612_v54 }
 0x4e6   : > { %9571 = vmatmul.mubr.msk.f32.gmra.mrb[86].mxu0 %vm1700_vm2, %v11624_v51  ;;  %9637 = vmatmul.mubr.msk.f32.gmra.mrb[150].mxu1 %vm1700_vm2, %v11624_v51 }
 0x4e7   : > { %9573 = vmatprep.mubr.msk.f32.mxu0 %vm1700_vm2, %v11628_v55  ;;  %9639 = vmatprep.mubr.msk.f32.mxu1 %vm1700_vm2, %v11628_v55 }
 0x4ea   : > { %9574 = vmatmul.mubr.msk.f32.gmra.mrb[88].mxu0 %vm1700_vm2, %v11640_v37  ;;  %9640 = vmatmul.mubr.msk.f32.gmra.mrb[152].mxu1 %vm1700_vm2, %v11640_v37 }
 0x4eb   : > { %9576 = vmatprep.mubr.msk.f32.mxu0 %vm1700_vm2, %v11644_v42  ;;  %9642 = vmatprep.mubr.msk.f32.mxu1 %vm1700_vm2, %v11644_v42 }
 0x4ee   : > { %9577 = vmatmul.mubr.msk.f32.gmra.mrb[90].mxu0 %vm1700_vm2, %v11656_v52  ;;  %9643 = vmatmul.mubr.msk.f32.gmra.mrb[154].mxu1 %vm1700_vm2, %v11656_v52 }
 0x4ef   : > { %9579 = vmatprep.mubr.msk.f32.mxu0 %vm1700_vm2, %v11660_v58  ;;  %9645 = vmatprep.mubr.msk.f32.mxu1 %vm1700_vm2, %v11660_v58 }
 0x4f2   : > { %9580 = vmatmul.mubr.msk.f32.gmra.mrb[92].mxu0 %vm1700_vm2, %v11672_v12  ;;  %9646 = vmatmul.mubr.msk.f32.gmra.mrb[156].mxu1 %vm1700_vm2, %v11672_v12 }
 0x4f3   : > { %9582 = vmatprep.mubr.msk.f32.mxu0 %vm1700_vm2, %v11674_v53  ;;  %9648 = vmatprep.mubr.msk.f32.mxu1 %vm1700_vm2, %v11674_v53 }
 0x4f6   : > { %9583 = vmatmul.mubr.msk.f32.gmra.mrb[94].mxu0 %vm1700_vm2, %v11684_v1  ;;  %9649 = vmatmul.mubr.msk.f32.gmra.mrb[158].mxu1 %vm1700_vm2, %v11684_v1 }
 0x4f7   : > { %9669 = vmatprep.mubr.msk.f32.mxu0 %vm1700_vm2, %v11390_v57  ;;  %9735 = vmatprep.mubr.msk.f32.mxu1 %vm1700_vm2, %v11390_v57 }
 0x4fa   : > { %9670 = vmatmul.mubr.msk.f32.vlgmr.msra.gmra.mrb[96].mxu0 %vm1700_vm2, %v11392_v15  ;;  %9736 = vmatmul.mubr.msk.f32.vlgmr.msra.gmra.mrb[160].mxu1 %vm1700_vm2, %v11392_v15 }
 0x4fb   : > { %9672 = vmatprep.mubr.msk.f32.mxu0 %vm1700_vm2, %v11398_v19  ;;  %9738 = vmatprep.mubr.msk.f32.mxu1 %vm1700_vm2, %v11398_v19 }
 0x4fc   : > { %10153 = vmatpush3.bf16.msra.mxu0 %v11782_v30  ;;  %10169 = vmatpush3.bf16.msra.mxu1 %v11784_v35  ;;  %v7715_v30 = vld [vmem:[%s13653_s8 + $0x278] sm:$0xff] }
 0x4fd   : > { %10155 = vmatprep.subr.bf16.mxu0 %v10154_v47  ;;  %10171 = vmatprep.subr.bf16.mxu1 %v10170_v60  ;;  %v10194_v35 = vpack.c.bf16 %v7715_v30, %v7714_v29 }
 0x4fe   : > { %9673 = vmatmul.mubr.msk.f32.gmra.mrb[98].mxu0 %vm1700_vm2, %v11426_v32  ;;  %9739 = vmatmul.mubr.msk.f32.gmra.mrb[162].mxu1 %vm1700_vm2, %v11426_v32 }
 0x4ff   : > { %9675 = vmatprep.mubr.msk.f32.mxu0 %vm1700_vm2, %v11432_v40  ;;  %9741 = vmatprep.mubr.msk.f32.mxu1 %vm1700_vm2, %v11432_v40 }
 0x500   : > { %10157 = vmatpush3.bf16.msra.mxu0 %v10154_v47  ;;  %10173 = vmatpush3.bf16.msra.mxu1 %v10170_v60  ;;  %v7959_v47 = vunpack.c.h.bf16 %v8483_v39  ;;  %v7958_v60 = vunpack.c.l.bf16 %v8483_v39 }
 0x501   : > { %10159 = vmatprep.subr.bf16.mxu0 %v10158_v34  ;;  %10175 = vmatprep.subr.bf16.mxu1 %v10174_v5 }
 0x502   : > { %9676 = vmatmul.mubr.msk.f32.gmra.mrb[100].mxu0 %vm1700_vm2, %v11456_v49  ;;  %9742 = vmatmul.mubr.msk.f32.gmra.mrb[164].mxu1 %vm1700_vm2, %v11456_v49 }
 0x503   : > { %9678 = vmatprep.mubr.msk.f32.mxu0 %vm1700_vm2, %v11460_v43  ;;  %9744 = vmatprep.mubr.msk.f32.mxu1 %vm1700_vm2, %v11460_v43 }
 0x504   : > { %10161 = vmatpush3.bf16.msra.mxu0 %v10158_v34  ;;  %10177 = vmatpush3.bf16.msra.mxu1 %v10174_v5 }
 0x505   : > { %10163 = vmatprep.subr.bf16.mxu0 %v10162_v10  ;;  %10179 = vmatprep.subr.bf16.mxu1 %v10178_v8 }
 0x506   : > { %9679 = vmatmul.mubr.msk.f32.gmra.mrb[102].mxu0 %vm1700_vm2, %v11472_v2  ;;  %9745 = vmatmul.mubr.msk.f32.gmra.mrb[166].mxu1 %vm1700_vm2, %v11472_v2 }
 0x507   : > { %9681 = vmatprep.mubr.msk.f32.mxu0 %vm1700_vm2, %v11476_v61  ;;  %9747 = vmatprep.mubr.msk.f32.mxu1 %vm1700_vm2, %v11476_v61 }
 0x508   : > { %10165 = vmatpush3.bf16.msra.mxu0 %v10162_v10  ;;  %10181 = vmatpush3.bf16.msra.mxu1 %v10178_v8  ;;  %v7963_v10 = vunpack.c.h.bf16 %v8484_v25 }
 0x509   : > { %9799 = vmatprep.subr.mxu0 %v7570_v16  ;;  %9865 = vmatprep.subr.mxu1 %v7643_v56 }
 0x50a   : > { %9682 = vmatmul.mubr.msk.f32.gmra.mrb[104].mxu0 %vm1700_vm2, %v11506_v7  ;;  %9748 = vmatmul.mubr.msk.f32.gmra.mrb[168].mxu1 %vm1700_vm2, %v11506_v7 }
 0x50b   : > { %9684 = vmatprep.mubr.msk.f32.mxu0 %vm1700_vm2, %v11510_v14  ;;  %9750 = vmatprep.mubr.msk.f32.mxu1 %vm1700_vm2, %v11510_v14 }
 0x50c   : > { %9800 = vmatpush3.msra.mxu0 %v7570_v16  ;;  %9866 = vmatpush3.msra.mxu1 %v7643_v56  ;;  %v7898_v56 = vunpack.c.l.bf16 %v8468_v41 }
 0x50d   : > { %10183 = vmatprep.subr.bf16.mxu0 %v11966_v23 }
 0x50e   : > { %9685 = vmatmul.mubr.msk.f32.gmra.mrb[106].mxu0 %vm1700_vm2, %v11526_v9  ;;  %9751 = vmatmul.mubr.msk.f32.gmra.mrb[170].mxu1 %vm1700_vm2, %v11526_v9 }
 0x50f   : > { %9687 = vmatprep.mubr.msk.f32.mxu0 %vm1700_vm2, %v11530_v22  ;;  %9753 = vmatprep.mubr.msk.f32.mxu1 %vm1700_vm2, %v11530_v22 }
 0x512   : > { %9688 = vmatmul.mubr.msk.f32.gmra.mrb[108].mxu0 %vm1700_vm2, %v11544_v13  ;;  %9754 = vmatmul.mubr.msk.f32.gmra.mrb[172].mxu1 %vm1700_vm2, %v11544_v13 }
 0x513   : > { %9690 = vmatprep.mubr.msk.f32.mxu0 %vm1700_vm2, %v11548_v24  ;;  %9756 = vmatprep.mubr.msk.f32.mxu1 %vm1700_vm2, %v11548_v24 }
 0x516   : > { %9691 = vmatmul.mubr.msk.f32.gmra.mrb[110].mxu0 %vm1700_vm2, %v11560_v63  ;;  %9757 = vmatmul.mubr.msk.f32.gmra.mrb[174].mxu1 %vm1700_vm2, %v11560_v63 }
 0x517   : > { %9693 = vmatprep.mubr.msk.f32.mxu0 %vm1700_vm2, %v11564_v46  ;;  %9759 = vmatprep.mubr.msk.f32.mxu1 %vm1700_vm2, %v11564_v46 }
 0x51a   : > { %9694 = vmatmul.mubr.msk.f32.gmra.mrb[112].mxu0 %vm1700_vm2, %v11576_v28  ;;  %9760 = vmatmul.mubr.msk.f32.gmra.mrb[176].mxu1 %vm1700_vm2, %v11576_v28 }
 0x51b   : > { %9696 = vmatprep.mubr.msk.f32.mxu0 %vm1700_vm2, %v11580_v31  ;;  %9762 = vmatprep.mubr.msk.f32.mxu1 %vm1700_vm2, %v11580_v31 }
 0x51e   : > { %9697 = vmatmul.mubr.msk.f32.gmra.mrb[114].mxu0 %vm1700_vm2, %v11592_v33  ;;  %9763 = vmatmul.mubr.msk.f32.gmra.mrb[178].mxu1 %vm1700_vm2, %v11592_v33 }
 0x51f   : > { %9699 = vmatprep.mubr.msk.f32.mxu0 %vm1700_vm2, %v11596_v62  ;;  %9765 = vmatprep.mubr.msk.f32.mxu1 %vm1700_vm2, %v11596_v62 }
 0x522   : > { %9700 = vmatmul.mubr.msk.f32.gmra.mrb[116].mxu0 %vm1700_vm2, %v11608_v44  ;;  %9766 = vmatmul.mubr.msk.f32.gmra.mrb[180].mxu1 %vm1700_vm2, %v11608_v44 }
 0x523   : > { %9702 = vmatprep.mubr.msk.f32.mxu0 %vm1700_vm2, %v11612_v54  ;;  %9768 = vmatprep.mubr.msk.f32.mxu1 %vm1700_vm2, %v11612_v54 }
 0x526   : > { %9703 = vmatmul.mubr.msk.f32.gmra.mrb[118].mxu0 %vm1700_vm2, %v11624_v51  ;;  %9769 = vmatmul.mubr.msk.f32.gmra.mrb[182].mxu1 %vm1700_vm2, %v11624_v51 }
 0x527   : > { %9705 = vmatprep.mubr.msk.f32.mxu0 %vm1700_vm2, %v11628_v55  ;;  %9771 = vmatprep.mubr.msk.f32.mxu1 %vm1700_vm2, %v11628_v55 }
 0x52a   : > { %9706 = vmatmul.mubr.msk.f32.gmra.mrb[120].mxu0 %vm1700_vm2, %v11640_v37  ;;  %9772 = vmatmul.mubr.msk.f32.gmra.mrb[184].mxu1 %vm1700_vm2, %v11640_v37 }
 0x52b   : > { %9708 = vmatprep.mubr.msk.f32.mxu0 %vm1700_vm2, %v11644_v42  ;;  %9774 = vmatprep.mubr.msk.f32.mxu1 %vm1700_vm2, %v11644_v42 }
 0x52e   : > { %9709 = vmatmul.mubr.msk.f32.gmra.mrb[122].mxu0 %vm1700_vm2, %v11656_v52  ;;  %9775 = vmatmul.mubr.msk.f32.gmra.mrb[186].mxu1 %vm1700_vm2, %v11656_v52 }
 0x52f   : > { %9711 = vmatprep.mubr.msk.f32.mxu0 %vm1700_vm2, %v11660_v58  ;;  %9777 = vmatprep.mubr.msk.f32.mxu1 %vm1700_vm2, %v11660_v58 }
 0x532   : > { %9712 = vmatmul.mubr.msk.f32.gmra.mrb[124].mxu0 %vm1700_vm2, %v11672_v12  ;;  %9778 = vmatmul.mubr.msk.f32.gmra.mrb[188].mxu1 %vm1700_vm2, %v11672_v12 }
 0x533   : > { %9714 = vmatprep.mubr.msk.f32.mxu0 %vm1700_vm2, %v11674_v53  ;;  %9780 = vmatprep.mubr.msk.f32.mxu1 %vm1700_vm2, %v11674_v53 }
 0x536   : > { %9715 = vmatmul.mubr.msk.f32.gmra.mrb[126].mxu0 %vm1700_vm2, %v11684_v1  ;;  %9781 = vmatmul.mubr.msk.f32.gmra.mrb[190].mxu1 %vm1700_vm2, %v11684_v1 }
 0x537   : > { %9801 = vmatprep.mubr.msk.f32.mxu0 %vm1700_vm2, %v11390_v57  ;;  %9867 = vmatprep.mubr.msk.f32.mxu1 %vm1700_vm2, %v11390_v57 }
 0x53a   : > { %9802 = vmatmul.mubr.msk.f32.vlgmr.msra.gmra.mrb[128].mxu0 %vm1700_vm2, %v11392_v15  ;;  %9868 = vmatmul.mubr.msk.f32.vlgmr.msra.gmra.mrb[192].mxu1 %vm1700_vm2, %v11392_v15 }
 0x53b   : > { %9804 = vmatprep.mubr.msk.f32.mxu0 %vm1700_vm2, %v11398_v19  ;;  %9870 = vmatprep.mubr.msk.f32.mxu1 %vm1700_vm2, %v11398_v19 }
 0x53c   : > { %10185 = vmatpush3.bf16.msra.mxu0 %v11966_v23  ;;  %v8485_v23 = vld [vmem:[%s12112_s0 + $0x90] sm:$0xff]  }
 0x53d   : > { %10187 = vmatprep.subr.bf16.mxu0 %v10186_v20 }
 0x53e   : > { %9805 = vmatmul.mubr.msk.f32.gmra.mrb[130].mxu0 %vm1700_vm2, %v11426_v32  ;;  %9871 = vmatmul.mubr.msk.f32.gmra.mrb[194].mxu1 %vm1700_vm2, %v11426_v32 }
 0x53f   : > { %9807 = vmatprep.mubr.msk.f32.mxu0 %vm1700_vm2, %v11432_v40  ;;  %9873 = vmatprep.mubr.msk.f32.mxu1 %vm1700_vm2, %v11432_v40 }
 0x540   : > { %10189 = vmatpush3.bf16.msra.mxu0 %v10186_v20 }
 0x541   : > { %10191 = vmatprep.subr.bf16.mxu0 %v10190_v27 }
 0x542   : > { %9808 = vmatmul.mubr.msk.f32.gmra.mrb[132].mxu0 %vm1700_vm2, %v11456_v49  ;;  %9874 = vmatmul.mubr.msk.f32.gmra.mrb[196].mxu1 %vm1700_vm2, %v11456_v49 }
 0x543   : > { %9810 = vmatprep.mubr.msk.f32.mxu0 %vm1700_vm2, %v11460_v43  ;;  %9876 = vmatprep.mubr.msk.f32.mxu1 %vm1700_vm2, %v11460_v43 }
 0x544   : > { %10193 = vmatpush3.bf16.msra.mxu0 %v10190_v27 }
 0x545   : > { %10195 = vmatprep.subr.bf16.mxu0 %v10194_v35 }
 0x546   : > { %9811 = vmatmul.mubr.msk.f32.gmra.mrb[134].mxu0 %vm1700_vm2, %v11472_v2  ;;  %9877 = vmatmul.mubr.msk.f32.gmra.mrb[198].mxu1 %vm1700_vm2, %v11472_v2 }
 0x547   : > { %9813 = vmatprep.mubr.msk.f32.mxu0 %vm1700_vm2, %v11476_v61  ;;  %9879 = vmatprep.mubr.msk.f32.mxu1 %vm1700_vm2, %v11476_v61 }
 0x548   : > { %10197 = vmatpush3.bf16.msra.mxu0 %v10194_v35  ;;  %v7903_v35 = vunpack.c.h.bf16 %v8469_v11 }
 0x549   : > { %9931 = vmatprep.subr.mxu0 %v7716_v36 }
 0x54a   : > { %9814 = vmatmul.mubr.msk.f32.gmra.mrb[136].mxu0 %vm1700_vm2, %v11506_v7  ;;  %9880 = vmatmul.mubr.msk.f32.gmra.mrb[200].mxu1 %vm1700_vm2, %v11506_v7 }
 0x54b   : > { %9816 = vmatprep.mubr.msk.f32.mxu0 %vm1700_vm2, %v11510_v14  ;;  %9882 = vmatprep.mubr.msk.f32.mxu1 %vm1700_vm2, %v11510_v14 }
 0x54c   : > { %9932 = vmatpush3.msra.mxu0 %v7716_v36  ;;  %v7967_v36 = vunpack.c.h.bf16 %v8485_v23 }
 0x54d   : > { %v9407_v0 = vpop.f32.mrb[32].mxu0  ;;  %v9473_v34 = vpop.f32.mrb[96].mxu1 }
 0x54e   : > { %v3006_v4 = vmul.f32 %v9407_v0, %v7895_v45  ;;  %v3338_v5 = vmul.f32 %v9473_v34, %v7959_v47  ;;  %v2846_v3 = vpop.f32.mrb[33].mxu0  ;;  %v3113_v6 = vpop.f32.mrb[97].mxu1  ;;  %9817 = vmatmul.mubr.msk.f32.gmra.mrb[138].mxu0 %vm1700_vm2, %v11526_v9  ;;  %9883 = vmatmul.mubr.msk.f32.gmra.mrb[202].mxu1 %vm1700_vm2, %v11526_v9  ;;  %v7902_v45 = vunpack.c.l.bf16 %v8469_v11  ;;  %v7966_v47 = vunpack.c.l.bf16 %v8485_v23  ;;  %v8471_v11 = vld [vmem:[%s12112_s0 + $0x20] sm:$0xff]  }
 0x54f   : > { %v3005_v8 = vmul.f32 %v7894_v48, %v2846_v3  ;;  %v3337_v16 = vmul.f32 %v7958_v60, %v3113_v6  ;;  %9819 = vmatprep.mubr.msk.f32.mxu0 %vm1700_vm2, %v11530_v22  ;;  %9885 = vmatprep.mubr.msk.f32.mxu1 %vm1700_vm2, %v11530_v22  ;;  %v8470_v48 = vld [vmem:[%s12112_s0 + $0x18] sm:$0xff]   ;;  %v8487_v23 = vld [vmem:[%s12112_s0 + $0xa0] sm:$0xff]  }
 0x550   : > { %v12147_v17 = vadd.f32 %v3338_v5, %v3006_v4  ;;  %v8486_v60 = vld [vmem:[%s12112_s0 + $0x98] sm:$0xff]  }
 0x551   : > { %v12149_v18 = vadd.f32 %v3337_v16, %v3005_v8  ;;  %v9410_v20 = vpop.f32.mrb[34].mxu0  ;;  %v9476_v21 = vpop.f32.mrb[98].mxu1 }
 0x552   : > { %v3008_v26 = vmul.f32 %v9410_v20, %v7899_v50  ;;  %v3340_v27 = vmul.f32 %v9476_v21, %v7963_v10  ;;  %v2856_v29 = vpop.f32.mrb[35].mxu0  ;;  %v3123_v30 = vpop.f32.mrb[99].mxu1  ;;  %9820 = vmatmul.mubr.msk.f32.gmra.mrb[140].mxu0 %vm1700_vm2, %v11544_v13  ;;  %9886 = vmatmul.mubr.msk.f32.gmra.mrb[204].mxu1 %vm1700_vm2, %v11544_v13  ;;  %v7907_v50 = vunpack.c.h.bf16 %v8470_v48  ;;  %v7971_v10 = vunpack.c.h.bf16 %v8486_v60 }
 0x553   : > { %v3007_v38 = vmul.f32 %v7898_v56, %v2856_v29  ;;  %v3339_v39 = vmul.f32 %v7962_v59, %v3123_v30  ;;  %9822 = vmatprep.mubr.msk.f32.mxu0 %vm1700_vm2, %v11548_v24  ;;  %9888 = vmatprep.mubr.msk.f32.mxu1 %vm1700_vm2, %v11548_v24  ;;  %v7906_v56 = vunpack.c.l.bf16 %v8470_v48  ;;  %v7970_v59 = vunpack.c.l.bf16 %v8486_v60 }
 0x554   : > { %v12161_v41 = vadd.f32 %v3340_v27, %v3008_v26  ;;  %v7910_v48 = vunpack.c.l.bf16 %v8471_v11  ;;  %v7974_v60 = vunpack.c.l.bf16 %v8487_v23 }
 0x555   : > { %v12163_v25 = vadd.f32 %v3339_v39, %v3007_v38  ;;  %v9413_v0 = vpop.f32.mrb[36].mxu0  ;;  %v9479_v34 = vpop.f32.mrb[100].mxu1  ;;  %v7911_v38 = vunpack.c.h.bf16 %v8471_v11  ;;  %v7975_v39 = vunpack.c.h.bf16 %v8487_v23 }
 0x556   : > { %v3010_v4 = vmul.f32 %v9413_v0, %v7903_v35  ;;  %v3342_v5 = vmul.f32 %v9479_v34, %v7967_v36  ;;  %v2866_v3 = vpop.f32.mrb[37].mxu0  ;;  %v3133_v6 = vpop.f32.mrb[101].mxu1  ;;  %9823 = vmatmul.mubr.msk.f32.gmra.mrb[142].mxu0 %vm1700_vm2, %v11560_v63  ;;  %9889 = vmatmul.mubr.msk.f32.gmra.mrb[206].mxu1 %vm1700_vm2, %v11560_v63  ;;  %v8472_v0 = vld [vmem:[%s12112_s0 + $0x28] sm:$0xff]  }
 0x557   : > { %v3009_v8 = vmul.f32 %v7902_v45, %v2866_v3  ;;  %v3341_v16 = vmul.f32 %v7966_v47, %v3133_v6  ;;  %9825 = vmatprep.mubr.msk.f32.mxu0 %vm1700_vm2, %v11564_v46  ;;  %9891 = vmatprep.mubr.msk.f32.mxu1 %vm1700_vm2, %v11564_v46  ;;  %v8488_v34 = vld [vmem:[%s12112_s0 + $0xa8] sm:$0xff]  }
 0x558   : > { %v12175_v20 = vadd.f32 %v3342_v5, %v3010_v4 }
 0x559   : > { %v12177_v21 = vadd.f32 %v3341_v16, %v3009_v8  ;;  %v9416_v26 = vpop.f32.mrb[38].mxu0  ;;  %v9482_v27 = vpop.f32.mrb[102].mxu1 }
 0x55a   : > { %v3012_v29 = vmul.f32 %v9416_v26, %v7907_v50  ;;  %v3344_v30 = vmul.f32 %v9482_v27, %v7971_v10  ;;  %v2876_v35 = vpop.f32.mrb[39].mxu0  ;;  %v3143_v36 = vpop.f32.mrb[103].mxu1  ;;  %9826 = vmatmul.mubr.msk.f32.gmra.mrb[144].mxu0 %vm1700_vm2, %v11576_v28  ;;  %9892 = vmatmul.mubr.msk.f32.gmra.mrb[208].mxu1 %vm1700_vm2, %v11576_v28  ;;  %v7914_v26 = vunpack.c.l.bf16 %v8472_v0  ;;  %v7978_v27 = vunpack.c.l.bf16 %v8488_v34 }
 0x55b   : > { %v3011_v45 = vmul.f32 %v7906_v56, %v2876_v35  ;;  %v3343_v47 = vmul.f32 %v7970_v59, %v3143_v36  ;;  %9828 = vmatprep.mubr.msk.f32.mxu0 %vm1700_vm2, %v11580_v31  ;;  %9894 = vmatprep.mubr.msk.f32.mxu1 %vm1700_vm2, %v11580_v31  ;;  %v7915_v56 = vunpack.c.h.bf16 %v8472_v0  ;;  %v7979_v59 = vunpack.c.h.bf16 %v8488_v34 }
 0x55c   : > { %v12189_v4 = vadd.f32 %v3344_v30, %v3012_v29  ;;  %v8473_v29 = vld [vmem:[%s12112_s0 + $0x30] sm:$0xff]  }
 0x55d   : > { %v12191_v5 = vadd.f32 %v3343_v47, %v3011_v45  ;;  %v9419_v3 = vpop.f32.mrb[40].mxu0  ;;  %v9485_v6 = vpop.f32.mrb[104].mxu1  ;;  %v8489_v30 = vld [vmem:[%s12112_s0 + $0xb0] sm:$0xff]   ;;  %v7919_v0 = vunpack.c.h.bf16 %v8473_v29 }
 0x55e   : > { %v3014_v50 = vmul.f32 %v9419_v3, %v7911_v38  ;;  %v3346_v10 = vmul.f32 %v9485_v6, %v7975_v39  ;;  %v2886_v8 = vpop.f32.mrb[41].mxu0  ;;  %v3153_v16 = vpop.f32.mrb[105].mxu1  ;;  %9829 = vmatmul.mubr.msk.f32.gmra.mrb[146].mxu0 %vm1700_vm2, %v11592_v33  ;;  %9895 = vmatmul.mubr.msk.f32.gmra.mrb[210].mxu1 %vm1700_vm2, %v11592_v33  ;;  %v7983_v34 = vunpack.c.h.bf16 %v8489_v30 }
 0x55f   : > { %v3013_v11 = vmul.f32 %v7910_v48, %v2886_v8  ;;  %v3345_v23 = vmul.f32 %v7974_v60, %v3153_v16  ;;  %9831 = vmatprep.mubr.msk.f32.mxu0 %vm1700_vm2, %v11596_v62  ;;  %9897 = vmatprep.mubr.msk.f32.mxu1 %vm1700_vm2, %v11596_v62  ;;  %v8474_v8 = vld [vmem:[%s12112_s0 + $0x38] sm:$0xff]  }
 0x560   : > { %v12203_v35 = vadd.f32 %v3346_v10, %v3014_v50  ;;  %v7918_v50 = vunpack.c.l.bf16 %v8473_v29  ;;  %v7982_v10 = vunpack.c.l.bf16 %v8489_v30  ;;  %v8490_v16 = vld [vmem:[%s12112_s0 + $0xb8] sm:$0xff]   ;;  %v7923_v29 = vunpack.c.h.bf16 %v8474_v8 }
 0x561   : > { %v12205_v36 = vadd.f32 %v3345_v23, %v3013_v11  ;;  %v9422_v38 = vpop.f32.mrb[42].mxu0  ;;  %v9488_v39 = vpop.f32.mrb[106].mxu1  ;;  %v7987_v30 = vunpack.c.h.bf16 %v8490_v16 }
 0x562   : > { %v3016_v45 = vmul.f32 %v9422_v38, %v7915_v56  ;;  %v3348_v47 = vmul.f32 %v9488_v39, %v7979_v59  ;;  %v2896_v48 = vpop.f32.mrb[43].mxu0  ;;  %v3163_v60 = vpop.f32.mrb[107].mxu1  ;;  %9832 = vmatmul.mubr.msk.f32.gmra.mrb[148].mxu0 %vm1700_vm2, %v11608_v44  ;;  %9898 = vmatmul.mubr.msk.f32.gmra.mrb[212].mxu1 %vm1700_vm2, %v11608_v44 }
 0x563   : > { %v3015_v3 = vmul.f32 %v7914_v26, %v2896_v48  ;;  %v3347_v6 = vmul.f32 %v7978_v27, %v3163_v60  ;;  %9834 = vmatprep.mubr.msk.f32.mxu0 %vm1700_vm2, %v11612_v54  ;;  %9900 = vmatprep.mubr.msk.f32.mxu1 %vm1700_vm2, %v11612_v54  ;;  %v7922_v48 = vunpack.c.l.bf16 %v8474_v8  ;;  %v7986_v60 = vunpack.c.l.bf16 %v8490_v16 }
 0x564   : > { %v12217_v56 = vadd.f32 %v3348_v47, %v3016_v45 }
 0x565   : > { %v12219_v59 = vadd.f32 %v3347_v6, %v3015_v3  ;;  %v9425_v11 = vpop.f32.mrb[44].mxu0  ;;  %v9491_v23 = vpop.f32.mrb[108].mxu1 }
 0x566   : > { %v3018_v26 = vmul.f32 %v9425_v11, %v7919_v0  ;;  %v3350_v27 = vmul.f32 %v9491_v23, %v7983_v34  ;;  %v2906_v38 = vpop.f32.mrb[45].mxu0  ;;  %v3173_v39 = vpop.f32.mrb[109].mxu1  ;;  %9835 = vmatmul.mubr.msk.f32.gmra.mrb[150].mxu0 %vm1700_vm2, %v11624_v51  ;;  %9901 = vmatmul.mubr.msk.f32.gmra.mrb[214].mxu1 %vm1700_vm2, %v11624_v51  ;;  %v8475_v0 = vld [vmem:[%s12112_s0 + $0x40] sm:$0xff]  }
 0x567   : > { %v3017_v45 = vmul.f32 %v7918_v50, %v2906_v38  ;;  %v3349_v47 = vmul.f32 %v7982_v10, %v3173_v39  ;;  %9837 = vmatprep.mubr.msk.f32.mxu0 %vm1700_vm2, %v11628_v55  ;;  %9903 = vmatprep.mubr.msk.f32.mxu1 %vm1700_vm2, %v11628_v55  ;;  %v8491_v34 = vld [vmem:[%s12112_s0 + $0xc0] sm:$0xff]   ;;  %v7927_v8 = vunpack.c.h.bf16 %v8475_v0 }
 0x568   : > { %v12231_v3 = vadd.f32 %v3350_v27, %v3018_v26  ;;  %v7991_v16 = vunpack.c.h.bf16 %v8491_v34 }
 0x569   : > { %v12233_v6 = vadd.f32 %v3349_v47, %v3017_v45  ;;  %v9428_v11 = vpop.f32.mrb[46].mxu0  ;;  %v9494_v23 = vpop.f32.mrb[110].mxu1  ;;  %v8476_v45 = vld [vmem:[%s12112_s0 + $0x48] sm:$0xff]  }
 0x56a   : > { %v3020_v50 = vmul.f32 %v9428_v11, %v7923_v29  ;;  %v3352_v10 = vmul.f32 %v9494_v23, %v7987_v30  ;;  %v2916_v38 = vpop.f32.mrb[47].mxu0  ;;  %v3183_v39 = vpop.f32.mrb[111].mxu1  ;;  %9838 = vmatmul.mubr.msk.f32.gmra.mrb[152].mxu0 %vm1700_vm2, %v11640_v37  ;;  %9904 = vmatmul.mubr.msk.f32.gmra.mrb[216].mxu1 %vm1700_vm2, %v11640_v37  ;;  %v7926_v29 = vunpack.c.l.bf16 %v8475_v0  ;;  %v7990_v30 = vunpack.c.l.bf16 %v8491_v34  ;;  %v8492_v47 = vld [vmem:[%s12112_s0 + $0xc8] sm:$0xff]  }
 0x56b   : > { %13702 = vst [vmem:[#allocation9_spill] sm:$0xff] %v12233_v6  ;;  %v3019_v26 = vmul.f32 %v7922_v48, %v2916_v38  ;;  %v3351_v27 = vmul.f32 %v7986_v60, %v3183_v39  ;;  %9840 = vmatprep.mubr.msk.f32.mxu0 %vm1700_vm2, %v11644_v42  ;;  %9906 = vmatprep.mubr.msk.f32.mxu1 %vm1700_vm2, %v11644_v42  ;;  %v7931_v0 = vunpack.c.h.bf16 %v8476_v45  ;;  %v7995_v34 = vunpack.c.h.bf16 %v8492_v47 }
 0x56c   : > { %v12245_v11 = vadd.f32 %v3352_v10, %v3020_v50 }
 0x56d   : > { %v12247_v23 = vadd.f32 %v3351_v27, %v3019_v26  ;;  %v9431_v6 = vpop.f32.mrb[48].mxu0  ;;  %v9497_v37 = vpop.f32.mrb[112].mxu1 }
 0x56e   : > { %v3022_v48 = vmul.f32 %v9431_v6, %v7927_v8  ;;  %v3354_v60 = vmul.f32 %v9497_v37, %v7991_v16  ;;  %v2926_v38 = vpop.f32.mrb[49].mxu0  ;;  %v3193_v39 = vpop.f32.mrb[113].mxu1  ;;  %9841 = vmatmul.mubr.msk.f32.gmra.mrb[154].mxu0 %vm1700_vm2, %v11656_v52  ;;  %9907 = vmatmul.mubr.msk.f32.gmra.mrb[218].mxu1 %vm1700_vm2, %v11656_v52  ;;  %v7930_v6 = vunpack.c.l.bf16 %v8476_v45  ;;  %v7994_v37 = vunpack.c.l.bf16 %v8492_v47  ;;  %v8477_v8 = vld [vmem:[%s12112_s0 + $0x50] sm:$0xff]  }
 0x56f   : > { %13703 = vst [vmem:[#allocation10_spill] sm:$0xff] %v12247_v23  ;;  %v3021_v50 = vmul.f32 %v7926_v29, %v2926_v38  ;;  %v3353_v10 = vmul.f32 %v7990_v30, %v3193_v39  ;;  %9843 = vmatprep.mubr.msk.f32.mxu0 %vm1700_vm2, %v11660_v58  ;;  %9909 = vmatprep.mubr.msk.f32.mxu1 %vm1700_vm2, %v11660_v58  ;;  %v8493_v16 = vld [vmem:[%s12112_s0 + $0xd0] sm:$0xff]   ;;  %v7935_v45 = vunpack.c.h.bf16 %v8477_v8 }
 0x570   : > { %v12259_v26 = vadd.f32 %v3354_v60, %v3022_v48  ;;  %v7999_v47 = vunpack.c.h.bf16 %v8493_v16 }
 0x571   : > { %v12261_v27 = vadd.f32 %v3353_v10, %v3021_v50  ;;  %v9434_v23 = vpop.f32.mrb[50].mxu0  ;;  %v9500_v52 = vpop.f32.mrb[114].mxu1 }
 0x572   : > { %13704 = vst [vmem:[#allocation11_spill] sm:$0xff] %v12259_v26  ;;  %v3024_v29 = vmul.f32 %v9434_v23, %v7931_v0  ;;  %v3356_v30 = vmul.f32 %v9500_v52, %v7995_v34  ;;  %v2936_v38 = vpop.f32.mrb[51].mxu0  ;;  %v3203_v39 = vpop.f32.mrb[115].mxu1  ;;  %9844 = vmatmul.mubr.msk.f32.gmra.mrb[156].mxu0 %vm1700_vm2, %v11672_v12  ;;  %9910 = vmatmul.mubr.msk.f32.gmra.mrb[220].mxu1 %vm1700_vm2, %v11672_v12  ;;  %v7934_v23 = vunpack.c.l.bf16 %v8477_v8  ;;  %v7998_v52 = vunpack.c.l.bf16 %v8493_v16  ;;  %v8478_v0 = vld [vmem:[%s12112_s0 + $0x58] sm:$0xff]  }
 0x573   : > { %13705 = vst [vmem:[#allocation12_spill] sm:$0xff] %v12261_v27  ;;  %v3023_v48 = vmul.f32 %v7930_v6, %v2936_v38  ;;  %v3355_v60 = vmul.f32 %v7994_v37, %v3203_v39  ;;  %9846 = vmatprep.mubr.msk.f32.mxu0 %vm1700_vm2, %v11674_v53  ;;  %9912 = vmatprep.mubr.msk.f32.mxu1 %vm1700_vm2, %v11674_v53  ;;  %v8494_v34 = vld [vmem:[%s12112_s0 + $0xd8] sm:$0xff]   ;;  %v7939_v8 = vunpack.c.h.bf16 %v8478_v0 }
 0x574   : > { %v12273_v50 = vadd.f32 %v3356_v30, %v3024_v29  ;;  %v8003_v16 = vunpack.c.h.bf16 %v8494_v34 }
 0x575   : > { %v12275_v10 = vadd.f32 %v3355_v60, %v3023_v48  ;;  %v9437_v12 = vpop.f32.mrb[52].mxu0  ;;  %v9503_v27 = vpop.f32.mrb[116].mxu1  ;;  %v7938_v48 = vunpack.c.l.bf16 %v8478_v0  ;;  %v8002_v60 = vunpack.c.l.bf16 %v8494_v34 }
 0x576   : > { %13706 = vst [vmem:[#allocation13_spill] sm:$0xff] %v12273_v50  ;;  %v3026_v6 = vmul.f32 %v9437_v12, %v7935_v45  ;;  %v3358_v37 = vmul.f32 %v9503_v27, %v7999_v47  ;;  %v2946_v38 = vpop.f32.mrb[53].mxu0  ;;  %v3213_v39 = vpop.f32.mrb[117].mxu1  ;;  %9847 = vmatmul.mubr.msk.f32.gmra.mrb[158].mxu0 %vm1700_vm2, %v11684_v1  ;;  %9913 = vmatmul.mubr.msk.f32.gmra.mrb[222].mxu1 %vm1700_vm2, %v11684_v1  ;;  %v8495_v12 = vld [vmem:[%s12112_s0 + $0xe0] sm:$0xff]  }
 0x577   : > { %13707 = vst [vmem:[#allocation14_spill] sm:$0xff] %v12275_v10  ;;  %v3025_v29 = vmul.f32 %v7934_v23, %v2946_v38  ;;  %v3357_v30 = vmul.f32 %v7998_v52, %v3213_v39  ;;  %9933 = vmatprep.mubr.msk.f32.mxu0 %vm1700_vm2, %v11390_v57  ;;  %v8479_v10 = vld [vmem:[%s12112_s0 + $0x60] sm:$0xff]   ;;  %v8007_v52 = vunpack.c.h.bf16 %v8495_v12  ;;  %v8480_v38 = vld [vmem:[%s12112_s0 + $0x68] sm:$0xff]  }
 0x578   : > { %v12285_v27 = vadd.f32 %v3358_v37, %v3026_v6  ;;  %v7943_v57 = vunpack.c.h.bf16 %v8479_v10  ;;  %v7942_v6 = vunpack.c.l.bf16 %v8479_v10  ;;  %v8006_v37 = vunpack.c.l.bf16 %v8495_v12  ;;  %v8496_v39 = vld [vmem:[%s12112_s0 + $0xe8] sm:$0xff]   ;;  %v8481_v12 = vld [vmem:[%s12112_s0 + $0x70] sm:$0xff]  }
 0x579   : > { %v12287_v45 = vadd.f32 %v3357_v30, %v3025_v29  ;;  %v9440_v47 = vpop.f32.mrb[54].mxu0  ;;  %v9506_v50 = vpop.f32.mrb[118].mxu1  ;;  %v8011_v10 = vunpack.c.h.bf16 %v8496_v39 }
 0x57a   : > { %v3028_v1 = vmul.f32 %v9440_v47, %v7939_v8  ;;  %v3360_v53 = vmul.f32 %v9506_v50, %v8003_v16  ;;  %v2956_v26 = vpop.f32.mrb[55].mxu0  ;;  %v3223_v23 = vpop.f32.mrb[119].mxu1  ;;  %9934 = vmatmul.mubr.msk.f32.vlgmr.msra.gmra.mrb[160].mxu0 %vm1700_vm2, %v11392_v15 }
 0x57b   : > { %v3027_v0 = vmul.f32 %v7938_v48, %v2956_v26  ;;  %v3359_v34 = vmul.f32 %v8002_v60, %v3223_v23  ;;  %9936 = vmatprep.mubr.msk.f32.mxu0 %vm1700_vm2, %v11398_v19  ;;  %v7947_v19 = vunpack.c.h.bf16 %v8480_v38  ;;  %v8497_v23 = vld [vmem:[%s12112_s0 + $0xf0] sm:$0xff]  }
 0x57c   : > { %v12295_v29 = vadd.f32 %v3360_v53, %v3028_v1  ;;  %v7946_v53 = vunpack.c.l.bf16 %v8480_v38  ;;  %v8010_v1 = vunpack.c.l.bf16 %v8496_v39 }
 0x57d   : > { %v12297_v50 = vadd.f32 %v3359_v34, %v3027_v0  ;;  %v9443_v8 = vpop.f32.mrb[56].mxu0  ;;  %v9509_v16 = vpop.f32.mrb[120].mxu1 }
 0x57e   : > { %v3030_v15 = vmul.f32 %v9443_v8, %v7943_v57  ;;  %v3362_v30 = vmul.f32 %v9509_v16, %v8007_v52  ;;  %v2966_v47 = vpop.f32.mrb[57].mxu0  ;;  %v3233_v26 = vpop.f32.mrb[121].mxu1  ;;  %9937 = vmatmul.mubr.msk.f32.gmra.mrb[162].mxu0 %vm1700_vm2, %v11426_v32 }
 0x57f   : > { %v3029_v48 = vmul.f32 %v7942_v6, %v2966_v47  ;;  %v3361_v60 = vmul.f32 %v8006_v37, %v3233_v26  ;;  %9939 = vmatprep.mubr.msk.f32.mxu0 %vm1700_vm2, %v11432_v40  ;;  %v7951_v40 = vunpack.c.h.bf16 %v8481_v12  ;;  %v8015_v37 = vunpack.c.h.bf16 %v8497_v23  ;;  %v8482_v47 = vld [vmem:[%s12112_s0 + $0x78] sm:$0xff]  }
 0x580   : > { %v12305_v0 = vadd.f32 %v3362_v30, %v3030_v15  ;;  %v7950_v15 = vunpack.c.l.bf16 %v8481_v12  ;;  %v8014_v30 = vunpack.c.l.bf16 %v8497_v23  ;;  %v8498_v26 = vld [vmem:[%s12112_s0 + $0xf8] sm:$0xff]  }
 0x581   : > { %v12307_v57 = vadd.f32 %v3361_v60, %v3029_v48  ;;  %v9446_v52 = vpop.f32.mrb[58].mxu0  ;;  %v9512_v34 = vpop.f32.mrb[122].mxu1 }
 0x582   : > { %v3032_v32 = vmul.f32 %v9446_v52, %v7947_v19  ;;  %v3364_v8 = vmul.f32 %v9512_v34, %v8011_v10  ;;  %v2976_v16 = vpop.f32.mrb[59].mxu0  ;;  %v3243_v6 = vpop.f32.mrb[123].mxu1  ;;  %9940 = vmatmul.mubr.msk.f32.gmra.mrb[164].mxu0 %vm1700_vm2, %v11456_v49 }
 0x583   : > { %v3031_v38 = vmul.f32 %v7946_v53, %v2976_v16  ;;  %v3363_v39 = vmul.f32 %v8010_v1, %v3243_v6  ;;  %9942 = vmatprep.mubr.msk.f32.mxu0 %vm1700_vm2, %v11460_v43  ;;  %v7955_v43 = vunpack.c.h.bf16 %v8482_v47  ;;  %v8019_v1 = vunpack.c.h.bf16 %v8498_v26  ;;  %v8499_v16 = vld [vmem:[%s12112_s0 + $0x100] sm:$0xff]  }
 0x584   : > { %v12315_v48 = vadd.f32 %v3364_v8, %v3032_v32  ;;  %v7954_v32 = vunpack.c.l.bf16 %v8482_v47  ;;  %v8018_v8 = vunpack.c.l.bf16 %v8498_v26  ;;  %v8022_v26 = vunpack.c.l.bf16 %v8499_v16 }
 0x585   : > { %v12317_v19 = vadd.f32 %v3363_v39, %v3031_v38  ;;  %v9449_v10 = vpop.f32.mrb[60].mxu0  ;;  %v9515_v60 = vpop.f32.mrb[124].mxu1  ;;  %v8515_v39 = vld [vmem:[%s12112_s0 + $0x180] sm:$0xff]  }
 0x586   : > { %v3034_v52 = vmul.f32 %v9449_v10, %v7951_v40  ;;  %v3366_v49 = vmul.f32 %v9515_v60, %v8015_v37  ;;  %v2986_v34 = vpop.f32.mrb[61].mxu0  ;;  %v3253_v53 = vpop.f32.mrb[125].mxu1  ;;  %9943 = vmatmul.mubr.msk.f32.gmra.mrb[166].mxu0 %vm1700_vm2, %v11472_v2 }
 0x587   : > { %v3033_v12 = vmul.f32 %v7950_v15, %v2986_v34  ;;  %v3365_v23 = vmul.f32 %v8014_v30, %v3253_v53  ;;  %9945 = vmatprep.mubr.msk.f32.mxu0 %vm1700_vm2, %v11476_v61  ;;  %v8023_v61 = vunpack.c.h.bf16 %v8499_v16  ;;  %v8087_v34 = vunpack.c.h.bf16 %v8515_v39 }
 0x588   : > { %v12324_v6 = vadd.f32 %v3366_v49, %v3034_v52  ;;  %v8500_v52 = vld [vmem:[%s12112_s0 + $0x108] sm:$0xff]  }
 0x589   : > { %v12326_v40 = vadd.f32 %v3365_v23, %v3033_v12  ;;  %v9452_v37 = vpop.f32.mrb[62].mxu0  ;;  %v9518_v38 = vpop.f32.mrb[126].mxu1  ;;  %v8086_v12 = vunpack.c.l.bf16 %v8515_v39  ;;  %v8516_v23 = vld [vmem:[%s12112_s0 + $0x188] sm:$0xff]   ;;  %v8026_v16 = vunpack.c.l.bf16 %v8500_v52 }
 0x58a   : > { %v3036_v10 = vmul.f32 %v9452_v37, %v7955_v43  ;;  %v3368_v2 = vmul.f32 %v9518_v38, %v8019_v1  ;;  %v2996_v60 = vpop.f32.mrb[63].mxu0  ;;  %v3263_v15 = vpop.f32.mrb[127].mxu1  ;;  %9946 = vmatmul.mubr.msk.f32.gmra.mrb[168].mxu0 %vm1700_vm2, %v11506_v7  ;;  %v8501_v38 = vld [vmem:[%s12112_s0 + $0x110] sm:$0xff]  }
 0x58b   : > { %v3035_v30 = vmul.f32 %v7954_v32, %v2996_v60  ;;  %v3367_v47 = vmul.f32 %v8018_v8, %v3263_v15  ;;  %9948 = vmatprep.mubr.msk.f32.mxu0 %vm1700_vm2, %v11510_v14  ;;  %v8027_v14 = vunpack.c.h.bf16 %v8500_v52  ;;  %v8091_v60 = vunpack.c.h.bf16 %v8516_v23 }
 0x58c   : > { %v12334_v49 = vadd.f32 %v3368_v2, %v3036_v10 }
 0x58d   : > { %v12336_v53 = vadd.f32 %v3367_v47, %v3035_v30  ;;  %v9539_v43 = vpop.f32.mrb[64].mxu0  ;;  %v9605_v1 = vpop.f32.mrb[128].mxu1  ;;  %v8090_v47 = vunpack.c.l.bf16 %v8516_v23 }
 0x58e   : > { %v3702_v37 = vmul.f32 %v9539_v43, %v8023_v61  ;;  %v3477_v7 = vpop.f32.mrb[65].mxu0  ;;  %v3841_v32 = vpop.f32.mrb[129].mxu1  ;;  %9949 = vmatmul.mubr.msk.f32.gmra.mrb[170].mxu0 %vm1700_vm2, %v11526_v9  ;;  %v4066_v2 = vmul.f32 %v9605_v1, %v8087_v34  ;;  %v8517_v43 = vld [vmem:[%s12112_s0 + $0x190] sm:$0xff]   ;;  %v8502_v34 = vld [vmem:[%s12112_s0 + $0x118] sm:$0xff]  }
 0x58f   : > { %13708 = vst [vmem:[#allocation15_spill] sm:$0xff] %v12336_v53  ;;  %v3701_v8 = vmul.f32 %v8022_v26, %v3477_v7  ;;  %9951 = vmatprep.mubr.msk.f32.mxu0 %vm1700_vm2, %v11530_v22  ;;  %v4065_v15 = vmul.f32 %v8086_v12, %v3841_v32  ;;  %v8031_v22 = vunpack.c.h.bf16 %v8501_v38  ;;  %v8095_v23 = vunpack.c.h.bf16 %v8517_v43 }
 0x590   : > { %v3734_v10 = vadd.f32 %v3702_v37, %v12147_v17 }
 0x591   : > { %v3733_v39 = vadd.f32 %v3701_v8, %v12149_v18  ;;  %v9542_v61 = vpop.f32.mrb[66].mxu0  ;;  %v9608_v30 = vpop.f32.mrb[130].mxu1  ;;  %v8030_v18 = vunpack.c.l.bf16 %v8501_v38 }
 0x592   : > { %v12347_v9 = vadd.f32 %v4066_v2, %v3734_v10  ;;  %v3704_v26 = vmul.f32 %v9542_v61, %v8027_v14  ;;  %v3487_v7 = vpop.f32.mrb[67].mxu0  ;;  %v3851_v53 = vpop.f32.mrb[131].mxu1  ;;  %9952 = vmatmul.mubr.msk.f32.gmra.mrb[172].mxu0 %vm1700_vm2, %v11544_v13  ;;  %v4068_v12 = vmul.f32 %v9608_v30, %v8091_v60  ;;  %v8094_v13 = vunpack.c.l.bf16 %v8517_v43  ;;  %v8518_v10 = vld [vmem:[%s12112_s0 + $0x198] sm:$0xff]  }
 0x593   : > { %v12351_v17 = vadd.f32 %v4065_v15, %v3733_v39  ;;  %v3703_v52 = vmul.f32 %v8026_v16, %v3487_v7  ;;  %9954 = vmatprep.mubr.msk.f32.mxu0 %vm1700_vm2, %v11548_v24  ;;  %v4067_v32 = vmul.f32 %v8090_v47, %v3851_v53  ;;  %v8035_v24 = vunpack.c.h.bf16 %v8502_v34  ;;  %v8503_v53 = vld [vmem:[%s12112_s0 + $0x120] sm:$0xff]  }
 0x594   : > { %v3736_v1 = vadd.f32 %v3704_v26, %v12161_v41  ;;  %v8099_v30 = vunpack.c.h.bf16 %v8518_v10 }
 0x595   : > { %v3735_v37 = vadd.f32 %v3703_v52, %v12163_v25  ;;  %v9545_v14 = vpop.f32.mrb[68].mxu0  ;;  %v9611_v8 = vpop.f32.mrb[132].mxu1  ;;  %v8034_v25 = vunpack.c.l.bf16 %v8502_v34 }
 0x596   : > { %v12359_v2 = vadd.f32 %v4068_v12, %v3736_v1  ;;  %v3706_v16 = vmul.f32 %v9545_v14, %v8031_v22  ;;  %v3497_v39 = vpop.f32.mrb[69].mxu0  ;;  %v3861_v15 = vpop.f32.mrb[133].mxu1  ;;  %9955 = vmatmul.mubr.msk.f32.gmra.mrb[174].mxu0 %vm1700_vm2, %v11560_v63  ;;  %v4070_v61 = vmul.f32 %v9611_v8, %v8095_v23  ;;  %v8098_v63 = vunpack.c.l.bf16 %v8518_v10  ;;  %v8519_v22 = vld [vmem:[%s12112_s0 + $0x1a0] sm:$0xff]   ;;  %v8504_v23 = vld [vmem:[%s12112_s0 + $0x128] sm:$0xff]  }
 0x597   : > { %v12363_v41 = vadd.f32 %v4067_v32, %v3735_v37  ;;  %v3705_v38 = vmul.f32 %v8030_v18, %v3497_v39  ;;  %9957 = vmatprep.mubr.msk.f32.mxu0 %vm1700_vm2, %v11564_v46  ;;  %v4069_v43 = vmul.f32 %v8094_v13, %v3861_v15  ;;  %v8039_v46 = vunpack.c.h.bf16 %v8503_v53  ;;  %v8520_v39 = vld [vmem:[%s12112_s0 + $0x1a8] sm:$0xff]  }
 0x598   : > { %v3738_v60 = vadd.f32 %v3706_v16, %v12175_v20  ;;  %v8103_v14 = vunpack.c.h.bf16 %v8519_v22 }
 0x599   : > { %v3737_v47 = vadd.f32 %v3705_v38, %v12177_v21  ;;  %v9548_v26 = vpop.f32.mrb[70].mxu0  ;;  %v9614_v7 = vpop.f32.mrb[134].mxu1  ;;  %v8038_v21 = vunpack.c.l.bf16 %v8503_v53 }
 0x59a   : > { %v12371_v52 = vadd.f32 %v4070_v61, %v3738_v60  ;;  %v3708_v18 = vmul.f32 %v9548_v26, %v8035_v24  ;;  %v3507_v1 = vpop.f32.mrb[71].mxu0  ;;  %v3871_v12 = vpop.f32.mrb[135].mxu1  ;;  %9958 = vmatmul.mubr.msk.f32.gmra.mrb[176].mxu0 %vm1700_vm2, %v11576_v28  ;;  %v4072_v32 = vmul.f32 %v9614_v7, %v8099_v30  ;;  %v8102_v28 = vunpack.c.l.bf16 %v8519_v22  ;;  %v8505_v60 = vld [vmem:[%s12112_s0 + $0x130] sm:$0xff]  }
 0x59b   : > { %v12375_v20 = vadd.f32 %v4069_v43, %v3737_v47  ;;  %v3707_v34 = vmul.f32 %v8034_v25, %v3507_v1  ;;  %9960 = vmatprep.mubr.msk.f32.mxu0 %vm1700_vm2, %v11580_v31  ;;  %v4071_v13 = vmul.f32 %v8098_v63, %v3871_v12  ;;  %v8043_v31 = vunpack.c.h.bf16 %v8504_v23  ;;  %v8521_v22 = vld [vmem:[%s12112_s0 + $0x1b0] sm:$0xff]  }
 0x59c   : > { %v3740_v37 = vadd.f32 %v3708_v18, %v12189_v4  ;;  %v8107_v47 = vunpack.c.h.bf16 %v8520_v39 }
 0x59d   : > { %v3739_v8 = vadd.f32 %v3707_v34, %v12191_v5  ;;  %v9551_v10 = vpop.f32.mrb[72].mxu0  ;;  %v9617_v16 = vpop.f32.mrb[136].mxu1  ;;  %v8042_v5 = vunpack.c.l.bf16 %v8504_v23 }
 0x59e   : > { %v12383_v15 = vadd.f32 %v4072_v32, %v3740_v37  ;;  %v3710_v24 = vmul.f32 %v9551_v10, %v8039_v46  ;;  %v3517_v38 = vpop.f32.mrb[73].mxu0  ;;  %v3881_v25 = vpop.f32.mrb[137].mxu1  ;;  %9961 = vmatmul.mubr.msk.f32.gmra.mrb[178].mxu0 %vm1700_vm2, %v11592_v33  ;;  %v4074_v30 = vmul.f32 %v9617_v16, %v8103_v14  ;;  %v8106_v33 = vunpack.c.l.bf16 %v8520_v39  ;;  %v8522_v16 = vld [vmem:[%s12112_s0 + $0x1b8] sm:$0xff]  }
 0x59f   : > { %v12387_v4 = vadd.f32 %v4071_v13, %v3739_v8  ;;  %v3709_v53 = vmul.f32 %v8038_v21, %v3517_v38  ;;  %9963 = vmatprep.mubr.msk.f32.mxu0 %vm1700_vm2, %v11596_v62  ;;  %v4073_v26 = vmul.f32 %v8102_v28, %v3881_v25  ;;  %v8047_v62 = vunpack.c.h.bf16 %v8505_v60  ;;  %v8506_v21 = vld [vmem:[%s12112_s0 + $0x138] sm:$0xff]  }
 0x5a0   : > { %v3742_v61 = vadd.f32 %v3710_v24, %v12203_v35  ;;  %v8111_v32 = vunpack.c.h.bf16 %v8521_v22 }
 0x5a1   : > { %v3741_v43 = vadd.f32 %v3709_v53, %v12205_v36  ;;  %v9554_v7 = vpop.f32.mrb[74].mxu0  ;;  %v9620_v63 = vpop.f32.mrb[138].mxu1  ;;  %v8046_v36 = vunpack.c.l.bf16 %v8505_v60  ;;  %v8115_v60 = vunpack.c.h.bf16 %v8522_v16 }
 0x5a2   : > { %v12395_v18 = vadd.f32 %v4074_v30, %v3742_v61  ;;  %v3712_v1 = vmul.f32 %v9554_v7, %v8043_v31  ;;  %v3527_v12 = vpop.f32.mrb[75].mxu0  ;;  %v3891_v46 = vpop.f32.mrb[139].mxu1  ;;  %9964 = vmatmul.mubr.msk.f32.gmra.mrb[180].mxu0 %vm1700_vm2, %v11608_v44  ;;  %v4076_v37 = vmul.f32 %v9620_v63, %v8107_v47  ;;  %v8110_v44 = vunpack.c.l.bf16 %v8521_v22  ;;  %v8507_v31 = vld [vmem:[%s12112_s0 + $0x140] sm:$0xff]   ;;  %v13709_v61 = vld [vmem:[#allocation9_spill] sm:$0xff] }
 0x5a3   : > { %v12399_v35 = vadd.f32 %v4073_v26, %v3741_v43  ;;  %v3711_v34 = vmul.f32 %v8042_v5, %v3527_v12  ;;  %9966 = vmatprep.mubr.msk.f32.mxu0 %vm1700_vm2, %v11612_v54  ;;  %v4075_v8 = vmul.f32 %v8106_v33, %v3891_v46  ;;  %v8051_v54 = vunpack.c.h.bf16 %v8506_v21  ;;  %v8523_v7 = vld [vmem:[%s12112_s0 + $0x1c0] sm:$0xff]  }
 0x5a4   : > { %v3744_v23 = vadd.f32 %v3712_v1, %v12217_v56 }
 0x5a5   : > { %v3743_v14 = vadd.f32 %v3711_v34, %v12219_v59  ;;  %v9557_v13 = vpop.f32.mrb[76].mxu0  ;;  %v9623_v10 = vpop.f32.mrb[140].mxu1  ;;  %v8050_v59 = vunpack.c.l.bf16 %v8506_v21  ;;  %v8508_v34 = vld [vmem:[%s12112_s0 + $0x148] sm:$0xff]  }
 0x5a6   : > { %v12407_v28 = vadd.f32 %v4076_v37, %v3744_v23  ;;  %v3714_v39 = vmul.f32 %v9557_v13, %v8047_v62  ;;  %v3537_v24 = vpop.f32.mrb[77].mxu0  ;;  %v3901_v38 = vpop.f32.mrb[141].mxu1  ;;  %9967 = vmatmul.mubr.msk.f32.gmra.mrb[182].mxu0 %vm1700_vm2, %v11624_v51  ;;  %v4078_v5 = vmul.f32 %v9623_v10, %v8111_v32  ;;  %v8114_v51 = vunpack.c.l.bf16 %v8522_v16  ;;  %v13711_v37 = vld [vmem:[#allocation10_spill] sm:$0xff] }
 0x5a7   : > { %v12411_v56 = vadd.f32 %v4075_v8, %v3743_v14  ;;  %v3713_v25 = vmul.f32 %v8046_v36, %v3537_v24  ;;  %9969 = vmatprep.mubr.msk.f32.mxu0 %vm1700_vm2, %v11628_v55  ;;  %v4077_v47 = vmul.f32 %v8110_v44, %v3901_v38  ;;  %v13710_v55 = vld [vmem:[#allocation4_spill] sm:$0xff]  ;;  %v8054_v62 = vunpack.c.l.bf16 %v8507_v31  ;;  %v8524_v44 = vld [vmem:[%s12112_s0 + $0x1c8] sm:$0xff]  }
 0x5a8   : > { %v3746_v53 = vadd.f32 %v3714_v39, %v12231_v3  ;;  %v8055_v3 = vunpack.c.h.bf16 %v8507_v31  ;;  %v8119_v23 = vunpack.c.h.bf16 %v8523_v7  ;;  %v8118_v10 = vunpack.c.l.bf16 %v8523_v7  ;;  %v8509_v31 = vld [vmem:[%s12112_s0 + $0x150] sm:$0xff]  }
 0x5a9   : > { %v3745_v30 = vadd.f32 %v3713_v25, %v13709_v61  ;;  %v9560_v43 = vpop.f32.mrb[78].mxu0  ;;  %v9626_v26 = vpop.f32.mrb[142].mxu1  ;;  %v8123_v61 = vunpack.c.h.bf16 %v8524_v44  ;;  %v8122_v7 = vunpack.c.l.bf16 %v8524_v44 }
 0x5aa   : > { %v12419_v63 = vadd.f32 %v4078_v5, %v3746_v53  ;;  %v3716_v33 = vmul.f32 %v9560_v43, %v8051_v54  ;;  %v3547_v22 = vpop.f32.mrb[79].mxu0  ;;  %v3911_v1 = vpop.f32.mrb[143].mxu1  ;;  %9970 = vmatmul.mubr.msk.f32.gmra.mrb[184].mxu0 %vm1700_vm2, %v13710_v55  ;;  %v4080_v21 = vmul.f32 %v9626_v26, %v8115_v60  ;;  %v13713_v53 = vld [vmem:[#allocation11_spill] sm:$0xff] }
 0x5ab   : > { %v12423_v12 = vadd.f32 %v4077_v47, %v3745_v30  ;;  %v3715_v46 = vmul.f32 %v8050_v59, %v3547_v22  ;;  %9972 = vmatprep.mubr.msk.f32.mxu0 %vm1700_vm2, %v11644_v42  ;;  %v4079_v14 = vmul.f32 %v8114_v51, %v3911_v1  ;;  %v13712_v42 = vld [vmem:[#allocation5_spill] sm:$0xff]  ;;  %v8058_v59 = vunpack.c.l.bf16 %v8508_v34  ;;  %v13714_v30 = vld [vmem:[#allocation12_spill] sm:$0xff] }
 0x5ac   : > { %v3748_v36 = vadd.f32 %v3716_v33, %v12245_v11  ;;  %v8059_v11 = vunpack.c.h.bf16 %v8508_v34  ;;  %v8525_v33 = vld [vmem:[%s12112_s0 + $0x1d0] sm:$0xff]  }
 0x5ad   : > { %v3747_v32 = vadd.f32 %v3715_v46, %v13711_v37  ;;  %v9563_v8 = vpop.f32.mrb[80].mxu0  ;;  %v9629_v13 = vpop.f32.mrb[144].mxu1  ;;  %v8063_v46 = vunpack.c.h.bf16 %v8509_v31  ;;  %v13717_v37 = vld [vmem:[#allocation13_spill] sm:$0xff] }
 0x5ae   : > { %v12431_v16 = vadd.f32 %v4080_v21, %v3748_v36  ;;  %v3718_v39 = vmul.f32 %v9563_v8, %v8055_v3  ;;  %v3557_v24 = vpop.f32.mrb[81].mxu0  ;;  %v3921_v38 = vpop.f32.mrb[145].mxu1  ;;  %9973 = vmatmul.mubr.msk.f32.gmra.mrb[186].mxu0 %vm1700_vm2, %v13712_v42  ;;  %v4082_v60 = vmul.f32 %v9629_v13, %v8119_v23  ;;  %v13716_v36 = vld [vmem:[#allocation7_spill] sm:$0xff]  ;;  %v8062_v21 = vunpack.c.l.bf16 %v8509_v31  ;;  %v13718_v13 = vld [vmem:[#allocation14_spill] sm:$0xff]  ;;  %v13719_v31 = vld [vmem:[#allocation8_spill] sm:$0xff] }
 0x5af   : > { %v12435_v54 = vadd.f32 %v4079_v14, %v3747_v32  ;;  %v3717_v25 = vmul.f32 %v8054_v62, %v3557_v24  ;;  %9975 = vmatprep.mubr.msk.f32.mxu0 %vm1700_vm2, %v11660_v58  ;;  %v4081_v43 = vmul.f32 %v8118_v10, %v3921_v38  ;;  %v13715_v58 = vld [vmem:[#allocation6_spill] sm:$0xff]  ;;  %v8510_v23 = vld [vmem:[%s12112_s0 + $0x158] sm:$0xff]   ;;  %v8127_v8 = vunpack.c.h.bf16 %v8525_v33 }
 0x5b0   : > { %v3750_v5 = vadd.f32 %v3718_v39, %v13713_v53  ;;  %v8126_v38 = vunpack.c.l.bf16 %v8525_v33  ;;  %v8526_v42 = vld [vmem:[%s12112_s0 + $0x1d8] sm:$0xff]  }
 0x5b1   : > { %v3749_v47 = vadd.f32 %v3717_v25, %v13714_v30  ;;  %v9566_v26 = vpop.f32.mrb[82].mxu0  ;;  %v9632_v51 = vpop.f32.mrb[146].mxu1  ;;  %v8066_v30 = vunpack.c.l.bf16 %v8510_v23 }
 0x5b2   : > { %v12443_v22 = vadd.f32 %v4082_v60, %v3750_v5  ;;  %v3720_v1 = vmul.f32 %v9566_v26, %v8059_v11  ;;  %v3567_v55 = vpop.f32.mrb[83].mxu0  ;;  %v3931_v3 = vpop.f32.mrb[147].mxu1  ;;  %9976 = vmatmul.mubr.msk.f32.gmra.mrb[188].mxu0 %vm1700_vm2, %v13715_v58  ;;  %v4084_v14 = vmul.f32 %v9632_v51, %v8123_v61  ;;  %v8067_v5 = vunpack.c.h.bf16 %v8510_v23  ;;  %v8527_v58 = vld [vmem:[%s12112_s0 + $0x1e0] sm:$0xff]  }
 0x5b3   : > { %v12447_v62 = vadd.f32 %v4081_v43, %v3749_v47  ;;  %v3719_v34 = vmul.f32 %v8058_v59, %v3567_v55  ;;  %9978 = vmatprep.mubr.msk.f32.mxu0 %vm1700_vm2, %v13716_v36  ;;  %v4083_v44 = vmul.f32 %v8122_v7, %v3931_v3  ;;  %v8511_v47 = vld [vmem:[%s12112_s0 + $0x160] sm:$0xff]   ;;  %v8131_v51 = vunpack.c.h.bf16 %v8526_v42 }
 0x5b4   : > { %v3752_v32 = vadd.f32 %v3720_v1, %v13717_v37  ;;  %v8130_v3 = vunpack.c.l.bf16 %v8526_v42  ;;  %v8071_v23 = vunpack.c.h.bf16 %v8511_v47  ;;  %v8528_v42 = vld [vmem:[%s12112_s0 + $0x1e8] sm:$0xff]  }
 0x5b5   : > { %v3751_v10 = vadd.f32 %v3719_v34, %v13718_v13  ;;  %v9569_v39 = vpop.f32.mrb[84].mxu0  ;;  %v9635_v24 = vpop.f32.mrb[148].mxu1  ;;  %v8135_v13 = vunpack.c.h.bf16 %v8527_v58 }
 0x5b6   : > { %v12455_v11 = vadd.f32 %v4084_v14, %v3752_v32  ;;  %v3722_v25 = vmul.f32 %v9569_v39, %v8063_v46  ;;  %v3577_v59 = vpop.f32.mrb[85].mxu0  ;;  %v3941_v53 = vpop.f32.mrb[149].mxu1  ;;  %9979 = vmatmul.mubr.msk.f32.gmra.mrb[190].mxu0 %vm1700_vm2, %v13719_v31  ;;  %v4086_v26 = vmul.f32 %v9635_v24, %v8127_v8  ;;  %v8070_v32 = vunpack.c.l.bf16 %v8511_v47  ;;  %v8512_v14 = vld [vmem:[%s12112_s0 + $0x168] sm:$0xff]   ;;  %v8513_v47 = vld [vmem:[%s12112_s0 + $0x170] sm:$0xff]  }
 0x5b7   : > { %v12459_v60 = vadd.f32 %v4083_v44, %v3751_v10  ;;  %v3721_v61 = vmul.f32 %v8062_v21, %v3577_v59  ;;  %v4085_v33 = vmul.f32 %v8126_v38, %v3941_v53  ;;  %v8134_v38 = vunpack.c.l.bf16 %v8527_v58 }
 0x5b8   : > { %v3754_v43 = vadd.f32 %v3722_v25, %v12285_v27 }
 0x5b9   : > { %v3753_v7 = vadd.f32 %v3721_v61, %v12287_v45  ;;  %v9572_v1 = vpop.f32.mrb[86].mxu0  ;;  %v9638_v55 = vpop.f32.mrb[150].mxu1 }
 0x5ba   : > { %v12465_v46 = vadd.f32 %v4086_v26, %v3754_v43  ;;  %v3724_v34 = vmul.f32 %v9572_v1, %v8067_v5  ;;  %v3587_v36 = vpop.f32.mrb[87].mxu0  ;;  %v3951_v21 = vpop.f32.mrb[151].mxu1  ;;  %v4088_v45 = vmul.f32 %v9638_v55, %v8131_v51  ;;  %v8075_v5 = vunpack.c.h.bf16 %v8512_v14 }
 0x5bb   : > { %v12467_v37 = vadd.f32 %v4085_v33, %v3753_v7  ;;  %v3723_v27 = vmul.f32 %v8066_v30, %v3587_v36  ;;  %v4087_v44 = vmul.f32 %v8130_v3, %v3951_v21  ;;  %v8074_v30 = vunpack.c.l.bf16 %v8512_v14  ;;  %v8529_v3 = vld [vmem:[%s12112_s0 + $0x1f0] sm:$0xff]   ;;  %v8514_v14 = vld [vmem:[%s12112_s0 + $0x178] sm:$0xff]  }
 0x5bc   : > { %v3756_v8 = vadd.f32 %v3724_v34, %v12295_v29  ;;  %v8139_v26 = vunpack.c.h.bf16 %v8528_v42  ;;  %v8138_v55 = vunpack.c.l.bf16 %v8528_v42 }
 0x5bd   : > { %v3755_v10 = vadd.f32 %v3723_v27, %v12297_v50  ;;  %v9575_v39 = vpop.f32.mrb[88].mxu0  ;;  %v9641_v24 = vpop.f32.mrb[152].mxu1 }
 0x5be   : > { %v12473_v25 = vadd.f32 %v4088_v45, %v3756_v8  ;;  %v3726_v59 = vmul.f32 %v9575_v39, %v8071_v23  ;;  %v3597_v53 = vpop.f32.mrb[89].mxu0  ;;  %v3961_v31 = vpop.f32.mrb[153].mxu1  ;;  %v4090_v50 = vmul.f32 %v9641_v24, %v8135_v13  ;;  %v8079_v23 = vunpack.c.h.bf16 %v8513_v47 }
 0x5bf   : > { %v12475_v61 = vadd.f32 %v4087_v44, %v3755_v10  ;;  %v3725_v29 = vmul.f32 %v8070_v32, %v3597_v53  ;;  %v4089_v7 = vmul.f32 %v8134_v38, %v3961_v31  ;;  %v8078_v32 = vunpack.c.l.bf16 %v8513_v47  ;;  %v8530_v38 = vld [vmem:[%s12112_s0 + $0x1f8] sm:$0xff]   ;;  %v8531_v47 = vld [vmem:[%s12112_s0 + $0x200] sm:$0xff]  }
 0x5c0   : > { %v3758_v43 = vadd.f32 %v3726_v59, %v12305_v0  ;;  %v8143_v45 = vunpack.c.h.bf16 %v8529_v3  ;;  %v8142_v24 = vunpack.c.l.bf16 %v8529_v3 }
 0x5c1   : > { %v3757_v51 = vadd.f32 %v3725_v29, %v12307_v57  ;;  %v9578_v33 = vpop.f32.mrb[90].mxu0  ;;  %v9644_v1 = vpop.f32.mrb[154].mxu1 }
 0x5c2   : > { %v12481_v58 = vadd.f32 %v4090_v50, %v3758_v43  ;;  %v3728_v34 = vmul.f32 %v9578_v33, %v8075_v5  ;;  %v3607_v36 = vpop.f32.mrb[91].mxu0  ;;  %v3971_v21 = vpop.f32.mrb[155].mxu1  ;;  %v4092_v57 = vmul.f32 %v9644_v1, %v8139_v26  ;;  %v8083_v5 = vunpack.c.h.bf16 %v8514_v14 }
 0x5c3   : > { %v12483_v27 = vadd.f32 %v4089_v7, %v3757_v51  ;;  %v3727_v0 = vmul.f32 %v8074_v30, %v3607_v36  ;;  %v4091_v10 = vmul.f32 %v8138_v55, %v3971_v21  ;;  %v8082_v30 = vunpack.c.l.bf16 %v8514_v14  ;;  %v8547_v55 = vld [vmem:[%s12112_s0 + $0x280] sm:$0xff]   ;;  %v8532_v14 = vld [vmem:[%s12112_s0 + $0x208] sm:$0xff]  }
 0x5c4   : > { %v3760_v8 = vadd.f32 %v3728_v34, %v12315_v48  ;;  %v8147_v50 = vunpack.c.h.bf16 %v8530_v38  ;;  %v8146_v1 = vunpack.c.l.bf16 %v8530_v38  ;;  %v8548_v38 = vld [vmem:[%s12112_s0 + $0x288] sm:$0xff]  }
 0x5c5   : > { %v3759_v13 = vadd.f32 %v3727_v0, %v12317_v19  ;;  %v9581_v44 = vpop.f32.mrb[92].mxu0  ;;  %v9647_v39 = vpop.f32.mrb[156].mxu1 }
 0x5c6   : > { %v12489_v42 = vadd.f32 %v4092_v57, %v3760_v8  ;;  %v3730_v59 = vmul.f32 %v9581_v44, %v8079_v23  ;;  %v3617_v53 = vpop.f32.mrb[93].mxu0  ;;  %v3981_v31 = vpop.f32.mrb[157].mxu1  ;;  %v4094_v19 = vmul.f32 %v9647_v39, %v8143_v45  ;;  %v8151_v23 = vunpack.c.h.bf16 %v8531_v47  ;;  %v13720_v45 = vld [vmem:[#allocation15_spill] sm:$0xff] }
 0x5c7   : > { %v12491_v29 = vadd.f32 %v4091_v10, %v3759_v13  ;;  %v3729_v48 = vmul.f32 %v8078_v32, %v3617_v53  ;;  %v4093_v51 = vmul.f32 %v8142_v24, %v3981_v31  ;;  %v8150_v32 = vunpack.c.l.bf16 %v8531_v47 }
 0x5c8   : > { %v3762_v43 = vadd.f32 %v3730_v59, %v12324_v6  ;;  %v8215_v57 = vunpack.c.h.bf16 %v8547_v55  ;;  %v8214_v24 = vunpack.c.l.bf16 %v8547_v55  ;;  %v8154_v47 = vunpack.c.l.bf16 %v8532_v14 }
 0x5c9   : > { %v3761_v26 = vadd.f32 %v3729_v48, %v12326_v40  ;;  %v9584_v7 = vpop.f32.mrb[94].mxu0  ;;  %v9650_v33 = vpop.f32.mrb[158].mxu1  ;;  %v8155_v48 = vunpack.c.h.bf16 %v8532_v14  ;;  %v8218_v55 = vunpack.c.l.bf16 %v8548_v38 }
 0x5ca   : > { %v12497_v3 = vadd.f32 %v4094_v19, %v3762_v43  ;;  %v3732_v34 = vmul.f32 %v9584_v7, %v8083_v5  ;;  %v3627_v36 = vpop.f32.mrb[95].mxu0  ;;  %v3991_v21 = vpop.f32.mrb[159].mxu1  ;;  %v4096_v40 = vmul.f32 %v9650_v33, %v8147_v50  ;;  %v8533_v43 = vld [vmem:[%s12112_s0 + $0x210] sm:$0xff]  }
 0x5cb   : > { %v12499_v0 = vadd.f32 %v4093_v51, %v3761_v26  ;;  %v3731_v6 = vmul.f32 %v8082_v30, %v3627_v36  ;;  %v4095_v10 = vmul.f32 %v8146_v1, %v3991_v21  ;;  %v8219_v26 = vunpack.c.h.bf16 %v8548_v38  ;;  %v8550_v38 = vld [vmem:[%s12112_s0 + $0x298] sm:$0xff]  }
 0x5cc   : > { %v3764_v8 = vadd.f32 %v3732_v34, %v12334_v49  ;;  %v8549_v34 = vld [vmem:[%s12112_s0 + $0x290] sm:$0xff]  }
 0x5cd   : > { %v3763_v13 = vadd.f32 %v3731_v6, %v13720_v45  ;;  %v9671_v44 = vpop.f32.mrb[96].mxu0  ;;  %v9737_v39 = vpop.f32.mrb[160].mxu1  ;;  %v8223_v45 = vunpack.c.h.bf16 %v8549_v34 }
 0x5ce   : > { %v12505_v59 = vadd.f32 %v4096_v40, %v3764_v8  ;;  %v4430_v53 = vmul.f32 %v9671_v44, %v8151_v23  ;;  %v4205_v31 = vpop.f32.mrb[97].mxu0  ;;  %v4569_v5 = vpop.f32.mrb[161].mxu1  ;;  %v4794_v50 = vmul.f32 %v9737_v39, %v8215_v57  ;;  %v8158_v8 = vunpack.c.l.bf16 %v8533_v43  ;;  %v8534_v40 = vld [vmem:[%s12112_s0 + $0x218] sm:$0xff]  }
 0x5cf   : > { %v12507_v30 = vadd.f32 %v4095_v10, %v3763_v13  ;;  %v4429_v49 = vmul.f32 %v8150_v32, %v4205_v31  ;;  %v4793_v7 = vmul.f32 %v8214_v24, %v4569_v5  ;;  %v8159_v32 = vunpack.c.h.bf16 %v8533_v43 }
 0x5d0   : > { %v4462_v19 = vadd.f32 %v4430_v53, %v12347_v9  ;;  %v8222_v24 = vunpack.c.l.bf16 %v8549_v34  ;;  %v8162_v43 = vunpack.c.l.bf16 %v8534_v40  ;;  %v8551_v34 = vld [vmem:[%s12112_s0 + $0x2a0] sm:$0xff]  }
 0x5d1   : > { %v4461_v51 = vadd.f32 %v4429_v49, %v12351_v17  ;;  %v9674_v33 = vpop.f32.mrb[98].mxu0  ;;  %v9740_v1 = vpop.f32.mrb[162].mxu1  ;;  %v8163_v49 = vunpack.c.h.bf16 %v8534_v40 }
 0x5d2   : > { %v12513_v36 = vadd.f32 %v4794_v50, %v4462_v19  ;;  %v4432_v21 = vmul.f32 %v9674_v33, %v8155_v48  ;;  %v4215_v23 = vpop.f32.mrb[99].mxu0  ;;  %v4579_v6 = vpop.f32.mrb[163].mxu1  ;;  %v4796_v17 = vmul.f32 %v9740_v1, %v8219_v26  ;;  %v8535_v19 = vld [vmem:[%s12112_s0 + $0x220] sm:$0xff]   ;;  %v8227_v26 = vunpack.c.h.bf16 %v8550_v38 }
 0x5d3   : > { %v12515_v14 = vadd.f32 %v4793_v7, %v4461_v51  ;;  %v4431_v9 = vmul.f32 %v8154_v47, %v4215_v23  ;;  %v4795_v10 = vmul.f32 %v8218_v55, %v4579_v6  ;;  %v8226_v55 = vunpack.c.l.bf16 %v8550_v38  ;;  %v8552_v38 = vld [vmem:[%s12112_s0 + $0x2a8] sm:$0xff]  }
 0x5d4   : > { %v4464_v57 = vadd.f32 %v4432_v21, %v12359_v2  ;;  %v8166_v40 = vunpack.c.l.bf16 %v8535_v19 }
 0x5d5   : > { %v4463_v13 = vadd.f32 %v4431_v9, %v12363_v41  ;;  %v9677_v44 = vpop.f32.mrb[100].mxu0  ;;  %v9743_v39 = vpop.f32.mrb[164].mxu1  ;;  %v8167_v9 = vunpack.c.h.bf16 %v8535_v19 }
 0x5d6   : > { %v12521_v53 = vadd.f32 %v4796_v17, %v4464_v57  ;;  %v4434_v31 = vmul.f32 %v9677_v44, %v8159_v32  ;;  %v4225_v5 = vpop.f32.mrb[101].mxu0  ;;  %v4589_v48 = vpop.f32.mrb[165].mxu1  ;;  %v4798_v41 = vmul.f32 %v9743_v39, %v8223_v45  ;;  %v8536_v57 = vld [vmem:[%s12112_s0 + $0x228] sm:$0xff]   ;;  %v8231_v45 = vunpack.c.h.bf16 %v8551_v34 }
 0x5d7   : > { %v12523_v47 = vadd.f32 %v4795_v10, %v4463_v13  ;;  %v4433_v2 = vmul.f32 %v8158_v8, %v4225_v5  ;;  %v4797_v7 = vmul.f32 %v8222_v24, %v4589_v48  ;;  %v8230_v24 = vunpack.c.l.bf16 %v8551_v34  ;;  %v8553_v34 = vld [vmem:[%s12112_s0 + $0x2b0] sm:$0xff]  }
 0x5d8   : > { %v4466_v50 = vadd.f32 %v4434_v31, %v12371_v52  ;;  %v8170_v19 = vunpack.c.l.bf16 %v8536_v57 }
 0x5d9   : > { %v4465_v51 = vadd.f32 %v4433_v2, %v12375_v20  ;;  %v9680_v33 = vpop.f32.mrb[102].mxu0  ;;  %v9746_v1 = vpop.f32.mrb[166].mxu1  ;;  %v8171_v2 = vunpack.c.h.bf16 %v8536_v57 }
 0x5da   : > { %v12529_v21 = vadd.f32 %v4798_v41, %v4466_v50  ;;  %v4436_v23 = vmul.f32 %v9680_v33, %v8163_v49  ;;  %v4235_v6 = vpop.f32.mrb[103].mxu0  ;;  %v4599_v32 = vpop.f32.mrb[167].mxu1  ;;  %v4800_v20 = vmul.f32 %v9746_v1, %v8227_v26  ;;  %v8537_v50 = vld [vmem:[%s12112_s0 + $0x230] sm:$0xff]   ;;  %v8235_v26 = vunpack.c.h.bf16 %v8552_v38 }
 0x5db   : > { %v12531_v8 = vadd.f32 %v4797_v7, %v4465_v51  ;;  %v4435_v52 = vmul.f32 %v8162_v43, %v4235_v6  ;;  %v4799_v10 = vmul.f32 %v8226_v55, %v4599_v32  ;;  %v8234_v55 = vunpack.c.l.bf16 %v8552_v38  ;;  %v8554_v38 = vld [vmem:[%s12112_s0 + $0x2b8] sm:$0xff]  }
 0x5dc   : > { %v4468_v17 = vadd.f32 %v4436_v23, %v12383_v15  ;;  %v8174_v57 = vunpack.c.l.bf16 %v8537_v50 }
 0x5dd   : > { %v4467_v13 = vadd.f32 %v4435_v52, %v12387_v4  ;;  %v9683_v44 = vpop.f32.mrb[104].mxu0  ;;  %v9749_v39 = vpop.f32.mrb[168].mxu1  ;;  %v8175_v52 = vunpack.c.h.bf16 %v8537_v50 }
 0x5de   : > { %v12537_v31 = vadd.f32 %v4800_v20, %v4468_v17  ;;  %v4438_v5 = vmul.f32 %v9683_v44, %v8167_v9  ;;  %v4245_v48 = vpop.f32.mrb[105].mxu0  ;;  %v4609_v49 = vpop.f32.mrb[169].mxu1  ;;  %v4802_v4 = vmul.f32 %v9749_v39, %v8231_v45  ;;  %v8538_v17 = vld [vmem:[%s12112_s0 + $0x238] sm:$0xff]   ;;  %v8239_v45 = vunpack.c.h.bf16 %v8553_v34 }
 0x5df   : > { %v12539_v43 = vadd.f32 %v4799_v10, %v4467_v13  ;;  %v4437_v15 = vmul.f32 %v8166_v40, %v4245_v48  ;;  %v4801_v7 = vmul.f32 %v8230_v24, %v4609_v49  ;;  %v8238_v24 = vunpack.c.l.bf16 %v8553_v34  ;;  %v8555_v34 = vld [vmem:[%s12112_s0 + $0x2c0] sm:$0xff]  }
 0x5e0   : > { %v4470_v41 = vadd.f32 %v4438_v5, %v12395_v18  ;;  %v8178_v50 = vunpack.c.l.bf16 %v8538_v17 }
 0x5e1   : > { %v4469_v51 = vadd.f32 %v4437_v15, %v12399_v35  ;;  %v9686_v33 = vpop.f32.mrb[106].mxu0  ;;  %v9752_v1 = vpop.f32.mrb[170].mxu1  ;;  %v8179_v15 = vunpack.c.h.bf16 %v8538_v17 }
 0x5e2   : > { %v12545_v23 = vadd.f32 %v4802_v4, %v4470_v41  ;;  %v4440_v6 = vmul.f32 %v9686_v33, %v8171_v2  ;;  %v4255_v32 = vpop.f32.mrb[107].mxu0  ;;  %v4619_v9 = vpop.f32.mrb[171].mxu1  ;;  %v4804_v35 = vmul.f32 %v9752_v1, %v8235_v26  ;;  %v8539_v41 = vld [vmem:[%s12112_s0 + $0x240] sm:$0xff]   ;;  %v8243_v26 = vunpack.c.h.bf16 %v8554_v38 }
 0x5e3   : > { %v12547_v40 = vadd.f32 %v4801_v7, %v4469_v51  ;;  %v4439_v18 = vmul.f32 %v8170_v19, %v4255_v32  ;;  %v4803_v10 = vmul.f32 %v8234_v55, %v4619_v9  ;;  %v8242_v55 = vunpack.c.l.bf16 %v8554_v38  ;;  %v8556_v38 = vld [vmem:[%s12112_s0 + $0x2c8] sm:$0xff]  }
 0x5e4   : > { %v4472_v20 = vadd.f32 %v4440_v6, %v12407_v28  ;;  %v8182_v17 = vunpack.c.l.bf16 %v8539_v41 }
 0x5e5   : > { %v4471_v13 = vadd.f32 %v4439_v18, %v12411_v56  ;;  %v9689_v44 = vpop.f32.mrb[108].mxu0  ;;  %v9755_v39 = vpop.f32.mrb[172].mxu1  ;;  %v8183_v18 = vunpack.c.h.bf16 %v8539_v41 }
 0x5e6   : > { %v12553_v5 = vadd.f32 %v4804_v35, %v4472_v20  ;;  %v4442_v48 = vmul.f32 %v9689_v44, %v8175_v52  ;;  %v4265_v49 = vpop.f32.mrb[109].mxu0  ;;  %v4629_v2 = vpop.f32.mrb[173].mxu1  ;;  %v4806_v56 = vmul.f32 %v9755_v39, %v8239_v45  ;;  %v8540_v20 = vld [vmem:[%s12112_s0 + $0x248] sm:$0xff]   ;;  %v8247_v45 = vunpack.c.h.bf16 %v8555_v34 }
 0x5e7   : > { %v12555_v19 = vadd.f32 %v4803_v10, %v4471_v13  ;;  %v4441_v28 = vmul.f32 %v8174_v57, %v4265_v49  ;;  %v4805_v7 = vmul.f32 %v8238_v24, %v4629_v2  ;;  %v8246_v24 = vunpack.c.l.bf16 %v8555_v34  ;;  %v8557_v34 = vld [vmem:[%s12112_s0 + $0x2d0] sm:$0xff]  }
 0x5e8   : > { %v4474_v4 = vadd.f32 %v4442_v48, %v12419_v63  ;;  %v8186_v41 = vunpack.c.l.bf16 %v8540_v20 }
 0x5e9   : > { %v4473_v51 = vadd.f32 %v4441_v28, %v12423_v12  ;;  %v9692_v33 = vpop.f32.mrb[110].mxu0  ;;  %v9758_v1 = vpop.f32.mrb[174].mxu1  ;;  %v8187_v28 = vunpack.c.h.bf16 %v8540_v20 }
 0x5ea   : > { %v12561_v6 = vadd.f32 %v4806_v56, %v4474_v4  ;;  %v4444_v32 = vmul.f32 %v9692_v33, %v8179_v15  ;;  %v4275_v9 = vpop.f32.mrb[111].mxu0  ;;  %v4639_v52 = vpop.f32.mrb[175].mxu1  ;;  %v4808_v12 = vmul.f32 %v9758_v1, %v8243_v26  ;;  %v8541_v4 = vld [vmem:[%s12112_s0 + $0x250] sm:$0xff]   ;;  %v8251_v26 = vunpack.c.h.bf16 %v8556_v38 }
 0x5eb   : > { %v12563_v57 = vadd.f32 %v4805_v7, %v4473_v51  ;;  %v4443_v63 = vmul.f32 %v8178_v50, %v4275_v9  ;;  %v4807_v10 = vmul.f32 %v8242_v55, %v4639_v52  ;;  %v8250_v55 = vunpack.c.l.bf16 %v8556_v38  ;;  %v8558_v38 = vld [vmem:[%s12112_s0 + $0x2d8] sm:$0xff]  }
 0x5ec   : > { %v4476_v35 = vadd.f32 %v4444_v32, %v12431_v16  ;;  %v8190_v20 = vunpack.c.l.bf16 %v8541_v4 }
 0x5ed   : > { %v4475_v13 = vadd.f32 %v4443_v63, %v12435_v54  ;;  %v9695_v44 = vpop.f32.mrb[112].mxu0  ;;  %v9761_v39 = vpop.f32.mrb[176].mxu1  ;;  %v8191_v63 = vunpack.c.h.bf16 %v8541_v4 }
 0x5ee   : > { %v12569_v48 = vadd.f32 %v4808_v12, %v4476_v35  ;;  %v4446_v49 = vmul.f32 %v9695_v44, %v8183_v18  ;;  %v4285_v2 = vpop.f32.mrb[113].mxu0  ;;  %v4649_v15 = vpop.f32.mrb[177].mxu1  ;;  %v4810_v54 = vmul.f32 %v9761_v39, %v8247_v45  ;;  %v8542_v35 = vld [vmem:[%s12112_s0 + $0x258] sm:$0xff]   ;;  %v8255_v45 = vunpack.c.h.bf16 %v8557_v34 }
 0x5ef   : > { %v12571_v50 = vadd.f32 %v4807_v10, %v4475_v13  ;;  %v4445_v16 = vmul.f32 %v8182_v17, %v4285_v2  ;;  %v4809_v7 = vmul.f32 %v8246_v24, %v4649_v15  ;;  %v8254_v24 = vunpack.c.l.bf16 %v8557_v34  ;;  %v8559_v34 = vld [vmem:[%s12112_s0 + $0x2e0] sm:$0xff]  }
 0x5f0   : > { %v4478_v56 = vadd.f32 %v4446_v49, %v12443_v22  ;;  %v8194_v4 = vunpack.c.l.bf16 %v8542_v35 }
 0x5f1   : > { %v4477_v51 = vadd.f32 %v4445_v16, %v12447_v62  ;;  %v9698_v33 = vpop.f32.mrb[114].mxu0  ;;  %v9764_v1 = vpop.f32.mrb[178].mxu1  ;;  %v8195_v16 = vunpack.c.h.bf16 %v8542_v35 }
 0x5f2   : > { %v12577_v32 = vadd.f32 %v4810_v54, %v4478_v56  ;;  %v4448_v9 = vmul.f32 %v9698_v33, %v8187_v28  ;;  %v4295_v52 = vpop.f32.mrb[115].mxu0  ;;  %v4659_v18 = vpop.f32.mrb[179].mxu1  ;;  %v4812_v62 = vmul.f32 %v9764_v1, %v8251_v26  ;;  %v8543_v56 = vld [vmem:[%s12112_s0 + $0x260] sm:$0xff]   ;;  %v8259_v26 = vunpack.c.h.bf16 %v8558_v38 }
 0x5f3   : > { %v12579_v17 = vadd.f32 %v4809_v7, %v4477_v51  ;;  %v4447_v22 = vmul.f32 %v8186_v41, %v4295_v52  ;;  %v4811_v10 = vmul.f32 %v8250_v55, %v4659_v18  ;;  %v8258_v55 = vunpack.c.l.bf16 %v8558_v38  ;;  %v8560_v38 = vld [vmem:[%s12112_s0 + $0x2e8] sm:$0xff]  }
 0x5f4   : > { %v4480_v12 = vadd.f32 %v4448_v9, %v12455_v11  ;;  %v8198_v35 = vunpack.c.l.bf16 %v8543_v56 }
 0x5f5   : > { %v4479_v13 = vadd.f32 %v4447_v22, %v12459_v60  ;;  %v9701_v44 = vpop.f32.mrb[116].mxu0  ;;  %v9767_v39 = vpop.f32.mrb[180].mxu1  ;;  %v8199_v22 = vunpack.c.h.bf16 %v8543_v56 }
 0x5f6   : > { %v12585_v49 = vadd.f32 %v4812_v62, %v4480_v12  ;;  %v4450_v2 = vmul.f32 %v9701_v44, %v8191_v63  ;;  %v4305_v15 = vpop.f32.mrb[117].mxu0  ;;  %v4669_v28 = vpop.f32.mrb[181].mxu1  ;;  %v4814_v60 = vmul.f32 %v9767_v39, %v8255_v45  ;;  %v8544_v12 = vld [vmem:[%s12112_s0 + $0x268] sm:$0xff]   ;;  %v8263_v45 = vunpack.c.h.bf16 %v8559_v34 }
 0x5f7   : > { %v12587_v41 = vadd.f32 %v4811_v10, %v4479_v13  ;;  %v4449_v11 = vmul.f32 %v8190_v20, %v4305_v15  ;;  %v4813_v7 = vmul.f32 %v8254_v24, %v4669_v28  ;;  %v8262_v24 = vunpack.c.l.bf16 %v8559_v34  ;;  %v8561_v34 = vld [vmem:[%s12112_s0 + $0x2f0] sm:$0xff]  }
 0x5f8   : > { %v4482_v54 = vadd.f32 %v4450_v2, %v12465_v46  ;;  %v8202_v56 = vunpack.c.l.bf16 %v8544_v12 }
 0x5f9   : > { %v4481_v51 = vadd.f32 %v4449_v11, %v12467_v37  ;;  %v9704_v33 = vpop.f32.mrb[118].mxu0  ;;  %v9770_v1 = vpop.f32.mrb[182].mxu1  ;;  %v8203_v11 = vunpack.c.h.bf16 %v8544_v12 }
 0x5fa   : > { %v12593_v9 = vadd.f32 %v4814_v60, %v4482_v54  ;;  %v4452_v52 = vmul.f32 %v9704_v33, %v8195_v16  ;;  %v4315_v18 = vpop.f32.mrb[119].mxu0  ;;  %v4679_v63 = vpop.f32.mrb[183].mxu1  ;;  %v4816_v37 = vmul.f32 %v9770_v1, %v8259_v26  ;;  %v8545_v54 = vld [vmem:[%s12112_s0 + $0x270] sm:$0xff]   ;;  %v8267_v26 = vunpack.c.h.bf16 %v8560_v38 }
 0x5fb   : > { %v12595_v20 = vadd.f32 %v4813_v7, %v4481_v51  ;;  %v4451_v46 = vmul.f32 %v8194_v4, %v4315_v18  ;;  %v4815_v10 = vmul.f32 %v8258_v55, %v4679_v63  ;;  %v8266_v55 = vunpack.c.l.bf16 %v8560_v38  ;;  %v8562_v38 = vld [vmem:[%s12112_s0 + $0x2f8] sm:$0xff]  }
 0x5fc   : > { %v4484_v62 = vadd.f32 %v4452_v52, %v12473_v25  ;;  %v8206_v12 = vunpack.c.l.bf16 %v8545_v54 }
 0x5fd   : > { %v4483_v13 = vadd.f32 %v4451_v46, %v12475_v61  ;;  %v9707_v44 = vpop.f32.mrb[120].mxu0  ;;  %v9773_v39 = vpop.f32.mrb[184].mxu1  ;;  %v8207_v46 = vunpack.c.h.bf16 %v8545_v54 }
 0x5fe   : > { %v12601_v2 = vadd.f32 %v4816_v37, %v4484_v62  ;;  %v4454_v15 = vmul.f32 %v9707_v44, %v8199_v22  ;;  %v4325_v28 = vpop.f32.mrb[121].mxu0  ;;  %v4689_v16 = vpop.f32.mrb[185].mxu1  ;;  %v4818_v61 = vmul.f32 %v9773_v39, %v8263_v45  ;;  %v8546_v62 = vld [vmem:[%s12112_s0 + $0x278] sm:$0xff]   ;;  %v8271_v45 = vunpack.c.h.bf16 %v8561_v34 }
 0x5ff   : > { %v12603_v4 = vadd.f32 %v4815_v10, %v4483_v13  ;;  %v4453_v25 = vmul.f32 %v8198_v35, %v4325_v28  ;;  %v4817_v7 = vmul.f32 %v8262_v24, %v4689_v16  ;;  %v8270_v24 = vunpack.c.l.bf16 %v8561_v34  ;;  %v8579_v34 = vld [vmem:[%s12112_s0 + $0x380] sm:$0xff]  }
 0x600   : > { %v4486_v60 = vadd.f32 %v4454_v15, %v12481_v58  ;;  %v8210_v54 = vunpack.c.l.bf16 %v8546_v62 }
 0x601   : > { %v4485_v51 = vadd.f32 %v4453_v25, %v12483_v27  ;;  %v9710_v33 = vpop.f32.mrb[122].mxu0  ;;  %v9776_v1 = vpop.f32.mrb[186].mxu1  ;;  %v8211_v25 = vunpack.c.h.bf16 %v8546_v62 }
 0x602   : > { %v12609_v52 = vadd.f32 %v4818_v61, %v4486_v60  ;;  %v4456_v18 = vmul.f32 %v9710_v33, %v8203_v11  ;;  %v4335_v63 = vpop.f32.mrb[123].mxu0  ;;  %v4699_v22 = vpop.f32.mrb[187].mxu1  ;;  %v4820_v27 = vmul.f32 %v9776_v1, %v8267_v26  ;;  %v8563_v60 = vld [vmem:[%s12112_s0 + $0x300] sm:$0xff]   ;;  %v8275_v26 = vunpack.c.h.bf16 %v8562_v38 }
 0x603   : > { %v12611_v35 = vadd.f32 %v4817_v7, %v4485_v51  ;;  %v4455_v58 = vmul.f32 %v8202_v56, %v4335_v63  ;;  %v4819_v10 = vmul.f32 %v8266_v55, %v4699_v22  ;;  %v8274_v55 = vunpack.c.l.bf16 %v8562_v38  ;;  %v8580_v38 = vld [vmem:[%s12112_s0 + $0x388] sm:$0xff]  }
 0x604   : > { %v4488_v37 = vadd.f32 %v4456_v18, %v12489_v42  ;;  %v8278_v62 = vunpack.c.l.bf16 %v8563_v60 }
 0x605   : > { %v4487_v13 = vadd.f32 %v4455_v58, %v12491_v29  ;;  %v9713_v44 = vpop.f32.mrb[124].mxu0  ;;  %v9779_v39 = vpop.f32.mrb[188].mxu1  ;;  %v8279_v58 = vunpack.c.h.bf16 %v8563_v60 }
 0x606   : > { %v12617_v15 = vadd.f32 %v4820_v27, %v4488_v37  ;;  %v4458_v28 = vmul.f32 %v9713_v44, %v8207_v46  ;;  %v4345_v16 = vpop.f32.mrb[125].mxu0  ;;  %v4709_v11 = vpop.f32.mrb[189].mxu1  ;;  %v4822_v29 = vmul.f32 %v9779_v39, %v8271_v45  ;;  %v8564_v37 = vld [vmem:[%s12112_s0 + $0x308] sm:$0xff]   ;;  %v8343_v45 = vunpack.c.h.bf16 %v8579_v34 }
 0x607   : > { %v12619_v56 = vadd.f32 %v4819_v10, %v4487_v13  ;;  %v4457_v42 = vmul.f32 %v8206_v12, %v4345_v16  ;;  %v4821_v7 = vmul.f32 %v8270_v24, %v4709_v11  ;;  %v8342_v24 = vunpack.c.l.bf16 %v8579_v34  ;;  %v8581_v34 = vld [vmem:[%s12112_s0 + $0x390] sm:$0xff]  }
 0x608   : > { %v4490_v61 = vadd.f32 %v4458_v28, %v12497_v3  ;;  %v8282_v60 = vunpack.c.l.bf16 %v8564_v37 }
 0x609   : > { %v4489_v51 = vadd.f32 %v4457_v42, %v12499_v0  ;;  %v9716_v33 = vpop.f32.mrb[126].mxu0  ;;  %v9782_v1 = vpop.f32.mrb[190].mxu1  ;;  %v8283_v42 = vunpack.c.h.bf16 %v8564_v37 }
 0x60a   : > { %v12625_v18 = vadd.f32 %v4822_v29, %v4490_v61  ;;  %v4460_v63 = vmul.f32 %v9716_v33, %v8211_v25  ;;  %v4355_v22 = vpop.f32.mrb[127].mxu0  ;;  %v4719_v46 = vpop.f32.mrb[191].mxu1  ;;  %v4824_v0 = vmul.f32 %v9782_v1, %v8275_v26  ;;  %v8565_v61 = vld [vmem:[%s12112_s0 + $0x310] sm:$0xff]   ;;  %v8347_v26 = vunpack.c.h.bf16 %v8580_v38 }
 0x60b   : > { %v12627_v12 = vadd.f32 %v4821_v7, %v4489_v51  ;;  %v4459_v3 = vmul.f32 %v8210_v54, %v4355_v22  ;;  %v4823_v10 = vmul.f32 %v8274_v55, %v4719_v46  ;;  %v8346_v55 = vunpack.c.l.bf16 %v8580_v38  ;;  %v8582_v38 = vld [vmem:[%s12112_s0 + $0x398] sm:$0xff]  }
 0x60c   : > { %v4492_v27 = vadd.f32 %v4460_v63, %v12505_v59  ;;  %v8286_v37 = vunpack.c.l.bf16 %v8565_v61 }
 0x60d   : > { %v4491_v13 = vadd.f32 %v4459_v3, %v12507_v30  ;;  %v9803_v44 = vpop.f32.mrb[128].mxu0  ;;  %v9869_v39 = vpop.f32.mrb[192].mxu1  ;;  %v8287_v3 = vunpack.c.h.bf16 %v8565_v61 }
 0x60e   : > { %v12633_v28 = vadd.f32 %v4824_v0, %v4492_v27  ;;  %v5158_v16 = vmul.f32 %v9803_v44, %v8279_v58  ;;  %v4933_v11 = vpop.f32.mrb[129].mxu0  ;;  %v5297_v25 = vpop.f32.mrb[193].mxu1  ;;  %v5522_v30 = vmul.f32 %v9869_v39, %v8343_v45  ;;  %v8566_v27 = vld [vmem:[%s12112_s0 + $0x318] sm:$0xff]   ;;  %v8351_v45 = vunpack.c.h.bf16 %v8581_v34 }
 0x60f   : > { %v12635_v54 = vadd.f32 %v4823_v10, %v4491_v13  ;;  %v5157_v59 = vmul.f32 %v8278_v62, %v4933_v11  ;;  %v5521_v7 = vmul.f32 %v8342_v24, %v5297_v25  ;;  %v8350_v24 = vunpack.c.l.bf16 %v8581_v34  ;;  %v8583_v34 = vld [vmem:[%s12112_s0 + $0x3a0] sm:$0xff]  }
 0x610   : > { %v5190_v29 = vadd.f32 %v5158_v16, %v12513_v36  ;;  %v8290_v61 = vunpack.c.l.bf16 %v8566_v27 }
 0x611   : > { %v5189_v51 = vadd.f32 %v5157_v59, %v12515_v14  ;;  %v9806_v33 = vpop.f32.mrb[130].mxu0  ;;  %v9872_v1 = vpop.f32.mrb[194].mxu1  ;;  %v8291_v59 = vunpack.c.h.bf16 %v8566_v27 }
 0x612   : > { %v12641_v63 = vadd.f32 %v5522_v30, %v5190_v29  ;;  %v5160_v22 = vmul.f32 %v9806_v33, %v8283_v42  ;;  %v4943_v46 = vpop.f32.mrb[131].mxu0  ;;  %v5307_v58 = vpop.f32.mrb[195].mxu1  ;;  %v5524_v14 = vmul.f32 %v9872_v1, %v8347_v26  ;;  %v8567_v29 = vld [vmem:[%s12112_s0 + $0x320] sm:$0xff]   ;;  %v8355_v26 = vunpack.c.h.bf16 %v8582_v38 }
 0x613   : > { %v12643_v62 = vadd.f32 %v5521_v7, %v5189_v51  ;;  %v5159_v36 = vmul.f32 %v8282_v60, %v4943_v46  ;;  %v5523_v10 = vmul.f32 %v8346_v55, %v5307_v58  ;;  %v8354_v55 = vunpack.c.l.bf16 %v8582_v38  ;;  %v8584_v38 = vld [vmem:[%s12112_s0 + $0x3a8] sm:$0xff]  }
 0x614   : > { %v5192_v0 = vadd.f32 %v5160_v22, %v12521_v53  ;;  %v8294_v27 = vunpack.c.l.bf16 %v8567_v29 }
 0x615   : > { %v5191_v13 = vadd.f32 %v5159_v36, %v12523_v47  ;;  %v9809_v44 = vpop.f32.mrb[132].mxu0  ;;  %v9875_v39 = vpop.f32.mrb[196].mxu1  ;;  %v8295_v36 = vunpack.c.h.bf16 %v8567_v29 }
 0x616   : > { %v12649_v16 = vadd.f32 %v5524_v14, %v5192_v0  ;;  %v5162_v11 = vmul.f32 %v9809_v44, %v8287_v3  ;;  %v4953_v25 = vpop.f32.mrb[133].mxu0  ;;  %v5317_v42 = vpop.f32.mrb[197].mxu1  ;;  %v5526_v47 = vmul.f32 %v9875_v39, %v8351_v45  ;;  %v8568_v0 = vld [vmem:[%s12112_s0 + $0x328] sm:$0xff]   ;;  %v8359_v45 = vunpack.c.h.bf16 %v8583_v34 }
 0x617   : > { %v12651_v60 = vadd.f32 %v5523_v10, %v5191_v13  ;;  %v5161_v53 = vmul.f32 %v8286_v37, %v4953_v25  ;;  %v5525_v7 = vmul.f32 %v8350_v24, %v5317_v42  ;;  %v8358_v24 = vunpack.c.l.bf16 %v8583_v34  ;;  %v8585_v34 = vld [vmem:[%s12112_s0 + $0x3b0] sm:$0xff]  }
 0x618   : > { %v5194_v30 = vadd.f32 %v5162_v11, %v12529_v21  ;;  %v8298_v29 = vunpack.c.l.bf16 %v8568_v0 }
 0x619   : > { %v5193_v51 = vadd.f32 %v5161_v53, %v12531_v8  ;;  %v9812_v33 = vpop.f32.mrb[134].mxu0  ;;  %v9878_v1 = vpop.f32.mrb[198].mxu1  ;;  %v8299_v53 = vunpack.c.h.bf16 %v8568_v0 }
 0x61a   : > { %v12657_v22 = vadd.f32 %v5526_v47, %v5194_v30  ;;  %v5164_v46 = vmul.f32 %v9812_v33, %v8291_v59  ;;  %v4963_v58 = vpop.f32.mrb[135].mxu0  ;;  %v5327_v3 = vpop.f32.mrb[199].mxu1  ;;  %v5528_v8 = vmul.f32 %v9878_v1, %v8355_v26  ;;  %v8569_v30 = vld [vmem:[%s12112_s0 + $0x330] sm:$0xff]   ;;  %v8363_v26 = vunpack.c.h.bf16 %v8584_v38 }
 0x61b   : > { %v12659_v37 = vadd.f32 %v5525_v7, %v5193_v51  ;;  %v5163_v21 = vmul.f32 %v8290_v61, %v4963_v58  ;;  %v5527_v10 = vmul.f32 %v8354_v55, %v5327_v3  ;;  %v8362_v55 = vunpack.c.l.bf16 %v8584_v38  ;;  %v8586_v38 = vld [vmem:[%s12112_s0 + $0x3b8] sm:$0xff]  }
 0x61c   : > { %v5196_v14 = vadd.f32 %v5164_v46, %v12537_v31  ;;  %v8302_v0 = vunpack.c.l.bf16 %v8569_v30 }
 0x61d   : > { %v5195_v13 = vadd.f32 %v5163_v21, %v12539_v43  ;;  %v9815_v44 = vpop.f32.mrb[136].mxu0  ;;  %v9881_v39 = vpop.f32.mrb[200].mxu1  ;;  %v8303_v21 = vunpack.c.h.bf16 %v8569_v30 }
 0x61e   : > { %v12665_v11 = vadd.f32 %v5528_v8, %v5196_v14  ;;  %v5166_v25 = vmul.f32 %v9815_v44, %v8295_v36  ;;  %v4973_v42 = vpop.f32.mrb[137].mxu0  ;;  %v5337_v59 = vpop.f32.mrb[201].mxu1  ;;  %v5530_v43 = vmul.f32 %v9881_v39, %v8359_v45  ;;  %v8570_v14 = vld [vmem:[%s12112_s0 + $0x338] sm:$0xff]   ;;  %v8367_v45 = vunpack.c.h.bf16 %v8585_v34 }
 0x61f   : > { %v12667_v61 = vadd.f32 %v5527_v10, %v5195_v13  ;;  %v5165_v31 = vmul.f32 %v8294_v27, %v4973_v42  ;;  %v5529_v7 = vmul.f32 %v8358_v24, %v5337_v59  ;;  %v8366_v24 = vunpack.c.l.bf16 %v8585_v34  ;;  %v8587_v34 = vld [vmem:[%s12112_s0 + $0x3c0] sm:$0xff]  }
 0x620   : > { %v5198_v47 = vadd.f32 %v5166_v25, %v12545_v23  ;;  %v8306_v30 = vunpack.c.l.bf16 %v8570_v14 }
 0x621   : > { %v5197_v51 = vadd.f32 %v5165_v31, %v12547_v40  ;;  %v9818_v33 = vpop.f32.mrb[138].mxu0  ;;  %v9884_v1 = vpop.f32.mrb[202].mxu1  ;;  %v8307_v31 = vunpack.c.h.bf16 %v8570_v14 }
 0x622   : > { %v12673_v46 = vadd.f32 %v5530_v43, %v5198_v47  ;;  %v5168_v58 = vmul.f32 %v9818_v33, %v8299_v53  ;;  %v4983_v3 = vpop.f32.mrb[139].mxu0  ;;  %v5347_v36 = vpop.f32.mrb[203].mxu1  ;;  %v5532_v40 = vmul.f32 %v9884_v1, %v8363_v26  ;;  %v8571_v47 = vld [vmem:[%s12112_s0 + $0x340] sm:$0xff]   ;;  %v8371_v26 = vunpack.c.h.bf16 %v8586_v38 }
 0x623   : > { %v12675_v27 = vadd.f32 %v5529_v7, %v5197_v51  ;;  %v5167_v23 = vmul.f32 %v8298_v29, %v4983_v3  ;;  %v5531_v10 = vmul.f32 %v8362_v55, %v5347_v36  ;;  %v8370_v55 = vunpack.c.l.bf16 %v8586_v38  ;;  %v8588_v38 = vld [vmem:[%s12112_s0 + $0x3c8] sm:$0xff]  }
 0x624   : > { %v5200_v8 = vadd.f32 %v5168_v58, %v12553_v5  ;;  %v8310_v14 = vunpack.c.l.bf16 %v8571_v47 }
 0x625   : > { %v5199_v13 = vadd.f32 %v5167_v23, %v12555_v19  ;;  %v9821_v44 = vpop.f32.mrb[140].mxu0  ;;  %v9887_v39 = vpop.f32.mrb[204].mxu1  ;;  %v8311_v23 = vunpack.c.h.bf16 %v8571_v47 }
 0x626   : > { %v12681_v25 = vadd.f32 %v5532_v40, %v5200_v8  ;;  %v5170_v42 = vmul.f32 %v9821_v44, %v8303_v21  ;;  %v4993_v59 = vpop.f32.mrb[141].mxu0  ;;  %v5357_v53 = vpop.f32.mrb[205].mxu1  ;;  %v5534_v19 = vmul.f32 %v9887_v39, %v8367_v45  ;;  %v8572_v8 = vld [vmem:[%s12112_s0 + $0x348] sm:$0xff]   ;;  %v8375_v45 = vunpack.c.h.bf16 %v8587_v34 }
 0x627   : > { %v12683_v29 = vadd.f32 %v5531_v10, %v5199_v13  ;;  %v5169_v5 = vmul.f32 %v8302_v0, %v4993_v59  ;;  %v5533_v7 = vmul.f32 %v8366_v24, %v5357_v53  ;;  %v8374_v24 = vunpack.c.l.bf16 %v8587_v34 }
 0x628   : > { %v5202_v43 = vadd.f32 %v5170_v42, %v12561_v6  ;;  %v13666_v42 = vmov 0.0|0.0   ;;  %v8314_v47 = vunpack.c.l.bf16 %v8572_v8  ;;  %v8378_v34 = vunpack.c.l.bf16 %v8588_v38 }
 0x629   : > { %v5201_v51 = vadd.f32 %v5169_v5, %v12563_v57  ;;  %v9824_v33 = vpop.f32.mrb[142].mxu0  ;;  %v9890_v1 = vpop.f32.mrb[206].mxu1  ;;  %10198 = vmatprep.subr.bf16.mxu1 %v13666_v42  ;;  %10210 = vmatprep.subr.bf16.mxu0 %v13666_v42  ;;  %v8315_v5 = vunpack.c.h.bf16 %v8572_v8 }
 0x62a   : > { %v12689_v58 = vadd.f32 %v5534_v19, %v5202_v43  ;;  %v5172_v3 = vmul.f32 %v9824_v33, %v8307_v31  ;;  %v5003_v36 = vpop.f32.mrb[143].mxu0  ;;  %v5367_v21 = vpop.f32.mrb[207].mxu1  ;;  %v5536_v57 = vmul.f32 %v9890_v1, %v8371_v26  ;;  %v8573_v43 = vld [vmem:[%s12112_s0 + $0x350] sm:$0xff]  }
 0x62b   : > { %v12691_v0 = vadd.f32 %v5533_v7, %v5201_v51  ;;  %v5171_v6 = vmul.f32 %v8306_v30, %v5003_v36  ;;  %v5535_v10 = vmul.f32 %v8370_v55, %v5367_v21  ;;  %v8379_v51 = vunpack.c.h.bf16 %v8588_v38  ;;  %v6275_v36 = vld [vmem:[%s12709_s25] sm:$0xff]  ;;  %v6276_v21 = vld [vmem:[%s12709_s25 + $0x8] sm:$0xff] }
 0x62c   : > { %v5204_v40 = vadd.f32 %v5172_v3, %v12569_v48  ;;  %v8589_v3 = vld [vmem:[%s12112_s0 + $0x3d0] sm:$0xff]   ;;  %v8319_v8 = vunpack.c.h.bf16 %v8573_v43 }
 0x62d   : > { %v5203_v13 = vadd.f32 %v5171_v6, %v12571_v50  ;;  %v9827_v44 = vpop.f32.mrb[144].mxu0  ;;  %v9893_v39 = vpop.f32.mrb[208].mxu1 }
 0x62e   : > { %v12699_v59 = vadd.f32 %v5536_v57, %v5204_v40  ;;  %v5174_v53 = vmul.f32 %v9827_v44, %v8311_v23  ;;  %v5013_v48 = vpop.f32.mrb[145].mxu0  ;;  %v5377_v31 = vpop.f32.mrb[209].mxu1  ;;  %v5538_v26 = vmul.f32 %v9893_v39, %v8375_v45  ;;  %v10199_v40 = vpack.c.bf16 %v6276_v21, %v6275_v36 }
 0x62f   : > { %v12701_v50 = vadd.f32 %v5535_v10, %v5203_v13  ;;  %v5173_v30 = vmul.f32 %v8310_v14, %v5013_v48  ;;  %v5537_v33 = vmul.f32 %v8374_v24, %v5377_v31  ;;  %v8574_v13 = vld [vmem:[%s12112_s0 + $0x358] sm:$0xff]   ;;  %v8383_v39 = vunpack.c.h.bf16 %v8589_v3 }
 0x630   : > { %v5206_v19 = vadd.f32 %v5174_v53, %v12577_v32  ;;  %10200 = vmatpush3.bf16.msra.mxu1 %v10199_v40  ;;  %v8382_v31 = vunpack.c.l.bf16 %v8589_v3 }
 0x631   : > { %v5205_v7 = vadd.f32 %v5173_v30, %v12579_v17  ;;  %v9830_v1 = vpop.f32.mrb[146].mxu0  ;;  %v9896_v55 = vpop.f32.mrb[210].mxu1  ;;  %v8318_v17 = vunpack.c.l.bf16 %v8573_v43  ;;  %10201 = vmatprep.subr.bf16.mxu1 %v13666_v42 }
 0x632   : > { %v12715_v32 = vadd.f32 %v5538_v26, %v5206_v19  ;;  %v5176_v23 = vmul.f32 %v9830_v1, %v8315_v5  ;;  %v5023_v6 = vpop.f32.mrb[147].mxu0  ;;  %v5387_v14 = vpop.f32.mrb[211].mxu1  ;;  %v5540_v44 = vmul.f32 %v9896_v55, %v8379_v51  ;;  %v8590_v5 = vld [vmem:[%s12112_s0 + $0x3d8] sm:$0xff]  }
 0x633   : > { %v12717_v57 = vadd.f32 %v5537_v33, %v5205_v7  ;;  %v5175_v45 = vmul.f32 %v8314_v47, %v5023_v6  ;;  %v5539_v38 = vmul.f32 %v8378_v34, %v5387_v14  ;;  %v8322_v7 = vunpack.c.l.bf16 %v8574_v13  ;;  %v8575_v33 = vld [vmem:[%s12112_s0 + $0x360] sm:$0xff]  }
 0x634   : > { %v5208_v10 = vadd.f32 %v5176_v23, %v12585_v49  ;;  %v8323_v49 = vunpack.c.h.bf16 %v8574_v13  ;;  %v8387_v55 = vunpack.c.h.bf16 %v8590_v5  ;;  %v8386_v23 = vunpack.c.l.bf16 %v8590_v5  ;;  %v8591_v6 = vld [vmem:[%s12112_s0 + $0x3e0] sm:$0xff]  }
 0x635   : > { %v5207_v24 = vadd.f32 %v5175_v45, %v12587_v41  ;;  %v9833_v53 = vpop.f32.mrb[148].mxu0  ;;  %v9899_v48 = vpop.f32.mrb[212].mxu1  ;;  %v8390_v5 = vunpack.c.l.bf16 %v8591_v6 }
 0x636   : > { %v12724_v30 = vadd.f32 %v5540_v44, %v5208_v10  ;;  %v5178_v47 = vmul.f32 %v9833_v53, %v8319_v8  ;;  %v5033_v43 = vpop.f32.mrb[149].mxu0  ;;  %v5397_v19 = vpop.f32.mrb[213].mxu1  ;;  %v5542_v1 = vmul.f32 %v9899_v48, %v8383_v39  ;;  %v8326_v10 = vunpack.c.l.bf16 %v8575_v33  ;;  %v8576_v44 = vld [vmem:[%s12112_s0 + $0x368] sm:$0xff]  }
 0x637   : > { %v12726_v26 = vadd.f32 %v5539_v38, %v5207_v24  ;;  %v5177_v51 = vmul.f32 %v8318_v17, %v5033_v43  ;;  %v5541_v3 = vmul.f32 %v8382_v31, %v5397_v19  ;;  %v8327_v17 = vunpack.c.h.bf16 %v8575_v33 }
 0x638   : > { %v5210_v41 = vadd.f32 %v5178_v47, %v12593_v9  ;;  %v8391_v24 = vunpack.c.h.bf16 %v8591_v6  ;;  %v8592_v47 = vld [vmem:[%s12112_s0 + $0x3e8] sm:$0xff]  }
 0x639   : > { %v5209_v34 = vadd.f32 %v5177_v51, %v12595_v20  ;;  %v9836_v36 = vpop.f32.mrb[150].mxu0  ;;  %v9902_v21 = vpop.f32.mrb[214].mxu1 }
 0x63a   : > { %v12732_v14 = vadd.f32 %v5542_v1, %v5210_v41  ;;  %v5180_v8 = vmul.f32 %v9836_v36, %v8323_v49  ;;  %v5043_v40 = vpop.f32.mrb[151].mxu0  ;;  %v5407_v45 = vpop.f32.mrb[215].mxu1  ;;  %v5544_v20 = vmul.f32 %v9902_v21, %v8387_v55  ;;  %v8330_v41 = vunpack.c.l.bf16 %v8576_v44  ;;  %v8577_v1 = vld [vmem:[%s12112_s0 + $0x370] sm:$0xff]  }
 0x63b   : > { %v12734_v13 = vadd.f32 %v5541_v3, %v5209_v34  ;;  %v5179_v9 = vmul.f32 %v8322_v7, %v5043_v40  ;;  %v5543_v53 = vmul.f32 %v8386_v23, %v5407_v45  ;;  %v8331_v7 = vunpack.c.h.bf16 %v8576_v44  ;;  %v6277_v55 = vld [vmem:[%s12709_s25 + $0x10] sm:$0xff] }
 0x63c   : > { %v5212_v39 = vadd.f32 %v5180_v8, %v12601_v2  ;;  %v8395_v36 = vunpack.c.h.bf16 %v8592_v47  ;;  %v8394_v45 = vunpack.c.l.bf16 %v8592_v47 }
 0x63d   : > { %v5211_v38 = vadd.f32 %v5179_v9, %v12603_v4  ;;  %v9839_v48 = vpop.f32.mrb[152].mxu0  ;;  %v9905_v31 = vpop.f32.mrb[216].mxu1  ;;  %v6278_v4 = vld [vmem:[%s12709_s25 + $0x18] sm:$0xff] }
 0x63e   : > { %v12740_v43 = vadd.f32 %v5544_v20, %v5212_v39  ;;  %v5182_v19 = vmul.f32 %v9839_v48, %v8327_v17  ;;  %v5053_v49 = vpop.f32.mrb[153].mxu0  ;;  %v5417_v51 = vpop.f32.mrb[217].mxu1  ;;  %v5546_v3 = vmul.f32 %v9905_v31, %v8391_v24  ;;  %v10202_v21 = vpack.c.bf16 %v6278_v4, %v6277_v55  ;;  %v8593_v17 = vld [vmem:[%s12112_s0 + $0x3f0] sm:$0xff]   ;;  %v6280_v48 = vld [vmem:[%s12709_s25 + $0x28] sm:$0xff] }
 0x63f   : > { %v12742_v2 = vadd.f32 %v5543_v53, %v5211_v38  ;;  %v5181_v33 = vmul.f32 %v8326_v10, %v5053_v49  ;;  %v5545_v6 = vmul.f32 %v8390_v5, %v5417_v51  ;;  %v8334_v38 = vunpack.c.l.bf16 %v8577_v1  ;;  %v6279_v53 = vld [vmem:[%s12709_s25 + $0x20] sm:$0xff] }
 0x640   : > { %v5214_v34 = vadd.f32 %v5182_v19, %v12609_v52  ;;  %v8335_v52 = vunpack.c.h.bf16 %v8577_v1  ;;  %10203 = vmatpush3.bf16.msra.mxu1 %v10202_v21  ;;  %v8399_v47 = vunpack.c.h.bf16 %v8593_v17  ;;  %v8594_v19 = vld [vmem:[%s12112_s0 + $0x3f8] sm:$0xff]   ;;  %v10205_v49 = vpack.c.bf16 %v6280_v48, %v6279_v53 }
 0x641   : > { %v5213_v23 = vadd.f32 %v5181_v33, %v12611_v35  ;;  %v9842_v8 = vpop.f32.mrb[154].mxu0  ;;  %v9908_v40 = vpop.f32.mrb[218].mxu1  ;;  %v8578_v35 = vld [vmem:[%s12112_s0 + $0x378] sm:$0xff]   ;;  %10204 = vmatprep.subr.bf16.mxu1 %v13666_v42  ;;  %v8398_v1 = vunpack.c.l.bf16 %v8593_v17 }
 0x642   : > { %v12750_v9 = vadd.f32 %v5546_v3, %v5214_v34  ;;  %v5184_v10 = vmul.f32 %v9842_v8, %v8331_v7  ;;  %v5063_v44 = vpop.f32.mrb[155].mxu0  ;;  %v5427_v39 = vpop.f32.mrb[219].mxu1  ;;  %v5548_v5 = vmul.f32 %v9908_v40, %v8395_v36  ;;  %v8339_v21 = vunpack.c.h.bf16 %v8578_v35  ;;  %v8595_v8 = vld [vmem:[%s12112_s0 + $0x400] sm:$0xff]   ;;  %v6282_v40 = vld [vmem:[%s12709_s25 + $0x38] sm:$0xff] }
 0x643   : > { %v12752_v20 = vadd.f32 %v5545_v6, %v5213_v23  ;;  %v5183_v24 = vmul.f32 %v8330_v41, %v5063_v44  ;;  %v5547_v7 = vmul.f32 %v8394_v45, %v5427_v39  ;;  %v8403_v23 = vunpack.c.h.bf16 %v8594_v19 }
 0x644   : > { %v5216_v31 = vadd.f32 %v5184_v10, %v12617_v15  ;;  %10206 = vmatpush3.bf16.msra.mxu1 %v10205_v49  ;;  %v8338_v6 = vunpack.c.l.bf16 %v8578_v35  ;;  %v8402_v10 = vunpack.c.l.bf16 %v8594_v19  ;;  %v13667_v49 = vmov 0.0   ;;  %v8596_v19 = vld [vmem:[%s12112_s0 + $0x408] sm:$0xff]  }
 0x645   : > { %v5215_v51 = vadd.f32 %v5183_v24, %v12619_v56  ;;  %v9845_v33 = vpop.f32.mrb[156].mxu0  ;;  %v9911_v41 = vpop.f32.mrb[220].mxu1  ;;  %10207 = vmatprep.subr.bf16.mxu1 %v13666_v42  ;;  %v6281_v56 = vld [vmem:[%s12709_s25 + $0x30] sm:$0xff]  ;;  %9997 = vmatprep.mubr.msk.f32.mxu1 %vm10532_vm3, %v13667_v49 }
 0x646   : > { %v12761_v55 = vadd.f32 %v5548_v5, %v5216_v31  ;;  %v5186_v4 = vmul.f32 %v9845_v33, %v8335_v52  ;;  %v5073_v34 = vpop.f32.mrb[157].mxu0  ;;  %v5437_v3 = vpop.f32.mrb[221].mxu1  ;;  %v5550_v17 = vmul.f32 %v9911_v41, %v8399_v47  ;;  %v10208_v44 = vpack.c.bf16 %v6282_v40, %v6281_v56  ;;  %10008 = vmatprep.mubr.msk.f32.mxu0 %vm10532_vm3, %v13667_v49  ;;  %v8597_v40 = vld [vmem:[%s12112_s0 + $0x410] sm:$0xff]  }
 0x647   : > { %v12763_v15 = vadd.f32 %v5547_v7, %v5215_v51  ;;  %v5185_v36 = vmul.f32 %v8334_v38, %v5073_v34  ;;  %v5549_v52 = vmul.f32 %v8398_v1, %v5437_v3  ;;  %v8407_v5 = vunpack.c.h.bf16 %v8595_v8  ;;  %v12882_v49 = vld [vmem:[%s12112_s0 + $0x470] sm:$0xff]  }
 0x648   : > { %v5218_v45 = vadd.f32 %v5186_v4, %v12625_v18  ;;  %10209 = vmatpush3.bf16.msra.mxu1 %v10208_v44  ;;  %v8406_v47 = vunpack.c.l.bf16 %v8595_v8  ;;  %v6360_v8 = vld [vmem:[%s745_s28 + $0x10] sm:$0xff] }
 0x649   : > { %v5217_v39 = vadd.f32 %v5185_v36, %v12627_v12  ;;  %v9848_v24 = vpop.f32.mrb[158].mxu0  ;;  %v9914_v53 = vpop.f32.mrb[222].mxu1  ;;  %10216 = vmatprep.subr.bf16.mxu1 %v13666_v42  ;;  %v6358_v36 = vld [vmem:[%s745_s28] sm:$0xff] }
 0x64a   : > { %v12771_v48 = vadd.f32 %v5550_v17, %v5218_v45  ;;  %v5188_v38 = vmul.f32 %v9848_v24, %v8339_v21  ;;  %v5083_v35 = vpop.f32.mrb[159].mxu0  ;;  %v5447_v31 = vpop.f32.mrb[223].mxu1  ;;  %v5552_v7 = vmul.f32 %v9914_v53, %v8403_v23  ;;  %v8411_v21 = vunpack.c.h.bf16 %v8596_v19  ;;  %v6361_v45 = vld [vmem:[%s745_s28 + $0x18] sm:$0xff] }
 0x64b   : > { %v12775_v18 = vadd.f32 %v5549_v52, %v5217_v39  ;;  %v5187_v12 = vmul.f32 %v8338_v6, %v5083_v35  ;;  %v5551_v41 = vmul.f32 %v8402_v10, %v5447_v31  ;;  %v6359_v6 = vld [vmem:[%s745_s28 + $0x8] sm:$0xff]  ;;  %v8410_v23 = vunpack.c.l.bf16 %v8596_v19 }
 0x64c   : > { %v5220_v51 = vadd.f32 %v5188_v38, %v12633_v28  ;;  %v10214_v39 = vpack.c.bf16 %v6361_v45, %v6360_v8  ;;  %v8415_v38 = vunpack.c.h.bf16 %v8597_v40 }
 0x64d   : > { %v5219_v33 = vadd.f32 %v5187_v12, %v12635_v54  ;;  %v9935_v1 = vpop.f32.mrb[160].mxu0  ;;  %v10211_v54 = vpack.c.bf16 %v6359_v6, %v6358_v36  ;;  %v8600_v36 = vld [vmem:[%s12112_s0 + $0x428] sm:$0xff]  }
 0x64e   : > { %v12787_v4 = vadd.f32 %v5552_v7, %v5220_v51  ;;  %v5886_v34 = vmul.f32 %v9935_v1, %v8407_v5  ;;  %v5661_v3 = vpop.f32.mrb[161].mxu0  ;;  %v8414_v5 = vunpack.c.l.bf16 %v8597_v40  ;;  %v12820_v40 = vld [vmem:[%s12112_s0 + $0x430] sm:$0xff]  }
 0x64f   : > { %v12789_v56 = vadd.f32 %v5551_v41, %v5219_v33  ;;  %v5885_v28 = vmul.f32 %v8406_v47, %v5661_v3  ;;  %10212 = vmatpush3.bf16.msra.mxu0 %v10211_v54 }
 0x650   : > { %v12793_v17 = vadd.f32 %v5886_v34, %v12641_v63  ;;  %10213 = vmatprep.subr.bf16.mxu0 %v13666_v42  ;;  %v8598_v63 = vld [vmem:[%s12112_s0 + $0x418] sm:$0xff]  }
 0x651   : > { %v12796_v10 = vadd.f32 %v5885_v28, %v12643_v62  ;;  %v9938_v44 = vpop.f32.mrb[162].mxu0  ;;  %v8419_v33 = vunpack.c.h.bf16 %v8598_v63  ;;  %v8418_v34 = vunpack.c.l.bf16 %v8598_v63 }
 0x652   : > { %v7782_v52 = vmul.f32 -1.442695, %v12793_v17  ;;  %v5888_v24 = vmul.f32 %v9938_v44, %v8411_v21  ;;  %v5671_v53 = vpop.f32.mrb[163].mxu0 }
 0x653   : > { %v7781_v35 = vmul.f32 -1.442695, %v12796_v10  ;;  %v5887_v31 = vmul.f32 %v8410_v23, %v5671_v53  ;;  %10215 = vmatpush3.bf16.msra.mxu0 %v10214_v39  ;;  %v8427_v39 = vunpack.c.h.bf16 %v8600_v36 }
 0x654   : > { %10325 = vpow2.f32 %v7782_v52  ;;  %v12803_v62 = vadd.f32 %v5888_v24, %v12649_v16  ;;  %v8599_v16 = vld [vmem:[%s12112_s0 + $0x420] sm:$0xff]   ;;  %v8426_v52 = vunpack.c.l.bf16 %v8600_v36 }
 0x655   : > { %10327 = vpow2.f32 %v7781_v35  ;;  %v12806_v12 = vadd.f32 %v5887_v31, %v12651_v60  ;;  %v9941_v47 = vpop.f32.mrb[164].mxu0  ;;  %v8423_v23 = vunpack.c.h.bf16 %v8599_v16  ;;  %v8422_v44 = vunpack.c.l.bf16 %v8599_v16  ;;  %v12830_v24 = vld [vmem:[%s12112_s0 + $0x440] sm:$0xff]   ;;  %v12846_v16 = vld [vmem:[%s12112_s0 + $0x450] sm:$0xff]  }
 0x656   : > { %v7784_v19 = vmul.f32 -1.442695, %v12803_v62  ;;  %v5890_v51 = vmul.f32 %v9941_v47, %v8415_v38  ;;  %v5681_v7 = vpop.f32.mrb[165].mxu0  ;;  %v8431_v35 = vunpack.c.h.bf16 %v12820_v40  ;;  %v8430_v31 = vunpack.c.l.bf16 %v12820_v40 }
 0x657   : > { %v7783_v41 = vmul.f32 -1.442695, %v12806_v12  ;;  %v5889_v1 = vmul.f32 %v8414_v5, %v5681_v7  ;;  %v12841_v7 = vld [vmem:[%s12112_s0 + $0x448] sm:$0xff]  }
 0x658   : > { %10329 = vpow2.f32 %v7784_v19  ;;  %v12812_v3 = vadd.f32 %v5890_v51, %v12657_v22  ;;  %v12824_v22 = vld [vmem:[%s12112_s0 + $0x438] sm:$0xff]  }
 0x659   : > { %10331 = vpow2.f32 %v7783_v41  ;;  %v12815_v60 = vadd.f32 %v5889_v1, %v12659_v37  ;;  %v9944_v21 = vpop.f32.mrb[166].mxu0  ;;  %v8435_v19 = vunpack.c.h.bf16 %v12824_v22  ;;  %v8434_v51 = vunpack.c.l.bf16 %v12824_v22 }
 0x65a   : > { %v7786_v6 = vmul.f32 -1.442695, %v12812_v3  ;;  %v5892_v8 = vmul.f32 %v9944_v21, %v8419_v33  ;;  %v5691_v28 = vpop.f32.mrb[167].mxu0 }
 0x65b   : > { %v7785_v54 = vmul.f32 -1.442695, %v12815_v60  ;;  %v5891_v45 = vmul.f32 %v8418_v34, %v5691_v28  ;;  %v8439_v34 = vunpack.c.h.bf16 %v12830_v24 }
 0x65c   : > { %10333 = vpow2.f32 %v7786_v6  ;;  %v12827_v37 = vadd.f32 %v5892_v8, %v12665_v11  ;;  %v8438_v6 = vunpack.c.l.bf16 %v12830_v24 }
 0x65d   : > { %10335 = vpow2.f32 %v7785_v54  ;;  %v12833_v53 = vadd.f32 %v5891_v45, %v12667_v61  ;;  %v9947_v38 = vpop.f32.mrb[168].mxu0 }
 0x65e   : > { %v10326_v5 = vpop.eup %10325  ;;  %v7788_v63 = vmul.f32 -1.442695, %v12827_v37  ;;  %v5894_v47 = vmul.f32 %v9947_v38, %v8423_v23  ;;  %v5701_v11 = vpop.f32.mrb[169].mxu0  ;;  %v8443_v23 = vunpack.c.h.bf16 %v12841_v7 }
 0x65f   : > { %v10328_v33 = vpop.eup %10327  ;;  %v6046_v61 = vadd.f32 1.0, %v10326_v5  ;;  %v7787_v41 = vmul.f32 -1.442695, %v12833_v53  ;;  %v5893_v1 = vmul.f32 %v8422_v44, %v5701_v11  ;;  %v12860_v5 = vld [vmem:[%s12112_s0 + $0x458] sm:$0xff]  }
 0x660   : > { %v6045_v21 = vadd.f32 1.0, %v10328_v33  ;;  %10337 = vpow2.f32 %v7788_v63  ;;  %v12849_v36 = vadd.f32 %v5894_v47, %v12673_v46  ;;  %v12864_v33 = vld [vmem:[%s12112_s0 + $0x460] sm:$0xff]  }
 0x661   : > { %10339 = vrcp.f32 %v6046_v61  ;;  %v12853_v8 = vadd.f32 %v5893_v1, %v12675_v27  ;;  %v9950_v28 = vpop.f32.mrb[170].mxu0 }
 0x662   : > { %v10330_v54 = vpop.eup %10329  ;;  %10341 = vrcp.f32 %v6045_v21  ;;  %v7790_v45 = vmul.f32 -1.442695, %v12849_v36  ;;  %v5896_v44 = vmul.f32 %v9950_v28, %v8427_v39  ;;  %v5711_v38 = vpop.f32.mrb[171].mxu0 }
 0x663   : > { %v10332_v63 = vpop.eup %10331  ;;  %v6048_v47 = vadd.f32 1.0, %v10330_v54  ;;  %10343 = vpow2.f32 %v7787_v41  ;;  %v7789_v27 = vmul.f32 -1.442695, %v12853_v8  ;;  %v5895_v11 = vmul.f32 %v8426_v52, %v5711_v38 }
 0x664   : > { %v6047_v61 = vadd.f32 1.0, %v10332_v63  ;;  %10345 = vpow2.f32 %v7790_v45  ;;  %v12867_v1 = vadd.f32 %v5896_v44, %v12681_v25  ;;  %v12878_v44 = vld [vmem:[%s12112_s0 + $0x468] sm:$0xff]  }
 0x665   : > { %10347 = vrcp.f32 %v6048_v47  ;;  %v12871_v21 = vadd.f32 %v5895_v11, %v12683_v29  ;;  %v9953_v28 = vpop.f32.mrb[172].mxu0 }
 0x666   : > { %v10334_v54 = vpop.eup %10333  ;;  %10349 = vrcp.f32 %v6047_v61  ;;  %v7792_v38 = vmul.f32 -1.442695, %v12867_v1  ;;  %v5898_v45 = vmul.f32 %v9953_v28, %v8431_v35  ;;  %v5721_v63 = vpop.f32.mrb[173].mxu0 }
 0x667   : > { %v10336_v47 = vpop.eup %10335  ;;  %v6050_v42 = vadd.f32 1.0, %v10334_v54  ;;  %10351 = vpow2.f32 %v7789_v27  ;;  %v7791_v29 = vmul.f32 -1.442695, %v12871_v21  ;;  %v5897_v11 = vmul.f32 %v8430_v31, %v5721_v63 }
 0x668   : > { %v6049_v52 = vadd.f32 1.0, %v10336_v47  ;;  %10353 = vpow2.f32 %v7792_v38  ;;  %v12885_v61 = vadd.f32 %v5898_v45, %v12689_v58  ;;  %v12898_v47 = vld [vmem:[%s12112_s0 + $0x478] sm:$0xff]  }
 0x669   : > { %10355 = vrcp.f32 %v6050_v42  ;;  %v12889_v28 = vadd.f32 %v5897_v11, %v12691_v0  ;;  %v9956_v25 = vpop.f32.mrb[174].mxu0 }
 0x66a   : > { %v10338_v31 = vpop.eup %10337  ;;  %10357 = vrcp.f32 %v6049_v52  ;;  %v7794_v63 = vmul.f32 -1.442695, %v12885_v61  ;;  %v5900_v38 = vmul.f32 %v9956_v25, %v8435_v19  ;;  %v5731_v58 = vpop.f32.mrb[175].mxu0 }
 0x66b   : > { %v10340_v42 = vpop.eup %10339  ;;  %v6052_v0 = vadd.f32 1.0, %v10338_v31  ;;  %10359 = vpow2.f32 %v7791_v29  ;;  %v7793_v11 = vmul.f32 -1.442695, %v12889_v28  ;;  %v5899_v54 = vmul.f32 %v8434_v51, %v5731_v58  ;;  %v12918_v58 = vld [vmem:[%s10666_s23 + $0x8] sm:$0xff] }
 0x66c   : > { %v10342_v52 = vpop.eup %10341  ;;  %v12904_v27 = vmul.f32 %v10340_v42, %v12793_v17  ;;  %10361 = vpow2.f32 %v7794_v63  ;;  %v12907_v19 = vadd.f32 %v5900_v38, %v12699_v59  ;;  %13721 = vst [vmem:[#allocation9_spill] sm:$0xff] %v12918_v58 }
 0x66d   : > { %v10344_v45 = vpop.eup %10343  ;;  %v12911_v31 = vmul.f32 %v10342_v52, %v12796_v10  ;;  %10363 = vrcp.f32 %v6052_v0  ;;  %v12914_v29 = vadd.f32 %v5899_v54, %v12701_v50  ;;  %v9959_v22 = vpop.f32.mrb[176].mxu0  ;;  %v12924_v52 = vld [vmem:[%s10666_s23] sm:$0xff] }
 0x66e   : > { %v10346_v17 = vpop.eup %10345  ;;  %v6174_v59 = vadd.f32 %v12918_v58, %v12904_v27  ;;  %v6051_v63 = vadd.f32 1.0, %v10344_v45  ;;  %10365 = vpow2.f32 %v7793_v11  ;;  %v7796_v38 = vmul.f32 -1.442695, %v12907_v19  ;;  %v5741_v42 = vpop.f32.mrb[177].mxu0  ;;  %v12989_v58 = vld [vmem:[%s10666_s23 + $0x38] sm:$0xff] }
 0x66f   : > { %v10348_v10 = vpop.eup %10347  ;;  %v6173_v50 = vadd.f32 %v12924_v52, %v12911_v31  ;;  %v6054_v54 = vadd.f32 1.0, %v10346_v17  ;;  %v7795_v0 = vmul.f32 -1.442695, %v12914_v29  ;;  %v5902_v51 = vmul.f32 %v9959_v22, %v8439_v34 }
 0x670   : > { %v10350_v25 = vpop.eup %10349  ;;  %v6206_v45 = vsel %vm887_vm0, %v6174_v59, 0.0  ;;  %v12933_v11 = vmul.f32 %v10348_v10, %v12803_v62  ;;  %10367 = vrcp.f32 %v6051_v63  ;;  %v5901_v35 = vmul.f32 %v8438_v6, %v5741_v42  ;;  %v12945_v62 = vld [vmem:[%s10666_s23 + $0x18] sm:$0xff]  ;;  %v12950_v10 = vld [vmem:[%s10666_s23 + $0x10] sm:$0xff] }
 0x671   : > { %v10352_v41 = vpop.eup %10351  ;;  %v6205_v17 = vsel %vm887_vm0, %v6173_v50, 0.0  ;;  %v12939_v39 = vmul.f32 %v10350_v25, %v12806_v12  ;;  %10369 = vrcp.f32 %v6054_v54  ;;  %v12942_v34 = vadd.f32 %v5902_v51, %v12715_v32  ;;  %v9962_v22 = vpop.f32.mrb[178].mxu0  ;;  %13722 = vst [vmem:[#allocation4_spill] sm:$0xff] %v12945_v62  ;;  %13723 = vst [vmem:[#allocation10_spill] sm:$0xff] %v12950_v10 }
 0x672   : > { %v10354_v59 = vpop.eup %10353  ;;  %v6207_v46 = vadd.f32 %v6206_v45, %v6205_v17  ;;  %v6176_v24 = vadd.f32 %v12945_v62, %v12933_v11  ;;  %v6053_v63 = vadd.f32 1.0, %v10352_v41  ;;  %10371 = vpow2.f32 %v7796_v38  ;;  %v5751_v6 = vpop.f32.mrb[179].mxu0 }
 0x673   : > { %v10356_v42 = vpop.eup %10355  ;;  %v6175_v12 = vadd.f32 %v12950_v10, %v12939_v39  ;;  %v6056_v25 = vadd.f32 1.0, %v10354_v59  ;;  %10373 = vpow2.f32 %v7795_v0  ;;  %v7798_v32 = vmul.f32 -1.442695, %v12942_v34 }
 0x674   : > { %v10358_v51 = vpop.eup %10357  ;;  %v6210_v50 = vsel %vm887_vm0, %v6176_v24, 0.0  ;;  %v12957_v54 = vmul.f32 %v10356_v42, %v12812_v3  ;;  %10375 = vrcp.f32 %v6053_v63  ;;  %v12960_v41 = vadd.f32 %v5901_v35, %v12717_v57  ;;  %v12969_v3 = vld [vmem:[%s10666_s23 + $0x28] sm:$0xff] }
 0x675   : > { %v10360_v38 = vpop.eup %10359  ;;  %v6208_v45 = vsel %vm887_vm0, %v6175_v12, 0.0  ;;  %v12964_v17 = vmul.f32 %v10358_v51, %v12815_v60  ;;  %10377 = vrcp.f32 %v6056_v25  ;;  %v5904_v0 = vmul.f32 %v9962_v22, %v8443_v23  ;;  %v9965_v59 = vpop.f32.mrb[180].mxu0  ;;  %13724 = vst [vmem:[#allocation5_spill] sm:$0xff] %v12969_v3  ;;  %v12974_v12 = vld [vmem:[%s10666_s23 + $0x20] sm:$0xff] }
 0x676   : > { %v10362_v24 = vpop.eup %10361  ;;  %v6209_v40 = vadd.f32 %v6208_v45, %v6207_v46  ;;  %v6178_v63 = vadd.f32 %v12969_v3, %v12957_v54  ;;  %v6055_v57 = vadd.f32 1.0, %v10360_v38  ;;  %10379 = vpow2.f32 %v7798_v32  ;;  %v5761_v35 = vpop.f32.mrb[181].mxu0  ;;  %13725 = vst [vmem:[#allocation11_spill] sm:$0xff] %v12974_v12 }
 0x677   : > { %v10364_v42 = vpop.eup %10363  ;;  %v6177_v60 = vadd.f32 %v12974_v12, %v12964_v17  ;;  %v6058_v25 = vadd.f32 1.0, %v10362_v24  ;;  %v7797_v23 = vmul.f32 -1.442695, %v12960_v41  ;;  %v12980_v46 = vadd.f32 %v5904_v0, %v12724_v30 }
 0x678   : > { %v10366_v22 = vpop.eup %10365  ;;  %v6214_v51 = vsel %vm887_vm0, %v6178_v63, 0.0  ;;  %v6211_v45 = vadd.f32 %v6210_v50, %v6209_v40  ;;  %v12984_v32 = vmul.f32 %v10364_v42, %v12827_v37  ;;  %10381 = vrcp.f32 %v6055_v57 }
 0x679   : > { %v6212_v38 = vsel %vm887_vm0, %v6177_v60, 0.0  ;;  %10383 = vrcp.f32 %v6058_v25  ;;  %v6057_v3 = vadd.f32 1.0, %v10366_v22  ;;  %v7800_v12 = vmul.f32 -1.442695, %v12980_v46  ;;  %v9968_v24 = vpop.f32.mrb[182].mxu0 }
 0x67a   : > { %v10368_v62 = vpop.eup %10367  ;;  %v6213_v10 = vadd.f32 %v6212_v38, %v6211_v45  ;;  %v6180_v30 = vadd.f32 %v12989_v58, %v12984_v32  ;;  %10385 = vpow2.f32 %v7797_v23  ;;  %v13726_v37 = vunpack.c.l.bf16 %v12841_v7  ;;  %v5771_v50 = vpop.f32.mrb[183].mxu0  ;;  %v13007_v38 = vld [vmem:[%s10666_s23 + $0x30] sm:$0xff] }
 0x67b   : > { %v10370_v0 = vpop.eup %10369  ;;  %v12996_v63 = vmul.f32 %v10368_v62, %v12833_v53  ;;  %10387 = vrcp.f32 %v6057_v3  ;;  %v13727_v57 = vunpack.c.h.bf16 %v12846_v16  ;;  %v13728_v60 = vunpack.c.l.bf16 %v12846_v16 }
 0x67c   : > { %v5903_v40 = vmul.f32 %v13726_v37, %v5751_v6  ;;  %v10372_v22 = vpop.eup %10371  ;;  %v6218_v45 = vsel %vm887_vm0, %v6180_v30, 0.0  ;;  %v6215_v23 = vadd.f32 %v6214_v51, %v6213_v10  ;;  %v13004_v7 = vmul.f32 %v10370_v0, %v12849_v36  ;;  %v13018_v10 = vld [vmem:[%s10666_s23 + $0x48] sm:$0xff] }
 0x67d   : > { %v5906_v42 = vmul.f32 %v9965_v59, %v13727_v57  ;;  %v5905_v25 = vmul.f32 %v13728_v60, %v5761_v35  ;;  %10389 = vpow2.f32 %v7800_v12  ;;  %v10374_v6 = vpop.eup %10373  ;;  %v6179_v53 = vadd.f32 %v13007_v38, %v12996_v63  ;;  %v9971_v3 = vpop.f32.mrb[184].mxu0  ;;  %13729 = vst [vmem:[#allocation12_spill] sm:$0xff] %v13018_v10 }
 0x67e   : > { %v6060_v62 = vadd.f32 1.0, %v10372_v22  ;;  %v13012_v59 = vadd.f32 %v5903_v40, %v12726_v26  ;;  %v10376_v35 = vpop.eup %10375  ;;  %v6182_v36 = vadd.f32 %v13018_v10, %v13004_v7  ;;  %v6059_v12 = vadd.f32 1.0, %v10374_v6  ;;  %v5781_v26 = vpop.f32.mrb[185].mxu0 }
 0x67f   : > { %v13015_v16 = vadd.f32 %v5906_v42, %v12732_v14  ;;  %v13023_v51 = vadd.f32 %v5905_v25, %v12734_v13  ;;  %v13730_v30 = vunpack.c.h.bf16 %v12860_v5  ;;  %v10378_v40 = vpop.eup %10377  ;;  %v6216_v14 = vsel %vm887_vm0, %v6179_v53, 0.0 }
 0x680   : > { %v13029_v0 = vmul.f32 %v10376_v35, %v12853_v8  ;;  %10391 = vrcp.f32 %v6060_v62  ;;  %v7799_v57 = vmul.f32 -1.442695, %v13012_v59  ;;  %v10380_v42 = vpop.eup %10379  ;;  %v6217_v60 = vadd.f32 %v6216_v14, %v6215_v23 }
 0x681   : > { %v5908_v37 = vmul.f32 %v9968_v24, %v13730_v30  ;;  %v6222_v22 = vsel %vm887_vm0, %v6182_v36, 0.0  ;;  %v13034_v13 = vmul.f32 %v10378_v40, %v12867_v1  ;;  %10393 = vrcp.f32 %v6059_v12  ;;  %v13037_v24 = vld [vmem:[%s10666_s23 + $0x40] sm:$0xff]  ;;  %v9974_v53 = vpop.f32.mrb[186].mxu0  ;;  %v13043_v30 = vld [vmem:[%s10666_s23 + $0x58] sm:$0xff] }
 0x682   : > { %13731 = vst [vmem:[#allocation6_spill] sm:$0xff] %v13037_v24  ;;  %v6181_v25 = vadd.f32 %v13037_v24, %v13029_v0  ;;  %v6062_v6 = vadd.f32 1.0, %v10380_v42  ;;  %10395 = vpow2.f32 %v7799_v57  ;;  %v7802_v8 = vmul.f32 -1.442695, %v13015_v16  ;;  %v10382_v62 = vpop.eup %10381  ;;  %13732 = vst [vmem:[#allocation7_spill] sm:$0xff] %v13043_v30  ;;  %v5791_v12 = vpop.f32.mrb[187].mxu0 }
 0x683   : > { %v6219_v35 = vadd.f32 %v6218_v45, %v6217_v60  ;;  %v6184_v1 = vadd.f32 %v13043_v30, %v13034_v13  ;;  %v7801_v23 = vmul.f32 -1.442695, %v13023_v51  ;;  %v13049_v36 = vadd.f32 %v5908_v37, %v12740_v43  ;;  %v10384_v40 = vpop.eup %10383  ;;  %v13062_v37 = vld [vmem:[%s10666_s23 + $0x50] sm:$0xff] }
 0x684   : > { %v6220_v14 = vsel %vm887_vm0, %v6181_v25, 0.0  ;;  %v13053_v57 = vmul.f32 %v10382_v62, %v12871_v21  ;;  %10397 = vrcp.f32 %v6062_v6  ;;  %v13733_v45 = vunpack.c.l.bf16 %v12860_v5  ;;  %v10386_v60 = vpop.eup %10385  ;;  %13734 = vst [vmem:[#allocation13_spill] sm:$0xff] %v13062_v37 }
 0x685   : > { %v6221_v10 = vadd.f32 %v6220_v14, %v6219_v35  ;;  %v6226_v30 = vsel %vm887_vm0, %v6184_v1, 0.0  ;;  %v13059_v24 = vmul.f32 %v10384_v40, %v12885_v61  ;;  %10399 = vpow2.f32 %v7802_v8  ;;  %v10388_v43 = vpop.eup %10387  ;;  %v13068_v35 = vld [vmem:[%s10666_s23 + $0x68] sm:$0xff] }
 0x686   : > { %v5907_v42 = vmul.f32 %v13733_v45, %v5771_v50  ;;  %v6183_v21 = vadd.f32 %v13062_v37, %v13053_v57  ;;  %v6061_v25 = vadd.f32 1.0, %v10386_v60  ;;  %10401 = vpow2.f32 %v7801_v23  ;;  %v9977_v50 = vpop.f32.mrb[188].mxu0  ;;  %13735 = vst [vmem:[#allocation14_spill] sm:$0xff] %v13068_v35  ;;  %v13083_v37 = vld [vmem:[%s10666_s23 + $0x60] sm:$0xff] }
 0x687   : > { %v7804_v5 = vmul.f32 -1.442695, %v13049_v36  ;;  %v10390_v6 = vpop.eup %10389  ;;  %v6223_v62 = vadd.f32 %v6222_v22, %v6221_v10  ;;  %v6186_v61 = vadd.f32 %v13068_v35, %v13059_v24  ;;  %v13073_v8 = vmul.f32 %v10388_v43, %v12889_v28  ;;  %v5801_v40 = vpop.f32.mrb[189].mxu0 }
 0x688   : > { %v13076_v1 = vadd.f32 %v5907_v42, %v12742_v2  ;;  %v6224_v23 = vsel %vm887_vm0, %v6183_v21, 0.0  ;;  %10403 = vrcp.f32 %v6061_v25  ;;  %v6064_v14 = vadd.f32 1.0, %v10390_v6 }
 0x689   : > { %v13736_v45 = vunpack.c.h.bf16 %v12864_v33  ;;  %v6225_v10 = vadd.f32 %v6224_v23, %v6223_v62  ;;  %v6230_v22 = vsel %vm887_vm0, %v6186_v61, 0.0  ;;  %v6185_v28 = vadd.f32 %v13083_v37, %v13073_v8  ;;  %v9980_v25 = vpop.f32.mrb[190].mxu0 }
 0x68a   : > { %10405 = vpow2.f32 %v7804_v5  ;;  %v10392_v43 = vpop.eup %10391  ;;  %v7803_v2 = vmul.f32 -1.442695, %v13076_v1  ;;  %v13737_v21 = vunpack.c.l.bf16 %v12864_v33  ;;  %v13738_v5 = vunpack.c.h.bf16 %v12878_v44 }
 0x68b   : > { %v5910_v60 = vmul.f32 %v9971_v3, %v13736_v45  ;;  %10407 = vrcp.f32 %v6064_v14  ;;  %v10394_v6 = vpop.eup %10393  ;;  %v6227_v62 = vadd.f32 %v6226_v30, %v6225_v10  ;;  %v6228_v61 = vsel %vm887_vm0, %v6185_v28, 0.0  ;;  %v5811_v45 = vpop.f32.mrb[191].mxu0 }
 0x68c   : > { %v5909_v3 = vmul.f32 %v13737_v21, %v5781_v26  ;;  %v13095_v23 = vmul.f32 %v10392_v43, %v12907_v19  ;;  %v5912_v14 = vmul.f32 %v9974_v53, %v13738_v5  ;;  %v10396_v35 = vpop.eup %10395  ;;  %10409 = vpow2.f32 %v7803_v2  ;;  %v13115_v43 = vld [vmem:[%s10666_s23 + $0x70] sm:$0xff] }
 0x68d   : > { %v13089_v42 = vadd.f32 %v5910_v60, %v12750_v9  ;;  %v13100_v9 = vmul.f32 %v10394_v6, %v12914_v29  ;;  %v6229_v30 = vadd.f32 %v6228_v61, %v6227_v62  ;;  %v13107_v60 = vld [vmem:[%s10666_s23 + $0x78] sm:$0xff]  ;;  %v6063_v10 = vadd.f32 1.0, %v10396_v35 }
 0x68e   : > { %v13104_v26 = vadd.f32 %v5909_v3, %v12752_v20  ;;  %13739 = vst [vmem:[#allocation8_spill] sm:$0xff] %v13107_v60  ;;  %v6188_v19 = vadd.f32 %v13107_v60, %v13095_v23  ;;  %v13112_v53 = vadd.f32 %v5912_v14, %v12761_v55  ;;  %v10398_v28 = vpop.eup %10397  ;;  %v13740_v2 = vunpack.c.l.bf16 %v12878_v44 }
 0x68f   : > { %v7806_v33 = vmul.f32 -1.442695, %v13089_v42  ;;  %v6187_v29 = vadd.f32 %v13115_v43, %v13100_v9  ;;  %v10400_v3 = vpop.eup %10399  ;;  %v6231_v62 = vadd.f32 %v6230_v22, %v6229_v30  ;;  %v8466_v55 = vunpack.c.l.bf16 %v12898_v47 }
 0x690   : > { %v7805_v20 = vmul.f32 -1.442695, %v13104_v26  ;;  %v5911_v21 = vmul.f32 %v13740_v2, %v5791_v12  ;;  %v6234_v6 = vsel %vm887_vm0, %v6188_v19, 0.0  ;;  %v10402_v35 = vpop.eup %10401  ;;  %v6066_v5 = vadd.f32 1.0, %v10400_v3 }
 0x691   : > { %10411 = vpow2.f32 %v7806_v33  ;;  %v6232_v61 = vsel %vm887_vm0, %v6187_v29, 0.0  ;;  %v7808_v14 = vmul.f32 -1.442695, %v13112_v53  ;;  %v13127_v60 = vmul.f32 %v10398_v28, %v12942_v34 }
 0x692   : > { %10413 = vrcp.f32 %v6063_v10  ;;  %v6233_v33 = vadd.f32 %v6232_v61, %v6231_v62  ;;  %v6065_v44 = vadd.f32 1.0, %v10402_v35  ;;  %v13130_v12 = vadd.f32 %v5911_v21, %v12763_v15  ;;  %v10404_v22 = vpop.eup %10403 }
 0x693   : > { %10415 = vpow2.f32 %v7805_v20  ;;  %v13741_v30 = vunpack.c.h.bf16 %v12882_v49  ;;  %v13742_v10 = vunpack.c.l.bf16 %v12882_v49  ;;  %v13743_v20 = vunpack.c.h.bf16 %v12898_v47  ;;  %v13146_v49 = vld [vmem:[%s10666_s23 + $0x80] sm:$0xff] }
 0x694   : > { %10417 = vrcp.f32 %v6066_v5  ;;  %v10406_v3 = vpop.eup %10405  ;;  %v13139_v34 = vmul.f32 %v10404_v22, %v12960_v41  ;;  %v6235_v28 = vadd.f32 %v6234_v6, %v6233_v33  ;;  %v7807_v62 = vmul.f32 -1.442695, %v13130_v12  ;;  %v13157_v6 = vld [vmem:[%s10666_s23 + $0x88] sm:$0xff] }
 0x695   : > { %v5914_v19 = vmul.f32 %v9977_v50, %v13741_v30  ;;  %v5913_v29 = vmul.f32 %v13742_v10, %v5801_v40  ;;  %v5916_v2 = vmul.f32 %v9980_v25, %v13743_v20  ;;  %10419 = vrcp.f32 %v6065_v44  ;;  %v10408_v15 = vpop.eup %10407 }
 0x696   : > { %v6068_v21 = vadd.f32 1.0, %v10406_v3  ;;  %10421 = vpow2.f32 %v7808_v14  ;;  %v6189_v47 = vadd.f32 %v13146_v49, %v13139_v34  ;;  %v10410_v25 = vpop.eup %10409  ;;  %v6190_v35 = vadd.f32 %v13157_v6, %v13127_v60 }
 0x697   : > { %v13143_v50 = vadd.f32 %v5914_v19, %v12771_v48  ;;  %v13151_v40 = vadd.f32 %v5913_v29, %v12775_v18  ;;  %v13154_v41 = vadd.f32 %v5916_v2, %v12787_v4  ;;  %v5915_v61 = vmul.f32 %v8466_v55, %v5811_v45 }
 0x698   : > { %10423 = vrcp.f32 %v6068_v21  ;;  %v6236_v5 = vsel %vm887_vm0, %v6189_v47, 0.0  ;;  %v13164_v14 = vmul.f32 %v10408_v15, %v12980_v46  ;;  %v6067_v18 = vadd.f32 1.0, %v10410_v25  ;;  %v13182_v15 = vld [vmem:[%s10666_s23 + $0x90] sm:$0xff] }
 0x699   : > { %v7810_v48 = vmul.f32 -1.442695, %v13143_v50  ;;  %10425 = vpow2.f32 %v7807_v62  ;;  %v6237_v4 = vadd.f32 %v6236_v5, %v6235_v28  ;;  %v7809_v44 = vmul.f32 -1.442695, %v13151_v40  ;;  %v13177_v28 = vld [vmem:[%s10666_s23 + $0x98] sm:$0xff] }
 0x69a   : > { %v7812_v22 = vmul.f32 -1.442695, %v13154_v41  ;;  %v13169_v45 = vadd.f32 %v5915_v61, %v12789_v56  ;;  %v6238_v46 = vsel %vm887_vm0, %v6190_v35, 0.0  ;;  %v6192_v56 = vadd.f32 %v13177_v28, %v13164_v14 }
 0x69b   : > { %v10412_v33 = vpop.eup %10411  ;;  %10427 = vpow2.f32 %v7810_v48  ;;  %v6239_v29 = vadd.f32 %v6238_v46, %v6237_v4 }
 0x69c   : > { %v10414_v30 = vpop.eup %10413  ;;  %10429 = vrcp.f32 %v6067_v18  ;;  %v6070_v19 = vadd.f32 1.0, %v10412_v33  ;;  %v7811_v2 = vmul.f32 -1.442695, %v13169_v45  ;;  %v6242_v18 = vsel %vm887_vm0, %v6192_v56, 0.0  ;;  %v13195_v33 = vld [vmem:[%s10666_s23 + $0xa8] sm:$0xff] }
 0x69d   : > { %v10416_v55 = vpop.eup %10415  ;;  %v13173_v10 = vmul.f32 %v10414_v30, %v13012_v59  ;;  %10431 = vpow2.f32 %v7809_v44 }
 0x69e   : > { %10433 = vrcp.f32 %v6070_v19  ;;  %v6069_v20 = vadd.f32 1.0, %v10416_v55  ;;  %v10418_v3 = vpop.eup %10417 }
 0x69f   : > { %v6191_v59 = vadd.f32 %v13182_v15, %v13173_v10  ;;  %10435 = vpow2.f32 %v7812_v22  ;;  %v10420_v21 = vpop.eup %10419  ;;  %v13187_v62 = vmul.f32 %v10418_v3, %v13015_v16  ;;  %v13200_v16 = vld [vmem:[%s10666_s23 + $0xa0] sm:$0xff] }
 0x6a0   : > { %10437 = vrcp.f32 %v6069_v20  ;;  %v10422_v47 = vpop.eup %10421  ;;  %v13191_v35 = vmul.f32 %v10420_v21, %v13023_v51 }
 0x6a1   : > { %v6240_v25 = vsel %vm887_vm0, %v6191_v59, 0.0  ;;  %10439 = vpow2.f32 %v7811_v2  ;;  %v6072_v61 = vadd.f32 1.0, %v10422_v47  ;;  %v6194_v4 = vadd.f32 %v13195_v33, %v13187_v62 }
 0x6a2   : > { %v6241_v48 = vadd.f32 %v6240_v25, %v6239_v29  ;;  %v10424_v5 = vpop.eup %10423  ;;  %v6193_v44 = vadd.f32 %v13200_v16, %v13191_v35 }
 0x6a3   : > { %v10426_v22 = vpop.eup %10425  ;;  %10441 = vrcp.f32 %v6072_v61  ;;  %v13206_v55 = vmul.f32 %v10424_v5, %v13049_v36  ;;  %v6246_v56 = vsel %vm887_vm0, %v6194_v4, 0.0  ;;  %v13213_v36 = vld [vmem:[%s10666_s23 + $0xb8] sm:$0xff]  ;;  %v13218_v5 = vld [vmem:[%s10666_s23 + $0xb0] sm:$0xff] }
 0x6a4   : > { %v6243_v30 = vadd.f32 %v6242_v18, %v6241_v48  ;;  %v6244_v19 = vsel %vm887_vm0, %v6193_v44, 0.0  ;;  %v6071_v46 = vadd.f32 1.0, %v10426_v22  ;;  %13744 = vst [vmem:[#allocation15_spill] sm:$0xff] %v13213_v36  ;;  %13745 = vst [vmem:[#allocation16_spill] sm:$0xff] %v13218_v5 }
 0x6a5   : > { %v10428_v51 = vpop.eup %10427  ;;  %v6196_v61 = vadd.f32 %v13213_v36, %v13206_v55 }
 0x6a6   : > { %v10430_v29 = vpop.eup %10429  ;;  %v6245_v20 = vadd.f32 %v6244_v19, %v6243_v30  ;;  %v6074_v2 = vadd.f32 1.0, %v10428_v51  ;;  %10443 = vrcp.f32 %v6071_v46 }
 0x6a7   : > { %v10432_v3 = vpop.eup %10431  ;;  %v13210_v59 = vmul.f32 %v10430_v29, %v13076_v1  ;;  %v6250_v29 = vsel %vm887_vm0, %v6196_v61, 0.0 }
 0x6a8   : > { %v10434_v21 = vpop.eup %10433  ;;  %v6247_v47 = vadd.f32 %v6246_v56, %v6245_v20  ;;  %10445 = vrcp.f32 %v6074_v2  ;;  %v6073_v25 = vadd.f32 1.0, %v10432_v3  ;;  %v13231_v20 = vld [vmem:[%s10666_s23 + $0xc0] sm:$0xff]  ;;  %v13236_v3 = vld [vmem:[%s10666_s23 + $0xc8] sm:$0xff] }
 0x6a9   : > { %v10436_v48 = vpop.eup %10435  ;;  %v6195_v18 = vadd.f32 %v13218_v5, %v13210_v59  ;;  %v13223_v4 = vmul.f32 %v10434_v21, %v13089_v42  ;;  %13746 = vst [vmem:[#allocation17_spill] sm:$0xff] %v13231_v20  ;;  %13747 = vst [vmem:[#allocation18_spill] sm:$0xff] %v13236_v3 }
 0x6aa   : > { %v10438_v1 = vpop.eup %10437  ;;  %10447 = vrcp.f32 %v6073_v25  ;;  %v6076_v44 = vadd.f32 1.0, %v10436_v48 }
 0x6ab   : > { %v10440_v22 = vpop.eup %10439  ;;  %v6248_v30 = vsel %vm887_vm0, %v6195_v18, 0.0  ;;  %v13227_v51 = vmul.f32 %v10438_v1, %v13104_v26  ;;  %v6198_v56 = vadd.f32 %v13236_v3, %v13223_v4 }
 0x6ac   : > { %v6249_v19 = vadd.f32 %v6248_v30, %v6247_v47  ;;  %10449 = vrcp.f32 %v6076_v44  ;;  %v6075_v46 = vadd.f32 1.0, %v10440_v22  ;;  %v13249_v30 = vld [vmem:[%s10666_s23 + $0xd8] sm:$0xff] }
 0x6ad   : > { %v6197_v42 = vadd.f32 %v13231_v20, %v13227_v51  ;;  %v10442_v2 = vpop.eup %10441  ;;  %v6254_v18 = vsel %vm887_vm0, %v6198_v56, 0.0  ;;  %13748 = vst [vmem:[#allocation19_spill] sm:$0xff] %v13249_v30 }
 0x6ae   : > { %v6251_v26 = vadd.f32 %v6250_v29, %v6249_v19  ;;  %10451 = vrcp.f32 %v6075_v46  ;;  %v13242_v25 = vmul.f32 %v10442_v2, %v13112_v53  ;;  %v13254_v46 = vld [vmem:[%s10666_s23 + $0xd0] sm:$0xff] }
 0x6af   : > { %v6252_v21 = vsel %vm887_vm0, %v6197_v42, 0.0  ;;  %13749 = vst [vmem:[#allocation20_spill] sm:$0xff] %v13254_v46 }
 0x6b0   : > { %v6253_v47 = vadd.f32 %v6252_v21, %v6251_v26  ;;  %v10444_v48 = vpop.eup %10443  ;;  %v6200_v19 = vadd.f32 %v13249_v30, %v13242_v25  ;;  %v13266_v26 = vld [vmem:[%s10666_s23 + $0xe0] sm:$0xff]  ;;  %v13290_v30 = vld [vmem:[%s10666_s23 + $0xf8] sm:$0xff] }
 0x6b1   : > { %v13246_v1 = vmul.f32 %v10444_v48, %v13130_v12  ;;  %13750 = vst [vmem:[#allocation21_spill] sm:$0xff] %v13266_v26  ;;  %13753 = vst [vmem:[#allocation24_spill] sm:$0xff] %v13290_v30 }
 0x6b2   : > { %v10446_v61 = vpop.eup %10445  ;;  %v6255_v44 = vadd.f32 %v6254_v18, %v6253_v47  ;;  %v6258_v48 = vsel %vm887_vm0, %v6200_v19, 0.0  ;;  %v13272_v18 = vld [vmem:[%s10666_s23 + $0xe8] sm:$0xff] }
 0x6b3   : > { %v6199_v53 = vadd.f32 %v13254_v46, %v13246_v1  ;;  %v13259_v29 = vmul.f32 %v10446_v61, %v13143_v50  ;;  %13751 = vst [vmem:[#allocation22_spill] sm:$0xff] %v13272_v18  ;;  %v6437_v46 = vld [vmem:[%s753_s17 + $0x8] sm:$0xff] }
 0x6b4   : > { %v10448_v22 = vpop.eup %10447 }
 0x6b5   : > { %v13262_v12 = vmul.f32 %v10448_v22, %v13151_v40  ;;  %v6256_v2 = vsel %vm887_vm0, %v6199_v53, 0.0  ;;  %v6202_v50 = vadd.f32 %v13272_v18, %v13259_v29  ;;  %v6436_v18 = vld [vmem:[%s753_s17] sm:$0xff] }
 0x6b6   : > { %v10450_v42 = vpop.eup %10449  ;;  %v6257_v56 = vadd.f32 %v6256_v2, %v6255_v44  ;;  %v13284_v2 = vld [vmem:[%s10666_s23 + $0xf0] sm:$0xff] }
 0x6b7   : > { %v6201_v21 = vadd.f32 %v13266_v26, %v13262_v12  ;;  %v13277_v40 = vmul.f32 %v10450_v42, %v13154_v41  ;;  %13752 = vst [vmem:[#allocation23_spill] sm:$0xff] %v13284_v2  ;;  %v6262_v26 = vsel %vm887_vm0, %v6202_v50, 0.0 }
 0x6b8   : > { %v10452_v47 = vpop.eup %10451  ;;  %v6259_v61 = vadd.f32 %v6258_v48, %v6257_v56 }
 0x6b9   : > { %v6260_v22 = vsel %vm887_vm0, %v6201_v21, 0.0  ;;  %v13281_v44 = vmul.f32 %v10452_v47, %v13169_v45  ;;  %v6204_v41 = vadd.f32 %v13290_v30, %v13277_v40 }
 0x6ba   : > { %v6261_v53 = vadd.f32 %v6260_v22, %v6259_v61 }
 0x6bb   : > { %v6203_v19 = vadd.f32 %v13284_v2, %v13281_v44  ;;  %v6266_v45 = vsel %vm887_vm0, %v6204_v41, 0.0  ;;  %v13755_v41 = vmov 0.0|0.0  }
 0x6bc   : > { %v6263_v42 = vadd.f32 %v6262_v26, %v6261_v53  ;;  %v10217_v26 = vpack.c.bf16 %v6437_v46, %v6436_v18  ;;  %v6283_v46 = vld [vmem:[%s740_s29] sm:$0x1] }
 0x6bd   : > { %v6264_v56 = vsel %vm887_vm0, %v6203_v19, 0.0  ;;  %v13754_v19 = vmov 0.0  }
 0x6be   : > { %v6265_v21 = vadd.f32 %v6264_v56, %v6263_v42  ;;  %v6438_v42 = vld [vmem:[%s753_s17 + $0x10] sm:$0xff]  ;;  %v6439_v56 = vld [vmem:[%s753_s17 + $0x18] sm:$0xff] }
 0x6c0   : > { %v6267_v47 = vadd.f32 %v6266_v45, %v6265_v21  ;;  %v10220_v21 = vpack.c.bf16 %v6439_v56, %v6438_v42 }
 0x6c2   : > { %v6268_v48 = vrot.slane %v6267_v47, 4 }
 0x6c4   : > { %v6269_v61 = vadd.f32 %v6268_v48, %v6267_v47  ;;  %v6362_v47 = vld [vmem:[%s748_s30] sm:$0x1] }
 0x6c5   : > { %v6440_v48 = vld [vmem:[%s756_s18] sm:$0x1] }
 0x6c6   : > { %v6270_v22 = vrot.slane %v6269_v61, 2 }
 0x6c8   : > { %v6271_v50 = vadd.f32 %v6270_v22, %v6269_v61 }
 0x6ca   : > { %v6272_v2 = vrot.slane %v6271_v50, 1 }
 0x6cc   : > { %v6273_v30 = vadd.f32 %v6272_v2, %v6271_v50 }
 0x6ce   : > { %v6274_v53 = vmul.f32 0.00390625, %v6273_v30 }
 0x6d0   : > { %9998 = vmatmul.mubr.msk.f32.vlgmr.msra.gmra.mrb[224].mxu1 %vm887_vm0, %v6274_v53 }
 0x6d1   : > { %10218 = vmatpush3.bf16.msra.mxu1 %v10217_v26  ;;  %10019 = vmatprep.mubr.msk.f32.mxu1 %vm10532_vm3, %v13754_v19 }
 0x6d2   : > { %10219 = vmatprep.subr.bf16.mxu1 %v13755_v41 }
 0x6d5   : > { %10221 = vmatpush3.bf16.msra.mxu1 %v10220_v21 }
 0x7a3   : > { %v6353_v30 = vpop.f32.mrb[224].mxu1 }
 0x7a4   : > { %v6354_v18 = vadd.f32 %v6353_v30, %v6283_v46  ;;  %v9999_v2 = vpop.f32.mrb[225].mxu1 }
 0x7a6   : > { %v6357_v45 = vmax.f32 %v6354_v18, 0.0 }
 0x7a8   : > { %10009 = vmatmul.mubr.msk.f32.vlgmr.msra.gmra.mrb[192].mxu0 %vm1481_vm1, %v6357_v45  ;;  %10020 = vmatmul.mubr.msk.f32.vlgmr.msra.gmra.mrb[226].mxu1 %vm1481_vm1, %v6357_v45  ;;  %v6521_v45 = vlaneseq }
 0x7aa   : > { %v6522_v3 = vshrl.u32 %v6521_v45, 7 }
 0x7ac   : > { %v6523_v20 = vsub.s32 0, %v6522_v3 }
 0x87b   : > { %v6432_v61 = vpop.f32.mrb[192].mxu0  ;;  %v6507_v22 = vpop.f32.mrb[226].mxu1 }
 0x87c   : > { %v6433_v50 = vadd.f32 %v6432_v61, %v6362_v47  ;;  %v6508_v26 = vadd.f32 %v6507_v22, %v6440_v48  ;;  %v10010_v53 = vpop.f32.mrb[193].mxu0  ;;  %v10021_v19 = vpop.f32.mrb[227].mxu1 }
 0x87e   : > { %v6511_v41 = vmax.f32 %v6433_v50, %v6508_v26 }
 0x880   : > { %v6512_v42 = vsub.f32 %v6433_v50, %v6511_v41  ;;  %v6515_v56 = vsub.f32 %v6508_v26, %v6511_v41 }
 0x882   : > { %v6513_v21 = vmul.f32 1.442695, %v6512_v42  ;;  %v6516_v46 = vmul.f32 1.442695, %v6515_v56 }
 0x884   : > { %10453 = vpow2.f32 %v6513_v21  ;;  %v13771_v21 = vld [vmem:[#allocation6_spill] sm:$0xff] }
 0x885   : > { %10455 = vpow2.f32 %v6516_v46 }
 0x88e   : > { %v10454_v30 = vpop.eup %10453 }
 0x88f   : > { %v10456_v18 = vpop.eup %10455 }
 0x890   : > { %v6518_v2 = vadd.f32 %v10456_v18, %v10454_v30 }
 0x892   : > { %10457 = vrcp.f32 %v6518_v2  ;;  %v13773_v2 = vld [vmem:[#allocation13_spill] sm:$0xff] }
 0x89c   : > { %v10458_v36 = vpop.eup %10457 }
 0x89d   : > { %v6520_v5 = vmul.f32 %v10458_v36, %v10454_v30  ;;  %v6557_v47 = vmul.f32 %v10458_v36, %v10456_v18  ;;  %v13772_v30 = vld [vmem:[#allocation12_spill] sm:$0xff] }
 0x89f   : > { %v6524_v48 = vrot.slane %v6520_v5, %v6523_v20  ;;  %v13318_v61 = vrot.slane %v6557_v47, %v6523_v20  ;;  %v13766_v20 = vld [vmem:[#allocation9_spill] sm:$0xff]  ;;  %v13774_v47 = vld [vmem:[#allocation7_spill] sm:$0xff] }
 0x8a1   : > { %v13321_v22 = vmul.f32 %v6524_v48, %v12911_v31  ;;  %v13324_v50 = vmul.f32 %v6524_v48, %v12904_v27  ;;  %v13327_v26 = vmul.f32 %v6524_v48, %v12939_v39  ;;  %v13330_v53 = vmul.f32 %v6524_v48, %v12933_v11 }
 0x8a2   : > { %v13333_v3 = vmul.f32 %v6524_v48, %v12964_v17  ;;  %v13336_v36 = vmul.f32 %v6524_v48, %v12957_v54  ;;  %v13339_v5 = vmul.f32 %v6524_v48, %v12996_v63  ;;  %v13342_v31 = vmul.f32 %v6524_v48, %v12984_v32 }
 0x8a3   : > { %v13345_v27 = vmul.f32 %v6524_v48, %v13029_v0  ;;  %v13348_v39 = vmul.f32 %v6524_v48, %v13004_v7  ;;  %v13351_v11 = vmul.f32 %v6524_v48, %v13053_v57  ;;  %v13354_v17 = vmul.f32 %v6524_v48, %v13034_v13 }
 0x8a4   : > { %v13357_v54 = vmul.f32 %v6524_v48, %v13073_v8  ;;  %v13360_v63 = vmul.f32 %v6524_v48, %v13059_v24  ;;  %v13363_v32 = vmul.f32 %v6524_v48, %v13100_v9  ;;  %v13366_v0 = vmul.f32 %v6524_v48, %v13095_v23 }
 0x8a5   : > { %v13369_v7 = vmul.f32 %v6524_v48, %v13139_v34  ;;  %v13372_v57 = vmul.f32 %v6524_v48, %v13127_v60  ;;  %v13375_v13 = vmul.f32 %v6524_v48, %v13173_v10  ;;  %v13378_v8 = vmul.f32 %v6524_v48, %v13164_v14 }
 0x8a6   : > { %v13381_v24 = vmul.f32 %v6524_v48, %v13191_v35  ;;  %v13384_v9 = vmul.f32 %v6524_v48, %v13187_v62  ;;  %v13387_v23 = vmul.f32 %v6524_v48, %v13210_v59  ;;  %v13390_v34 = vmul.f32 %v6524_v48, %v13206_v55 }
 0x8a7   : > { %v13393_v60 = vmul.f32 %v6524_v48, %v13227_v51  ;;  %v13396_v10 = vmul.f32 %v6524_v48, %v13223_v4  ;;  %v13399_v14 = vmul.f32 %v6524_v48, %v13246_v1  ;;  %v13402_v35 = vmul.f32 %v6524_v48, %v13242_v25  ;;  %v13767_v25 = vld [vmem:[#allocation10_spill] sm:$0xff] }
 0x8a8   : > { %13756 = vst [vmem:[#allocation25_spill] sm:$0xff] %v13387_v23  ;;  %13757 = vst [vmem:[#allocation26_spill] sm:$0xff] %v13390_v34  ;;  %v13405_v62 = vmul.f32 %v6524_v48, %v13262_v12  ;;  %v13408_v59 = vmul.f32 %v6524_v48, %v13259_v29  ;;  %v13411_v55 = vmul.f32 %v6524_v48, %v13281_v44  ;;  %v13768_v12 = vld [vmem:[#allocation4_spill] sm:$0xff]  ;;  %v13769_v29 = vld [vmem:[#allocation11_spill] sm:$0xff] }
 0x8a9   : > { %13758 = vst [vmem:[#allocation27_spill] sm:$0xff] %v13393_v60  ;;  %13759 = vst [vmem:[#allocation28_spill] sm:$0xff] %v13396_v10  ;;  %v13414_v51 = vmul.f32 %v6524_v48, %v13277_v40  ;;  %v6562_v4 = vmul.f32 %v12924_v52, %v13318_v61  ;;  %v6563_v1 = vmul.f32 %v13766_v20, %v13318_v61  ;;  %v13770_v44 = vld [vmem:[#allocation5_spill] sm:$0xff] }
 0x8aa   : > { %13760 = vst [vmem:[#allocation29_spill] sm:$0xff] %v13399_v14  ;;  %13761 = vst [vmem:[#allocation30_spill] sm:$0xff] %v13402_v35  ;;  %v6564_v19 = vmul.f32 %v13767_v25, %v13318_v61  ;;  %v6565_v41 = vmul.f32 %v13768_v12, %v13318_v61  ;;  %v6566_v42 = vmul.f32 %v13769_v29, %v13318_v61  ;;  %v13776_v12 = vld [vmem:[#allocation8_spill] sm:$0xff] }
 0x8ab   : > { %13762 = vst [vmem:[#allocation31_spill] sm:$0xff] %v13405_v62  ;;  %13763 = vst [vmem:[#allocation32_spill] sm:$0xff] %v13408_v59  ;;  %v6567_v56 = vmul.f32 %v13770_v44, %v13318_v61  ;;  %v6568_v40 = vmul.f32 %v13007_v38, %v13318_v61  ;;  %v6569_v52 = vmul.f32 %v12989_v58, %v13318_v61  ;;  %v13775_v38 = vld [vmem:[#allocation14_spill] sm:$0xff] }
 0x8ac   : > { %13764 = vst [vmem:[#allocation33_spill] sm:$0xff] %v13411_v55  ;;  %13765 = vst [vmem:[#allocation34_spill] sm:$0xff] %v13414_v51  ;;  %v6570_v46 = vmul.f32 %v13771_v21, %v13318_v61  ;;  %v6571_v18 = vmul.f32 %v13772_v30, %v13318_v61  ;;  %v6572_v45 = vmul.f32 %v13773_v2, %v13318_v61 }
 0x8ad   : > { %v6573_v48 = vmul.f32 %v13774_v47, %v13318_v61  ;;  %v6574_v20 = vmul.f32 %v13083_v37, %v13318_v61  ;;  %v6575_v25 = vmul.f32 %v13775_v38, %v13318_v61  ;;  %v6576_v58 = vmul.f32 %v13115_v43, %v13318_v61  ;;  %v13777_v47 = vld [vmem:[#allocation16_spill] sm:$0xff] }
 0x8ae   : > { %v6577_v29 = vmul.f32 %v13776_v12, %v13318_v61  ;;  %v6578_v44 = vmul.f32 %v13146_v49, %v13318_v61  ;;  %v6579_v21 = vmul.f32 %v13157_v6, %v13318_v61  ;;  %v6580_v30 = vmul.f32 %v13182_v15, %v13318_v61  ;;  %v13778_v49 = vld [vmem:[#allocation15_spill] sm:$0xff]  ;;  %v13779_v6 = vld [vmem:[#allocation17_spill] sm:$0xff]  ;;  %v13780_v15 = vld [vmem:[#allocation18_spill] sm:$0xff] }
 0x8af   : > { %v6581_v37 = vmul.f32 %v13177_v28, %v13318_v61  ;;  %v6582_v2 = vmul.f32 %v13200_v16, %v13318_v61  ;;  %v6583_v43 = vmul.f32 %v13195_v33, %v13318_v61  ;;  %v6584_v38 = vmul.f32 %v13777_v47, %v13318_v61  ;;  %v13781_v28 = vld [vmem:[#allocation20_spill] sm:$0xff]  ;;  %v13782_v16 = vld [vmem:[#allocation19_spill] sm:$0xff]  ;;  %v13783_v33 = vld [vmem:[#allocation21_spill] sm:$0xff] }
 0x8b0   : > { %v6585_v12 = vmul.f32 %v13778_v49, %v13318_v61  ;;  %v6586_v51 = vmul.f32 %v13779_v6, %v13318_v61  ;;  %v6587_v55 = vmul.f32 %v13780_v15, %v13318_v61  ;;  %v6588_v59 = vmul.f32 %v13781_v28, %v13318_v61  ;;  %v13784_v47 = vld [vmem:[#allocation22_spill] sm:$0xff]  ;;  %v13785_v49 = vld [vmem:[#allocation23_spill] sm:$0xff]  ;;  %v13786_v6 = vld [vmem:[#allocation24_spill] sm:$0xff] }
 0x8b1   : > { %v6589_v62 = vmul.f32 %v13782_v16, %v13318_v61  ;;  %v6590_v35 = vmul.f32 %v13783_v33, %v13318_v61  ;;  %v6591_v14 = vmul.f32 %v13784_v47, %v13318_v61  ;;  %v6592_v10 = vmul.f32 %v13785_v49, %v13318_v61 }
 0x8b2   : > { %v6593_v60 = vmul.f32 %v13786_v6, %v13318_v61  ;;  %v6594_v15 = vadd.f32 %v6562_v4, %v13321_v22  ;;  %v6595_v28 = vadd.f32 %v6563_v1, %v13324_v50  ;;  %v6596_v16 = vadd.f32 %v6564_v19, %v13327_v26  ;;  %v13789_v4 = vld [vmem:[#allocation27_spill] sm:$0xff] }
 0x8b3   : > { %v6597_v34 = vadd.f32 %v6565_v41, %v13330_v53  ;;  %v6598_v33 = vadd.f32 %v6566_v42, %v13333_v3  ;;  %v6599_v47 = vadd.f32 %v6567_v56, %v13336_v36  ;;  %v6600_v23 = vadd.f32 %v6568_v40, %v13339_v5  ;;  %v13794_v42 = vld [vmem:[#allocation32_spill] sm:$0xff] }
 0x8b4   : > { %v6601_v49 = vadd.f32 %v6569_v52, %v13342_v31  ;;  %v6602_v61 = vadd.f32 %v6570_v46, %v13345_v27  ;;  %v6603_v6 = vadd.f32 %v6571_v18, %v13348_v39  ;;  %v6604_v22 = vadd.f32 %v6572_v45, %v13351_v11 }
 0x8b5   : > { %v6605_v50 = vadd.f32 %v6573_v48, %v13354_v17  ;;  %v6606_v26 = vadd.f32 %v6574_v20, %v13357_v54  ;;  %v6607_v53 = vadd.f32 %v6575_v25, %v13360_v63  ;;  %v6608_v3 = vadd.f32 %v6576_v58, %v13363_v32  ;;  %v13787_v54 = vld [vmem:[#allocation25_spill] sm:$0xff]  ;;  %v13788_v32 = vld [vmem:[#allocation26_spill] sm:$0xff] }
 0x8b6   : > { %v6609_v36 = vadd.f32 %v6577_v29, %v13366_v0  ;;  %v6610_v5 = vadd.f32 %v6578_v44, %v13369_v7  ;;  %v6611_v31 = vadd.f32 %v6579_v21, %v13372_v57  ;;  %v6612_v27 = vadd.f32 %v6580_v30, %v13375_v13  ;;  %v13790_v57 = vld [vmem:[#allocation28_spill] sm:$0xff]  ;;  %v13791_v13 = vld [vmem:[#allocation29_spill] sm:$0xff] }
 0x8b7   : > { %v6613_v39 = vadd.f32 %v6581_v37, %v13378_v8  ;;  %v13502_v11 = vadd.f32 %v6582_v2, %v13381_v24  ;;  %v13505_v17 = vadd.f32 %v6583_v43, %v13384_v9  ;;  %v13508_v63 = vadd.f32 %v6584_v38, %v13787_v54  ;;  %v13792_v24 = vld [vmem:[#allocation30_spill] sm:$0xff]  ;;  %v13793_v9 = vld [vmem:[#allocation31_spill] sm:$0xff] }
 0x8b8   : > { %v13511_v0 = vadd.f32 %v6585_v12, %v13788_v32  ;;  %v13514_v7 = vadd.f32 %v6586_v51, %v13789_v4  ;;  %v13517_v1 = vadd.f32 %v6587_v55, %v13790_v57  ;;  %v13520_v8 = vadd.f32 %v6588_v59, %v13791_v13  ;;  %v13795_v55 = vld [vmem:[#allocation33_spill] sm:$0xff]  ;;  %v13796_v59 = vld [vmem:[#allocation34_spill] sm:$0xff] }
 0x8b9   : > { %v13523_v19 = vadd.f32 %v6589_v62, %v13792_v24  ;;  %v13531_v41 = vadd.f32 %v6590_v35, %v13793_v9  ;;  %v13534_v51 = vadd.f32 %v6591_v14, %v13794_v42  ;;  %v13537_v56 = vadd.f32 %v6592_v10, %v13795_v55 }
 0x8ba   : > { %v13540_v62 = vadd.f32 %v6593_v60, %v13796_v59  ;;  %v7860_v40 = vpack.c.bf16 %v6594_v15, %v6594_v15  ;;  %v7861_v52 = vpack.c.bf16 %v6595_v28, %v6595_v28  ;;  %v7862_v46 = vpack.c.bf16 %v6596_v16, %v6596_v16 }
 0x8bb   : > { %v7863_v18 = vpack.c.bf16 %v6597_v34, %v6597_v34  ;;  %v7864_v45 = vpack.c.bf16 %v6598_v33, %v6598_v33  ;;  %v7865_v35 = vpack.c.bf16 %v6599_v47, %v6599_v47  ;;  %v7866_v48 = vpack.c.bf16 %v6600_v23, %v6600_v23 }
 0x8bc   : > { %v7867_v14 = vpack.c.bf16 %v6601_v49, %v6601_v49  ;;  %v7868_v20 = vpack.c.bf16 %v6602_v61, %v6602_v61  ;;  %v7869_v10 = vpack.c.bf16 %v6603_v6, %v6603_v6  ;;  %v7870_v25 = vpack.c.bf16 %v6604_v22, %v6604_v22  ;;  %6755 = vst.msk [vmem:[%s13528_s26] sm:$0xf] %vm6754_vm4, %v7860_v40 }
 0x8bd   : > { %v7871_v58 = vpack.c.bf16 %v6605_v50, %v6605_v50  ;;  %6756 = vst.msk [vmem:[%s13528_s26 + $0x4] sm:$0xf] %vm6754_vm4, %v7861_v52  ;;  %6757 = vst.msk [vmem:[%s13528_s26 + $0x8] sm:$0xf] %vm6754_vm4, %v7862_v46  ;;  %v7872_v23 = vpack.c.bf16 %v6606_v26, %v6606_v26  ;;  %v7873_v34 = vpack.c.bf16 %v6607_v53, %v6607_v53 }
 0x8be   : > { %6758 = vst.msk [vmem:[%s13528_s26 + $0xc] sm:$0xf] %vm6754_vm4, %v7863_v18  ;;  %v7874_v60 = vpack.c.bf16 %v6608_v3, %v6608_v3  ;;  %v7875_v29 = vpack.c.bf16 %v6609_v36, %v6609_v36  ;;  %6759 = vst.msk [vmem:[%s13528_s26 + $0x10] sm:$0xf] %vm6754_vm4, %v7864_v45  ;;  %v7876_v44 = vpack.c.bf16 %v6610_v5, %v6610_v5 }
 0x8bf   : > { %6760 = vst.msk [vmem:[%s13528_s26 + $0x14] sm:$0xf] %vm6754_vm4, %v7865_v35  ;;  %6761 = vst.msk [vmem:[%s13528_s26 + $0x18] sm:$0xf] %vm6754_vm4, %v7866_v48  ;;  %v7877_v21 = vpack.c.bf16 %v6611_v31, %v6611_v31  ;;  %v7878_v30 = vpack.c.bf16 %v6612_v27, %v6612_v27  ;;  %v7879_v37 = vpack.c.bf16 %v6613_v39, %v6613_v39 }
 0x8c0   : > { %6762 = vst.msk [vmem:[%s13528_s26 + $0x1c] sm:$0xf] %vm6754_vm4, %v7867_v14  ;;  %6763 = vst.msk [vmem:[%s13528_s26 + $0x20] sm:$0xf] %vm6754_vm4, %v7868_v20  ;;  %v7880_v2 = vpack.c.bf16 %v13502_v11, %v13502_v11  ;;  %v7881_v43 = vpack.c.bf16 %v13505_v17, %v13505_v17  ;;  %v7882_v38 = vpack.c.bf16 %v13508_v63, %v13508_v63 }
 0x8c1   : > { %6764 = vst.msk [vmem:[%s13528_s26 + $0x24] sm:$0xf] %vm6754_vm4, %v7869_v10  ;;  %6765 = vst.msk [vmem:[%s13528_s26 + $0x28] sm:$0xf] %vm6754_vm4, %v7870_v25  ;;  %v7883_v12 = vpack.c.bf16 %v13511_v0, %v13511_v0  ;;  %v7884_v15 = vpack.c.bf16 %v13514_v7, %v13514_v7  ;;  %v7885_v28 = vpack.c.bf16 %v13517_v1, %v13517_v1 }
 0x8c2   : > { %6766 = vst.msk [vmem:[%s13528_s26 + $0x2c] sm:$0xf] %vm6754_vm4, %v7871_v58  ;;  %6767 = vst.msk [vmem:[%s13528_s26 + $0x30] sm:$0xf] %vm6754_vm4, %v7872_v23  ;;  %v7886_v16 = vpack.c.bf16 %v13520_v8, %v13520_v8  ;;  %v7887_v33 = vpack.c.bf16 %v13523_v19, %v13523_v19  ;;  %v7888_v47 = vpack.c.bf16 %v13531_v41, %v13531_v41 }
 0x8c3   : > { %6768 = vst.msk [vmem:[%s13528_s26 + $0x34] sm:$0xf] %vm6754_vm4, %v7873_v34  ;;  %6769 = vst.msk [vmem:[%s13528_s26 + $0x38] sm:$0xf] %vm6754_vm4, %v7874_v60  ;;  %v7889_v49 = vpack.c.bf16 %v13534_v51, %v13534_v51  ;;  %v7890_v61 = vpack.c.bf16 %v13537_v56, %v13537_v56  ;;  %v7891_v6 = vpack.c.bf16 %v13540_v62, %v13540_v62 }
 0x8c4   : > { %6770 = vst.msk [vmem:[%s13528_s26 + $0x3c] sm:$0xf] %vm6754_vm4, %v7875_v29  ;;  %6771 = vst.msk [vmem:[%s13528_s26 + $0x40] sm:$0xf] %vm6754_vm4, %v7876_v44 }
 0x8c5   : > { %6772 = vst.msk [vmem:[%s13528_s26 + $0x44] sm:$0xf] %vm6754_vm4, %v7877_v21  ;;  %6773 = vst.msk [vmem:[%s13528_s26 + $0x48] sm:$0xf] %vm6754_vm4, %v7878_v30 }
 0x8c6   : > { %6774 = vst.msk [vmem:[%s13528_s26 + $0x4c] sm:$0xf] %vm6754_vm4, %v7879_v37  ;;  %6775 = vst.msk [vmem:[%s13528_s26 + $0x50] sm:$0xf] %vm6754_vm4, %v7880_v2 }
 0x8c7   : > { %6776 = vst.msk [vmem:[%s13528_s26 + $0x54] sm:$0xf] %vm6754_vm4, %v7881_v43  ;;  %6777 = vst.msk [vmem:[%s13528_s26 + $0x58] sm:$0xf] %vm6754_vm4, %v7882_v38 }
 0x8c8   : > { %6778 = vst.msk [vmem:[%s13528_s26 + $0x5c] sm:$0xf] %vm6754_vm4, %v7883_v12  ;;  %6779 = vst.msk [vmem:[%s13528_s26 + $0x60] sm:$0xf] %vm6754_vm4, %v7884_v15 }
 0x8c9   : > { %6780 = vst.msk [vmem:[%s13528_s26 + $0x64] sm:$0xf] %vm6754_vm4, %v7885_v28  ;;  %6781 = vst.msk [vmem:[%s13528_s26 + $0x68] sm:$0xf] %vm6754_vm4, %v7886_v16 }
 0x8ca   : > { %6782 = vst.msk [vmem:[%s13528_s26 + $0x6c] sm:$0xf] %vm6754_vm4, %v7887_v33  ;;  %6783 = vst.msk [vmem:[%s13528_s26 + $0x70] sm:$0xf] %vm6754_vm4, %v7888_v47 }
 0x8cb   : > { %6784 = vst.msk [vmem:[%s13528_s26 + $0x74] sm:$0xf] %vm6754_vm4, %v7889_v49  ;;  %6785 = vst.msk [vmem:[%s13528_s26 + $0x78] sm:$0xf] %vm6754_vm4, %v7890_v61 }
 0x8cc   : > { %6786 = vst.msk [vmem:[%s13528_s26 + $0x7c] sm:$0xf] %vm6754_vm4, %v7891_v6 }
 0x8cd PF: > { %s25_s22 = sadd.s32 1, %s10529_s22   ;;  %s13797_s0 = sld [smem:[#allocation2_spill]] }
 0x8ce   : > { %p22_p9 = scmp.ge.s32.totalorder %s25_s22, 10   ;;  %s13798_s17 = sld [smem:[#allocation3_spill]] }
 0x8cf   : > { %s13799_s18 = smov %s10521_s20  ;;  %s13800_s19 = smov %s10525_s21 }
 0x8d0   :  { %24 = sbr.rel (!%p22_p9) target bundleno = 4 (0x4), region = 162 }
 0x8d3   : > { %s13801_s20 = smov %s13797_s0 }
 0x8d4   : > { %s13802_s21 = smov %s13798_s17 }

</bundles_post_ra>
